<compile_context>
chip_gen: v7x
topology: tpu7x:2x2x1
jax: 0.10.0
libtpu: 0.0.40
codegen_flags: <defaults>
</compile_context>

<pallas_src>
import functools

import numpy as np
import jax
import jax.numpy as jnp
from jax.experimental import pallas as pl
from jax.experimental.pallas import tpu as pltpu

BBLK = 8   # images per grid step


# --------------------------------------------------------------------------
# Fused kernel: whole forward pass for a block of BBLK images
# --------------------------------------------------------------------------

def _cnn_kernel(x_ref, t1_ref, b1_ref, t2_ref, b2_ref, w3_ref, b3_ref,
                w4_ref, b4_ref, w5_ref, b5_ref, o_ref, p2f_ref, *, bblk):
    # x_ref : [bblk, 32, 128] f32   image rows, lane = w*C + c (zero-padded to 128)
    # t1/t2 : [5, 128, 256]  bf16   row-Toeplitz conv weights (see pack_params)
    # b1/b2 : [1, 128]       f32    per-lane conv biases in the *pooled* lane layout
    # w3    : [640, 128]     bf16   conv3 folded to a single K=640 GEMM
    # w4/w5 : [128,128]/[128,NC] bf16   fc1 / fc2
    # p2f   : [bblk, 640]    f32    scratch: pooled conv2 output, flattened per image
    for b in range(bblk):
        xi = x_ref[b]                                               # [32, 128] f32

        # ---- conv1: 5 row-Toeplitz GEMMs; output lane = (ow%2)*128 + (ow//2)*8 + oc
        acc1 = jnp.dot(xi[0:28, :].astype(jnp.bfloat16), t1_ref[0],
                       preferred_element_type=jnp.float32)          # [28, 256]
        for di in range(1, 5):
            acc1 = acc1 + jnp.dot(xi[di:di + 28, :].astype(jnp.bfloat16), t1_ref[di],
                                  preferred_element_type=jnp.float32)
        # ---- pool1 (2x2) + bias + ReLU (bias/ReLU commute with max)
        h1 = jnp.maximum(acc1[:, 0:128], acc1[:, 128:256])          # horizontal pairs
        v1 = jnp.maximum(h1[0:27, :], h1[1:28, :])                  # vertical pairs
        p1 = jnp.maximum(v1 + b1_ref[...], 0.0)                     # [27,128] f32
        # valid pooled rows are the even rows; selection is folded into conv2's offsets

        # ---- conv2: 5 row-Toeplitz GEMMs over the pooled map
        acc2 = jnp.dot(p1[0:19, :].astype(jnp.bfloat16), t2_ref[0],
                       preferred_element_type=jnp.float32)          # [19, 256]
        for di in range(1, 5):
            acc2 = acc2 + jnp.dot(p1[2 * di:2 * di + 19, :].astype(jnp.bfloat16),
                                  t2_ref[di], preferred_element_type=jnp.float32)
        # ---- pool2 (2x2) + bias + ReLU
        h2 = jnp.maximum(acc2[:, 0:128], acc2[:, 128:256])          # [19,128]
        v2 = jnp.maximum(h2[0:17, :], h2[2:19, :])                  # [17,128]
        # valid rows are 0,4,8,12,16 (h3 = row/4); pack them into the flat tail input
        for r in range(5):
            row = jnp.maximum(v2[4 * r:4 * r + 1, :] + b2_ref[...], 0.0)   # [1,128]
            p2f_ref[b:b + 1, r * 128:(r + 1) * 128] = row

    # ---- fused tail (batched over the block): conv3 -> fc1 -> fc2 -> log_softmax
    pf = p2f_ref[...].astype(jnp.bfloat16)                          # [bblk, 640]
    h = jnp.dot(pf, w3_ref[...], preferred_element_type=jnp.float32) + b3_ref[...]
    h = jnp.maximum(h, 0.0).astype(jnp.bfloat16)                    # conv3 + ReLU (120 real)

    h = jnp.dot(h, w4_ref[...], preferred_element_type=jnp.float32) + b4_ref[...]
    h = jnp.maximum(h, 0.0).astype(jnp.bfloat16)                    # fc1 + ReLU (84 real)
    # TODO(synk): nn.Dropout(p=0.5) applied as identity (eval-mode semantics);
    #             training-mode RNG masking + 1/(1-p) scaling not implemented.

    logits = jnp.dot(h, w5_ref[...], preferred_element_type=jnp.float32) + b5_ref[...]
    m = jnp.max(logits, axis=-1, keepdims=True)
    s = logits - m
    lse = jnp.log(jnp.sum(jnp.exp(s), axis=-1, keepdims=True))
    o_ref[...] = (s - lse).astype(o_ref.dtype)


# --------------------------------------------------------------------------
# Forward wrapper
# --------------------------------------------------------------------------

def cnn_forward(x_nchw, packed):
    B, C = x_nchw.shape[0], x_nchw.shape[1]
    assert x_nchw.shape[2] == 32 and x_nchw.shape[3] == 32, "module implies 32x32 input"
    assert 32 * C <= 128, "n_channels must be <= 4 for the lane-dense row layout"
    n_classes = packed["bfc2"].shape[1]

    # NCHW -> [B, 32 rows, 32*C lanes], zero-pad lanes to 128.
    x = jnp.transpose(x_nchw, (0, 2, 3, 1)).reshape(B, 32, 32 * C).astype(jnp.float32)
    x = jnp.pad(x, ((0, 0), (0, 0), (0, 128 - 32 * C)))
    Bp = ((B + BBLK - 1) // BBLK) * BBLK
    if Bp != B:
        x = jnp.pad(x, ((0, Bp - B), (0, 0), (0, 0)))

    out = pl.pallas_call(
        functools.partial(_cnn_kernel, bblk=BBLK),
        out_shape=jax.ShapeDtypeStruct((Bp, n_classes), jnp.float32),
        grid=(Bp // BBLK,),
        in_specs=[
            pl.BlockSpec((BBLK, 32, 128), lambda i: (i, 0, 0)),     # images
            pl.BlockSpec((5, 128, 256), lambda i: (0, 0, 0)),       # conv1 Toeplitz
            pl.BlockSpec((1, 128), lambda i: (0, 0)),               # conv1 bias (pooled layout)
            pl.BlockSpec((5, 128, 256), lambda i: (0, 0, 0)),       # conv2 Toeplitz
            pl.BlockSpec((1, 128), lambda i: (0, 0)),               # conv2 bias (pooled layout)
            pl.BlockSpec((640, 128), lambda i: (0, 0)),             # conv3 (folded K)
            pl.BlockSpec((1, 128), lambda i: (0, 0)),               # conv3 bias
            pl.BlockSpec((128, 128), lambda i: (0, 0)),             # fc1
            pl.BlockSpec((1, 128), lambda i: (0, 0)),               # fc1 bias
            pl.BlockSpec((128, n_classes), lambda i: (0, 0)),       # fc2
            pl.BlockSpec((1, n_classes), lambda i: (0, 0)),         # fc2 bias
        ],
        out_specs=pl.BlockSpec((BBLK, n_classes), lambda i: (i, 0)),
        scratch_shapes=[pltpu.VMEM((BBLK, 640), jnp.float32)],
        compiler_params=pltpu.CompilerParams(dimension_semantics=("parallel",)),
    )(x, packed["t1"], packed["b1"], packed["t2"], packed["b2"],
      packed["w3f"], packed["b3"], packed["wfc1"], packed["bfc1"],
      packed["wfc2"], packed["bfc2"])
    return out[:B]


# --------------------------------------------------------------------------
# Parameters: canonical (PyTorch-layout) init + host-side packing to kernel layout
# --------------------------------------------------------------------------

def init_params(key, n_channels, n_classes):
    ks = jax.random.split(key, 10)

    def rnd(k, shape, fan_in):
        return jax.random.normal(k, shape, jnp.float32) / np.sqrt(fan_in)

    return {
        "w1": rnd(ks[0], (6, n_channels, 5, 5), 25 * n_channels),
        "b1": rnd(ks[1], (6,), 25 * n_channels),
        "w2": rnd(ks[2], (16, 6, 5, 5), 25 * 6),
        "b2": rnd(ks[3], (16,), 25 * 6),
        "w3": rnd(ks[4], (120, 16, 5, 5), 25 * 16),
        "b3": rnd(ks[5], (120,), 25 * 16),
        "wfc1": rnd(ks[6], (84, 120), 120),
        "bfc1": rnd(ks[7], (84,), 120),
        "wfc2": rnd(ks[8], (n_classes, 84), 84),
        "bfc2": rnd(ks[9], (n_classes,), 84),
    }


def pack_params(p, n_channels, n_classes):
    """Build kernel-layout weights from canonical PyTorch-layout params (host-side)."""
    C = n_channels
    W1 = np.asarray(p["w1"], np.float32)   # [6,  C, 5, 5]
    W2 = np.asarray(p["w2"], np.float32)   # [16, 6, 5, 5]
    W3 = np.asarray(p["w3"], np.float32)   # [120,16, 5, 5]
    Wf1 = np.asarray(p["wfc1"], np.float32)  # [84, 120]
    Wf2 = np.asarray(p["wfc2"], np.float32)  # [n_classes, 84]
    b1 = np.asarray(p["b1"], np.float32)
    b2 = np.asarray(p["b2"], np.float32)
    b3 = np.asarray(p["b3"], np.float32)
    bf1 = np.asarray(p["bfc1"], np.float32)
    bf2 = np.asarray(p["bfc2"], np.float32)

    # conv1 Toeplitz: input lane = w*C + c, output lane = (ow%2)*128 + (ow//2)*8 + oc
    T1 = np.zeros((5, 128, 256), np.float32)
    for di in range(5):
        for ow in range(28):
            lo = (ow % 2) * 128 + (ow // 2) * 8
            for dj in range(5):
                li = (ow + dj) * C
                T1[di, li:li + C, lo:lo + 6] = W1[:, :, di, dj].T          # [C, 6]

    # conv2 Toeplitz: input lane = w2*8 + c, output lane = (ow2%2)*128 + (ow2//2)*16 + oc2
    T2 = np.zeros((5, 128, 256), np.float32)
    for di in range(5):
        for ow in range(10):
            lo = (ow % 2) * 128 + (ow // 2) * 16
            for dj in range(5):
                li = (ow + dj) * 8
                T2[di, li:li + 6, lo:lo + 16] = W2[:, :, di, dj].T         # [6, 16]

    # conv3 as one K=640 GEMM: pf lane = kh*128 + kw*16 + c2
    W3f = np.zeros((640, 128), np.float32)
    for kh in range(5):
        for kw in range(5):
            W3f[kh * 128 + kw * 16: kh * 128 + kw * 16 + 16, :120] = W3[:, :, kh, kw].T

    Wf1m = np.zeros((128, 128), np.float32)
    Wf1m[:120, :84] = Wf1.T
    Wf2m = np.zeros((128, n_classes), np.float32)
    Wf2m[:84, :] = Wf2.T

    # conv biases in the pooled lane layouts
    b1lane = np.zeros((1, 128), np.float32)
    for w2 in range(14):
        b1lane[0, w2 * 8:w2 * 8 + 6] = b1
    b2lane = np.zeros((1, 128), np.float32)
    for w3 in range(5):
        b2lane[0, w3 * 16:w3 * 16 + 16] = b2
    b3p = np.zeros((1, 128), np.float32)
    b3p[0, :120] = b3
    bf1p = np.zeros((1, 128), np.float32)
    bf1p[0, :84] = bf1

    return {
        "t1": jnp.asarray(T1, jnp.bfloat16),
        "b1": jnp.asarray(b1lane, jnp.float32),
        "t2": jnp.asarray(T2, jnp.bfloat16),
        "b2": jnp.asarray(b2lane, jnp.float32),
        "w3f": jnp.asarray(W3f, jnp.bfloat16),
        "b3": jnp.asarray(b3p, jnp.float32),
        "wfc1": jnp.asarray(Wf1m, jnp.bfloat16),
        "bfc1": jnp.asarray(bf1p, jnp.float32),
        "wfc2": jnp.asarray(Wf2m, jnp.bfloat16),
        "bfc2": jnp.asarray(bf2.reshape(1, n_classes), jnp.float32),
    }


if __name__ == "__main__":
    n_channels, n_classes, batch = 3, 10, 2
    key = jax.random.PRNGKey(0)
    kx, kp = jax.random.split(key)
    # 32x32 spatial is implied by the module (conv/pool stack must reduce to 1x1x120).
    x = jax.random.normal(kx, (batch, n_channels, 32, 32), jnp.float32)
    params = init_params(kp, n_channels, n_classes)
    packed = pack_params(params, n_channels, n_classes)

    fwd = jax.jit(cnn_forward)
    out = fwd(x, packed)
    jax.block_until_ready(out)
    assert out.shape == (batch, n_classes)
    print("KERNEL_OK")
</pallas_src>

<mosaic_0001>
module attributes {stable_mosaic.version = 11 : i64} {
  func.func @_cnn_kernel(%arg0: i32, %arg1: memref<8x32x128xf32, #tpu.memory_space<vmem>>, %arg2: memref<5x128x256xbf16, #tpu.memory_space<vmem>>, %arg3: memref<1x128xf32, #tpu.memory_space<vmem>>, %arg4: memref<5x128x256xbf16, #tpu.memory_space<vmem>>, %arg5: memref<1x128xf32, #tpu.memory_space<vmem>>, %arg6: memref<640x128xbf16, #tpu.memory_space<vmem>>, %arg7: memref<1x128xf32, #tpu.memory_space<vmem>>, %arg8: memref<128x128xbf16, #tpu.memory_space<vmem>>, %arg9: memref<1x128xf32, #tpu.memory_space<vmem>>, %arg10: memref<128x10xbf16, #tpu.memory_space<vmem>>, %arg11: memref<1x10xf32, #tpu.memory_space<vmem>>, %arg12: memref<8x10xf32, #tpu.memory_space<vmem>>, %arg13: memref<8x640xf32, #tpu.memory_space<vmem>>) attributes {dimension_semantics = [#tpu.dimension_semantics<parallel>], iteration_bounds = array<i64: 1>, scalar_prefetch = 0 : i64, scratch_operands = 1 : i64, tpu.core_type = #tpu.core_type<tc>, window_params = [{transform_indices = @transform_0, window_bounds = array<i64: 8, 32, 128>}, {pipeline_mode = #tpu.pipeline_mode<synchronous>, transform_indices = @transform_1, window_bounds = array<i64: 5, 128, 256>}, {pipeline_mode = #tpu.pipeline_mode<synchronous>, transform_indices = @transform_2, window_bounds = array<i64: 1, 128>}, {pipeline_mode = #tpu.pipeline_mode<synchronous>, transform_indices = @transform_3, window_bounds = array<i64: 5, 128, 256>}, {pipeline_mode = #tpu.pipeline_mode<synchronous>, transform_indices = @transform_4, window_bounds = array<i64: 1, 128>}, {pipeline_mode = #tpu.pipeline_mode<synchronous>, transform_indices = @transform_5, window_bounds = array<i64: 640, 128>}, {pipeline_mode = #tpu.pipeline_mode<synchronous>, transform_indices = @transform_6, window_bounds = array<i64: 1, 128>}, {pipeline_mode = #tpu.pipeline_mode<synchronous>, transform_indices = @transform_7, window_bounds = array<i64: 128, 128>}, {pipeline_mode = #tpu.pipeline_mode<synchronous>, transform_indices = @transform_8, window_bounds = array<i64: 1, 128>}, {pipeline_mode = #tpu.pipeline_mode<synchronous>, transform_indices = @transform_9, window_bounds = array<i64: 128, 10>}, {pipeline_mode = #tpu.pipeline_mode<synchronous>, transform_indices = @transform_10, window_bounds = array<i64: 1, 10>}, {transform_indices = @transform_11, window_bounds = array<i64: 8, 10>}]} {
    %c0 = arith.constant 0 : index
    %c0_0 = arith.constant 0 : index
    %c0_1 = arith.constant 0 : index
    %0 = vector.load %arg1[%c0, %c0_0, %c0_1] : memref<8x32x128xf32, #tpu.memory_space<vmem>>, vector<1x32x128xf32>
    %1 = vector.shape_cast %0 : vector<1x32x128xf32> to vector<32x128xf32>
    %2 = vector.extract_strided_slice %1 {offsets = [0, 0], sizes = [28, 128], strides = [1, 1]} : vector<32x128xf32> to vector<28x128xf32>
    %3 = arith.truncf %2 : vector<28x128xf32> to vector<28x128xbf16>
    %c0_2 = arith.constant 0 : index
    %c0_3 = arith.constant 0 : index
    %c0_4 = arith.constant 0 : index
    %4 = vector.load %arg2[%c0_2, %c0_3, %c0_4] : memref<5x128x256xbf16, #tpu.memory_space<vmem>>, vector<1x128x256xbf16>
    %5 = vector.shape_cast %4 : vector<1x128x256xbf16> to vector<128x256xbf16>
    %cst = arith.constant dense<0.000000e+00> : vector<28x256xf32>
    %6 = tpu.matmul %3, %5, %cst {dimension_numbers = #tpu.dot_dimension_numbers<[1], [0], [0], [1], [0, 0, 1, 1], [], []>} : vector<28x128xbf16>, vector<128x256xbf16>, vector<28x256xf32> -> vector<28x256xf32>
    %7 = vector.extract_strided_slice %1 {offsets = [1, 0], sizes = [28, 128], strides = [1, 1]} : vector<32x128xf32> to vector<28x128xf32>
    %8 = arith.truncf %7 : vector<28x128xf32> to vector<28x128xbf16>
    %c1 = arith.constant 1 : index
    %c0_5 = arith.constant 0 : index
    %c0_6 = arith.constant 0 : index
    %9 = vector.load %arg2[%c1, %c0_5, %c0_6] : memref<5x128x256xbf16, #tpu.memory_space<vmem>>, vector<1x128x256xbf16>
    %10 = vector.shape_cast %9 : vector<1x128x256xbf16> to vector<128x256xbf16>
    %cst_7 = arith.constant dense<0.000000e+00> : vector<28x256xf32>
    %11 = tpu.matmul %8, %10, %cst_7 {dimension_numbers = #tpu.dot_dimension_numbers<[1], [0], [0], [1], [0, 0, 1, 1], [], []>} : vector<28x128xbf16>, vector<128x256xbf16>, vector<28x256xf32> -> vector<28x256xf32>
    %12 = arith.addf %6, %11 : vector<28x256xf32>
    %13 = vector.extract_strided_slice %1 {offsets = [2, 0], sizes = [28, 128], strides = [1, 1]} : vector<32x128xf32> to vector<28x128xf32>
    %14 = arith.truncf %13 : vector<28x128xf32> to vector<28x128xbf16>
    %c2 = arith.constant 2 : index
    %c0_8 = arith.constant 0 : index
    %c0_9 = arith.constant 0 : index
    %15 = vector.load %arg2[%c2, %c0_8, %c0_9] : memref<5x128x256xbf16, #tpu.memory_space<vmem>>, vector<1x128x256xbf16>
    %16 = vector.shape_cast %15 : vector<1x128x256xbf16> to vector<128x256xbf16>
    %cst_10 = arith.constant dense<0.000000e+00> : vector<28x256xf32>
    %17 = tpu.matmul %14, %16, %cst_10 {dimension_numbers = #tpu.dot_dimension_numbers<[1], [0], [0], [1], [0, 0, 1, 1], [], []>} : vector<28x128xbf16>, vector<128x256xbf16>, vector<28x256xf32> -> vector<28x256xf32>
    %18 = arith.addf %12, %17 : vector<28x256xf32>
    %19 = vector.extract_strided_slice %1 {offsets = [3, 0], sizes = [28, 128], strides = [1, 1]} : vector<32x128xf32> to vector<28x128xf32>
    %20 = arith.truncf %19 : vector<28x128xf32> to vector<28x128xbf16>
    %c3 = arith.constant 3 : index
    %c0_11 = arith.constant 0 : index
    %c0_12 = arith.constant 0 : index
    %21 = vector.load %arg2[%c3, %c0_11, %c0_12] : memref<5x128x256xbf16, #tpu.memory_space<vmem>>, vector<1x128x256xbf16>
    %22 = vector.shape_cast %21 : vector<1x128x256xbf16> to vector<128x256xbf16>
    %cst_13 = arith.constant dense<0.000000e+00> : vector<28x256xf32>
    %23 = tpu.matmul %20, %22, %cst_13 {dimension_numbers = #tpu.dot_dimension_numbers<[1], [0], [0], [1], [0, 0, 1, 1], [], []>} : vector<28x128xbf16>, vector<128x256xbf16>, vector<28x256xf32> -> vector<28x256xf32>
    %24 = arith.addf %18, %23 : vector<28x256xf32>
    %25 = vector.extract_strided_slice %1 {offsets = [4, 0], sizes = [28, 128], strides = [1, 1]} : vector<32x128xf32> to vector<28x128xf32>
    %26 = arith.truncf %25 : vector<28x128xf32> to vector<28x128xbf16>
    %c4 = arith.constant 4 : index
    %c0_14 = arith.constant 0 : index
    %c0_15 = arith.constant 0 : index
    %27 = vector.load %arg2[%c4, %c0_14, %c0_15] : memref<5x128x256xbf16, #tpu.memory_space<vmem>>, vector<1x128x256xbf16>
    %28 = vector.shape_cast %27 : vector<1x128x256xbf16> to vector<128x256xbf16>
    %cst_16 = arith.constant dense<0.000000e+00> : vector<28x256xf32>
    %29 = tpu.matmul %26, %28, %cst_16 {dimension_numbers = #tpu.dot_dimension_numbers<[1], [0], [0], [1], [0, 0, 1, 1], [], []>} : vector<28x128xbf16>, vector<128x256xbf16>, vector<28x256xf32> -> vector<28x256xf32>
    %30 = arith.addf %24, %29 : vector<28x256xf32>
    %31 = vector.extract_strided_slice %30 {offsets = [0, 0], sizes = [28, 128], strides = [1, 1]} : vector<28x256xf32> to vector<28x128xf32>
    %32 = vector.extract_strided_slice %30 {offsets = [0, 128], sizes = [28, 128], strides = [1, 1]} : vector<28x256xf32> to vector<28x128xf32>
    %33 = arith.maximumf %31, %32 : vector<28x128xf32>
    %34 = vector.extract_strided_slice %33 {offsets = [0, 0], sizes = [27, 128], strides = [1, 1]} : vector<28x128xf32> to vector<27x128xf32>
    %35 = vector.extract_strided_slice %33 {offsets = [1, 0], sizes = [27, 128], strides = [1, 1]} : vector<28x128xf32> to vector<27x128xf32>
    %36 = arith.maximumf %34, %35 : vector<27x128xf32>
    %c0_17 = arith.constant 0 : index
    %c0_18 = arith.constant 0 : index
    %37 = vector.load %arg3[%c0_17, %c0_18] : memref<1x128xf32, #tpu.memory_space<vmem>>, vector<1x128xf32>
    %38 = vector.broadcast %37 : vector<1x128xf32> to vector<27x128xf32>
    %39 = arith.addf %36, %38 : vector<27x128xf32>
    %cst_19 = arith.constant 0.000000e+00 : f32
    %40 = vector.broadcast %cst_19 : f32 to vector<27x128xf32>
    %41 = arith.maximumf %39, %40 : vector<27x128xf32>
    %42 = vector.extract_strided_slice %41 {offsets = [0, 0], sizes = [19, 128], strides = [1, 1]} : vector<27x128xf32> to vector<19x128xf32>
    %43 = arith.truncf %42 : vector<19x128xf32> to vector<19x128xbf16>
    %c0_20 = arith.constant 0 : index
    %c0_21 = arith.constant 0 : index
    %c0_22 = arith.constant 0 : index
    %44 = vector.load %arg4[%c0_20, %c0_21, %c0_22] : memref<5x128x256xbf16, #tpu.memory_space<vmem>>, vector<1x128x256xbf16>
    %45 = vector.shape_cast %44 : vector<1x128x256xbf16> to vector<128x256xbf16>
    %cst_23 = arith.constant dense<0.000000e+00> : vector<19x256xf32>
    %46 = tpu.matmul %43, %45, %cst_23 {dimension_numbers = #tpu.dot_dimension_numbers<[1], [0], [0], [1], [0, 0, 1, 1], [], []>} : vector<19x128xbf16>, vector<128x256xbf16>, vector<19x256xf32> -> vector<19x256xf32>
    %47 = vector.extract_strided_slice %41 {offsets = [2, 0], sizes = [19, 128], strides = [1, 1]} : vector<27x128xf32> to vector<19x128xf32>
    %48 = arith.truncf %47 : vector<19x128xf32> to vector<19x128xbf16>
    %c1_24 = arith.constant 1 : index
    %c0_25 = arith.constant 0 : index
    %c0_26 = arith.constant 0 : index
    %49 = vector.load %arg4[%c1_24, %c0_25, %c0_26] : memref<5x128x256xbf16, #tpu.memory_space<vmem>>, vector<1x128x256xbf16>
    %50 = vector.shape_cast %49 : vector<1x128x256xbf16> to vector<128x256xbf16>
    %cst_27 = arith.constant dense<0.000000e+00> : vector<19x256xf32>
    %51 = tpu.matmul %48, %50, %cst_27 {dimension_numbers = #tpu.dot_dimension_numbers<[1], [0], [0], [1], [0, 0, 1, 1], [], []>} : vector<19x128xbf16>, vector<128x256xbf16>, vector<19x256xf32> -> vector<19x256xf32>
    %52 = arith.addf %46, %51 : vector<19x256xf32>
    %53 = vector.extract_strided_slice %41 {offsets = [4, 0], sizes = [19, 128], strides = [1, 1]} : vector<27x128xf32> to vector<19x128xf32>
    %54 = arith.truncf %53 : vector<19x128xf32> to vector<19x128xbf16>
    %c2_28 = arith.constant 2 : index
    %c0_29 = arith.constant 0 : index
    %c0_30 = arith.constant 0 : index
    %55 = vector.load %arg4[%c2_28, %c0_29, %c0_30] : memref<5x128x256xbf16, #tpu.memory_space<vmem>>, vector<1x128x256xbf16>
    %56 = vector.shape_cast %55 : vector<1x128x256xbf16> to vector<128x256xbf16>
    %cst_31 = arith.constant dense<0.000000e+00> : vector<19x256xf32>
    %57 = tpu.matmul %54, %56, %cst_31 {dimension_numbers = #tpu.dot_dimension_numbers<[1], [0], [0], [1], [0, 0, 1, 1], [], []>} : vector<19x128xbf16>, vector<128x256xbf16>, vector<19x256xf32> -> vector<19x256xf32>
    %58 = arith.addf %52, %57 : vector<19x256xf32>
    %59 = vector.extract_strided_slice %41 {offsets = [6, 0], sizes = [19, 128], strides = [1, 1]} : vector<27x128xf32> to vector<19x128xf32>
    %60 = arith.truncf %59 : vector<19x128xf32> to vector<19x128xbf16>
    %c3_32 = arith.constant 3 : index
    %c0_33 = arith.constant 0 : index
    %c0_34 = arith.constant 0 : index
    %61 = vector.load %arg4[%c3_32, %c0_33, %c0_34] : memref<5x128x256xbf16, #tpu.memory_space<vmem>>, vector<1x128x256xbf16>
    %62 = vector.shape_cast %61 : vector<1x128x256xbf16> to vector<128x256xbf16>
    %cst_35 = arith.constant dense<0.000000e+00> : vector<19x256xf32>
    %63 = tpu.matmul %60, %62, %cst_35 {dimension_numbers = #tpu.dot_dimension_numbers<[1], [0], [0], [1], [0, 0, 1, 1], [], []>} : vector<19x128xbf16>, vector<128x256xbf16>, vector<19x256xf32> -> vector<19x256xf32>
    %64 = arith.addf %58, %63 : vector<19x256xf32>
    %65 = vector.extract_strided_slice %41 {offsets = [8, 0], sizes = [19, 128], strides = [1, 1]} : vector<27x128xf32> to vector<19x128xf32>
    %66 = arith.truncf %65 : vector<19x128xf32> to vector<19x128xbf16>
    %c4_36 = arith.constant 4 : index
    %c0_37 = arith.constant 0 : index
    %c0_38 = arith.constant 0 : index
    %67 = vector.load %arg4[%c4_36, %c0_37, %c0_38] : memref<5x128x256xbf16, #tpu.memory_space<vmem>>, vector<1x128x256xbf16>
    %68 = vector.shape_cast %67 : vector<1x128x256xbf16> to vector<128x256xbf16>
    %cst_39 = arith.constant dense<0.000000e+00> : vector<19x256xf32>
    %69 = tpu.matmul %66, %68, %cst_39 {dimension_numbers = #tpu.dot_dimension_numbers<[1], [0], [0], [1], [0, 0, 1, 1], [], []>} : vector<19x128xbf16>, vector<128x256xbf16>, vector<19x256xf32> -> vector<19x256xf32>
    %70 = arith.addf %64, %69 : vector<19x256xf32>
    %71 = vector.extract_strided_slice %70 {offsets = [0, 0], sizes = [19, 128], strides = [1, 1]} : vector<19x256xf32> to vector<19x128xf32>
    %72 = vector.extract_strided_slice %70 {offsets = [0, 128], sizes = [19, 128], strides = [1, 1]} : vector<19x256xf32> to vector<19x128xf32>
    %73 = arith.maximumf %71, %72 : vector<19x128xf32>
    %74 = vector.extract_strided_slice %73 {offsets = [0, 0], sizes = [17, 128], strides = [1, 1]} : vector<19x128xf32> to vector<17x128xf32>
    %75 = vector.extract_strided_slice %73 {offsets = [2, 0], sizes = [17, 128], strides = [1, 1]} : vector<19x128xf32> to vector<17x128xf32>
    %76 = arith.maximumf %74, %75 : vector<17x128xf32>
    %77 = vector.extract_strided_slice %76 {offsets = [0, 0], sizes = [1, 128], strides = [1, 1]} : vector<17x128xf32> to vector<1x128xf32>
    %c0_40 = arith.constant 0 : index
    %c0_41 = arith.constant 0 : index
    %78 = vector.load %arg5[%c0_40, %c0_41] : memref<1x128xf32, #tpu.memory_space<vmem>>, vector<1x128xf32>
    %79 = arith.addf %77, %78 : vector<1x128xf32>
    %cst_42 = arith.constant 0.000000e+00 : f32
    %80 = vector.broadcast %cst_42 : f32 to vector<1x128xf32>
    %81 = arith.maximumf %79, %80 : vector<1x128xf32>
    %c0_43 = arith.constant 0 : index
    %c0_44 = arith.constant 0 : index
    %82 = vector.load %arg13[%c0_43, %c0_44] : memref<8x640xf32, #tpu.memory_space<vmem>>, vector<1x128xf32>
    tpu.vector_store %arg13[%c0_43, %c0_44], %81 {strides = array<i32>} : memref<8x640xf32, #tpu.memory_space<vmem>>, vector<1x128xf32>,
    %83 = vector.extract_strided_slice %76 {offsets = [4, 0], sizes = [1, 128], strides = [1, 1]} : vector<17x128xf32> to vector<1x128xf32>
    %c0_45 = arith.constant 0 : index
    %c0_46 = arith.constant 0 : index
    %84 = vector.load %arg5[%c0_45, %c0_46] : memref<1x128xf32, #tpu.memory_space<vmem>>, vector<1x128xf32>
    %85 = arith.addf %83, %84 : vector<1x128xf32>
    %cst_47 = arith.constant 0.000000e+00 : f32
    %86 = vector.broadcast %cst_47 : f32 to vector<1x128xf32>
    %87 = arith.maximumf %85, %86 : vector<1x128xf32>
    %c0_48 = arith.constant 0 : index
    %c128 = arith.constant 128 : index
    %88 = vector.load %arg13[%c0_48, %c128] : memref<8x640xf32, #tpu.memory_space<vmem>>, vector<1x128xf32>
    tpu.vector_store %arg13[%c0_48, %c128], %87 {strides = array<i32>} : memref<8x640xf32, #tpu.memory_space<vmem>>, vector<1x128xf32>,
    %89 = vector.extract_strided_slice %76 {offsets = [8, 0], sizes = [1, 128], strides = [1, 1]} : vector<17x128xf32> to vector<1x128xf32>
    %c0_49 = arith.constant 0 : index
    %c0_50 = arith.constant 0 : index
    %90 = vector.load %arg5[%c0_49, %c0_50] : memref<1x128xf32, #tpu.memory_space<vmem>>, vector<1x128xf32>
    %91 = arith.addf %89, %90 : vector<1x128xf32>
    %cst_51 = arith.constant 0.000000e+00 : f32
    %92 = vector.broadcast %cst_51 : f32 to vector<1x128xf32>
    %93 = arith.maximumf %91, %92 : vector<1x128xf32>
    %c0_52 = arith.constant 0 : index
    %c256 = arith.constant 256 : index
    %94 = vector.load %arg13[%c0_52, %c256] : memref<8x640xf32, #tpu.memory_space<vmem>>, vector<1x128xf32>
    tpu.vector_store %arg13[%c0_52, %c256], %93 {strides = array<i32>} : memref<8x640xf32, #tpu.memory_space<vmem>>, vector<1x128xf32>,
    %95 = vector.extract_strided_slice %76 {offsets = [12, 0], sizes = [1, 128], strides = [1, 1]} : vector<17x128xf32> to vector<1x128xf32>
    %c0_53 = arith.constant 0 : index
    %c0_54 = arith.constant 0 : index
    %96 = vector.load %arg5[%c0_53, %c0_54] : memref<1x128xf32, #tpu.memory_space<vmem>>, vector<1x128xf32>
    %97 = arith.addf %95, %96 : vector<1x128xf32>
    %cst_55 = arith.constant 0.000000e+00 : f32
    %98 = vector.broadcast %cst_55 : f32 to vector<1x128xf32>
    %99 = arith.maximumf %97, %98 : vector<1x128xf32>
    %c0_56 = arith.constant 0 : index
    %c384 = arith.constant 384 : index
    %100 = vector.load %arg13[%c0_56, %c384] : memref<8x640xf32, #tpu.memory_space<vmem>>, vector<1x128xf32>
    tpu.vector_store %arg13[%c0_56, %c384], %99 {strides = array<i32>} : memref<8x640xf32, #tpu.memory_space<vmem>>, vector<1x128xf32>,
    %101 = vector.extract_strided_slice %76 {offsets = [16, 0], sizes = [1, 128], strides = [1, 1]} : vector<17x128xf32> to vector<1x128xf32>
    %c0_57 = arith.constant 0 : index
    %c0_58 = arith.constant 0 : index
    %102 = vector.load %arg5[%c0_57, %c0_58] : memref<1x128xf32, #tpu.memory_space<vmem>>, vector<1x128xf32>
    %103 = arith.addf %101, %102 : vector<1x128xf32>
    %cst_59 = arith.constant 0.000000e+00 : f32
    %104 = vector.broadcast %cst_59 : f32 to vector<1x128xf32>
    %105 = arith.maximumf %103, %104 : vector<1x128xf32>
    %c0_60 = arith.constant 0 : index
    %c512 = arith.constant 512 : index
    %106 = vector.load %arg13[%c0_60, %c512] : memref<8x640xf32, #tpu.memory_space<vmem>>, vector<1x128xf32>
    tpu.vector_store %arg13[%c0_60, %c512], %105 {strides = array<i32>} : memref<8x640xf32, #tpu.memory_space<vmem>>, vector<1x128xf32>,
    %c1_61 = arith.constant 1 : index
    %c0_62 = arith.constant 0 : index
    %c0_63 = arith.constant 0 : index
    %107 = vector.load %arg1[%c1_61, %c0_62, %c0_63] : memref<8x32x128xf32, #tpu.memory_space<vmem>>, vector<1x32x128xf32>
    %108 = vector.shape_cast %107 : vector<1x32x128xf32> to vector<32x128xf32>
    %109 = vector.extract_strided_slice %108 {offsets = [0, 0], sizes = [28, 128], strides = [1, 1]} : vector<32x128xf32> to vector<28x128xf32>
    %110 = arith.truncf %109 : vector<28x128xf32> to vector<28x128xbf16>
    %c0_64 = arith.constant 0 : index
    %c0_65 = arith.constant 0 : index
    %c0_66 = arith.constant 0 : index
    %111 = vector.load %arg2[%c0_64, %c0_65, %c0_66] : memref<5x128x256xbf16, #tpu.memory_space<vmem>>, vector<1x128x256xbf16>
    %112 = vector.shape_cast %111 : vector<1x128x256xbf16> to vector<128x256xbf16>
    %cst_67 = arith.constant dense<0.000000e+00> : vector<28x256xf32>
    %113 = tpu.matmul %110, %112, %cst_67 {dimension_numbers = #tpu.dot_dimension_numbers<[1], [0], [0], [1], [0, 0, 1, 1], [], []>} : vector<28x128xbf16>, vector<128x256xbf16>, vector<28x256xf32> -> vector<28x256xf32>
    %114 = vector.extract_strided_slice %108 {offsets = [1, 0], sizes = [28, 128], strides = [1, 1]} : vector<32x128xf32> to vector<28x128xf32>
    %115 = arith.truncf %114 : vector<28x128xf32> to vector<28x128xbf16>
    %c1_68 = arith.constant 1 : index
    %c0_69 = arith.constant 0 : index
    %c0_70 = arith.constant 0 : index
    %116 = vector.load %arg2[%c1_68, %c0_69, %c0_70] : memref<5x128x256xbf16, #tpu.memory_space<vmem>>, vector<1x128x256xbf16>
    %117 = vector.shape_cast %116 : vector<1x128x256xbf16> to vector<128x256xbf16>
    %cst_71 = arith.constant dense<0.000000e+00> : vector<28x256xf32>
    %118 = tpu.matmul %115, %117, %cst_71 {dimension_numbers = #tpu.dot_dimension_numbers<[1], [0], [0], [1], [0, 0, 1, 1], [], []>} : vector<28x128xbf16>, vector<128x256xbf16>, vector<28x256xf32> -> vector<28x256xf32>
    %119 = arith.addf %113, %118 : vector<28x256xf32>
    %120 = vector.extract_strided_slice %108 {offsets = [2, 0], sizes = [28, 128], strides = [1, 1]} : vector<32x128xf32> to vector<28x128xf32>
    %121 = arith.truncf %120 : vector<28x128xf32> to vector<28x128xbf16>
    %c2_72 = arith.constant 2 : index
    %c0_73 = arith.constant 0 : index
    %c0_74 = arith.constant 0 : index
    %122 = vector.load %arg2[%c2_72, %c0_73, %c0_74] : memref<5x128x256xbf16, #tpu.memory_space<vmem>>, vector<1x128x256xbf16>
    %123 = vector.shape_cast %122 : vector<1x128x256xbf16> to vector<128x256xbf16>
    %cst_75 = arith.constant dense<0.000000e+00> : vector<28x256xf32>
    %124 = tpu.matmul %121, %123, %cst_75 {dimension_numbers = #tpu.dot_dimension_numbers<[1], [0], [0], [1], [0, 0, 1, 1], [], []>} : vector<28x128xbf16>, vector<128x256xbf16>, vector<28x256xf32> -> vector<28x256xf32>
    %125 = arith.addf %119, %124 : vector<28x256xf32>
    %126 = vector.extract_strided_slice %108 {offsets = [3, 0], sizes = [28, 128], strides = [1, 1]} : vector<32x128xf32> to vector<28x128xf32>
    %127 = arith.truncf %126 : vector<28x128xf32> to vector<28x128xbf16>
    %c3_76 = arith.constant 3 : index
    %c0_77 = arith.constant 0 : index
    %c0_78 = arith.constant 0 : index
    %128 = vector.load %arg2[%c3_76, %c0_77, %c0_78] : memref<5x128x256xbf16, #tpu.memory_space<vmem>>, vector<1x128x256xbf16>
    %129 = vector.shape_cast %128 : vector<1x128x256xbf16> to vector<128x256xbf16>
    %cst_79 = arith.constant dense<0.000000e+00> : vector<28x256xf32>
    %130 = tpu.matmul %127, %129, %cst_79 {dimension_numbers = #tpu.dot_dimension_numbers<[1], [0], [0], [1], [0, 0, 1, 1], [], []>} : vector<28x128xbf16>, vector<128x256xbf16>, vector<28x256xf32> -> vector<28x256xf32>
    %131 = arith.addf %125, %130 : vector<28x256xf32>
    %132 = vector.extract_strided_slice %108 {offsets = [4, 0], sizes = [28, 128], strides = [1, 1]} : vector<32x128xf32> to vector<28x128xf32>
    %133 = arith.truncf %132 : vector<28x128xf32> to vector<28x128xbf16>
    %c4_80 = arith.constant 4 : index
    %c0_81 = arith.constant 0 : index
    %c0_82 = arith.constant 0 : index
    %134 = vector.load %arg2[%c4_80, %c0_81, %c0_82] : memref<5x128x256xbf16, #tpu.memory_space<vmem>>, vector<1x128x256xbf16>
    %135 = vector.shape_cast %134 : vector<1x128x256xbf16> to vector<128x256xbf16>
    %cst_83 = arith.constant dense<0.000000e+00> : vector<28x256xf32>
    %136 = tpu.matmul %133, %135, %cst_83 {dimension_numbers = #tpu.dot_dimension_numbers<[1], [0], [0], [1], [0, 0, 1, 1], [], []>} : vector<28x128xbf16>, vector<128x256xbf16>, vector<28x256xf32> -> vector<28x256xf32>
    %137 = arith.addf %131, %136 : vector<28x256xf32>
    %138 = vector.extract_strided_slice %137 {offsets = [0, 0], sizes = [28, 128], strides = [1, 1]} : vector<28x256xf32> to vector<28x128xf32>
    %139 = vector.extract_strided_slice %137 {offsets = [0, 128], sizes = [28, 128], strides = [1, 1]} : vector<28x256xf32> to vector<28x128xf32>
    %140 = arith.maximumf %138, %139 : vector<28x128xf32>
    %141 = vector.extract_strided_slice %140 {offsets = [0, 0], sizes = [27, 128], strides = [1, 1]} : vector<28x128xf32> to vector<27x128xf32>
    %142 = vector.extract_strided_slice %140 {offsets = [1, 0], sizes = [27, 128], strides = [1, 1]} : vector<28x128xf32> to vector<27x128xf32>
    %143 = arith.maximumf %141, %142 : vector<27x128xf32>
    %c0_84 = arith.constant 0 : index
    %c0_85 = arith.constant 0 : index
    %144 = vector.load %arg3[%c0_84, %c0_85] : memref<1x128xf32, #tpu.memory_space<vmem>>, vector<1x128xf32>
    %145 = vector.broadcast %144 : vector<1x128xf32> to vector<27x128xf32>
    %146 = arith.addf %143, %145 : vector<27x128xf32>
    %cst_86 = arith.constant 0.000000e+00 : f32
    %147 = vector.broadcast %cst_86 : f32 to vector<27x128xf32>
    %148 = arith.maximumf %146, %147 : vector<27x128xf32>
    %149 = vector.extract_strided_slice %148 {offsets = [0, 0], sizes = [19, 128], strides = [1, 1]} : vector<27x128xf32> to vector<19x128xf32>
    %150 = arith.truncf %149 : vector<19x128xf32> to vector<19x128xbf16>
    %c0_87 = arith.constant 0 : index
    %c0_88 = arith.constant 0 : index
    %c0_89 = arith.constant 0 : index
    %151 = vector.load %arg4[%c0_87, %c0_88, %c0_89] : memref<5x128x256xbf16, #tpu.memory_space<vmem>>, vector<1x128x256xbf16>
    %152 = vector.shape_cast %151 : vector<1x128x256xbf16> to vector<128x256xbf16>
    %cst_90 = arith.constant dense<0.000000e+00> : vector<19x256xf32>
    %153 = tpu.matmul %150, %152, %cst_90 {dimension_numbers = #tpu.dot_dimension_numbers<[1], [0], [0], [1], [0, 0, 1, 1], [], []>} : vector<19x128xbf16>, vector<128x256xbf16>, vector<19x256xf32> -> vector<19x256xf32>
    %154 = vector.extract_strided_slice %148 {offsets = [2, 0], sizes = [19, 128], strides = [1, 1]} : vector<27x128xf32> to vector<19x128xf32>
    %155 = arith.truncf %154 : vector<19x128xf32> to vector<19x128xbf16>
    %c1_91 = arith.constant 1 : index
    %c0_92 = arith.constant 0 : index
    %c0_93 = arith.constant 0 : index
    %156 = vector.load %arg4[%c1_91, %c0_92, %c0_93] : memref<5x128x256xbf16, #tpu.memory_space<vmem>>, vector<1x128x256xbf16>
    %157 = vector.shape_cast %156 : vector<1x128x256xbf16> to vector<128x256xbf16>
    %cst_94 = arith.constant dense<0.000000e+00> : vector<19x256xf32>
    %158 = tpu.matmul %155, %157, %cst_94 {dimension_numbers = #tpu.dot_dimension_numbers<[1], [0], [0], [1], [0, 0, 1, 1], [], []>} : vector<19x128xbf16>, vector<128x256xbf16>, vector<19x256xf32> -> vector<19x256xf32>
    %159 = arith.addf %153, %158 : vector<19x256xf32>
    %160 = vector.extract_strided_slice %148 {offsets = [4, 0], sizes = [19, 128], strides = [1, 1]} : vector<27x128xf32> to vector<19x128xf32>
    %161 = arith.truncf %160 : vector<19x128xf32> to vector<19x128xbf16>
    %c2_95 = arith.constant 2 : index
    %c0_96 = arith.constant 0 : index
    %c0_97 = arith.constant 0 : index
    %162 = vector.load %arg4[%c2_95, %c0_96, %c0_97] : memref<5x128x256xbf16, #tpu.memory_space<vmem>>, vector<1x128x256xbf16>
    %163 = vector.shape_cast %162 : vector<1x128x256xbf16> to vector<128x256xbf16>
    %cst_98 = arith.constant dense<0.000000e+00> : vector<19x256xf32>
    %164 = tpu.matmul %161, %163, %cst_98 {dimension_numbers = #tpu.dot_dimension_numbers<[1], [0], [0], [1], [0, 0, 1, 1], [], []>} : vector<19x128xbf16>, vector<128x256xbf16>, vector<19x256xf32> -> vector<19x256xf32>
    %165 = arith.addf %159, %164 : vector<19x256xf32>
    %166 = vector.extract_strided_slice %148 {offsets = [6, 0], sizes = [19, 128], strides = [1, 1]} : vector<27x128xf32> to vector<19x128xf32>
    %167 = arith.truncf %166 : vector<19x128xf32> to vector<19x128xbf16>
    %c3_99 = arith.constant 3 : index
    %c0_100 = arith.constant 0 : index
    %c0_101 = arith.constant 0 : index
    %168 = vector.load %arg4[%c3_99, %c0_100, %c0_101] : memref<5x128x256xbf16, #tpu.memory_space<vmem>>, vector<1x128x256xbf16>
    %169 = vector.shape_cast %168 : vector<1x128x256xbf16> to vector<128x256xbf16>
    %cst_102 = arith.constant dense<0.000000e+00> : vector<19x256xf32>
    %170 = tpu.matmul %167, %169, %cst_102 {dimension_numbers = #tpu.dot_dimension_numbers<[1], [0], [0], [1], [0, 0, 1, 1], [], []>} : vector<19x128xbf16>, vector<128x256xbf16>, vector<19x256xf32> -> vector<19x256xf32>
    %171 = arith.addf %165, %170 : vector<19x256xf32>
    %172 = vector.extract_strided_slice %148 {offsets = [8, 0], sizes = [19, 128], strides = [1, 1]} : vector<27x128xf32> to vector<19x128xf32>
    %173 = arith.truncf %172 : vector<19x128xf32> to vector<19x128xbf16>
    %c4_103 = arith.constant 4 : index
    %c0_104 = arith.constant 0 : index
    %c0_105 = arith.constant 0 : index
    %174 = vector.load %arg4[%c4_103, %c0_104, %c0_105] : memref<5x128x256xbf16, #tpu.memory_space<vmem>>, vector<1x128x256xbf16>
    %175 = vector.shape_cast %174 : vector<1x128x256xbf16> to vector<128x256xbf16>
    %cst_106 = arith.constant dense<0.000000e+00> : vector<19x256xf32>
    %176 = tpu.matmul %173, %175, %cst_106 {dimension_numbers = #tpu.dot_dimension_numbers<[1], [0], [0], [1], [0, 0, 1, 1], [], []>} : vector<19x128xbf16>, vector<128x256xbf16>, vector<19x256xf32> -> vector<19x256xf32>
    %177 = arith.addf %171, %176 : vector<19x256xf32>
    %178 = vector.extract_strided_slice %177 {offsets = [0, 0], sizes = [19, 128], strides = [1, 1]} : vector<19x256xf32> to vector<19x128xf32>
    %179 = vector.extract_strided_slice %177 {offsets = [0, 128], sizes = [19, 128], strides = [1, 1]} : vector<19x256xf32> to vector<19x128xf32>
    %180 = arith.maximumf %178, %179 : vector<19x128xf32>
    %181 = vector.extract_strided_slice %180 {offsets = [0, 0], sizes = [17, 128], strides = [1, 1]} : vector<19x128xf32> to vector<17x128xf32>
    %182 = vector.extract_strided_slice %180 {offsets = [2, 0], sizes = [17, 128], strides = [1, 1]} : vector<19x128xf32> to vector<17x128xf32>
    %183 = arith.maximumf %181, %182 : vector<17x128xf32>
    %184 = vector.extract_strided_slice %183 {offsets = [0, 0], sizes = [1, 128], strides = [1, 1]} : vector<17x128xf32> to vector<1x128xf32>
    %c0_107 = arith.constant 0 : index
    %c0_108 = arith.constant 0 : index
    %185 = vector.load %arg5[%c0_107, %c0_108] : memref<1x128xf32, #tpu.memory_space<vmem>>, vector<1x128xf32>
    %186 = arith.addf %184, %185 : vector<1x128xf32>
    %cst_109 = arith.constant 0.000000e+00 : f32
    %187 = vector.broadcast %cst_109 : f32 to vector<1x128xf32>
    %188 = arith.maximumf %186, %187 : vector<1x128xf32>
    %c1_110 = arith.constant 1 : index
    %c0_111 = arith.constant 0 : index
    %189 = vector.load %arg13[%c1_110, %c0_111] : memref<8x640xf32, #tpu.memory_space<vmem>>, vector<1x128xf32>
    tpu.vector_store %arg13[%c1_110, %c0_111], %188 {strides = array<i32>} : memref<8x640xf32, #tpu.memory_space<vmem>>, vector<1x128xf32>,
    %190 = vector.extract_strided_slice %183 {offsets = [4, 0], sizes = [1, 128], strides = [1, 1]} : vector<17x128xf32> to vector<1x128xf32>
    %c0_112 = arith.constant 0 : index
    %c0_113 = arith.constant 0 : index
    %191 = vector.load %arg5[%c0_112, %c0_113] : memref<1x128xf32, #tpu.memory_space<vmem>>, vector<1x128xf32>
    %192 = arith.addf %190, %191 : vector<1x128xf32>
    %cst_114 = arith.constant 0.000000e+00 : f32
    %193 = vector.broadcast %cst_114 : f32 to vector<1x128xf32>
    %194 = arith.maximumf %192, %193 : vector<1x128xf32>
    %c1_115 = arith.constant 1 : index
    %c128_116 = arith.constant 128 : index
    %195 = vector.load %arg13[%c1_115, %c128_116] : memref<8x640xf32, #tpu.memory_space<vmem>>, vector<1x128xf32>
    tpu.vector_store %arg13[%c1_115, %c128_116], %194 {strides = array<i32>} : memref<8x640xf32, #tpu.memory_space<vmem>>, vector<1x128xf32>,
    %196 = vector.extract_strided_slice %183 {offsets = [8, 0], sizes = [1, 128], strides = [1, 1]} : vector<17x128xf32> to vector<1x128xf32>
    %c0_117 = arith.constant 0 : index
    %c0_118 = arith.constant 0 : index
    %197 = vector.load %arg5[%c0_117, %c0_118] : memref<1x128xf32, #tpu.memory_space<vmem>>, vector<1x128xf32>
    %198 = arith.addf %196, %197 : vector<1x128xf32>
    %cst_119 = arith.constant 0.000000e+00 : f32
    %199 = vector.broadcast %cst_119 : f32 to vector<1x128xf32>
    %200 = arith.maximumf %198, %199 : vector<1x128xf32>
    %c1_120 = arith.constant 1 : index
    %c256_121 = arith.constant 256 : index
    %201 = vector.load %arg13[%c1_120, %c256_121] : memref<8x640xf32, #tpu.memory_space<vmem>>, vector<1x128xf32>
    tpu.vector_store %arg13[%c1_120, %c256_121], %200 {strides = array<i32>} : memref<8x640xf32, #tpu.memory_space<vmem>>, vector<1x128xf32>,
    %202 = vector.extract_strided_slice %183 {offsets = [12, 0], sizes = [1, 128], strides = [1, 1]} : vector<17x128xf32> to vector<1x128xf32>
    %c0_122 = arith.constant 0 : index
    %c0_123 = arith.constant 0 : index
    %203 = vector.load %arg5[%c0_122, %c0_123] : memref<1x128xf32, #tpu.memory_space<vmem>>, vector<1x128xf32>
    %204 = arith.addf %202, %203 : vector<1x128xf32>
    %cst_124 = arith.constant 0.000000e+00 : f32
    %205 = vector.broadcast %cst_124 : f32 to vector<1x128xf32>
    %206 = arith.maximumf %204, %205 : vector<1x128xf32>
    %c1_125 = arith.constant 1 : index
    %c384_126 = arith.constant 384 : index
    %207 = vector.load %arg13[%c1_125, %c384_126] : memref<8x640xf32, #tpu.memory_space<vmem>>, vector<1x128xf32>
    tpu.vector_store %arg13[%c1_125, %c384_126], %206 {strides = array<i32>} : memref<8x640xf32, #tpu.memory_space<vmem>>, vector<1x128xf32>,
    %208 = vector.extract_strided_slice %183 {offsets = [16, 0], sizes = [1, 128], strides = [1, 1]} : vector<17x128xf32> to vector<1x128xf32>
    %c0_127 = arith.constant 0 : index
    %c0_128 = arith.constant 0 : index
    %209 = vector.load %arg5[%c0_127, %c0_128] : memref<1x128xf32, #tpu.memory_space<vmem>>, vector<1x128xf32>
    %210 = arith.addf %208, %209 : vector<1x128xf32>
    %cst_129 = arith.constant 0.000000e+00 : f32
    %211 = vector.broadcast %cst_129 : f32 to vector<1x128xf32>
    %212 = arith.maximumf %210, %211 : vector<1x128xf32>
    %c1_130 = arith.constant 1 : index
    %c512_131 = arith.constant 512 : index
    %213 = vector.load %arg13[%c1_130, %c512_131] : memref<8x640xf32, #tpu.memory_space<vmem>>, vector<1x128xf32>
    tpu.vector_store %arg13[%c1_130, %c512_131], %212 {strides = array<i32>} : memref<8x640xf32, #tpu.memory_space<vmem>>, vector<1x128xf32>,
    %c2_132 = arith.constant 2 : index
    %c0_133 = arith.constant 0 : index
    %c0_134 = arith.constant 0 : index
    %214 = vector.load %arg1[%c2_132, %c0_133, %c0_134] : memref<8x32x128xf32, #tpu.memory_space<vmem>>, vector<1x32x128xf32>
    %215 = vector.shape_cast %214 : vector<1x32x128xf32> to vector<32x128xf32>
    %216 = vector.extract_strided_slice %215 {offsets = [0, 0], sizes = [28, 128], strides = [1, 1]} : vector<32x128xf32> to vector<28x128xf32>
    %217 = arith.truncf %216 : vector<28x128xf32> to vector<28x128xbf16>
    %c0_135 = arith.constant 0 : index
    %c0_136 = arith.constant 0 : index
    %c0_137 = arith.constant 0 : index
    %218 = vector.load %arg2[%c0_135, %c0_136, %c0_137] : memref<5x128x256xbf16, #tpu.memory_space<vmem>>, vector<1x128x256xbf16>
    %219 = vector.shape_cast %218 : vector<1x128x256xbf16> to vector<128x256xbf16>
    %cst_138 = arith.constant dense<0.000000e+00> : vector<28x256xf32>
    %220 = tpu.matmul %217, %219, %cst_138 {dimension_numbers = #tpu.dot_dimension_numbers<[1], [0], [0], [1], [0, 0, 1, 1], [], []>} : vector<28x128xbf16>, vector<128x256xbf16>, vector<28x256xf32> -> vector<28x256xf32>
    %221 = vector.extract_strided_slice %215 {offsets = [1, 0], sizes = [28, 128], strides = [1, 1]} : vector<32x128xf32> to vector<28x128xf32>
    %222 = arith.truncf %221 : vector<28x128xf32> to vector<28x128xbf16>
    %c1_139 = arith.constant 1 : index
    %c0_140 = arith.constant 0 : index
    %c0_141 = arith.constant 0 : index
    %223 = vector.load %arg2[%c1_139, %c0_140, %c0_141] : memref<5x128x256xbf16, #tpu.memory_space<vmem>>, vector<1x128x256xbf16>
    %224 = vector.shape_cast %223 : vector<1x128x256xbf16> to vector<128x256xbf16>
    %cst_142 = arith.constant dense<0.000000e+00> : vector<28x256xf32>
    %225 = tpu.matmul %222, %224, %cst_142 {dimension_numbers = #tpu.dot_dimension_numbers<[1], [0], [0], [1], [0, 0, 1, 1], [], []>} : vector<28x128xbf16>, vector<128x256xbf16>, vector<28x256xf32> -> vector<28x256xf32>
    %226 = arith.addf %220, %225 : vector<28x256xf32>
    %227 = vector.extract_strided_slice %215 {offsets = [2, 0], sizes = [28, 128], strides = [1, 1]} : vector<32x128xf32> to vector<28x128xf32>
    %228 = arith.truncf %227 : vector<28x128xf32> to vector<28x128xbf16>
    %c2_143 = arith.constant 2 : index
    %c0_144 = arith.constant 0 : index
    %c0_145 = arith.constant 0 : index
    %229 = vector.load %arg2[%c2_143, %c0_144, %c0_145] : memref<5x128x256xbf16, #tpu.memory_space<vmem>>, vector<1x128x256xbf16>
    %230 = vector.shape_cast %229 : vector<1x128x256xbf16> to vector<128x256xbf16>
    %cst_146 = arith.constant dense<0.000000e+00> : vector<28x256xf32>
    %231 = tpu.matmul %228, %230, %cst_146 {dimension_numbers = #tpu.dot_dimension_numbers<[1], [0], [0], [1], [0, 0, 1, 1], [], []>} : vector<28x128xbf16>, vector<128x256xbf16>, vector<28x256xf32> -> vector<28x256xf32>
    %232 = arith.addf %226, %231 : vector<28x256xf32>
    %233 = vector.extract_strided_slice %215 {offsets = [3, 0], sizes = [28, 128], strides = [1, 1]} : vector<32x128xf32> to vector<28x128xf32>
    %234 = arith.truncf %233 : vector<28x128xf32> to vector<28x128xbf16>
    %c3_147 = arith.constant 3 : index
    %c0_148 = arith.constant 0 : index
    %c0_149 = arith.constant 0 : index
    %235 = vector.load %arg2[%c3_147, %c0_148, %c0_149] : memref<5x128x256xbf16, #tpu.memory_space<vmem>>, vector<1x128x256xbf16>
    %236 = vector.shape_cast %235 : vector<1x128x256xbf16> to vector<128x256xbf16>
    %cst_150 = arith.constant dense<0.000000e+00> : vector<28x256xf32>
    %237 = tpu.matmul %234, %236, %cst_150 {dimension_numbers = #tpu.dot_dimension_numbers<[1], [0], [0], [1], [0, 0, 1, 1], [], []>} : vector<28x128xbf16>, vector<128x256xbf16>, vector<28x256xf32> -> vector<28x256xf32>
    %238 = arith.addf %232, %237 : vector<28x256xf32>
    %239 = vector.extract_strided_slice %215 {offsets = [4, 0], sizes = [28, 128], strides = [1, 1]} : vector<32x128xf32> to vector<28x128xf32>
    %240 = arith.truncf %239 : vector<28x128xf32> to vector<28x128xbf16>
    %c4_151 = arith.constant 4 : index
    %c0_152 = arith.constant 0 : index
    %c0_153 = arith.constant 0 : index
    %241 = vector.load %arg2[%c4_151, %c0_152, %c0_153] : memref<5x128x256xbf16, #tpu.memory_space<vmem>>, vector<1x128x256xbf16>
    %242 = vector.shape_cast %241 : vector<1x128x256xbf16> to vector<128x256xbf16>
    %cst_154 = arith.constant dense<0.000000e+00> : vector<28x256xf32>
    %243 = tpu.matmul %240, %242, %cst_154 {dimension_numbers = #tpu.dot_dimension_numbers<[1], [0], [0], [1], [0, 0, 1, 1], [], []>} : vector<28x128xbf16>, vector<128x256xbf16>, vector<28x256xf32> -> vector<28x256xf32>
    %244 = arith.addf %238, %243 : vector<28x256xf32>
    %245 = vector.extract_strided_slice %244 {offsets = [0, 0], sizes = [28, 128], strides = [1, 1]} : vector<28x256xf32> to vector<28x128xf32>
    %246 = vector.extract_strided_slice %244 {offsets = [0, 128], sizes = [28, 128], strides = [1, 1]} : vector<28x256xf32> to vector<28x128xf32>
    %247 = arith.maximumf %245, %246 : vector<28x128xf32>
    %248 = vector.extract_strided_slice %247 {offsets = [0, 0], sizes = [27, 128], strides = [1, 1]} : vector<28x128xf32> to vector<27x128xf32>
    %249 = vector.extract_strided_slice %247 {offsets = [1, 0], sizes = [27, 128], strides = [1, 1]} : vector<28x128xf32> to vector<27x128xf32>
    %250 = arith.maximumf %248, %249 : vector<27x128xf32>
    %c0_155 = arith.constant 0 : index
    %c0_156 = arith.constant 0 : index
    %251 = vector.load %arg3[%c0_155, %c0_156] : memref<1x128xf32, #tpu.memory_space<vmem>>, vector<1x128xf32>
    %252 = vector.broadcast %251 : vector<1x128xf32> to vector<27x128xf32>
    %253 = arith.addf %250, %252 : vector<27x128xf32>
    %cst_157 = arith.constant 0.000000e+00 : f32
    %254 = vector.broadcast %cst_157 : f32 to vector<27x128xf32>
    %255 = arith.maximumf %253, %254 : vector<27x128xf32>
    %256 = vector.extract_strided_slice %255 {offsets = [0, 0], sizes = [19, 128], strides = [1, 1]} : vector<27x128xf32> to vector<19x128xf32>
    %257 = arith.truncf %256 : vector<19x128xf32> to vector<19x128xbf16>
    %c0_158 = arith.constant 0 : index
    %c0_159 = arith.constant 0 : index
    %c0_160 = arith.constant 0 : index
    %258 = vector.load %arg4[%c0_158, %c0_159, %c0_160] : memref<5x128x256xbf16, #tpu.memory_space<vmem>>, vector<1x128x256xbf16>
    %259 = vector.shape_cast %258 : vector<1x128x256xbf16> to vector<128x256xbf16>
    %cst_161 = arith.constant dense<0.000000e+00> : vector<19x256xf32>
    %260 = tpu.matmul %257, %259, %cst_161 {dimension_numbers = #tpu.dot_dimension_numbers<[1], [0], [0], [1], [0, 0, 1, 1], [], []>} : vector<19x128xbf16>, vector<128x256xbf16>, vector<19x256xf32> -> vector<19x256xf32>
    %261 = vector.extract_strided_slice %255 {offsets = [2, 0], sizes = [19, 128], strides = [1, 1]} : vector<27x128xf32> to vector<19x128xf32>
    %262 = arith.truncf %261 : vector<19x128xf32> to vector<19x128xbf16>
    %c1_162 = arith.constant 1 : index
    %c0_163 = arith.constant 0 : index
    %c0_164 = arith.constant 0 : index
    %263 = vector.load %arg4[%c1_162, %c0_163, %c0_164] : memref<5x128x256xbf16, #tpu.memory_space<vmem>>, vector<1x128x256xbf16>
    %264 = vector.shape_cast %263 : vector<1x128x256xbf16> to vector<128x256xbf16>
    %cst_165 = arith.constant dense<0.000000e+00> : vector<19x256xf32>
    %265 = tpu.matmul %262, %264, %cst_165 {dimension_numbers = #tpu.dot_dimension_numbers<[1], [0], [0], [1], [0, 0, 1, 1], [], []>} : vector<19x128xbf16>, vector<128x256xbf16>, vector<19x256xf32> -> vector<19x256xf32>
    %266 = arith.addf %260, %265 : vector<19x256xf32>
    %267 = vector.extract_strided_slice %255 {offsets = [4, 0], sizes = [19, 128], strides = [1, 1]} : vector<27x128xf32> to vector<19x128xf32>
    %268 = arith.truncf %267 : vector<19x128xf32> to vector<19x128xbf16>
    %c2_166 = arith.constant 2 : index
    %c0_167 = arith.constant 0 : index
    %c0_168 = arith.constant 0 : index
    %269 = vector.load %arg4[%c2_166, %c0_167, %c0_168] : memref<5x128x256xbf16, #tpu.memory_space<vmem>>, vector<1x128x256xbf16>
    %270 = vector.shape_cast %269 : vector<1x128x256xbf16> to vector<128x256xbf16>
    %cst_169 = arith.constant dense<0.000000e+00> : vector<19x256xf32>
    %271 = tpu.matmul %268, %270, %cst_169 {dimension_numbers = #tpu.dot_dimension_numbers<[1], [0], [0], [1], [0, 0, 1, 1], [], []>} : vector<19x128xbf16>, vector<128x256xbf16>, vector<19x256xf32> -> vector<19x256xf32>
    %272 = arith.addf %266, %271 : vector<19x256xf32>
    %273 = vector.extract_strided_slice %255 {offsets = [6, 0], sizes = [19, 128], strides = [1, 1]} : vector<27x128xf32> to vector<19x128xf32>
    %274 = arith.truncf %273 : vector<19x128xf32> to vector<19x128xbf16>
    %c3_170 = arith.constant 3 : index
    %c0_171 = arith.constant 0 : index
    %c0_172 = arith.constant 0 : index
    %275 = vector.load %arg4[%c3_170, %c0_171, %c0_172] : memref<5x128x256xbf16, #tpu.memory_space<vmem>>, vector<1x128x256xbf16>
    %276 = vector.shape_cast %275 : vector<1x128x256xbf16> to vector<128x256xbf16>
    %cst_173 = arith.constant dense<0.000000e+00> : vector<19x256xf32>
    %277 = tpu.matmul %274, %276, %cst_173 {dimension_numbers = #tpu.dot_dimension_numbers<[1], [0], [0], [1], [0, 0, 1, 1], [], []>} : vector<19x128xbf16>, vector<128x256xbf16>, vector<19x256xf32> -> vector<19x256xf32>
    %278 = arith.addf %272, %277 : vector<19x256xf32>
    %279 = vector.extract_strided_slice %255 {offsets = [8, 0], sizes = [19, 128], strides = [1, 1]} : vector<27x128xf32> to vector<19x128xf32>
    %280 = arith.truncf %279 : vector<19x128xf32> to vector<19x128xbf16>
    %c4_174 = arith.constant 4 : index
    %c0_175 = arith.constant 0 : index
    %c0_176 = arith.constant 0 : index
    %281 = vector.load %arg4[%c4_174, %c0_175, %c0_176] : memref<5x128x256xbf16, #tpu.memory_space<vmem>>, vector<1x128x256xbf16>
    %282 = vector.shape_cast %281 : vector<1x128x256xbf16> to vector<128x256xbf16>
    %cst_177 = arith.constant dense<0.000000e+00> : vector<19x256xf32>
    %283 = tpu.matmul %280, %282, %cst_177 {dimension_numbers = #tpu.dot_dimension_numbers<[1], [0], [0], [1], [0, 0, 1, 1], [], []>} : vector<19x128xbf16>, vector<128x256xbf16>, vector<19x256xf32> -> vector<19x256xf32>
    %284 = arith.addf %278, %283 : vector<19x256xf32>
    %285 = vector.extract_strided_slice %284 {offsets = [0, 0], sizes = [19, 128], strides = [1, 1]} : vector<19x256xf32> to vector<19x128xf32>
    %286 = vector.extract_strided_slice %284 {offsets = [0, 128], sizes = [19, 128], strides = [1, 1]} : vector<19x256xf32> to vector<19x128xf32>
    %287 = arith.maximumf %285, %286 : vector<19x128xf32>
    %288 = vector.extract_strided_slice %287 {offsets = [0, 0], sizes = [17, 128], strides = [1, 1]} : vector<19x128xf32> to vector<17x128xf32>
    %289 = vector.extract_strided_slice %287 {offsets = [2, 0], sizes = [17, 128], strides = [1, 1]} : vector<19x128xf32> to vector<17x128xf32>
    %290 = arith.maximumf %288, %289 : vector<17x128xf32>
    %291 = vector.extract_strided_slice %290 {offsets = [0, 0], sizes = [1, 128], strides = [1, 1]} : vector<17x128xf32> to vector<1x128xf32>
    %c0_178 = arith.constant 0 : index
    %c0_179 = arith.constant 0 : index
    %292 = vector.load %arg5[%c0_178, %c0_179] : memref<1x128xf32, #tpu.memory_space<vmem>>, vector<1x128xf32>
    %293 = arith.addf %291, %292 : vector<1x128xf32>
    %cst_180 = arith.constant 0.000000e+00 : f32
    %294 = vector.broadcast %cst_180 : f32 to vector<1x128xf32>
    %295 = arith.maximumf %293, %294 : vector<1x128xf32>
    %c2_181 = arith.constant 2 : index
    %c0_182 = arith.constant 0 : index
    %296 = vector.load %arg13[%c2_181, %c0_182] : memref<8x640xf32, #tpu.memory_space<vmem>>, vector<1x128xf32>
    tpu.vector_store %arg13[%c2_181, %c0_182], %295 {strides = array<i32>} : memref<8x640xf32, #tpu.memory_space<vmem>>, vector<1x128xf32>,
    %297 = vector.extract_strided_slice %290 {offsets = [4, 0], sizes = [1, 128], strides = [1, 1]} : vector<17x128xf32> to vector<1x128xf32>
    %c0_183 = arith.constant 0 : index
    %c0_184 = arith.constant 0 : index
    %298 = vector.load %arg5[%c0_183, %c0_184] : memref<1x128xf32, #tpu.memory_space<vmem>>, vector<1x128xf32>
    %299 = arith.addf %297, %298 : vector<1x128xf32>
    %cst_185 = arith.constant 0.000000e+00 : f32
    %300 = vector.broadcast %cst_185 : f32 to vector<1x128xf32>
    %301 = arith.maximumf %299, %300 : vector<1x128xf32>
    %c2_186 = arith.constant 2 : index
    %c128_187 = arith.constant 128 : index
    %302 = vector.load %arg13[%c2_186, %c128_187] : memref<8x640xf32, #tpu.memory_space<vmem>>, vector<1x128xf32>
    tpu.vector_store %arg13[%c2_186, %c128_187], %301 {strides = array<i32>} : memref<8x640xf32, #tpu.memory_space<vmem>>, vector<1x128xf32>,
    %303 = vector.extract_strided_slice %290 {offsets = [8, 0], sizes = [1, 128], strides = [1, 1]} : vector<17x128xf32> to vector<1x128xf32>
    %c0_188 = arith.constant 0 : index
    %c0_189 = arith.constant 0 : index
    %304 = vector.load %arg5[%c0_188, %c0_189] : memref<1x128xf32, #tpu.memory_space<vmem>>, vector<1x128xf32>
    %305 = arith.addf %303, %304 : vector<1x128xf32>
    %cst_190 = arith.constant 0.000000e+00 : f32
    %306 = vector.broadcast %cst_190 : f32 to vector<1x128xf32>
    %307 = arith.maximumf %305, %306 : vector<1x128xf32>
    %c2_191 = arith.constant 2 : index
    %c256_192 = arith.constant 256 : index
    %308 = vector.load %arg13[%c2_191, %c256_192] : memref<8x640xf32, #tpu.memory_space<vmem>>, vector<1x128xf32>
    tpu.vector_store %arg13[%c2_191, %c256_192], %307 {strides = array<i32>} : memref<8x640xf32, #tpu.memory_space<vmem>>, vector<1x128xf32>,
    %309 = vector.extract_strided_slice %290 {offsets = [12, 0], sizes = [1, 128], strides = [1, 1]} : vector<17x128xf32> to vector<1x128xf32>
    %c0_193 = arith.constant 0 : index
    %c0_194 = arith.constant 0 : index
    %310 = vector.load %arg5[%c0_193, %c0_194] : memref<1x128xf32, #tpu.memory_space<vmem>>, vector<1x128xf32>
    %311 = arith.addf %309, %310 : vector<1x128xf32>
    %cst_195 = arith.constant 0.000000e+00 : f32
    %312 = vector.broadcast %cst_195 : f32 to vector<1x128xf32>
    %313 = arith.maximumf %311, %312 : vector<1x128xf32>
    %c2_196 = arith.constant 2 : index
    %c384_197 = arith.constant 384 : index
    %314 = vector.load %arg13[%c2_196, %c384_197] : memref<8x640xf32, #tpu.memory_space<vmem>>, vector<1x128xf32>
    tpu.vector_store %arg13[%c2_196, %c384_197], %313 {strides = array<i32>} : memref<8x640xf32, #tpu.memory_space<vmem>>, vector<1x128xf32>,
    %315 = vector.extract_strided_slice %290 {offsets = [16, 0], sizes = [1, 128], strides = [1, 1]} : vector<17x128xf32> to vector<1x128xf32>
    %c0_198 = arith.constant 0 : index
    %c0_199 = arith.constant 0 : index
    %316 = vector.load %arg5[%c0_198, %c0_199] : memref<1x128xf32, #tpu.memory_space<vmem>>, vector<1x128xf32>
    %317 = arith.addf %315, %316 : vector<1x128xf32>
    %cst_200 = arith.constant 0.000000e+00 : f32
    %318 = vector.broadcast %cst_200 : f32 to vector<1x128xf32>
    %319 = arith.maximumf %317, %318 : vector<1x128xf32>
    %c2_201 = arith.constant 2 : index
    %c512_202 = arith.constant 512 : index
    %320 = vector.load %arg13[%c2_201, %c512_202] : memref<8x640xf32, #tpu.memory_space<vmem>>, vector<1x128xf32>
    tpu.vector_store %arg13[%c2_201, %c512_202], %319 {strides = array<i32>} : memref<8x640xf32, #tpu.memory_space<vmem>>, vector<1x128xf32>,
    %c3_203 = arith.constant 3 : index
    %c0_204 = arith.constant 0 : index
    %c0_205 = arith.constant 0 : index
    %321 = vector.load %arg1[%c3_203, %c0_204, %c0_205] : memref<8x32x128xf32, #tpu.memory_space<vmem>>, vector<1x32x128xf32>
    %322 = vector.shape_cast %321 : vector<1x32x128xf32> to vector<32x128xf32>
    %323 = vector.extract_strided_slice %322 {offsets = [0, 0], sizes = [28, 128], strides = [1, 1]} : vector<32x128xf32> to vector<28x128xf32>
    %324 = arith.truncf %323 : vector<28x128xf32> to vector<28x128xbf16>
    %c0_206 = arith.constant 0 : index
    %c0_207 = arith.constant 0 : index
    %c0_208 = arith.constant 0 : index
    %325 = vector.load %arg2[%c0_206, %c0_207, %c0_208] : memref<5x128x256xbf16, #tpu.memory_space<vmem>>, vector<1x128x256xbf16>
    %326 = vector.shape_cast %325 : vector<1x128x256xbf16> to vector<128x256xbf16>
    %cst_209 = arith.constant dense<0.000000e+00> : vector<28x256xf32>
    %327 = tpu.matmul %324, %326, %cst_209 {dimension_numbers = #tpu.dot_dimension_numbers<[1], [0], [0], [1], [0, 0, 1, 1], [], []>} : vector<28x128xbf16>, vector<128x256xbf16>, vector<28x256xf32> -> vector<28x256xf32>
    %328 = vector.extract_strided_slice %322 {offsets = [1, 0], sizes = [28, 128], strides = [1, 1]} : vector<32x128xf32> to vector<28x128xf32>
    %329 = arith.truncf %328 : vector<28x128xf32> to vector<28x128xbf16>
    %c1_210 = arith.constant 1 : index
    %c0_211 = arith.constant 0 : index
    %c0_212 = arith.constant 0 : index
    %330 = vector.load %arg2[%c1_210, %c0_211, %c0_212] : memref<5x128x256xbf16, #tpu.memory_space<vmem>>, vector<1x128x256xbf16>
    %331 = vector.shape_cast %330 : vector<1x128x256xbf16> to vector<128x256xbf16>
    %cst_213 = arith.constant dense<0.000000e+00> : vector<28x256xf32>
    %332 = tpu.matmul %329, %331, %cst_213 {dimension_numbers = #tpu.dot_dimension_numbers<[1], [0], [0], [1], [0, 0, 1, 1], [], []>} : vector<28x128xbf16>, vector<128x256xbf16>, vector<28x256xf32> -> vector<28x256xf32>
    %333 = arith.addf %327, %332 : vector<28x256xf32>
    %334 = vector.extract_strided_slice %322 {offsets = [2, 0], sizes = [28, 128], strides = [1, 1]} : vector<32x128xf32> to vector<28x128xf32>
    %335 = arith.truncf %334 : vector<28x128xf32> to vector<28x128xbf16>
    %c2_214 = arith.constant 2 : index
    %c0_215 = arith.constant 0 : index
    %c0_216 = arith.constant 0 : index
    %336 = vector.load %arg2[%c2_214, %c0_215, %c0_216] : memref<5x128x256xbf16, #tpu.memory_space<vmem>>, vector<1x128x256xbf16>
    %337 = vector.shape_cast %336 : vector<1x128x256xbf16> to vector<128x256xbf16>
    %cst_217 = arith.constant dense<0.000000e+00> : vector<28x256xf32>
    %338 = tpu.matmul %335, %337, %cst_217 {dimension_numbers = #tpu.dot_dimension_numbers<[1], [0], [0], [1], [0, 0, 1, 1], [], []>} : vector<28x128xbf16>, vector<128x256xbf16>, vector<28x256xf32> -> vector<28x256xf32>
    %339 = arith.addf %333, %338 : vector<28x256xf32>
    %340 = vector.extract_strided_slice %322 {offsets = [3, 0], sizes = [28, 128], strides = [1, 1]} : vector<32x128xf32> to vector<28x128xf32>
    %341 = arith.truncf %340 : vector<28x128xf32> to vector<28x128xbf16>
    %c3_218 = arith.constant 3 : index
    %c0_219 = arith.constant 0 : index
    %c0_220 = arith.constant 0 : index
    %342 = vector.load %arg2[%c3_218, %c0_219, %c0_220] : memref<5x128x256xbf16, #tpu.memory_space<vmem>>, vector<1x128x256xbf16>
    %343 = vector.shape_cast %342 : vector<1x128x256xbf16> to vector<128x256xbf16>
    %cst_221 = arith.constant dense<0.000000e+00> : vector<28x256xf32>
    %344 = tpu.matmul %341, %343, %cst_221 {dimension_numbers = #tpu.dot_dimension_numbers<[1], [0], [0], [1], [0, 0, 1, 1], [], []>} : vector<28x128xbf16>, vector<128x256xbf16>, vector<28x256xf32> -> vector<28x256xf32>
    %345 = arith.addf %339, %344 : vector<28x256xf32>
    %346 = vector.extract_strided_slice %322 {offsets = [4, 0], sizes = [28, 128], strides = [1, 1]} : vector<32x128xf32> to vector<28x128xf32>
    %347 = arith.truncf %346 : vector<28x128xf32> to vector<28x128xbf16>
    %c4_222 = arith.constant 4 : index
    %c0_223 = arith.constant 0 : index
    %c0_224 = arith.constant 0 : index
    %348 = vector.load %arg2[%c4_222, %c0_223, %c0_224] : memref<5x128x256xbf16, #tpu.memory_space<vmem>>, vector<1x128x256xbf16>
    %349 = vector.shape_cast %348 : vector<1x128x256xbf16> to vector<128x256xbf16>
    %cst_225 = arith.constant dense<0.000000e+00> : vector<28x256xf32>
    %350 = tpu.matmul %347, %349, %cst_225 {dimension_numbers = #tpu.dot_dimension_numbers<[1], [0], [0], [1], [0, 0, 1, 1], [], []>} : vector<28x128xbf16>, vector<128x256xbf16>, vector<28x256xf32> -> vector<28x256xf32>
    %351 = arith.addf %345, %350 : vector<28x256xf32>
    %352 = vector.extract_strided_slice %351 {offsets = [0, 0], sizes = [28, 128], strides = [1, 1]} : vector<28x256xf32> to vector<28x128xf32>
    %353 = vector.extract_strided_slice %351 {offsets = [0, 128], sizes = [28, 128], strides = [1, 1]} : vector<28x256xf32> to vector<28x128xf32>
    %354 = arith.maximumf %352, %353 : vector<28x128xf32>
    %355 = vector.extract_strided_slice %354 {offsets = [0, 0], sizes = [27, 128], strides = [1, 1]} : vector<28x128xf32> to vector<27x128xf32>
    %356 = vector.extract_strided_slice %354 {offsets = [1, 0], sizes = [27, 128], strides = [1, 1]} : vector<28x128xf32> to vector<27x128xf32>
    %357 = arith.maximumf %355, %356 : vector<27x128xf32>
    %c0_226 = arith.constant 0 : index
    %c0_227 = arith.constant 0 : index
    %358 = vector.load %arg3[%c0_226, %c0_227] : memref<1x128xf32, #tpu.memory_space<vmem>>, vector<1x128xf32>
    %359 = vector.broadcast %358 : vector<1x128xf32> to vector<27x128xf32>
    %360 = arith.addf %357, %359 : vector<27x128xf32>
    %cst_228 = arith.constant 0.000000e+00 : f32
    %361 = vector.broadcast %cst_228 : f32 to vector<27x128xf32>
    %362 = arith.maximumf %360, %361 : vector<27x128xf32>
    %363 = vector.extract_strided_slice %362 {offsets = [0, 0], sizes = [19, 128], strides = [1, 1]} : vector<27x128xf32> to vector<19x128xf32>
    %364 = arith.truncf %363 : vector<19x128xf32> to vector<19x128xbf16>
    %c0_229 = arith.constant 0 : index
    %c0_230 = arith.constant 0 : index
    %c0_231 = arith.constant 0 : index
    %365 = vector.load %arg4[%c0_229, %c0_230, %c0_231] : memref<5x128x256xbf16, #tpu.memory_space<vmem>>, vector<1x128x256xbf16>
    %366 = vector.shape_cast %365 : vector<1x128x256xbf16> to vector<128x256xbf16>
    %cst_232 = arith.constant dense<0.000000e+00> : vector<19x256xf32>
    %367 = tpu.matmul %364, %366, %cst_232 {dimension_numbers = #tpu.dot_dimension_numbers<[1], [0], [0], [1], [0, 0, 1, 1], [], []>} : vector<19x128xbf16>, vector<128x256xbf16>, vector<19x256xf32> -> vector<19x256xf32>
    %368 = vector.extract_strided_slice %362 {offsets = [2, 0], sizes = [19, 128], strides = [1, 1]} : vector<27x128xf32> to vector<19x128xf32>
    %369 = arith.truncf %368 : vector<19x128xf32> to vector<19x128xbf16>
    %c1_233 = arith.constant 1 : index
    %c0_234 = arith.constant 0 : index
    %c0_235 = arith.constant 0 : index
    %370 = vector.load %arg4[%c1_233, %c0_234, %c0_235] : memref<5x128x256xbf16, #tpu.memory_space<vmem>>, vector<1x128x256xbf16>
    %371 = vector.shape_cast %370 : vector<1x128x256xbf16> to vector<128x256xbf16>
    %cst_236 = arith.constant dense<0.000000e+00> : vector<19x256xf32>
    %372 = tpu.matmul %369, %371, %cst_236 {dimension_numbers = #tpu.dot_dimension_numbers<[1], [0], [0], [1], [0, 0, 1, 1], [], []>} : vector<19x128xbf16>, vector<128x256xbf16>, vector<19x256xf32> -> vector<19x256xf32>
    %373 = arith.addf %367, %372 : vector<19x256xf32>
    %374 = vector.extract_strided_slice %362 {offsets = [4, 0], sizes = [19, 128], strides = [1, 1]} : vector<27x128xf32> to vector<19x128xf32>
    %375 = arith.truncf %374 : vector<19x128xf32> to vector<19x128xbf16>
    %c2_237 = arith.constant 2 : index
    %c0_238 = arith.constant 0 : index
    %c0_239 = arith.constant 0 : index
    %376 = vector.load %arg4[%c2_237, %c0_238, %c0_239] : memref<5x128x256xbf16, #tpu.memory_space<vmem>>, vector<1x128x256xbf16>
    %377 = vector.shape_cast %376 : vector<1x128x256xbf16> to vector<128x256xbf16>
    %cst_240 = arith.constant dense<0.000000e+00> : vector<19x256xf32>
    %378 = tpu.matmul %375, %377, %cst_240 {dimension_numbers = #tpu.dot_dimension_numbers<[1], [0], [0], [1], [0, 0, 1, 1], [], []>} : vector<19x128xbf16>, vector<128x256xbf16>, vector<19x256xf32> -> vector<19x256xf32>
    %379 = arith.addf %373, %378 : vector<19x256xf32>
    %380 = vector.extract_strided_slice %362 {offsets = [6, 0], sizes = [19, 128], strides = [1, 1]} : vector<27x128xf32> to vector<19x128xf32>
    %381 = arith.truncf %380 : vector<19x128xf32> to vector<19x128xbf16>
    %c3_241 = arith.constant 3 : index
    %c0_242 = arith.constant 0 : index
    %c0_243 = arith.constant 0 : index
    %382 = vector.load %arg4[%c3_241, %c0_242, %c0_243] : memref<5x128x256xbf16, #tpu.memory_space<vmem>>, vector<1x128x256xbf16>
    %383 = vector.shape_cast %382 : vector<1x128x256xbf16> to vector<128x256xbf16>
    %cst_244 = arith.constant dense<0.000000e+00> : vector<19x256xf32>
    %384 = tpu.matmul %381, %383, %cst_244 {dimension_numbers = #tpu.dot_dimension_numbers<[1], [0], [0], [1], [0, 0, 1, 1], [], []>} : vector<19x128xbf16>, vector<128x256xbf16>, vector<19x256xf32> -> vector<19x256xf32>
    %385 = arith.addf %379, %384 : vector<19x256xf32>
    %386 = vector.extract_strided_slice %362 {offsets = [8, 0], sizes = [19, 128], strides = [1, 1]} : vector<27x128xf32> to vector<19x128xf32>
    %387 = arith.truncf %386 : vector<19x128xf32> to vector<19x128xbf16>
    %c4_245 = arith.constant 4 : index
    %c0_246 = arith.constant 0 : index
    %c0_247 = arith.constant 0 : index
    %388 = vector.load %arg4[%c4_245, %c0_246, %c0_247] : memref<5x128x256xbf16, #tpu.memory_space<vmem>>, vector<1x128x256xbf16>
    %389 = vector.shape_cast %388 : vector<1x128x256xbf16> to vector<128x256xbf16>
    %cst_248 = arith.constant dense<0.000000e+00> : vector<19x256xf32>
    %390 = tpu.matmul %387, %389, %cst_248 {dimension_numbers = #tpu.dot_dimension_numbers<[1], [0], [0], [1], [0, 0, 1, 1], [], []>} : vector<19x128xbf16>, vector<128x256xbf16>, vector<19x256xf32> -> vector<19x256xf32>
    %391 = arith.addf %385, %390 : vector<19x256xf32>
    %392 = vector.extract_strided_slice %391 {offsets = [0, 0], sizes = [19, 128], strides = [1, 1]} : vector<19x256xf32> to vector<19x128xf32>
    %393 = vector.extract_strided_slice %391 {offsets = [0, 128], sizes = [19, 128], strides = [1, 1]} : vector<19x256xf32> to vector<19x128xf32>
    %394 = arith.maximumf %392, %393 : vector<19x128xf32>
    %395 = vector.extract_strided_slice %394 {offsets = [0, 0], sizes = [17, 128], strides = [1, 1]} : vector<19x128xf32> to vector<17x128xf32>
    %396 = vector.extract_strided_slice %394 {offsets = [2, 0], sizes = [17, 128], strides = [1, 1]} : vector<19x128xf32> to vector<17x128xf32>
    %397 = arith.maximumf %395, %396 : vector<17x128xf32>
    %398 = vector.extract_strided_slice %397 {offsets = [0, 0], sizes = [1, 128], strides = [1, 1]} : vector<17x128xf32> to vector<1x128xf32>
    %c0_249 = arith.constant 0 : index
    %c0_250 = arith.constant 0 : index
    %399 = vector.load %arg5[%c0_249, %c0_250] : memref<1x128xf32, #tpu.memory_space<vmem>>, vector<1x128xf32>
    %400 = arith.addf %398, %399 : vector<1x128xf32>
    %cst_251 = arith.constant 0.000000e+00 : f32
    %401 = vector.broadcast %cst_251 : f32 to vector<1x128xf32>
    %402 = arith.maximumf %400, %401 : vector<1x128xf32>
    %c3_252 = arith.constant 3 : index
    %c0_253 = arith.constant 0 : index
    %403 = vector.load %arg13[%c3_252, %c0_253] : memref<8x640xf32, #tpu.memory_space<vmem>>, vector<1x128xf32>
    tpu.vector_store %arg13[%c3_252, %c0_253], %402 {strides = array<i32>} : memref<8x640xf32, #tpu.memory_space<vmem>>, vector<1x128xf32>,
    %404 = vector.extract_strided_slice %397 {offsets = [4, 0], sizes = [1, 128], strides = [1, 1]} : vector<17x128xf32> to vector<1x128xf32>
    %c0_254 = arith.constant 0 : index
    %c0_255 = arith.constant 0 : index
    %405 = vector.load %arg5[%c0_254, %c0_255] : memref<1x128xf32, #tpu.memory_space<vmem>>, vector<1x128xf32>
    %406 = arith.addf %404, %405 : vector<1x128xf32>
    %cst_256 = arith.constant 0.000000e+00 : f32
    %407 = vector.broadcast %cst_256 : f32 to vector<1x128xf32>
    %408 = arith.maximumf %406, %407 : vector<1x128xf32>
    %c3_257 = arith.constant 3 : index
    %c128_258 = arith.constant 128 : index
    %409 = vector.load %arg13[%c3_257, %c128_258] : memref<8x640xf32, #tpu.memory_space<vmem>>, vector<1x128xf32>
    tpu.vector_store %arg13[%c3_257, %c128_258], %408 {strides = array<i32>} : memref<8x640xf32, #tpu.memory_space<vmem>>, vector<1x128xf32>,
    %410 = vector.extract_strided_slice %397 {offsets = [8, 0], sizes = [1, 128], strides = [1, 1]} : vector<17x128xf32> to vector<1x128xf32>
    %c0_259 = arith.constant 0 : index
    %c0_260 = arith.constant 0 : index
    %411 = vector.load %arg5[%c0_259, %c0_260] : memref<1x128xf32, #tpu.memory_space<vmem>>, vector<1x128xf32>
    %412 = arith.addf %410, %411 : vector<1x128xf32>
    %cst_261 = arith.constant 0.000000e+00 : f32
    %413 = vector.broadcast %cst_261 : f32 to vector<1x128xf32>
    %414 = arith.maximumf %412, %413 : vector<1x128xf32>
    %c3_262 = arith.constant 3 : index
    %c256_263 = arith.constant 256 : index
    %415 = vector.load %arg13[%c3_262, %c256_263] : memref<8x640xf32, #tpu.memory_space<vmem>>, vector<1x128xf32>
    tpu.vector_store %arg13[%c3_262, %c256_263], %414 {strides = array<i32>} : memref<8x640xf32, #tpu.memory_space<vmem>>, vector<1x128xf32>,
    %416 = vector.extract_strided_slice %397 {offsets = [12, 0], sizes = [1, 128], strides = [1, 1]} : vector<17x128xf32> to vector<1x128xf32>
    %c0_264 = arith.constant 0 : index
    %c0_265 = arith.constant 0 : index
    %417 = vector.load %arg5[%c0_264, %c0_265] : memref<1x128xf32, #tpu.memory_space<vmem>>, vector<1x128xf32>
    %418 = arith.addf %416, %417 : vector<1x128xf32>
    %cst_266 = arith.constant 0.000000e+00 : f32
    %419 = vector.broadcast %cst_266 : f32 to vector<1x128xf32>
    %420 = arith.maximumf %418, %419 : vector<1x128xf32>
    %c3_267 = arith.constant 3 : index
    %c384_268 = arith.constant 384 : index
    %421 = vector.load %arg13[%c3_267, %c384_268] : memref<8x640xf32, #tpu.memory_space<vmem>>, vector<1x128xf32>
    tpu.vector_store %arg13[%c3_267, %c384_268], %420 {strides = array<i32>} : memref<8x640xf32, #tpu.memory_space<vmem>>, vector<1x128xf32>,
    %422 = vector.extract_strided_slice %397 {offsets = [16, 0], sizes = [1, 128], strides = [1, 1]} : vector<17x128xf32> to vector<1x128xf32>
    %c0_269 = arith.constant 0 : index
    %c0_270 = arith.constant 0 : index
    %423 = vector.load %arg5[%c0_269, %c0_270] : memref<1x128xf32, #tpu.memory_space<vmem>>, vector<1x128xf32>
    %424 = arith.addf %422, %423 : vector<1x128xf32>
    %cst_271 = arith.constant 0.000000e+00 : f32
    %425 = vector.broadcast %cst_271 : f32 to vector<1x128xf32>
    %426 = arith.maximumf %424, %425 : vector<1x128xf32>
    %c3_272 = arith.constant 3 : index
    %c512_273 = arith.constant 512 : index
    %427 = vector.load %arg13[%c3_272, %c512_273] : memref<8x640xf32, #tpu.memory_space<vmem>>, vector<1x128xf32>
    tpu.vector_store %arg13[%c3_272, %c512_273], %426 {strides = array<i32>} : memref<8x640xf32, #tpu.memory_space<vmem>>, vector<1x128xf32>,
    %c4_274 = arith.constant 4 : index
    %c0_275 = arith.constant 0 : index
    %c0_276 = arith.constant 0 : index
    %428 = vector.load %arg1[%c4_274, %c0_275, %c0_276] : memref<8x32x128xf32, #tpu.memory_space<vmem>>, vector<1x32x128xf32>
    %429 = vector.shape_cast %428 : vector<1x32x128xf32> to vector<32x128xf32>
    %430 = vector.extract_strided_slice %429 {offsets = [0, 0], sizes = [28, 128], strides = [1, 1]} : vector<32x128xf32> to vector<28x128xf32>
    %431 = arith.truncf %430 : vector<28x128xf32> to vector<28x128xbf16>
    %c0_277 = arith.constant 0 : index
    %c0_278 = arith.constant 0 : index
    %c0_279 = arith.constant 0 : index
    %432 = vector.load %arg2[%c0_277, %c0_278, %c0_279] : memref<5x128x256xbf16, #tpu.memory_space<vmem>>, vector<1x128x256xbf16>
    %433 = vector.shape_cast %432 : vector<1x128x256xbf16> to vector<128x256xbf16>
    %cst_280 = arith.constant dense<0.000000e+00> : vector<28x256xf32>
    %434 = tpu.matmul %431, %433, %cst_280 {dimension_numbers = #tpu.dot_dimension_numbers<[1], [0], [0], [1], [0, 0, 1, 1], [], []>} : vector<28x128xbf16>, vector<128x256xbf16>, vector<28x256xf32> -> vector<28x256xf32>
    %435 = vector.extract_strided_slice %429 {offsets = [1, 0], sizes = [28, 128], strides = [1, 1]} : vector<32x128xf32> to vector<28x128xf32>
    %436 = arith.truncf %435 : vector<28x128xf32> to vector<28x128xbf16>
    %c1_281 = arith.constant 1 : index
    %c0_282 = arith.constant 0 : index
    %c0_283 = arith.constant 0 : index
    %437 = vector.load %arg2[%c1_281, %c0_282, %c0_283] : memref<5x128x256xbf16, #tpu.memory_space<vmem>>, vector<1x128x256xbf16>
    %438 = vector.shape_cast %437 : vector<1x128x256xbf16> to vector<128x256xbf16>
    %cst_284 = arith.constant dense<0.000000e+00> : vector<28x256xf32>
    %439 = tpu.matmul %436, %438, %cst_284 {dimension_numbers = #tpu.dot_dimension_numbers<[1], [0], [0], [1], [0, 0, 1, 1], [], []>} : vector<28x128xbf16>, vector<128x256xbf16>, vector<28x256xf32> -> vector<28x256xf32>
    %440 = arith.addf %434, %439 : vector<28x256xf32>
    %441 = vector.extract_strided_slice %429 {offsets = [2, 0], sizes = [28, 128], strides = [1, 1]} : vector<32x128xf32> to vector<28x128xf32>
    %442 = arith.truncf %441 : vector<28x128xf32> to vector<28x128xbf16>
    %c2_285 = arith.constant 2 : index
    %c0_286 = arith.constant 0 : index
    %c0_287 = arith.constant 0 : index
    %443 = vector.load %arg2[%c2_285, %c0_286, %c0_287] : memref<5x128x256xbf16, #tpu.memory_space<vmem>>, vector<1x128x256xbf16>
    %444 = vector.shape_cast %443 : vector<1x128x256xbf16> to vector<128x256xbf16>
    %cst_288 = arith.constant dense<0.000000e+00> : vector<28x256xf32>
    %445 = tpu.matmul %442, %444, %cst_288 {dimension_numbers = #tpu.dot_dimension_numbers<[1], [0], [0], [1], [0, 0, 1, 1], [], []>} : vector<28x128xbf16>, vector<128x256xbf16>, vector<28x256xf32> -> vector<28x256xf32>
    %446 = arith.addf %440, %445 : vector<28x256xf32>
    %447 = vector.extract_strided_slice %429 {offsets = [3, 0], sizes = [28, 128], strides = [1, 1]} : vector<32x128xf32> to vector<28x128xf32>
    %448 = arith.truncf %447 : vector<28x128xf32> to vector<28x128xbf16>
    %c3_289 = arith.constant 3 : index
    %c0_290 = arith.constant 0 : index
    %c0_291 = arith.constant 0 : index
    %449 = vector.load %arg2[%c3_289, %c0_290, %c0_291] : memref<5x128x256xbf16, #tpu.memory_space<vmem>>, vector<1x128x256xbf16>
    %450 = vector.shape_cast %449 : vector<1x128x256xbf16> to vector<128x256xbf16>
    %cst_292 = arith.constant dense<0.000000e+00> : vector<28x256xf32>
    %451 = tpu.matmul %448, %450, %cst_292 {dimension_numbers = #tpu.dot_dimension_numbers<[1], [0], [0], [1], [0, 0, 1, 1], [], []>} : vector<28x128xbf16>, vector<128x256xbf16>, vector<28x256xf32> -> vector<28x256xf32>
    %452 = arith.addf %446, %451 : vector<28x256xf32>
    %453 = vector.extract_strided_slice %429 {offsets = [4, 0], sizes = [28, 128], strides = [1, 1]} : vector<32x128xf32> to vector<28x128xf32>
    %454 = arith.truncf %453 : vector<28x128xf32> to vector<28x128xbf16>
    %c4_293 = arith.constant 4 : index
    %c0_294 = arith.constant 0 : index
    %c0_295 = arith.constant 0 : index
    %455 = vector.load %arg2[%c4_293, %c0_294, %c0_295] : memref<5x128x256xbf16, #tpu.memory_space<vmem>>, vector<1x128x256xbf16>
    %456 = vector.shape_cast %455 : vector<1x128x256xbf16> to vector<128x256xbf16>
    %cst_296 = arith.constant dense<0.000000e+00> : vector<28x256xf32>
    %457 = tpu.matmul %454, %456, %cst_296 {dimension_numbers = #tpu.dot_dimension_numbers<[1], [0], [0], [1], [0, 0, 1, 1], [], []>} : vector<28x128xbf16>, vector<128x256xbf16>, vector<28x256xf32> -> vector<28x256xf32>
    %458 = arith.addf %452, %457 : vector<28x256xf32>
    %459 = vector.extract_strided_slice %458 {offsets = [0, 0], sizes = [28, 128], strides = [1, 1]} : vector<28x256xf32> to vector<28x128xf32>
    %460 = vector.extract_strided_slice %458 {offsets = [0, 128], sizes = [28, 128], strides = [1, 1]} : vector<28x256xf32> to vector<28x128xf32>
    %461 = arith.maximumf %459, %460 : vector<28x128xf32>
    %462 = vector.extract_strided_slice %461 {offsets = [0, 0], sizes = [27, 128], strides = [1, 1]} : vector<28x128xf32> to vector<27x128xf32>
    %463 = vector.extract_strided_slice %461 {offsets = [1, 0], sizes = [27, 128], strides = [1, 1]} : vector<28x128xf32> to vector<27x128xf32>
    %464 = arith.maximumf %462, %463 : vector<27x128xf32>
    %c0_297 = arith.constant 0 : index
    %c0_298 = arith.constant 0 : index
    %465 = vector.load %arg3[%c0_297, %c0_298] : memref<1x128xf32, #tpu.memory_space<vmem>>, vector<1x128xf32>
    %466 = vector.broadcast %465 : vector<1x128xf32> to vector<27x128xf32>
    %467 = arith.addf %464, %466 : vector<27x128xf32>
    %cst_299 = arith.constant 0.000000e+00 : f32
    %468 = vector.broadcast %cst_299 : f32 to vector<27x128xf32>
    %469 = arith.maximumf %467, %468 : vector<27x128xf32>
    %470 = vector.extract_strided_slice %469 {offsets = [0, 0], sizes = [19, 128], strides = [1, 1]} : vector<27x128xf32> to vector<19x128xf32>
    %471 = arith.truncf %470 : vector<19x128xf32> to vector<19x128xbf16>
    %c0_300 = arith.constant 0 : index
    %c0_301 = arith.constant 0 : index
    %c0_302 = arith.constant 0 : index
    %472 = vector.load %arg4[%c0_300, %c0_301, %c0_302] : memref<5x128x256xbf16, #tpu.memory_space<vmem>>, vector<1x128x256xbf16>
    %473 = vector.shape_cast %472 : vector<1x128x256xbf16> to vector<128x256xbf16>
    %cst_303 = arith.constant dense<0.000000e+00> : vector<19x256xf32>
    %474 = tpu.matmul %471, %473, %cst_303 {dimension_numbers = #tpu.dot_dimension_numbers<[1], [0], [0], [1], [0, 0, 1, 1], [], []>} : vector<19x128xbf16>, vector<128x256xbf16>, vector<19x256xf32> -> vector<19x256xf32>
    %475 = vector.extract_strided_slice %469 {offsets = [2, 0], sizes = [19, 128], strides = [1, 1]} : vector<27x128xf32> to vector<19x128xf32>
    %476 = arith.truncf %475 : vector<19x128xf32> to vector<19x128xbf16>
    %c1_304 = arith.constant 1 : index
    %c0_305 = arith.constant 0 : index
    %c0_306 = arith.constant 0 : index
    %477 = vector.load %arg4[%c1_304, %c0_305, %c0_306] : memref<5x128x256xbf16, #tpu.memory_space<vmem>>, vector<1x128x256xbf16>
    %478 = vector.shape_cast %477 : vector<1x128x256xbf16> to vector<128x256xbf16>
    %cst_307 = arith.constant dense<0.000000e+00> : vector<19x256xf32>
    %479 = tpu.matmul %476, %478, %cst_307 {dimension_numbers = #tpu.dot_dimension_numbers<[1], [0], [0], [1], [0, 0, 1, 1], [], []>} : vector<19x128xbf16>, vector<128x256xbf16>, vector<19x256xf32> -> vector<19x256xf32>
    %480 = arith.addf %474, %479 : vector<19x256xf32>
    %481 = vector.extract_strided_slice %469 {offsets = [4, 0], sizes = [19, 128], strides = [1, 1]} : vector<27x128xf32> to vector<19x128xf32>
    %482 = arith.truncf %481 : vector<19x128xf32> to vector<19x128xbf16>
    %c2_308 = arith.constant 2 : index
    %c0_309 = arith.constant 0 : index
    %c0_310 = arith.constant 0 : index
    %483 = vector.load %arg4[%c2_308, %c0_309, %c0_310] : memref<5x128x256xbf16, #tpu.memory_space<vmem>>, vector<1x128x256xbf16>
    %484 = vector.shape_cast %483 : vector<1x128x256xbf16> to vector<128x256xbf16>
    %cst_311 = arith.constant dense<0.000000e+00> : vector<19x256xf32>
    %485 = tpu.matmul %482, %484, %cst_311 {dimension_numbers = #tpu.dot_dimension_numbers<[1], [0], [0], [1], [0, 0, 1, 1], [], []>} : vector<19x128xbf16>, vector<128x256xbf16>, vector<19x256xf32> -> vector<19x256xf32>
    %486 = arith.addf %480, %485 : vector<19x256xf32>
    %487 = vector.extract_strided_slice %469 {offsets = [6, 0], sizes = [19, 128], strides = [1, 1]} : vector<27x128xf32> to vector<19x128xf32>
    %488 = arith.truncf %487 : vector<19x128xf32> to vector<19x128xbf16>
    %c3_312 = arith.constant 3 : index
    %c0_313 = arith.constant 0 : index
    %c0_314 = arith.constant 0 : index
    %489 = vector.load %arg4[%c3_312, %c0_313, %c0_314] : memref<5x128x256xbf16, #tpu.memory_space<vmem>>, vector<1x128x256xbf16>
    %490 = vector.shape_cast %489 : vector<1x128x256xbf16> to vector<128x256xbf16>
    %cst_315 = arith.constant dense<0.000000e+00> : vector<19x256xf32>
    %491 = tpu.matmul %488, %490, %cst_315 {dimension_numbers = #tpu.dot_dimension_numbers<[1], [0], [0], [1], [0, 0, 1, 1], [], []>} : vector<19x128xbf16>, vector<128x256xbf16>, vector<19x256xf32> -> vector<19x256xf32>
    %492 = arith.addf %486, %491 : vector<19x256xf32>
    %493 = vector.extract_strided_slice %469 {offsets = [8, 0], sizes = [19, 128], strides = [1, 1]} : vector<27x128xf32> to vector<19x128xf32>
    %494 = arith.truncf %493 : vector<19x128xf32> to vector<19x128xbf16>
    %c4_316 = arith.constant 4 : index
    %c0_317 = arith.constant 0 : index
    %c0_318 = arith.constant 0 : index
    %495 = vector.load %arg4[%c4_316, %c0_317, %c0_318] : memref<5x128x256xbf16, #tpu.memory_space<vmem>>, vector<1x128x256xbf16>
    %496 = vector.shape_cast %495 : vector<1x128x256xbf16> to vector<128x256xbf16>
    %cst_319 = arith.constant dense<0.000000e+00> : vector<19x256xf32>
    %497 = tpu.matmul %494, %496, %cst_319 {dimension_numbers = #tpu.dot_dimension_numbers<[1], [0], [0], [1], [0, 0, 1, 1], [], []>} : vector<19x128xbf16>, vector<128x256xbf16>, vector<19x256xf32> -> vector<19x256xf32>
    %498 = arith.addf %492, %497 : vector<19x256xf32>
    %499 = vector.extract_strided_slice %498 {offsets = [0, 0], sizes = [19, 128], strides = [1, 1]} : vector<19x256xf32> to vector<19x128xf32>
    %500 = vector.extract_strided_slice %498 {offsets = [0, 128], sizes = [19, 128], strides = [1, 1]} : vector<19x256xf32> to vector<19x128xf32>
    %501 = arith.maximumf %499, %500 : vector<19x128xf32>
    %502 = vector.extract_strided_slice %501 {offsets = [0, 0], sizes = [17, 128], strides = [1, 1]} : vector<19x128xf32> to vector<17x128xf32>
    %503 = vector.extract_strided_slice %501 {offsets = [2, 0], sizes = [17, 128], strides = [1, 1]} : vector<19x128xf32> to vector<17x128xf32>
    %504 = arith.maximumf %502, %503 : vector<17x128xf32>
    %505 = vector.extract_strided_slice %504 {offsets = [0, 0], sizes = [1, 128], strides = [1, 1]} : vector<17x128xf32> to vector<1x128xf32>
    %c0_320 = arith.constant 0 : index
    %c0_321 = arith.constant 0 : index
    %506 = vector.load %arg5[%c0_320, %c0_321] : memref<1x128xf32, #tpu.memory_space<vmem>>, vector<1x128xf32>
    %507 = arith.addf %505, %506 : vector<1x128xf32>
    %cst_322 = arith.constant 0.000000e+00 : f32
    %508 = vector.broadcast %cst_322 : f32 to vector<1x128xf32>
    %509 = arith.maximumf %507, %508 : vector<1x128xf32>
    %c4_323 = arith.constant 4 : index
    %c0_324 = arith.constant 0 : index
    %510 = vector.load %arg13[%c4_323, %c0_324] : memref<8x640xf32, #tpu.memory_space<vmem>>, vector<1x128xf32>
    tpu.vector_store %arg13[%c4_323, %c0_324], %509 {strides = array<i32>} : memref<8x640xf32, #tpu.memory_space<vmem>>, vector<1x128xf32>,
    %511 = vector.extract_strided_slice %504 {offsets = [4, 0], sizes = [1, 128], strides = [1, 1]} : vector<17x128xf32> to vector<1x128xf32>
    %c0_325 = arith.constant 0 : index
    %c0_326 = arith.constant 0 : index
    %512 = vector.load %arg5[%c0_325, %c0_326] : memref<1x128xf32, #tpu.memory_space<vmem>>, vector<1x128xf32>
    %513 = arith.addf %511, %512 : vector<1x128xf32>
    %cst_327 = arith.constant 0.000000e+00 : f32
    %514 = vector.broadcast %cst_327 : f32 to vector<1x128xf32>
    %515 = arith.maximumf %513, %514 : vector<1x128xf32>
    %c4_328 = arith.constant 4 : index
    %c128_329 = arith.constant 128 : index
    %516 = vector.load %arg13[%c4_328, %c128_329] : memref<8x640xf32, #tpu.memory_space<vmem>>, vector<1x128xf32>
    tpu.vector_store %arg13[%c4_328, %c128_329], %515 {strides = array<i32>} : memref<8x640xf32, #tpu.memory_space<vmem>>, vector<1x128xf32>,
    %517 = vector.extract_strided_slice %504 {offsets = [8, 0], sizes = [1, 128], strides = [1, 1]} : vector<17x128xf32> to vector<1x128xf32>
    %c0_330 = arith.constant 0 : index
    %c0_331 = arith.constant 0 : index
    %518 = vector.load %arg5[%c0_330, %c0_331] : memref<1x128xf32, #tpu.memory_space<vmem>>, vector<1x128xf32>
    %519 = arith.addf %517, %518 : vector<1x128xf32>
    %cst_332 = arith.constant 0.000000e+00 : f32
    %520 = vector.broadcast %cst_332 : f32 to vector<1x128xf32>
    %521 = arith.maximumf %519, %520 : vector<1x128xf32>
    %c4_333 = arith.constant 4 : index
    %c256_334 = arith.constant 256 : index
    %522 = vector.load %arg13[%c4_333, %c256_334] : memref<8x640xf32, #tpu.memory_space<vmem>>, vector<1x128xf32>
    tpu.vector_store %arg13[%c4_333, %c256_334], %521 {strides = array<i32>} : memref<8x640xf32, #tpu.memory_space<vmem>>, vector<1x128xf32>,
    %523 = vector.extract_strided_slice %504 {offsets = [12, 0], sizes = [1, 128], strides = [1, 1]} : vector<17x128xf32> to vector<1x128xf32>
    %c0_335 = arith.constant 0 : index
    %c0_336 = arith.constant 0 : index
    %524 = vector.load %arg5[%c0_335, %c0_336] : memref<1x128xf32, #tpu.memory_space<vmem>>, vector<1x128xf32>
    %525 = arith.addf %523, %524 : vector<1x128xf32>
    %cst_337 = arith.constant 0.000000e+00 : f32
    %526 = vector.broadcast %cst_337 : f32 to vector<1x128xf32>
    %527 = arith.maximumf %525, %526 : vector<1x128xf32>
    %c4_338 = arith.constant 4 : index
    %c384_339 = arith.constant 384 : index
    %528 = vector.load %arg13[%c4_338, %c384_339] : memref<8x640xf32, #tpu.memory_space<vmem>>, vector<1x128xf32>
    tpu.vector_store %arg13[%c4_338, %c384_339], %527 {strides = array<i32>} : memref<8x640xf32, #tpu.memory_space<vmem>>, vector<1x128xf32>,
    %529 = vector.extract_strided_slice %504 {offsets = [16, 0], sizes = [1, 128], strides = [1, 1]} : vector<17x128xf32> to vector<1x128xf32>
    %c0_340 = arith.constant 0 : index
    %c0_341 = arith.constant 0 : index
    %530 = vector.load %arg5[%c0_340, %c0_341] : memref<1x128xf32, #tpu.memory_space<vmem>>, vector<1x128xf32>
    %531 = arith.addf %529, %530 : vector<1x128xf32>
    %cst_342 = arith.constant 0.000000e+00 : f32
    %532 = vector.broadcast %cst_342 : f32 to vector<1x128xf32>
    %533 = arith.maximumf %531, %532 : vector<1x128xf32>
    %c4_343 = arith.constant 4 : index
    %c512_344 = arith.constant 512 : index
    %534 = vector.load %arg13[%c4_343, %c512_344] : memref<8x640xf32, #tpu.memory_space<vmem>>, vector<1x128xf32>
    tpu.vector_store %arg13[%c4_343, %c512_344], %533 {strides = array<i32>} : memref<8x640xf32, #tpu.memory_space<vmem>>, vector<1x128xf32>,
    %c5 = arith.constant 5 : index
    %c0_345 = arith.constant 0 : index
    %c0_346 = arith.constant 0 : index
    %535 = vector.load %arg1[%c5, %c0_345, %c0_346] : memref<8x32x128xf32, #tpu.memory_space<vmem>>, vector<1x32x128xf32>
    %536 = vector.shape_cast %535 : vector<1x32x128xf32> to vector<32x128xf32>
    %537 = vector.extract_strided_slice %536 {offsets = [0, 0], sizes = [28, 128], strides = [1, 1]} : vector<32x128xf32> to vector<28x128xf32>
    %538 = arith.truncf %537 : vector<28x128xf32> to vector<28x128xbf16>
    %c0_347 = arith.constant 0 : index
    %c0_348 = arith.constant 0 : index
    %c0_349 = arith.constant 0 : index
    %539 = vector.load %arg2[%c0_347, %c0_348, %c0_349] : memref<5x128x256xbf16, #tpu.memory_space<vmem>>, vector<1x128x256xbf16>
    %540 = vector.shape_cast %539 : vector<1x128x256xbf16> to vector<128x256xbf16>
    %cst_350 = arith.constant dense<0.000000e+00> : vector<28x256xf32>
    %541 = tpu.matmul %538, %540, %cst_350 {dimension_numbers = #tpu.dot_dimension_numbers<[1], [0], [0], [1], [0, 0, 1, 1], [], []>} : vector<28x128xbf16>, vector<128x256xbf16>, vector<28x256xf32> -> vector<28x256xf32>
    %542 = vector.extract_strided_slice %536 {offsets = [1, 0], sizes = [28, 128], strides = [1, 1]} : vector<32x128xf32> to vector<28x128xf32>
    %543 = arith.truncf %542 : vector<28x128xf32> to vector<28x128xbf16>
    %c1_351 = arith.constant 1 : index
    %c0_352 = arith.constant 0 : index
    %c0_353 = arith.constant 0 : index
    %544 = vector.load %arg2[%c1_351, %c0_352, %c0_353] : memref<5x128x256xbf16, #tpu.memory_space<vmem>>, vector<1x128x256xbf16>
    %545 = vector.shape_cast %544 : vector<1x128x256xbf16> to vector<128x256xbf16>
    %cst_354 = arith.constant dense<0.000000e+00> : vector<28x256xf32>
    %546 = tpu.matmul %543, %545, %cst_354 {dimension_numbers = #tpu.dot_dimension_numbers<[1], [0], [0], [1], [0, 0, 1, 1], [], []>} : vector<28x128xbf16>, vector<128x256xbf16>, vector<28x256xf32> -> vector<28x256xf32>
    %547 = arith.addf %541, %546 : vector<28x256xf32>
    %548 = vector.extract_strided_slice %536 {offsets = [2, 0], sizes = [28, 128], strides = [1, 1]} : vector<32x128xf32> to vector<28x128xf32>
    %549 = arith.truncf %548 : vector<28x128xf32> to vector<28x128xbf16>
    %c2_355 = arith.constant 2 : index
    %c0_356 = arith.constant 0 : index
    %c0_357 = arith.constant 0 : index
    %550 = vector.load %arg2[%c2_355, %c0_356, %c0_357] : memref<5x128x256xbf16, #tpu.memory_space<vmem>>, vector<1x128x256xbf16>
    %551 = vector.shape_cast %550 : vector<1x128x256xbf16> to vector<128x256xbf16>
    %cst_358 = arith.constant dense<0.000000e+00> : vector<28x256xf32>
    %552 = tpu.matmul %549, %551, %cst_358 {dimension_numbers = #tpu.dot_dimension_numbers<[1], [0], [0], [1], [0, 0, 1, 1], [], []>} : vector<28x128xbf16>, vector<128x256xbf16>, vector<28x256xf32> -> vector<28x256xf32>
    %553 = arith.addf %547, %552 : vector<28x256xf32>
    %554 = vector.extract_strided_slice %536 {offsets = [3, 0], sizes = [28, 128], strides = [1, 1]} : vector<32x128xf32> to vector<28x128xf32>
    %555 = arith.truncf %554 : vector<28x128xf32> to vector<28x128xbf16>
    %c3_359 = arith.constant 3 : index
    %c0_360 = arith.constant 0 : index
    %c0_361 = arith.constant 0 : index
    %556 = vector.load %arg2[%c3_359, %c0_360, %c0_361] : memref<5x128x256xbf16, #tpu.memory_space<vmem>>, vector<1x128x256xbf16>
    %557 = vector.shape_cast %556 : vector<1x128x256xbf16> to vector<128x256xbf16>
    %cst_362 = arith.constant dense<0.000000e+00> : vector<28x256xf32>
    %558 = tpu.matmul %555, %557, %cst_362 {dimension_numbers = #tpu.dot_dimension_numbers<[1], [0], [0], [1], [0, 0, 1, 1], [], []>} : vector<28x128xbf16>, vector<128x256xbf16>, vector<28x256xf32> -> vector<28x256xf32>
    %559 = arith.addf %553, %558 : vector<28x256xf32>
    %560 = vector.extract_strided_slice %536 {offsets = [4, 0], sizes = [28, 128], strides = [1, 1]} : vector<32x128xf32> to vector<28x128xf32>
    %561 = arith.truncf %560 : vector<28x128xf32> to vector<28x128xbf16>
    %c4_363 = arith.constant 4 : index
    %c0_364 = arith.constant 0 : index
    %c0_365 = arith.constant 0 : index
    %562 = vector.load %arg2[%c4_363, %c0_364, %c0_365] : memref<5x128x256xbf16, #tpu.memory_space<vmem>>, vector<1x128x256xbf16>
    %563 = vector.shape_cast %562 : vector<1x128x256xbf16> to vector<128x256xbf16>
    %cst_366 = arith.constant dense<0.000000e+00> : vector<28x256xf32>
    %564 = tpu.matmul %561, %563, %cst_366 {dimension_numbers = #tpu.dot_dimension_numbers<[1], [0], [0], [1], [0, 0, 1, 1], [], []>} : vector<28x128xbf16>, vector<128x256xbf16>, vector<28x256xf32> -> vector<28x256xf32>
    %565 = arith.addf %559, %564 : vector<28x256xf32>
    %566 = vector.extract_strided_slice %565 {offsets = [0, 0], sizes = [28, 128], strides = [1, 1]} : vector<28x256xf32> to vector<28x128xf32>
    %567 = vector.extract_strided_slice %565 {offsets = [0, 128], sizes = [28, 128], strides = [1, 1]} : vector<28x256xf32> to vector<28x128xf32>
    %568 = arith.maximumf %566, %567 : vector<28x128xf32>
    %569 = vector.extract_strided_slice %568 {offsets = [0, 0], sizes = [27, 128], strides = [1, 1]} : vector<28x128xf32> to vector<27x128xf32>
    %570 = vector.extract_strided_slice %568 {offsets = [1, 0], sizes = [27, 128], strides = [1, 1]} : vector<28x128xf32> to vector<27x128xf32>
    %571 = arith.maximumf %569, %570 : vector<27x128xf32>
    %c0_367 = arith.constant 0 : index
    %c0_368 = arith.constant 0 : index
    %572 = vector.load %arg3[%c0_367, %c0_368] : memref<1x128xf32, #tpu.memory_space<vmem>>, vector<1x128xf32>
    %573 = vector.broadcast %572 : vector<1x128xf32> to vector<27x128xf32>
    %574 = arith.addf %571, %573 : vector<27x128xf32>
    %cst_369 = arith.constant 0.000000e+00 : f32
    %575 = vector.broadcast %cst_369 : f32 to vector<27x128xf32>
    %576 = arith.maximumf %574, %575 : vector<27x128xf32>
    %577 = vector.extract_strided_slice %576 {offsets = [0, 0], sizes = [19, 128], strides = [1, 1]} : vector<27x128xf32> to vector<19x128xf32>
    %578 = arith.truncf %577 : vector<19x128xf32> to vector<19x128xbf16>
    %c0_370 = arith.constant 0 : index
    %c0_371 = arith.constant 0 : index
    %c0_372 = arith.constant 0 : index
    %579 = vector.load %arg4[%c0_370, %c0_371, %c0_372] : memref<5x128x256xbf16, #tpu.memory_space<vmem>>, vector<1x128x256xbf16>
    %580 = vector.shape_cast %579 : vector<1x128x256xbf16> to vector<128x256xbf16>
    %cst_373 = arith.constant dense<0.000000e+00> : vector<19x256xf32>
    %581 = tpu.matmul %578, %580, %cst_373 {dimension_numbers = #tpu.dot_dimension_numbers<[1], [0], [0], [1], [0, 0, 1, 1], [], []>} : vector<19x128xbf16>, vector<128x256xbf16>, vector<19x256xf32> -> vector<19x256xf32>
    %582 = vector.extract_strided_slice %576 {offsets = [2, 0], sizes = [19, 128], strides = [1, 1]} : vector<27x128xf32> to vector<19x128xf32>
    %583 = arith.truncf %582 : vector<19x128xf32> to vector<19x128xbf16>
    %c1_374 = arith.constant 1 : index
    %c0_375 = arith.constant 0 : index
    %c0_376 = arith.constant 0 : index
    %584 = vector.load %arg4[%c1_374, %c0_375, %c0_376] : memref<5x128x256xbf16, #tpu.memory_space<vmem>>, vector<1x128x256xbf16>
    %585 = vector.shape_cast %584 : vector<1x128x256xbf16> to vector<128x256xbf16>
    %cst_377 = arith.constant dense<0.000000e+00> : vector<19x256xf32>
    %586 = tpu.matmul %583, %585, %cst_377 {dimension_numbers = #tpu.dot_dimension_numbers<[1], [0], [0], [1], [0, 0, 1, 1], [], []>} : vector<19x128xbf16>, vector<128x256xbf16>, vector<19x256xf32> -> vector<19x256xf32>
    %587 = arith.addf %581, %586 : vector<19x256xf32>
    %588 = vector.extract_strided_slice %576 {offsets = [4, 0], sizes = [19, 128], strides = [1, 1]} : vector<27x128xf32> to vector<19x128xf32>
    %589 = arith.truncf %588 : vector<19x128xf32> to vector<19x128xbf16>
    %c2_378 = arith.constant 2 : index
    %c0_379 = arith.constant 0 : index
    %c0_380 = arith.constant 0 : index
    %590 = vector.load %arg4[%c2_378, %c0_379, %c0_380] : memref<5x128x256xbf16, #tpu.memory_space<vmem>>, vector<1x128x256xbf16>
    %591 = vector.shape_cast %590 : vector<1x128x256xbf16> to vector<128x256xbf16>
    %cst_381 = arith.constant dense<0.000000e+00> : vector<19x256xf32>
    %592 = tpu.matmul %589, %591, %cst_381 {dimension_numbers = #tpu.dot_dimension_numbers<[1], [0], [0], [1], [0, 0, 1, 1], [], []>} : vector<19x128xbf16>, vector<128x256xbf16>, vector<19x256xf32> -> vector<19x256xf32>
    %593 = arith.addf %587, %592 : vector<19x256xf32>
    %594 = vector.extract_strided_slice %576 {offsets = [6, 0], sizes = [19, 128], strides = [1, 1]} : vector<27x128xf32> to vector<19x128xf32>
    %595 = arith.truncf %594 : vector<19x128xf32> to vector<19x128xbf16>
    %c3_382 = arith.constant 3 : index
    %c0_383 = arith.constant 0 : index
    %c0_384 = arith.constant 0 : index
    %596 = vector.load %arg4[%c3_382, %c0_383, %c0_384] : memref<5x128x256xbf16, #tpu.memory_space<vmem>>, vector<1x128x256xbf16>
    %597 = vector.shape_cast %596 : vector<1x128x256xbf16> to vector<128x256xbf16>
    %cst_385 = arith.constant dense<0.000000e+00> : vector<19x256xf32>
    %598 = tpu.matmul %595, %597, %cst_385 {dimension_numbers = #tpu.dot_dimension_numbers<[1], [0], [0], [1], [0, 0, 1, 1], [], []>} : vector<19x128xbf16>, vector<128x256xbf16>, vector<19x256xf32> -> vector<19x256xf32>
    %599 = arith.addf %593, %598 : vector<19x256xf32>
    %600 = vector.extract_strided_slice %576 {offsets = [8, 0], sizes = [19, 128], strides = [1, 1]} : vector<27x128xf32> to vector<19x128xf32>
    %601 = arith.truncf %600 : vector<19x128xf32> to vector<19x128xbf16>
    %c4_386 = arith.constant 4 : index
    %c0_387 = arith.constant 0 : index
    %c0_388 = arith.constant 0 : index
    %602 = vector.load %arg4[%c4_386, %c0_387, %c0_388] : memref<5x128x256xbf16, #tpu.memory_space<vmem>>, vector<1x128x256xbf16>
    %603 = vector.shape_cast %602 : vector<1x128x256xbf16> to vector<128x256xbf16>
    %cst_389 = arith.constant dense<0.000000e+00> : vector<19x256xf32>
    %604 = tpu.matmul %601, %603, %cst_389 {dimension_numbers = #tpu.dot_dimension_numbers<[1], [0], [0], [1], [0, 0, 1, 1], [], []>} : vector<19x128xbf16>, vector<128x256xbf16>, vector<19x256xf32> -> vector<19x256xf32>
    %605 = arith.addf %599, %604 : vector<19x256xf32>
    %606 = vector.extract_strided_slice %605 {offsets = [0, 0], sizes = [19, 128], strides = [1, 1]} : vector<19x256xf32> to vector<19x128xf32>
    %607 = vector.extract_strided_slice %605 {offsets = [0, 128], sizes = [19, 128], strides = [1, 1]} : vector<19x256xf32> to vector<19x128xf32>
    %608 = arith.maximumf %606, %607 : vector<19x128xf32>
    %609 = vector.extract_strided_slice %608 {offsets = [0, 0], sizes = [17, 128], strides = [1, 1]} : vector<19x128xf32> to vector<17x128xf32>
    %610 = vector.extract_strided_slice %608 {offsets = [2, 0], sizes = [17, 128], strides = [1, 1]} : vector<19x128xf32> to vector<17x128xf32>
    %611 = arith.maximumf %609, %610 : vector<17x128xf32>
    %612 = vector.extract_strided_slice %611 {offsets = [0, 0], sizes = [1, 128], strides = [1, 1]} : vector<17x128xf32> to vector<1x128xf32>
    %c0_390 = arith.constant 0 : index
    %c0_391 = arith.constant 0 : index
    %613 = vector.load %arg5[%c0_390, %c0_391] : memref<1x128xf32, #tpu.memory_space<vmem>>, vector<1x128xf32>
    %614 = arith.addf %612, %613 : vector<1x128xf32>
    %cst_392 = arith.constant 0.000000e+00 : f32
    %615 = vector.broadcast %cst_392 : f32 to vector<1x128xf32>
    %616 = arith.maximumf %614, %615 : vector<1x128xf32>
    %c5_393 = arith.constant 5 : index
    %c0_394 = arith.constant 0 : index
    %617 = vector.load %arg13[%c5_393, %c0_394] : memref<8x640xf32, #tpu.memory_space<vmem>>, vector<1x128xf32>
    tpu.vector_store %arg13[%c5_393, %c0_394], %616 {strides = array<i32>} : memref<8x640xf32, #tpu.memory_space<vmem>>, vector<1x128xf32>,
    %618 = vector.extract_strided_slice %611 {offsets = [4, 0], sizes = [1, 128], strides = [1, 1]} : vector<17x128xf32> to vector<1x128xf32>
    %c0_395 = arith.constant 0 : index
    %c0_396 = arith.constant 0 : index
    %619 = vector.load %arg5[%c0_395, %c0_396] : memref<1x128xf32, #tpu.memory_space<vmem>>, vector<1x128xf32>
    %620 = arith.addf %618, %619 : vector<1x128xf32>
    %cst_397 = arith.constant 0.000000e+00 : f32
    %621 = vector.broadcast %cst_397 : f32 to vector<1x128xf32>
    %622 = arith.maximumf %620, %621 : vector<1x128xf32>
    %c5_398 = arith.constant 5 : index
    %c128_399 = arith.constant 128 : index
    %623 = vector.load %arg13[%c5_398, %c128_399] : memref<8x640xf32, #tpu.memory_space<vmem>>, vector<1x128xf32>
    tpu.vector_store %arg13[%c5_398, %c128_399], %622 {strides = array<i32>} : memref<8x640xf32, #tpu.memory_space<vmem>>, vector<1x128xf32>,
    %624 = vector.extract_strided_slice %611 {offsets = [8, 0], sizes = [1, 128], strides = [1, 1]} : vector<17x128xf32> to vector<1x128xf32>
    %c0_400 = arith.constant 0 : index
    %c0_401 = arith.constant 0 : index
    %625 = vector.load %arg5[%c0_400, %c0_401] : memref<1x128xf32, #tpu.memory_space<vmem>>, vector<1x128xf32>
    %626 = arith.addf %624, %625 : vector<1x128xf32>
    %cst_402 = arith.constant 0.000000e+00 : f32
    %627 = vector.broadcast %cst_402 : f32 to vector<1x128xf32>
    %628 = arith.maximumf %626, %627 : vector<1x128xf32>
    %c5_403 = arith.constant 5 : index
    %c256_404 = arith.constant 256 : index
    %629 = vector.load %arg13[%c5_403, %c256_404] : memref<8x640xf32, #tpu.memory_space<vmem>>, vector<1x128xf32>
    tpu.vector_store %arg13[%c5_403, %c256_404], %628 {strides = array<i32>} : memref<8x640xf32, #tpu.memory_space<vmem>>, vector<1x128xf32>,
    %630 = vector.extract_strided_slice %611 {offsets = [12, 0], sizes = [1, 128], strides = [1, 1]} : vector<17x128xf32> to vector<1x128xf32>
    %c0_405 = arith.constant 0 : index
    %c0_406 = arith.constant 0 : index
    %631 = vector.load %arg5[%c0_405, %c0_406] : memref<1x128xf32, #tpu.memory_space<vmem>>, vector<1x128xf32>
    %632 = arith.addf %630, %631 : vector<1x128xf32>
    %cst_407 = arith.constant 0.000000e+00 : f32
    %633 = vector.broadcast %cst_407 : f32 to vector<1x128xf32>
    %634 = arith.maximumf %632, %633 : vector<1x128xf32>
    %c5_408 = arith.constant 5 : index
    %c384_409 = arith.constant 384 : index
    %635 = vector.load %arg13[%c5_408, %c384_409] : memref<8x640xf32, #tpu.memory_space<vmem>>, vector<1x128xf32>
    tpu.vector_store %arg13[%c5_408, %c384_409], %634 {strides = array<i32>} : memref<8x640xf32, #tpu.memory_space<vmem>>, vector<1x128xf32>,
    %636 = vector.extract_strided_slice %611 {offsets = [16, 0], sizes = [1, 128], strides = [1, 1]} : vector<17x128xf32> to vector<1x128xf32>
    %c0_410 = arith.constant 0 : index
    %c0_411 = arith.constant 0 : index
    %637 = vector.load %arg5[%c0_410, %c0_411] : memref<1x128xf32, #tpu.memory_space<vmem>>, vector<1x128xf32>
    %638 = arith.addf %636, %637 : vector<1x128xf32>
    %cst_412 = arith.constant 0.000000e+00 : f32
    %639 = vector.broadcast %cst_412 : f32 to vector<1x128xf32>
    %640 = arith.maximumf %638, %639 : vector<1x128xf32>
    %c5_413 = arith.constant 5 : index
    %c512_414 = arith.constant 512 : index
    %641 = vector.load %arg13[%c5_413, %c512_414] : memref<8x640xf32, #tpu.memory_space<vmem>>, vector<1x128xf32>
    tpu.vector_store %arg13[%c5_413, %c512_414], %640 {strides = array<i32>} : memref<8x640xf32, #tpu.memory_space<vmem>>, vector<1x128xf32>,
    %c6 = arith.constant 6 : index
    %c0_415 = arith.constant 0 : index
    %c0_416 = arith.constant 0 : index
    %642 = vector.load %arg1[%c6, %c0_415, %c0_416] : memref<8x32x128xf32, #tpu.memory_space<vmem>>, vector<1x32x128xf32>
    %643 = vector.shape_cast %642 : vector<1x32x128xf32> to vector<32x128xf32>
    %644 = vector.extract_strided_slice %643 {offsets = [0, 0], sizes = [28, 128], strides = [1, 1]} : vector<32x128xf32> to vector<28x128xf32>
    %645 = arith.truncf %644 : vector<28x128xf32> to vector<28x128xbf16>
    %c0_417 = arith.constant 0 : index
    %c0_418 = arith.constant 0 : index
    %c0_419 = arith.constant 0 : index
    %646 = vector.load %arg2[%c0_417, %c0_418, %c0_419] : memref<5x128x256xbf16, #tpu.memory_space<vmem>>, vector<1x128x256xbf16>
    %647 = vector.shape_cast %646 : vector<1x128x256xbf16> to vector<128x256xbf16>
    %cst_420 = arith.constant dense<0.000000e+00> : vector<28x256xf32>
    %648 = tpu.matmul %645, %647, %cst_420 {dimension_numbers = #tpu.dot_dimension_numbers<[1], [0], [0], [1], [0, 0, 1, 1], [], []>} : vector<28x128xbf16>, vector<128x256xbf16>, vector<28x256xf32> -> vector<28x256xf32>
    %649 = vector.extract_strided_slice %643 {offsets = [1, 0], sizes = [28, 128], strides = [1, 1]} : vector<32x128xf32> to vector<28x128xf32>
    %650 = arith.truncf %649 : vector<28x128xf32> to vector<28x128xbf16>
    %c1_421 = arith.constant 1 : index
    %c0_422 = arith.constant 0 : index
    %c0_423 = arith.constant 0 : index
    %651 = vector.load %arg2[%c1_421, %c0_422, %c0_423] : memref<5x128x256xbf16, #tpu.memory_space<vmem>>, vector<1x128x256xbf16>
    %652 = vector.shape_cast %651 : vector<1x128x256xbf16> to vector<128x256xbf16>
    %cst_424 = arith.constant dense<0.000000e+00> : vector<28x256xf32>
    %653 = tpu.matmul %650, %652, %cst_424 {dimension_numbers = #tpu.dot_dimension_numbers<[1], [0], [0], [1], [0, 0, 1, 1], [], []>} : vector<28x128xbf16>, vector<128x256xbf16>, vector<28x256xf32> -> vector<28x256xf32>
    %654 = arith.addf %648, %653 : vector<28x256xf32>
    %655 = vector.extract_strided_slice %643 {offsets = [2, 0], sizes = [28, 128], strides = [1, 1]} : vector<32x128xf32> to vector<28x128xf32>
    %656 = arith.truncf %655 : vector<28x128xf32> to vector<28x128xbf16>
    %c2_425 = arith.constant 2 : index
    %c0_426 = arith.constant 0 : index
    %c0_427 = arith.constant 0 : index
    %657 = vector.load %arg2[%c2_425, %c0_426, %c0_427] : memref<5x128x256xbf16, #tpu.memory_space<vmem>>, vector<1x128x256xbf16>
    %658 = vector.shape_cast %657 : vector<1x128x256xbf16> to vector<128x256xbf16>
    %cst_428 = arith.constant dense<0.000000e+00> : vector<28x256xf32>
    %659 = tpu.matmul %656, %658, %cst_428 {dimension_numbers = #tpu.dot_dimension_numbers<[1], [0], [0], [1], [0, 0, 1, 1], [], []>} : vector<28x128xbf16>, vector<128x256xbf16>, vector<28x256xf32> -> vector<28x256xf32>
    %660 = arith.addf %654, %659 : vector<28x256xf32>
    %661 = vector.extract_strided_slice %643 {offsets = [3, 0], sizes = [28, 128], strides = [1, 1]} : vector<32x128xf32> to vector<28x128xf32>
    %662 = arith.truncf %661 : vector<28x128xf32> to vector<28x128xbf16>
    %c3_429 = arith.constant 3 : index
    %c0_430 = arith.constant 0 : index
    %c0_431 = arith.constant 0 : index
    %663 = vector.load %arg2[%c3_429, %c0_430, %c0_431] : memref<5x128x256xbf16, #tpu.memory_space<vmem>>, vector<1x128x256xbf16>
    %664 = vector.shape_cast %663 : vector<1x128x256xbf16> to vector<128x256xbf16>
    %cst_432 = arith.constant dense<0.000000e+00> : vector<28x256xf32>
    %665 = tpu.matmul %662, %664, %cst_432 {dimension_numbers = #tpu.dot_dimension_numbers<[1], [0], [0], [1], [0, 0, 1, 1], [], []>} : vector<28x128xbf16>, vector<128x256xbf16>, vector<28x256xf32> -> vector<28x256xf32>
    %666 = arith.addf %660, %665 : vector<28x256xf32>
    %667 = vector.extract_strided_slice %643 {offsets = [4, 0], sizes = [28, 128], strides = [1, 1]} : vector<32x128xf32> to vector<28x128xf32>
    %668 = arith.truncf %667 : vector<28x128xf32> to vector<28x128xbf16>
    %c4_433 = arith.constant 4 : index
    %c0_434 = arith.constant 0 : index
    %c0_435 = arith.constant 0 : index
    %669 = vector.load %arg2[%c4_433, %c0_434, %c0_435] : memref<5x128x256xbf16, #tpu.memory_space<vmem>>, vector<1x128x256xbf16>
    %670 = vector.shape_cast %669 : vector<1x128x256xbf16> to vector<128x256xbf16>
    %cst_436 = arith.constant dense<0.000000e+00> : vector<28x256xf32>
    %671 = tpu.matmul %668, %670, %cst_436 {dimension_numbers = #tpu.dot_dimension_numbers<[1], [0], [0], [1], [0, 0, 1, 1], [], []>} : vector<28x128xbf16>, vector<128x256xbf16>, vector<28x256xf32> -> vector<28x256xf32>
    %672 = arith.addf %666, %671 : vector<28x256xf32>
    %673 = vector.extract_strided_slice %672 {offsets = [0, 0], sizes = [28, 128], strides = [1, 1]} : vector<28x256xf32> to vector<28x128xf32>
    %674 = vector.extract_strided_slice %672 {offsets = [0, 128], sizes = [28, 128], strides = [1, 1]} : vector<28x256xf32> to vector<28x128xf32>
    %675 = arith.maximumf %673, %674 : vector<28x128xf32>
    %676 = vector.extract_strided_slice %675 {offsets = [0, 0], sizes = [27, 128], strides = [1, 1]} : vector<28x128xf32> to vector<27x128xf32>
    %677 = vector.extract_strided_slice %675 {offsets = [1, 0], sizes = [27, 128], strides = [1, 1]} : vector<28x128xf32> to vector<27x128xf32>
    %678 = arith.maximumf %676, %677 : vector<27x128xf32>
    %c0_437 = arith.constant 0 : index
    %c0_438 = arith.constant 0 : index
    %679 = vector.load %arg3[%c0_437, %c0_438] : memref<1x128xf32, #tpu.memory_space<vmem>>, vector<1x128xf32>
    %680 = vector.broadcast %679 : vector<1x128xf32> to vector<27x128xf32>
    %681 = arith.addf %678, %680 : vector<27x128xf32>
    %cst_439 = arith.constant 0.000000e+00 : f32
    %682 = vector.broadcast %cst_439 : f32 to vector<27x128xf32>
    %683 = arith.maximumf %681, %682 : vector<27x128xf32>
    %684 = vector.extract_strided_slice %683 {offsets = [0, 0], sizes = [19, 128], strides = [1, 1]} : vector<27x128xf32> to vector<19x128xf32>
    %685 = arith.truncf %684 : vector<19x128xf32> to vector<19x128xbf16>
    %c0_440 = arith.constant 0 : index
    %c0_441 = arith.constant 0 : index
    %c0_442 = arith.constant 0 : index
    %686 = vector.load %arg4[%c0_440, %c0_441, %c0_442] : memref<5x128x256xbf16, #tpu.memory_space<vmem>>, vector<1x128x256xbf16>
    %687 = vector.shape_cast %686 : vector<1x128x256xbf16> to vector<128x256xbf16>
    %cst_443 = arith.constant dense<0.000000e+00> : vector<19x256xf32>
    %688 = tpu.matmul %685, %687, %cst_443 {dimension_numbers = #tpu.dot_dimension_numbers<[1], [0], [0], [1], [0, 0, 1, 1], [], []>} : vector<19x128xbf16>, vector<128x256xbf16>, vector<19x256xf32> -> vector<19x256xf32>
    %689 = vector.extract_strided_slice %683 {offsets = [2, 0], sizes = [19, 128], strides = [1, 1]} : vector<27x128xf32> to vector<19x128xf32>
    %690 = arith.truncf %689 : vector<19x128xf32> to vector<19x128xbf16>
    %c1_444 = arith.constant 1 : index
    %c0_445 = arith.constant 0 : index
    %c0_446 = arith.constant 0 : index
    %691 = vector.load %arg4[%c1_444, %c0_445, %c0_446] : memref<5x128x256xbf16, #tpu.memory_space<vmem>>, vector<1x128x256xbf16>
    %692 = vector.shape_cast %691 : vector<1x128x256xbf16> to vector<128x256xbf16>
    %cst_447 = arith.constant dense<0.000000e+00> : vector<19x256xf32>
    %693 = tpu.matmul %690, %692, %cst_447 {dimension_numbers = #tpu.dot_dimension_numbers<[1], [0], [0], [1], [0, 0, 1, 1], [], []>} : vector<19x128xbf16>, vector<128x256xbf16>, vector<19x256xf32> -> vector<19x256xf32>
    %694 = arith.addf %688, %693 : vector<19x256xf32>
    %695 = vector.extract_strided_slice %683 {offsets = [4, 0], sizes = [19, 128], strides = [1, 1]} : vector<27x128xf32> to vector<19x128xf32>
    %696 = arith.truncf %695 : vector<19x128xf32> to vector<19x128xbf16>
    %c2_448 = arith.constant 2 : index
    %c0_449 = arith.constant 0 : index
    %c0_450 = arith.constant 0 : index
    %697 = vector.load %arg4[%c2_448, %c0_449, %c0_450] : memref<5x128x256xbf16, #tpu.memory_space<vmem>>, vector<1x128x256xbf16>
    %698 = vector.shape_cast %697 : vector<1x128x256xbf16> to vector<128x256xbf16>
    %cst_451 = arith.constant dense<0.000000e+00> : vector<19x256xf32>
    %699 = tpu.matmul %696, %698, %cst_451 {dimension_numbers = #tpu.dot_dimension_numbers<[1], [0], [0], [1], [0, 0, 1, 1], [], []>} : vector<19x128xbf16>, vector<128x256xbf16>, vector<19x256xf32> -> vector<19x256xf32>
    %700 = arith.addf %694, %699 : vector<19x256xf32>
    %701 = vector.extract_strided_slice %683 {offsets = [6, 0], sizes = [19, 128], strides = [1, 1]} : vector<27x128xf32> to vector<19x128xf32>
    %702 = arith.truncf %701 : vector<19x128xf32> to vector<19x128xbf16>
    %c3_452 = arith.constant 3 : index
    %c0_453 = arith.constant 0 : index
    %c0_454 = arith.constant 0 : index
    %703 = vector.load %arg4[%c3_452, %c0_453, %c0_454] : memref<5x128x256xbf16, #tpu.memory_space<vmem>>, vector<1x128x256xbf16>
    %704 = vector.shape_cast %703 : vector<1x128x256xbf16> to vector<128x256xbf16>
    %cst_455 = arith.constant dense<0.000000e+00> : vector<19x256xf32>
    %705 = tpu.matmul %702, %704, %cst_455 {dimension_numbers = #tpu.dot_dimension_numbers<[1], [0], [0], [1], [0, 0, 1, 1], [], []>} : vector<19x128xbf16>, vector<128x256xbf16>, vector<19x256xf32> -> vector<19x256xf32>
    %706 = arith.addf %700, %705 : vector<19x256xf32>
    %707 = vector.extract_strided_slice %683 {offsets = [8, 0], sizes = [19, 128], strides = [1, 1]} : vector<27x128xf32> to vector<19x128xf32>
    %708 = arith.truncf %707 : vector<19x128xf32> to vector<19x128xbf16>
    %c4_456 = arith.constant 4 : index
    %c0_457 = arith.constant 0 : index
    %c0_458 = arith.constant 0 : index
    %709 = vector.load %arg4[%c4_456, %c0_457, %c0_458] : memref<5x128x256xbf16, #tpu.memory_space<vmem>>, vector<1x128x256xbf16>
    %710 = vector.shape_cast %709 : vector<1x128x256xbf16> to vector<128x256xbf16>
    %cst_459 = arith.constant dense<0.000000e+00> : vector<19x256xf32>
    %711 = tpu.matmul %708, %710, %cst_459 {dimension_numbers = #tpu.dot_dimension_numbers<[1], [0], [0], [1], [0, 0, 1, 1], [], []>} : vector<19x128xbf16>, vector<128x256xbf16>, vector<19x256xf32> -> vector<19x256xf32>
    %712 = arith.addf %706, %711 : vector<19x256xf32>
    %713 = vector.extract_strided_slice %712 {offsets = [0, 0], sizes = [19, 128], strides = [1, 1]} : vector<19x256xf32> to vector<19x128xf32>
    %714 = vector.extract_strided_slice %712 {offsets = [0, 128], sizes = [19, 128], strides = [1, 1]} : vector<19x256xf32> to vector<19x128xf32>
    %715 = arith.maximumf %713, %714 : vector<19x128xf32>
    %716 = vector.extract_strided_slice %715 {offsets = [0, 0], sizes = [17, 128], strides = [1, 1]} : vector<19x128xf32> to vector<17x128xf32>
    %717 = vector.extract_strided_slice %715 {offsets = [2, 0], sizes = [17, 128], strides = [1, 1]} : vector<19x128xf32> to vector<17x128xf32>
    %718 = arith.maximumf %716, %717 : vector<17x128xf32>
    %719 = vector.extract_strided_slice %718 {offsets = [0, 0], sizes = [1, 128], strides = [1, 1]} : vector<17x128xf32> to vector<1x128xf32>
    %c0_460 = arith.constant 0 : index
    %c0_461 = arith.constant 0 : index
    %720 = vector.load %arg5[%c0_460, %c0_461] : memref<1x128xf32, #tpu.memory_space<vmem>>, vector<1x128xf32>
    %721 = arith.addf %719, %720 : vector<1x128xf32>
    %cst_462 = arith.constant 0.000000e+00 : f32
    %722 = vector.broadcast %cst_462 : f32 to vector<1x128xf32>
    %723 = arith.maximumf %721, %722 : vector<1x128xf32>
    %c6_463 = arith.constant 6 : index
    %c0_464 = arith.constant 0 : index
    %724 = vector.load %arg13[%c6_463, %c0_464] : memref<8x640xf32, #tpu.memory_space<vmem>>, vector<1x128xf32>
    tpu.vector_store %arg13[%c6_463, %c0_464], %723 {strides = array<i32>} : memref<8x640xf32, #tpu.memory_space<vmem>>, vector<1x128xf32>,
    %725 = vector.extract_strided_slice %718 {offsets = [4, 0], sizes = [1, 128], strides = [1, 1]} : vector<17x128xf32> to vector<1x128xf32>
    %c0_465 = arith.constant 0 : index
    %c0_466 = arith.constant 0 : index
    %726 = vector.load %arg5[%c0_465, %c0_466] : memref<1x128xf32, #tpu.memory_space<vmem>>, vector<1x128xf32>
    %727 = arith.addf %725, %726 : vector<1x128xf32>
    %cst_467 = arith.constant 0.000000e+00 : f32
    %728 = vector.broadcast %cst_467 : f32 to vector<1x128xf32>
    %729 = arith.maximumf %727, %728 : vector<1x128xf32>
    %c6_468 = arith.constant 6 : index
    %c128_469 = arith.constant 128 : index
    %730 = vector.load %arg13[%c6_468, %c128_469] : memref<8x640xf32, #tpu.memory_space<vmem>>, vector<1x128xf32>
    tpu.vector_store %arg13[%c6_468, %c128_469], %729 {strides = array<i32>} : memref<8x640xf32, #tpu.memory_space<vmem>>, vector<1x128xf32>,
    %731 = vector.extract_strided_slice %718 {offsets = [8, 0], sizes = [1, 128], strides = [1, 1]} : vector<17x128xf32> to vector<1x128xf32>
    %c0_470 = arith.constant 0 : index
    %c0_471 = arith.constant 0 : index
    %732 = vector.load %arg5[%c0_470, %c0_471] : memref<1x128xf32, #tpu.memory_space<vmem>>, vector<1x128xf32>
    %733 = arith.addf %731, %732 : vector<1x128xf32>
    %cst_472 = arith.constant 0.000000e+00 : f32
    %734 = vector.broadcast %cst_472 : f32 to vector<1x128xf32>
    %735 = arith.maximumf %733, %734 : vector<1x128xf32>
    %c6_473 = arith.constant 6 : index
    %c256_474 = arith.constant 256 : index
    %736 = vector.load %arg13[%c6_473, %c256_474] : memref<8x640xf32, #tpu.memory_space<vmem>>, vector<1x128xf32>
    tpu.vector_store %arg13[%c6_473, %c256_474], %735 {strides = array<i32>} : memref<8x640xf32, #tpu.memory_space<vmem>>, vector<1x128xf32>,
    %737 = vector.extract_strided_slice %718 {offsets = [12, 0], sizes = [1, 128], strides = [1, 1]} : vector<17x128xf32> to vector<1x128xf32>
    %c0_475 = arith.constant 0 : index
    %c0_476 = arith.constant 0 : index
    %738 = vector.load %arg5[%c0_475, %c0_476] : memref<1x128xf32, #tpu.memory_space<vmem>>, vector<1x128xf32>
    %739 = arith.addf %737, %738 : vector<1x128xf32>
    %cst_477 = arith.constant 0.000000e+00 : f32
    %740 = vector.broadcast %cst_477 : f32 to vector<1x128xf32>
    %741 = arith.maximumf %739, %740 : vector<1x128xf32>
    %c6_478 = arith.constant 6 : index
    %c384_479 = arith.constant 384 : index
    %742 = vector.load %arg13[%c6_478, %c384_479] : memref<8x640xf32, #tpu.memory_space<vmem>>, vector<1x128xf32>
    tpu.vector_store %arg13[%c6_478, %c384_479], %741 {strides = array<i32>} : memref<8x640xf32, #tpu.memory_space<vmem>>, vector<1x128xf32>,
    %743 = vector.extract_strided_slice %718 {offsets = [16, 0], sizes = [1, 128], strides = [1, 1]} : vector<17x128xf32> to vector<1x128xf32>
    %c0_480 = arith.constant 0 : index
    %c0_481 = arith.constant 0 : index
    %744 = vector.load %arg5[%c0_480, %c0_481] : memref<1x128xf32, #tpu.memory_space<vmem>>, vector<1x128xf32>
    %745 = arith.addf %743, %744 : vector<1x128xf32>
    %cst_482 = arith.constant 0.000000e+00 : f32
    %746 = vector.broadcast %cst_482 : f32 to vector<1x128xf32>
    %747 = arith.maximumf %745, %746 : vector<1x128xf32>
    %c6_483 = arith.constant 6 : index
    %c512_484 = arith.constant 512 : index
    %748 = vector.load %arg13[%c6_483, %c512_484] : memref<8x640xf32, #tpu.memory_space<vmem>>, vector<1x128xf32>
    tpu.vector_store %arg13[%c6_483, %c512_484], %747 {strides = array<i32>} : memref<8x640xf32, #tpu.memory_space<vmem>>, vector<1x128xf32>,
    %c7 = arith.constant 7 : index
    %c0_485 = arith.constant 0 : index
    %c0_486 = arith.constant 0 : index
    %749 = vector.load %arg1[%c7, %c0_485, %c0_486] : memref<8x32x128xf32, #tpu.memory_space<vmem>>, vector<1x32x128xf32>
    %750 = vector.shape_cast %749 : vector<1x32x128xf32> to vector<32x128xf32>
    %751 = vector.extract_strided_slice %750 {offsets = [0, 0], sizes = [28, 128], strides = [1, 1]} : vector<32x128xf32> to vector<28x128xf32>
    %752 = arith.truncf %751 : vector<28x128xf32> to vector<28x128xbf16>
    %c0_487 = arith.constant 0 : index
    %c0_488 = arith.constant 0 : index
    %c0_489 = arith.constant 0 : index
    %753 = vector.load %arg2[%c0_487, %c0_488, %c0_489] : memref<5x128x256xbf16, #tpu.memory_space<vmem>>, vector<1x128x256xbf16>
    %754 = vector.shape_cast %753 : vector<1x128x256xbf16> to vector<128x256xbf16>
    %cst_490 = arith.constant dense<0.000000e+00> : vector<28x256xf32>
    %755 = tpu.matmul %752, %754, %cst_490 {dimension_numbers = #tpu.dot_dimension_numbers<[1], [0], [0], [1], [0, 0, 1, 1], [], []>} : vector<28x128xbf16>, vector<128x256xbf16>, vector<28x256xf32> -> vector<28x256xf32>
    %756 = vector.extract_strided_slice %750 {offsets = [1, 0], sizes = [28, 128], strides = [1, 1]} : vector<32x128xf32> to vector<28x128xf32>
    %757 = arith.truncf %756 : vector<28x128xf32> to vector<28x128xbf16>
    %c1_491 = arith.constant 1 : index
    %c0_492 = arith.constant 0 : index
    %c0_493 = arith.constant 0 : index
    %758 = vector.load %arg2[%c1_491, %c0_492, %c0_493] : memref<5x128x256xbf16, #tpu.memory_space<vmem>>, vector<1x128x256xbf16>
    %759 = vector.shape_cast %758 : vector<1x128x256xbf16> to vector<128x256xbf16>
    %cst_494 = arith.constant dense<0.000000e+00> : vector<28x256xf32>
    %760 = tpu.matmul %757, %759, %cst_494 {dimension_numbers = #tpu.dot_dimension_numbers<[1], [0], [0], [1], [0, 0, 1, 1], [], []>} : vector<28x128xbf16>, vector<128x256xbf16>, vector<28x256xf32> -> vector<28x256xf32>
    %761 = arith.addf %755, %760 : vector<28x256xf32>
    %762 = vector.extract_strided_slice %750 {offsets = [2, 0], sizes = [28, 128], strides = [1, 1]} : vector<32x128xf32> to vector<28x128xf32>
    %763 = arith.truncf %762 : vector<28x128xf32> to vector<28x128xbf16>
    %c2_495 = arith.constant 2 : index
    %c0_496 = arith.constant 0 : index
    %c0_497 = arith.constant 0 : index
    %764 = vector.load %arg2[%c2_495, %c0_496, %c0_497] : memref<5x128x256xbf16, #tpu.memory_space<vmem>>, vector<1x128x256xbf16>
    %765 = vector.shape_cast %764 : vector<1x128x256xbf16> to vector<128x256xbf16>
    %cst_498 = arith.constant dense<0.000000e+00> : vector<28x256xf32>
    %766 = tpu.matmul %763, %765, %cst_498 {dimension_numbers = #tpu.dot_dimension_numbers<[1], [0], [0], [1], [0, 0, 1, 1], [], []>} : vector<28x128xbf16>, vector<128x256xbf16>, vector<28x256xf32> -> vector<28x256xf32>
    %767 = arith.addf %761, %766 : vector<28x256xf32>
    %768 = vector.extract_strided_slice %750 {offsets = [3, 0], sizes = [28, 128], strides = [1, 1]} : vector<32x128xf32> to vector<28x128xf32>
    %769 = arith.truncf %768 : vector<28x128xf32> to vector<28x128xbf16>
    %c3_499 = arith.constant 3 : index
    %c0_500 = arith.constant 0 : index
    %c0_501 = arith.constant 0 : index
    %770 = vector.load %arg2[%c3_499, %c0_500, %c0_501] : memref<5x128x256xbf16, #tpu.memory_space<vmem>>, vector<1x128x256xbf16>
    %771 = vector.shape_cast %770 : vector<1x128x256xbf16> to vector<128x256xbf16>
    %cst_502 = arith.constant dense<0.000000e+00> : vector<28x256xf32>
    %772 = tpu.matmul %769, %771, %cst_502 {dimension_numbers = #tpu.dot_dimension_numbers<[1], [0], [0], [1], [0, 0, 1, 1], [], []>} : vector<28x128xbf16>, vector<128x256xbf16>, vector<28x256xf32> -> vector<28x256xf32>
    %773 = arith.addf %767, %772 : vector<28x256xf32>
    %774 = vector.extract_strided_slice %750 {offsets = [4, 0], sizes = [28, 128], strides = [1, 1]} : vector<32x128xf32> to vector<28x128xf32>
    %775 = arith.truncf %774 : vector<28x128xf32> to vector<28x128xbf16>
    %c4_503 = arith.constant 4 : index
    %c0_504 = arith.constant 0 : index
    %c0_505 = arith.constant 0 : index
    %776 = vector.load %arg2[%c4_503, %c0_504, %c0_505] : memref<5x128x256xbf16, #tpu.memory_space<vmem>>, vector<1x128x256xbf16>
    %777 = vector.shape_cast %776 : vector<1x128x256xbf16> to vector<128x256xbf16>
    %cst_506 = arith.constant dense<0.000000e+00> : vector<28x256xf32>
    %778 = tpu.matmul %775, %777, %cst_506 {dimension_numbers = #tpu.dot_dimension_numbers<[1], [0], [0], [1], [0, 0, 1, 1], [], []>} : vector<28x128xbf16>, vector<128x256xbf16>, vector<28x256xf32> -> vector<28x256xf32>
    %779 = arith.addf %773, %778 : vector<28x256xf32>
    %780 = vector.extract_strided_slice %779 {offsets = [0, 0], sizes = [28, 128], strides = [1, 1]} : vector<28x256xf32> to vector<28x128xf32>
    %781 = vector.extract_strided_slice %779 {offsets = [0, 128], sizes = [28, 128], strides = [1, 1]} : vector<28x256xf32> to vector<28x128xf32>
    %782 = arith.maximumf %780, %781 : vector<28x128xf32>
    %783 = vector.extract_strided_slice %782 {offsets = [0, 0], sizes = [27, 128], strides = [1, 1]} : vector<28x128xf32> to vector<27x128xf32>
    %784 = vector.extract_strided_slice %782 {offsets = [1, 0], sizes = [27, 128], strides = [1, 1]} : vector<28x128xf32> to vector<27x128xf32>
    %785 = arith.maximumf %783, %784 : vector<27x128xf32>
    %c0_507 = arith.constant 0 : index
    %c0_508 = arith.constant 0 : index
    %786 = vector.load %arg3[%c0_507, %c0_508] : memref<1x128xf32, #tpu.memory_space<vmem>>, vector<1x128xf32>
    %787 = vector.broadcast %786 : vector<1x128xf32> to vector<27x128xf32>
    %788 = arith.addf %785, %787 : vector<27x128xf32>
    %cst_509 = arith.constant 0.000000e+00 : f32
    %789 = vector.broadcast %cst_509 : f32 to vector<27x128xf32>
    %790 = arith.maximumf %788, %789 : vector<27x128xf32>
    %791 = vector.extract_strided_slice %790 {offsets = [0, 0], sizes = [19, 128], strides = [1, 1]} : vector<27x128xf32> to vector<19x128xf32>
    %792 = arith.truncf %791 : vector<19x128xf32> to vector<19x128xbf16>
    %c0_510 = arith.constant 0 : index
    %c0_511 = arith.constant 0 : index
    %c0_512 = arith.constant 0 : index
    %793 = vector.load %arg4[%c0_510, %c0_511, %c0_512] : memref<5x128x256xbf16, #tpu.memory_space<vmem>>, vector<1x128x256xbf16>
    %794 = vector.shape_cast %793 : vector<1x128x256xbf16> to vector<128x256xbf16>
    %cst_513 = arith.constant dense<0.000000e+00> : vector<19x256xf32>
    %795 = tpu.matmul %792, %794, %cst_513 {dimension_numbers = #tpu.dot_dimension_numbers<[1], [0], [0], [1], [0, 0, 1, 1], [], []>} : vector<19x128xbf16>, vector<128x256xbf16>, vector<19x256xf32> -> vector<19x256xf32>
    %796 = vector.extract_strided_slice %790 {offsets = [2, 0], sizes = [19, 128], strides = [1, 1]} : vector<27x128xf32> to vector<19x128xf32>
    %797 = arith.truncf %796 : vector<19x128xf32> to vector<19x128xbf16>
    %c1_514 = arith.constant 1 : index
    %c0_515 = arith.constant 0 : index
    %c0_516 = arith.constant 0 : index
    %798 = vector.load %arg4[%c1_514, %c0_515, %c0_516] : memref<5x128x256xbf16, #tpu.memory_space<vmem>>, vector<1x128x256xbf16>
    %799 = vector.shape_cast %798 : vector<1x128x256xbf16> to vector<128x256xbf16>
    %cst_517 = arith.constant dense<0.000000e+00> : vector<19x256xf32>
    %800 = tpu.matmul %797, %799, %cst_517 {dimension_numbers = #tpu.dot_dimension_numbers<[1], [0], [0], [1], [0, 0, 1, 1], [], []>} : vector<19x128xbf16>, vector<128x256xbf16>, vector<19x256xf32> -> vector<19x256xf32>
    %801 = arith.addf %795, %800 : vector<19x256xf32>
    %802 = vector.extract_strided_slice %790 {offsets = [4, 0], sizes = [19, 128], strides = [1, 1]} : vector<27x128xf32> to vector<19x128xf32>
    %803 = arith.truncf %802 : vector<19x128xf32> to vector<19x128xbf16>
    %c2_518 = arith.constant 2 : index
    %c0_519 = arith.constant 0 : index
    %c0_520 = arith.constant 0 : index
    %804 = vector.load %arg4[%c2_518, %c0_519, %c0_520] : memref<5x128x256xbf16, #tpu.memory_space<vmem>>, vector<1x128x256xbf16>
    %805 = vector.shape_cast %804 : vector<1x128x256xbf16> to vector<128x256xbf16>
    %cst_521 = arith.constant dense<0.000000e+00> : vector<19x256xf32>
    %806 = tpu.matmul %803, %805, %cst_521 {dimension_numbers = #tpu.dot_dimension_numbers<[1], [0], [0], [1], [0, 0, 1, 1], [], []>} : vector<19x128xbf16>, vector<128x256xbf16>, vector<19x256xf32> -> vector<19x256xf32>
    %807 = arith.addf %801, %806 : vector<19x256xf32>
    %808 = vector.extract_strided_slice %790 {offsets = [6, 0], sizes = [19, 128], strides = [1, 1]} : vector<27x128xf32> to vector<19x128xf32>
    %809 = arith.truncf %808 : vector<19x128xf32> to vector<19x128xbf16>
    %c3_522 = arith.constant 3 : index
    %c0_523 = arith.constant 0 : index
    %c0_524 = arith.constant 0 : index
    %810 = vector.load %arg4[%c3_522, %c0_523, %c0_524] : memref<5x128x256xbf16, #tpu.memory_space<vmem>>, vector<1x128x256xbf16>
    %811 = vector.shape_cast %810 : vector<1x128x256xbf16> to vector<128x256xbf16>
    %cst_525 = arith.constant dense<0.000000e+00> : vector<19x256xf32>
    %812 = tpu.matmul %809, %811, %cst_525 {dimension_numbers = #tpu.dot_dimension_numbers<[1], [0], [0], [1], [0, 0, 1, 1], [], []>} : vector<19x128xbf16>, vector<128x256xbf16>, vector<19x256xf32> -> vector<19x256xf32>
    %813 = arith.addf %807, %812 : vector<19x256xf32>
    %814 = vector.extract_strided_slice %790 {offsets = [8, 0], sizes = [19, 128], strides = [1, 1]} : vector<27x128xf32> to vector<19x128xf32>
    %815 = arith.truncf %814 : vector<19x128xf32> to vector<19x128xbf16>
    %c4_526 = arith.constant 4 : index
    %c0_527 = arith.constant 0 : index
    %c0_528 = arith.constant 0 : index
    %816 = vector.load %arg4[%c4_526, %c0_527, %c0_528] : memref<5x128x256xbf16, #tpu.memory_space<vmem>>, vector<1x128x256xbf16>
    %817 = vector.shape_cast %816 : vector<1x128x256xbf16> to vector<128x256xbf16>
    %cst_529 = arith.constant dense<0.000000e+00> : vector<19x256xf32>
    %818 = tpu.matmul %815, %817, %cst_529 {dimension_numbers = #tpu.dot_dimension_numbers<[1], [0], [0], [1], [0, 0, 1, 1], [], []>} : vector<19x128xbf16>, vector<128x256xbf16>, vector<19x256xf32> -> vector<19x256xf32>
    %819 = arith.addf %813, %818 : vector<19x256xf32>
    %820 = vector.extract_strided_slice %819 {offsets = [0, 0], sizes = [19, 128], strides = [1, 1]} : vector<19x256xf32> to vector<19x128xf32>
    %821 = vector.extract_strided_slice %819 {offsets = [0, 128], sizes = [19, 128], strides = [1, 1]} : vector<19x256xf32> to vector<19x128xf32>
    %822 = arith.maximumf %820, %821 : vector<19x128xf32>
    %823 = vector.extract_strided_slice %822 {offsets = [0, 0], sizes = [17, 128], strides = [1, 1]} : vector<19x128xf32> to vector<17x128xf32>
    %824 = vector.extract_strided_slice %822 {offsets = [2, 0], sizes = [17, 128], strides = [1, 1]} : vector<19x128xf32> to vector<17x128xf32>
    %825 = arith.maximumf %823, %824 : vector<17x128xf32>
    %826 = vector.extract_strided_slice %825 {offsets = [0, 0], sizes = [1, 128], strides = [1, 1]} : vector<17x128xf32> to vector<1x128xf32>
    %c0_530 = arith.constant 0 : index
    %c0_531 = arith.constant 0 : index
    %827 = vector.load %arg5[%c0_530, %c0_531] : memref<1x128xf32, #tpu.memory_space<vmem>>, vector<1x128xf32>
    %828 = arith.addf %826, %827 : vector<1x128xf32>
    %cst_532 = arith.constant 0.000000e+00 : f32
    %829 = vector.broadcast %cst_532 : f32 to vector<1x128xf32>
    %830 = arith.maximumf %828, %829 : vector<1x128xf32>
    %c7_533 = arith.constant 7 : index
    %c0_534 = arith.constant 0 : index
    %831 = vector.load %arg13[%c7_533, %c0_534] : memref<8x640xf32, #tpu.memory_space<vmem>>, vector<1x128xf32>
    tpu.vector_store %arg13[%c7_533, %c0_534], %830 {strides = array<i32>} : memref<8x640xf32, #tpu.memory_space<vmem>>, vector<1x128xf32>,
    %832 = vector.extract_strided_slice %825 {offsets = [4, 0], sizes = [1, 128], strides = [1, 1]} : vector<17x128xf32> to vector<1x128xf32>
    %c0_535 = arith.constant 0 : index
    %c0_536 = arith.constant 0 : index
    %833 = vector.load %arg5[%c0_535, %c0_536] : memref<1x128xf32, #tpu.memory_space<vmem>>, vector<1x128xf32>
    %834 = arith.addf %832, %833 : vector<1x128xf32>
    %cst_537 = arith.constant 0.000000e+00 : f32
    %835 = vector.broadcast %cst_537 : f32 to vector<1x128xf32>
    %836 = arith.maximumf %834, %835 : vector<1x128xf32>
    %c7_538 = arith.constant 7 : index
    %c128_539 = arith.constant 128 : index
    %837 = vector.load %arg13[%c7_538, %c128_539] : memref<8x640xf32, #tpu.memory_space<vmem>>, vector<1x128xf32>
    tpu.vector_store %arg13[%c7_538, %c128_539], %836 {strides = array<i32>} : memref<8x640xf32, #tpu.memory_space<vmem>>, vector<1x128xf32>,
    %838 = vector.extract_strided_slice %825 {offsets = [8, 0], sizes = [1, 128], strides = [1, 1]} : vector<17x128xf32> to vector<1x128xf32>
    %c0_540 = arith.constant 0 : index
    %c0_541 = arith.constant 0 : index
    %839 = vector.load %arg5[%c0_540, %c0_541] : memref<1x128xf32, #tpu.memory_space<vmem>>, vector<1x128xf32>
    %840 = arith.addf %838, %839 : vector<1x128xf32>
    %cst_542 = arith.constant 0.000000e+00 : f32
    %841 = vector.broadcast %cst_542 : f32 to vector<1x128xf32>
    %842 = arith.maximumf %840, %841 : vector<1x128xf32>
    %c7_543 = arith.constant 7 : index
    %c256_544 = arith.constant 256 : index
    %843 = vector.load %arg13[%c7_543, %c256_544] : memref<8x640xf32, #tpu.memory_space<vmem>>, vector<1x128xf32>
    tpu.vector_store %arg13[%c7_543, %c256_544], %842 {strides = array<i32>} : memref<8x640xf32, #tpu.memory_space<vmem>>, vector<1x128xf32>,
    %844 = vector.extract_strided_slice %825 {offsets = [12, 0], sizes = [1, 128], strides = [1, 1]} : vector<17x128xf32> to vector<1x128xf32>
    %c0_545 = arith.constant 0 : index
    %c0_546 = arith.constant 0 : index
    %845 = vector.load %arg5[%c0_545, %c0_546] : memref<1x128xf32, #tpu.memory_space<vmem>>, vector<1x128xf32>
    %846 = arith.addf %844, %845 : vector<1x128xf32>
    %cst_547 = arith.constant 0.000000e+00 : f32
    %847 = vector.broadcast %cst_547 : f32 to vector<1x128xf32>
    %848 = arith.maximumf %846, %847 : vector<1x128xf32>
    %c7_548 = arith.constant 7 : index
    %c384_549 = arith.constant 384 : index
    %849 = vector.load %arg13[%c7_548, %c384_549] : memref<8x640xf32, #tpu.memory_space<vmem>>, vector<1x128xf32>
    tpu.vector_store %arg13[%c7_548, %c384_549], %848 {strides = array<i32>} : memref<8x640xf32, #tpu.memory_space<vmem>>, vector<1x128xf32>,
    %850 = vector.extract_strided_slice %825 {offsets = [16, 0], sizes = [1, 128], strides = [1, 1]} : vector<17x128xf32> to vector<1x128xf32>
    %c0_550 = arith.constant 0 : index
    %c0_551 = arith.constant 0 : index
    %851 = vector.load %arg5[%c0_550, %c0_551] : memref<1x128xf32, #tpu.memory_space<vmem>>, vector<1x128xf32>
    %852 = arith.addf %850, %851 : vector<1x128xf32>
    %cst_552 = arith.constant 0.000000e+00 : f32
    %853 = vector.broadcast %cst_552 : f32 to vector<1x128xf32>
    %854 = arith.maximumf %852, %853 : vector<1x128xf32>
    %c7_553 = arith.constant 7 : index
    %c512_554 = arith.constant 512 : index
    %855 = vector.load %arg13[%c7_553, %c512_554] : memref<8x640xf32, #tpu.memory_space<vmem>>, vector<1x128xf32>
    tpu.vector_store %arg13[%c7_553, %c512_554], %854 {strides = array<i32>} : memref<8x640xf32, #tpu.memory_space<vmem>>, vector<1x128xf32>,
    %c0_555 = arith.constant 0 : index
    %c0_556 = arith.constant 0 : index
    %856 = vector.load %arg13[%c0_555, %c0_556] : memref<8x640xf32, #tpu.memory_space<vmem>>, vector<8x640xf32>
    %857 = arith.truncf %856 : vector<8x640xf32> to vector<8x640xbf16>
    %c0_557 = arith.constant 0 : index
    %c0_558 = arith.constant 0 : index
    %858 = vector.load %arg6[%c0_557, %c0_558] : memref<640x128xbf16, #tpu.memory_space<vmem>>, vector<640x128xbf16>
    %cst_559 = arith.constant dense<0.000000e+00> : vector<8x128xf32>
    %859 = tpu.matmul %857, %858, %cst_559 {dimension_numbers = #tpu.dot_dimension_numbers<[1], [0], [0], [1], [0, 0, 1, 1], [], []>} : vector<8x640xbf16>, vector<640x128xbf16>, vector<8x128xf32> -> vector<8x128xf32>
    %c0_560 = arith.constant 0 : index
    %c0_561 = arith.constant 0 : index
    %860 = vector.load %arg7[%c0_560, %c0_561] : memref<1x128xf32, #tpu.memory_space<vmem>>, vector<1x128xf32>
    %861 = vector.broadcast %860 : vector<1x128xf32> to vector<8x128xf32>
    %862 = arith.addf %859, %861 : vector<8x128xf32>
    %cst_562 = arith.constant 0.000000e+00 : f32
    %863 = vector.broadcast %cst_562 : f32 to vector<8x128xf32>
    %864 = arith.maximumf %862, %863 : vector<8x128xf32>
    %865 = arith.truncf %864 : vector<8x128xf32> to vector<8x128xbf16>
    %c0_563 = arith.constant 0 : index
    %c0_564 = arith.constant 0 : index
    %866 = vector.load %arg8[%c0_563, %c0_564] : memref<128x128xbf16, #tpu.memory_space<vmem>>, vector<128x128xbf16>
    %cst_565 = arith.constant dense<0.000000e+00> : vector<8x128xf32>
    %867 = tpu.matmul %865, %866, %cst_565 {dimension_numbers = #tpu.dot_dimension_numbers<[1], [0], [0], [1], [0, 0, 1, 1], [], []>} : vector<8x128xbf16>, vector<128x128xbf16>, vector<8x128xf32> -> vector<8x128xf32>
    %c0_566 = arith.constant 0 : index
    %c0_567 = arith.constant 0 : index
    %868 = vector.load %arg9[%c0_566, %c0_567] : memref<1x128xf32, #tpu.memory_space<vmem>>, vector<1x128xf32>
    %869 = vector.broadcast %868 : vector<1x128xf32> to vector<8x128xf32>
    %870 = arith.addf %867, %869 : vector<8x128xf32>
    %cst_568 = arith.constant 0.000000e+00 : f32
    %871 = vector.broadcast %cst_568 : f32 to vector<8x128xf32>
    %872 = arith.maximumf %870, %871 : vector<8x128xf32>
    %873 = arith.truncf %872 : vector<8x128xf32> to vector<8x128xbf16>
    %c0_569 = arith.constant 0 : index
    %c0_570 = arith.constant 0 : index
    %874 = vector.load %arg10[%c0_569, %c0_570] : memref<128x10xbf16, #tpu.memory_space<vmem>>, vector<128x10xbf16>
    %cst_571 = arith.constant dense<0.000000e+00> : vector<8x10xf32>
    %875 = tpu.matmul %873, %874, %cst_571 {dimension_numbers = #tpu.dot_dimension_numbers<[1], [0], [0], [1], [0, 0, 1, 1], [], []>} : vector<8x128xbf16>, vector<128x10xbf16>, vector<8x10xf32> -> vector<8x10xf32>
    %c0_572 = arith.constant 0 : index
    %c0_573 = arith.constant 0 : index
    %876 = vector.load %arg11[%c0_572, %c0_573] : memref<1x10xf32, #tpu.memory_space<vmem>>, vector<1x10xf32>
    %877 = vector.broadcast %876 : vector<1x10xf32> to vector<8x10xf32>
    %878 = arith.addf %875, %877 : vector<8x10xf32>
    %cst_574 = arith.constant dense<0xFF800000> : vector<8xf32>
    %879 = vector.multi_reduction <maximumf>, %878, %cst_574 [1] : vector<8x10xf32> to vector<8xf32>
    %880 = vector.shape_cast %879 : vector<8xf32> to vector<8x1xf32>
    %881 = vector.broadcast %880 : vector<8x1xf32> to vector<8x10xf32>
    %882 = arith.subf %878, %881 : vector<8x10xf32>
    %883 = math.exp %882 : vector<8x10xf32>
    %cst_575 = arith.constant dense<0.000000e+00> : vector<8xf32>
    %884 = vector.multi_reduction <add>, %883, %cst_575 [1] : vector<8x10xf32> to vector<8xf32>
    %885 = vector.shape_cast %884 : vector<8xf32> to vector<8x1xf32>
    %886 = math.log %885 : vector<8x1xf32>
    %887 = vector.broadcast %886 : vector<8x1xf32> to vector<8x10xf32>
    %888 = arith.subf %882, %887 : vector<8x10xf32>
    %c0_576 = arith.constant 0 : index
    %c0_577 = arith.constant 0 : index
    %889 = vector.load %arg12[%c0_576, %c0_577] : memref<8x10xf32, #tpu.memory_space<vmem>>, vector<8x10xf32>
    tpu.vector_store %arg12[%c0_576, %c0_577], %888 {strides = array<i32>} : memref<8x10xf32, #tpu.memory_space<vmem>>, vector<8x10xf32>,
    return
  }
  func.func @transform_0(%arg0: i32) -> (i32, i32, i32) {
    %c0_i32 = arith.constant 0 : i32
    %c0_i32_0 = arith.constant 0 : i32
    %c0_i32_1 = arith.constant 0 : i32
    return %arg0, %c0_i32, %c0_i32_0 : i32, i32, i32
  }
  func.func @transform_1(%arg0: i32) -> (i32, i32, i32) {
    %c0_i32 = arith.constant 0 : i32
    %c0_i32_0 = arith.constant 0 : i32
    %c0_i32_1 = arith.constant 0 : i32
    %c0_i32_2 = arith.constant 0 : i32
    return %c0_i32, %c0_i32_0, %c0_i32_1 : i32, i32, i32
  }
  func.func @transform_2(%arg0: i32) -> (i32, i32) {
    %c0_i32 = arith.constant 0 : i32
    %c0_i32_0 = arith.constant 0 : i32
    %c0_i32_1 = arith.constant 0 : i32
    return %c0_i32, %c0_i32_0 : i32, i32
  }
  func.func @transform_3(%arg0: i32) -> (i32, i32, i32) {
    %c0_i32 = arith.constant 0 : i32
    %c0_i32_0 = arith.constant 0 : i32
    %c0_i32_1 = arith.constant 0 : i32
    %c0_i32_2 = arith.constant 0 : i32
    return %c0_i32, %c0_i32_0, %c0_i32_1 : i32, i32, i32
  }
  func.func @transform_4(%arg0: i32) -> (i32, i32) {
    %c0_i32 = arith.constant 0 : i32
    %c0_i32_0 = arith.constant 0 : i32
    %c0_i32_1 = arith.constant 0 : i32
    return %c0_i32, %c0_i32_0 : i32, i32
  }
  func.func @transform_5(%arg0: i32) -> (i32, i32) {
    %c0_i32 = arith.constant 0 : i32
    %c0_i32_0 = arith.constant 0 : i32
    %c0_i32_1 = arith.constant 0 : i32
    return %c0_i32, %c0_i32_0 : i32, i32
  }
  func.func @transform_6(%arg0: i32) -> (i32, i32) {
    %c0_i32 = arith.constant 0 : i32
    %c0_i32_0 = arith.constant 0 : i32
    %c0_i32_1 = arith.constant 0 : i32
    return %c0_i32, %c0_i32_0 : i32, i32
  }
  func.func @transform_7(%arg0: i32) -> (i32, i32) {
    %c0_i32 = arith.constant 0 : i32
    %c0_i32_0 = arith.constant 0 : i32
    %c0_i32_1 = arith.constant 0 : i32
    return %c0_i32, %c0_i32_0 : i32, i32
  }
  func.func @transform_8(%arg0: i32) -> (i32, i32) {
    %c0_i32 = arith.constant 0 : i32
    %c0_i32_0 = arith.constant 0 : i32
    %c0_i32_1 = arith.constant 0 : i32
    return %c0_i32, %c0_i32_0 : i32, i32
  }
  func.func @transform_9(%arg0: i32) -> (i32, i32) {
    %c0_i32 = arith.constant 0 : i32
    %c0_i32_0 = arith.constant 0 : i32
    %c0_i32_1 = arith.constant 0 : i32
    return %c0_i32, %c0_i32_0 : i32, i32
  }
  func.func @transform_10(%arg0: i32) -> (i32, i32) {
    %c0_i32 = arith.constant 0 : i32
    %c0_i32_0 = arith.constant 0 : i32
    %c0_i32_1 = arith.constant 0 : i32
    return %c0_i32, %c0_i32_0 : i32, i32
  }
  func.func @transform_11(%arg0: i32) -> (i32, i32) {
    %c0_i32 = arith.constant 0 : i32
    %c0_i32_0 = arith.constant 0 : i32
    return %arg0, %c0_i32 : i32, i32
  }
}

</mosaic_0001>

<bundles_post_ra>
// kernel: cnn_forward.1
= control target key start
LH: loop header
LB: loop body
LE: loop exit
PB: predicated region body
PF: predicated region fallthrough
CT: control target
= control target key end

     0   :  { %16 = vsyncpa [#allocation4], 0  ;;  %s18629_s17 = smov [#allocation3]   ;;  %s22175_s0 = inlined_call_operand.vmem [shape: f32[8,32,128], index: 0, kind: input, shape index: {}]   ;;  %s22176_s1 = inlined_call_operand.vmem [shape: bf16[5,128,256], index: 1, kind: input, shape index: {}]   ;;  %s22177_s2 = inlined_call_operand.vmem [shape: f32[1,128], index: 2, kind: input, shape index: {}]   ;;  %s22178_s3 = inlined_call_operand.hbm [shape: bf16[5,128,256], index: 3, kind: input, shape index: {}]   ;;  %s22179_s4 = inlined_call_operand.vmem [shape: f32[1,128], index: 4, kind: input, shape index: {}]   ;;  %s22180_s5 = inlined_call_operand.vmem [shape: bf16[640,128], index: 5, kind: input, shape index: {}]   ;;  %s22181_s6 = inlined_call_operand.vmem [shape: f32[1,128], index: 6, kind: input, shape index: {}]   ;;  %s22182_s7 = inlined_call_operand.vmem [shape: bf16[128,128], index: 7, kind: input, shape index: {}]   ;;  %s22183_s8 = inlined_call_operand.vmem [shape: f32[1,128], index: 8, kind: input, shape index: {}]   ;;  %s22184_s9 = inlined_call_operand.vmem [shape: bf16[128,10], index: 9, kind: input, shape index: {}]   ;;  %s22185_s10 = inlined_call_operand.vmem [shape: f32[1,10], index: 10, kind: input, shape index: {}]   ;;  %s22186_s11 = inlined_call_operand.vmem [shape: f32[8,10], index: 11, kind: output, shape index: {}]  }
   0x1   :  { %s28_s18 = sshll.u32 %s18629_s17, 4  ;;  %s18605_s21 = scalar_lea.hbm %s22178_s3, 10240  ;;  %s29_s18 = int_to_ptr.vmem [resolvable:$true] %s28_s18 }
   0x2   :  { %p18606_p0 = scmp.ne.s32.totalorder %s22178_s3, %s18605_s21  ;;  %p18609_p1 = scmp.lt.u32.totalorder %s18605_s21, %s22178_s3 }
   0x4   :  { %p18611_p2 = pnand %p18609_p1, %p18606_p0 }
   0x6   :  { %18614 = shalt.err (!%p18611_p2)
}
   0x7   :  { %s18615_s26 = scalar_lea.vmem %s29_s18, 10240  ;;  %p18620_p4 = scmp.lt.s32.totalorder %s29_s18, %s29_s18 }
   0x8   :  { %p18616_p3 = scmp.ne.s32.totalorder %s29_s18, %s18615_s26  ;;  %p18621_p5 = scmp.lt.s32.totalorder %s18615_s26, %s18615_s26 }
   0xa   :  { %p18622_p6 = por %p18621_p5, %p18620_p4 }
   0xc   :  { %p18623_p7 = pnand %p18622_p6, %p18616_p3 }
   0xe   :  { %18626 = shalt.err (!%p18623_p7)
}
   0xf   :  { %s18630_s27 = smov 128   ;;  %s18631_s28 = smov 8  }
  0x10   :  { %34 = dma.hbm_to_vmem [thread:$0]  %s22178_s3, 10240, %s29_s18, [#allocation4], %s18630_s27, %s18630_s27, %s18631_s28  }
  0x11   :  { %18627 = dma.done.wait [#allocation4], 10240  }
  0x12   :  { %18628 = vsyncadd [#allocation4], 4294957056  ;;  %v22187_v0 = vmov 0   ;;  %v16785_v1 = vld [vmem:[%s22176_s1 + $0x84] ss:$8 sps:$4 sm:$0xff]   ;;  %v55_v12 = vld [vmem:[%s22175_s0 + $0x10] sm:$0xff] }
  0x13   :  { %222 = vmatprep.mubr.bf16.mxu0 %v22187_v0  ;;  %1067 = vmatprep.mubr.bf16.mxu1 %v22187_v0  ;;  %v16787_v2 = vld [vmem:[%s22176_s1 + $0x80] ss:$8 sps:$4 sm:$0xff]   ;;  %v16788_v3 = vld [vmem:[%s22176_s1 + $0x94] ss:$8 sps:$4 sm:$0xff]   ;;  %v16790_v4 = vld [vmem:[%s22176_s1 + $0x90] ss:$8 sps:$4 sm:$0xff]  }
  0x14   :  { %190 = vmatprep.subr.bf16.mxu0 %v16785_v1  ;;  %v16791_v5 = vld [vmem:[%s22176_s1 + $0xa4] ss:$8 sps:$4 sm:$0xff]   ;;  %v16793_v6 = vld [vmem:[%s22176_s1 + $0xa0] ss:$8 sps:$4 sm:$0xff]   ;;  %v16794_v7 = vld [vmem:[%s22176_s1 + $0xb4] ss:$8 sps:$4 sm:$0xff]  }
  0x15   :  { %191 = vmatpush1.bf16.msra.mxu0 %v16787_v2  ;;  %v16796_v8 = vld [vmem:[%s22176_s1 + $0xb0] ss:$8 sps:$4 sm:$0xff]   ;;  %v16797_v9 = vld [vmem:[%s22176_s1 + $0xc4] ss:$8 sps:$4 sm:$0xff]   ;;  %v16799_v16 = vld [vmem:[%s22176_s1 + $0xc0] ss:$8 sps:$4 sm:$0xff]  }
  0x16   :  { %192 = vmatprep.subr.bf16.mxu0 %v16788_v3  ;;  %v53_v10 = vld [vmem:[%s22175_s0] sm:$0xff]  ;;  %v54_v11 = vld [vmem:[%s22175_s0 + $0x8] sm:$0xff]  ;;  %v56_v13 = vld [vmem:[%s22175_s0 + $0x18] sm:$0xff]  ;;  %vm395_vm0 = vcmask 1046528   ;;  %vm559_vm1 = vsmask.f32 6400 }
  0x17   :  { %v18748_v14 = vpack.c.bf16 %v54_v11, %v53_v10  ;;  %v18750_v15 = vpack.c.bf16 %v56_v13, %v55_v12  ;;  %v16800_v17 = vld [vmem:[%s22176_s1 + $0xd4] ss:$8 sps:$4 sm:$0xff]   ;;  %v16802_v20 = vld [vmem:[%s22176_s1 + $0xd0] ss:$8 sps:$4 sm:$0xff]   ;;  %v16803_v26 = vld [vmem:[%s22176_s1 + $0xe4] ss:$8 sps:$4 sm:$0xff]  }
  0x18   :  { %v16805_v32 = vld [vmem:[%s22176_s1 + $0xe0] ss:$8 sps:$4 sm:$0xff]   ;;  %v16806_v35 = vld [vmem:[%s22176_s1 + $0xf4] ss:$8 sps:$4 sm:$0xff]   ;;  %v16808_v37 = vld [vmem:[%s22176_s1 + $0xf0] ss:$8 sps:$4 sm:$0xff]  }
  0x19   :  { %193 = vmatpush1.bf16.msra.mxu0 %v16790_v4  ;;  %v94_v18 = vshrl.u32 %v18748_v14, 16  ;;  %v101_v19 = vshll.u32 %v18750_v15, 16  ;;  %v96_v21 = vshll.u32 %v18748_v14, 16  ;;  %v105_v24 = vshrl.u32 %v18750_v15, 16  ;;  %v16811_v40 = vld [vmem:[%s22176_s1 + $0x4] ss:$8 sps:$4 sm:$0xff]  }
  0x1a   :  { %194 = vmatprep.subr.bf16.mxu0 %v16791_v5  ;;  %v396_v25 = vrot.slane %v18748_v14, 1  ;;  %v397_v27 = vrot.slane %v18750_v15, 1  ;;  %vm92_vm2 = vsmask.f32 7424  ;;  %v16809_v41 = vld [vmem:[%s22176_s1] ss:$8 sps:$4 sm:$0xff]  }
  0x1b   :  { %v560_v22 = vrot.slane %v94_v18, 1  ;;  %v564_v23 = vrot.slane %v101_v19, 2  ;;  %v561_v28 = vrot.slane %v96_v21, 2  ;;  %v563_v29 = vrot.slane %v105_v24, 1  ;;  %v16814_v44 = vld [vmem:[%s22176_s1 + $0x14] ss:$8 sps:$4 sm:$0xff]  }
  0x1c   :  { %v18773_v30 = vsel %vm395_vm0, %v396_v25, %v397_v27  ;;  %v98_v33 = vrot.slane %v96_v21, 1  ;;  %v103_v39 = vrot.slane %v101_v19, 1  ;;  %vm727_vm3 = vcmask 1045504   ;;  %v16812_v47 = vld [vmem:[%s22176_s1 + $0x10] ss:$8 sps:$4 sm:$0xff]  }
  0x1d   :  { %195 = vmatpush1.bf16.msra.mxu0 %v16793_v6  ;;  %v562_v31 = vor.u32 %v561_v28, %v560_v22  ;;  %v18778_v34 = vor.u32 %v564_v23, %v563_v29  ;;  %v728_v43 = vrot.slane %v18748_v14, 2  ;;  %v729_v45 = vrot.slane %v18750_v15, 2  ;;  %v16817_v48 = vld [vmem:[%s22176_s1 + $0x24] ss:$8 sps:$4 sm:$0xff]   ;;  %v16815_v50 = vld [vmem:[%s22176_s1 + $0x20] ss:$8 sps:$4 sm:$0xff]  }
  0x1e   :  { %196 = vmatprep.subr.bf16.mxu0 %v16794_v7  ;;  %v99_v38 = vor.u32 %v98_v33, %v94_v18  ;;  %v107_v49 = vor.u32 %v105_v24, %v103_v39  ;;  %v16820_v51 = vld [vmem:[%s22176_s1 + $0x34] ss:$8 sps:$4 sm:$0xff]   ;;  %v16818_v52 = vld [vmem:[%s22176_s1 + $0x30] ss:$8 sps:$4 sm:$0xff]   ;;  %v16823_v53 = vld [vmem:[%s22176_s1 + $0x44] ss:$8 sps:$4 sm:$0xff]  }
  0x1f   :  { %v18785_v36 = vsel %vm559_vm1, %v562_v31, %v18778_v34  ;;  %v18805_v46 = vsel %vm727_vm3, %v728_v43, %v729_v45  ;;  %v16821_v54 = vld [vmem:[%s22176_s1 + $0x40] ss:$8 sps:$4 sm:$0xff]   ;;  %v16826_v55 = vld [vmem:[%s22176_s1 + $0x54] ss:$8 sps:$4 sm:$0xff]   ;;  %v16824_v56 = vld [vmem:[%s22176_s1 + $0x50] ss:$8 sps:$4 sm:$0xff]  }
  0x20   :  { %v104_v42 = vsel %vm92_vm2, %v99_v38, %v103_v39  ;;  %v16829_v57 = vld [vmem:[%s22176_s1 + $0x64] ss:$8 sps:$4 sm:$0xff]   ;;  %v16827_v58 = vld [vmem:[%s22176_s1 + $0x60] ss:$8 sps:$4 sm:$0xff]   ;;  %v16832_v59 = vld [vmem:[%s22176_s1 + $0x74] ss:$8 sps:$4 sm:$0xff]  }
  0x21   :  { %197 = vmatpush1.bf16.msra.mxu0 %v16796_v8  ;;  %v16830_v60 = vld [vmem:[%s22176_s1 + $0x70] ss:$8 sps:$4 sm:$0xff]   ;;  %v16835_v61 = vld [vmem:[%s22176_s1 + $0x104] ss:$8 sps:$4 sm:$0xff]   ;;  %v16833_v62 = vld [vmem:[%s22176_s1 + $0x100] ss:$8 sps:$4 sm:$0xff]  }
  0x22   :  { %198 = vmatprep.subr.bf16.mxu0 %v16797_v9  ;;  %v16838_v63 = vld [vmem:[%s22176_s1 + $0x114] ss:$8 sps:$4 sm:$0xff]   ;;  %v16836_v1 = vld [vmem:[%s22176_s1 + $0x110] ss:$8 sps:$4 sm:$0xff]   ;;  %v16841_v2 = vld [vmem:[%s22176_s1 + $0x124] ss:$8 sps:$4 sm:$0xff]  }
  0x23   :  { %v16839_v3 = vld [vmem:[%s22176_s1 + $0x120] ss:$8 sps:$4 sm:$0xff]   ;;  %v16844_v4 = vld [vmem:[%s22176_s1 + $0x134] ss:$8 sps:$4 sm:$0xff]   ;;  %v16842_v5 = vld [vmem:[%s22176_s1 + $0x130] ss:$8 sps:$4 sm:$0xff]  }
  0x24   :  { %v16847_v6 = vld [vmem:[%s22176_s1 + $0x144] ss:$8 sps:$4 sm:$0xff]   ;;  %v16845_v7 = vld [vmem:[%s22176_s1 + $0x140] ss:$8 sps:$4 sm:$0xff]   ;;  %v14462_v8 = vld [vmem:[%s22175_s0 + $0x30] sm:$0xff]  ;;  %vm1395_vm4 = vcmask 1044480  }
  0x25   :  { %199 = vmatpush1.bf16.msra.mxu0 %v16799_v16  ;;  %v14463_v9 = vld [vmem:[%s22175_s0 + $0x38] sm:$0xff]  ;;  %v16853_v12 = vld [vmem:[%s22176_s1 + $0x164] ss:$8 sps:$4 sm:$0xff]   ;;  %v16857_v24 = vld [vmem:[%s22176_s1 + $0x180] ss:$8 sps:$4 sm:$0xff]   ;;  %vm18634_vm5 = vmmov 0  }
  0x26   :  { %200 = vmatprep.subr.bf16.mxu0 %v16800_v17  ;;  %v16850_v10 = vld [vmem:[%s22176_s1 + $0x154] ss:$8 sps:$4 sm:$0xff]   ;;  %v16848_v11 = vld [vmem:[%s22176_s1 + $0x150] ss:$8 sps:$4 sm:$0xff]   ;;  %v18897_v13 = vpack.c.bf16 %v14463_v9, %v14462_v8  ;;  %v16859_v22 = vld [vmem:[%s22176_s1 + $0x184] ss:$8 sps:$4 sm:$0xff]  }
  0x27   :  { %v16856_v16 = vld [vmem:[%s22176_s1 + $0x174] ss:$8 sps:$4 sm:$0xff]   ;;  %v16865_v28 = vld [vmem:[%s22176_s1 + $0x1a4] ss:$8 sps:$4 sm:$0xff]   ;;  %v16863_v29 = vld [vmem:[%s22176_s1 + $0x1a0] ss:$8 sps:$4 sm:$0xff]  }
  0x28   :  { %v1797_v17 = vshll.u32 %v18897_v13, 16  ;;  %v1801_v18 = vshrl.u32 %v18897_v13, 16  ;;  %v16862_v25 = vld [vmem:[%s22176_s1 + $0x194] ss:$8 sps:$4 sm:$0xff]   ;;  %v16869_v33 = vld [vmem:[%s22176_s1 + $0x1c0] ss:$8 sps:$4 sm:$0xff]  }
  0x29   :  { %201 = vmatpush1.bf16.msra.mxu0 %v16802_v20  ;;  %v16854_v20 = vld [vmem:[%s22176_s1 + $0x170] ss:$8 sps:$4 sm:$0xff]   ;;  %v16868_v31 = vld [vmem:[%s22176_s1 + $0x1b4] ss:$8 sps:$4 sm:$0xff]   ;;  %v16875_v38 = vld [vmem:[%s22176_s1 + $0x1e0] ss:$8 sps:$4 sm:$0xff]  }
  0x2a   :  { %202 = vmatprep.subr.bf16.mxu0 %v16803_v26  ;;  %v2256_v19 = vrot.slane %v1797_v17, 2  ;;  %v2255_v21 = vrot.slane %v1801_v18, 1  ;;  %v16860_v26 = vld [vmem:[%s22176_s1 + $0x190] ss:$8 sps:$4 sm:$0xff]   ;;  %v16880_v39 = vld [vmem:[%s22176_s1 + $0x1f4] ss:$8 sps:$4 sm:$0xff]  }
  0x2b   :  { %v16886_v43 = vld [vmem:[%s22176_s1 + $0x214] ss:$8 sps:$4 sm:$0xff]   ;;  %v18537_v9 = vld [vmem:[%s22176_s1 + $0xe4] ss:$8 sps:$4 sm:$0xff]   ;;  %vm14214_vm6 = vcmask 80896  }
  0x2c   :  { %v18917_v23 = vor.u32 %v2256_v19, %v2255_v21  ;;  %v18543_v21 = vld [vmem:[%s22176_s1 + $0x14] ss:$8 sps:$4 sm:$0xff]  }
  0x2d   :  { %203 = vmatpush1.bf16.msra.mxu0 %v16805_v32  ;;  %v16871_v32 = vld [vmem:[%s22176_s1 + $0x1c4] ss:$8 sps:$4 sm:$0xff]  }
  0x2e   :  { %204 = vmatprep.subr.bf16.mxu0 %v16806_v35  ;;  %v16874_v35 = vld [vmem:[%s22176_s1 + $0x1d4] ss:$8 sps:$4 sm:$0xff]  }
  0x31   :  { %205 = vmatpush1.bf16.msra.mxu0 %v16808_v37  ;;  %v16872_v37 = vld [vmem:[%s22176_s1 + $0x1d0] ss:$8 sps:$4 sm:$0xff]  }
  0x32   :  { %323 = vmatprep.subr.bf16.mxu0 %v16811_v40  ;;  %v16878_v40 = vld [vmem:[%s22176_s1 + $0x1f0] ss:$8 sps:$4 sm:$0xff]  }
  0x34   :  { %223 = vmatmul.mubr.bf16.vlgmr.msra.gmra.mrb[0].mxu0 %v104_v42  ;;  %v16881_v42 = vld [vmem:[%s22176_s1 + $0x200] ss:$8 sps:$4 sm:$0xff]  }
  0x35   :  { %324 = vmatpush1.bf16.msra.mxu0 %v16809_v41  ;;  %232 = vmatprep.mubr.bf16.mxu0 %v22187_v0  ;;  %v16883_v41 = vld [vmem:[%s22176_s1 + $0x204] ss:$8 sps:$4 sm:$0xff]  }
  0x36   :  { %325 = vmatprep.subr.bf16.mxu0 %v16814_v44  ;;  %v16884_v44 = vld [vmem:[%s22176_s1 + $0x210] ss:$8 sps:$4 sm:$0xff]  }
  0x39   :  { %326 = vmatpush1.bf16.msra.mxu0 %v16812_v47  ;;  %v16889_v47 = vld [vmem:[%s22176_s1 + $0x224] ss:$8 sps:$4 sm:$0xff]  }
  0x3a   :  { %327 = vmatprep.subr.bf16.mxu0 %v16817_v48  ;;  %v16887_v48 = vld [vmem:[%s22176_s1 + $0x220] ss:$8 sps:$4 sm:$0xff]  }
  0x3c   :  { %233 = vmatmul.mubr.bf16.gmra.mrb[4].mxu0 %v107_v49  ;;  %v16892_v49 = vld [vmem:[%s22176_s1 + $0x234] ss:$8 sps:$4 sm:$0xff]  }
  0x3d   :  { %328 = vmatpush1.bf16.msra.mxu0 %v16815_v50  ;;  %355 = vmatprep.mubr.bf16.mxu0 %v22187_v0  ;;  %v16895_v50 = vld [vmem:[%s22176_s1 + $0x244] ss:$8 sps:$4 sm:$0xff]  }
  0x3e   :  { %329 = vmatprep.subr.bf16.mxu0 %v16820_v51  ;;  %v16893_v51 = vld [vmem:[%s22176_s1 + $0x240] ss:$8 sps:$4 sm:$0xff]  }
  0x41   :  { %330 = vmatpush1.bf16.msra.mxu0 %v16818_v52  ;;  %v16898_v52 = vld [vmem:[%s22176_s1 + $0x254] ss:$8 sps:$4 sm:$0xff]  }
  0x42   :  { %331 = vmatprep.subr.bf16.mxu0 %v16823_v53  ;;  %v16896_v53 = vld [vmem:[%s22176_s1 + $0x250] ss:$8 sps:$4 sm:$0xff]  }
  0x45   :  { %332 = vmatpush1.bf16.msra.mxu0 %v16821_v54  ;;  %v16899_v54 = vld [vmem:[%s22176_s1 + $0x260] ss:$8 sps:$4 sm:$0xff]  }
  0x46   :  { %333 = vmatprep.subr.bf16.mxu0 %v16826_v55  ;;  %v16904_v55 = vld [vmem:[%s22176_s1 + $0x274] ss:$8 sps:$4 sm:$0xff]  }
  0x49   :  { %334 = vmatpush1.bf16.msra.mxu0 %v16824_v56  ;;  %v16902_v56 = vld [vmem:[%s22176_s1 + $0x270] ss:$8 sps:$4 sm:$0xff]  }
  0x4a   :  { %335 = vmatprep.subr.bf16.mxu0 %v16829_v57  ;;  %v18525_v57 = vld [vmem:[%s22176_s1 + $0x84] ss:$8 sps:$4 sm:$0xff]  }
  0x4d   :  { %336 = vmatpush1.bf16.msra.mxu0 %v16827_v58  ;;  %v18526_v58 = vld [vmem:[%s22176_s1 + $0x80] ss:$8 sps:$4 sm:$0xff]  }
  0x4e   :  { %337 = vmatprep.subr.bf16.mxu0 %v16832_v59  ;;  %v18527_v59 = vld [vmem:[%s22176_s1 + $0x94] ss:$8 sps:$4 sm:$0xff]  }
  0x51   :  { %338 = vmatpush1.bf16.msra.mxu0 %v16830_v60  ;;  %v18528_v60 = vld [vmem:[%s22176_s1 + $0x90] ss:$8 sps:$4 sm:$0xff]  }
  0x52   :  { %481 = vmatprep.subr.bf16.mxu0 %v16835_v61  ;;  %v14460_v61 = vld [vmem:[%s22175_s0 + $0x20] sm:$0xff] }
  0x54   :  { %356 = vmatmul.mubr.bf16.vlgmr.msra.gmra.mrb[0].mxu0 %v18748_v14  ;;  %v16851_v14 = vld [vmem:[%s22176_s1 + $0x160] ss:$8 sps:$4 sm:$0xff]  }
  0x55   :  { %482 = vmatpush1.bf16.msra.mxu0 %v16833_v62  ;;  %365 = vmatprep.mubr.bf16.mxu0 %v22187_v0  ;;  %v14461_v62 = vld [vmem:[%s22175_s0 + $0x28] sm:$0xff] }
  0x56   :  { %483 = vmatprep.subr.bf16.mxu0 %v16838_v63  ;;  %v18530_v63 = vld [vmem:[%s22176_s1 + $0xa0] ss:$8 sps:$4 sm:$0xff]  }
  0x59   :  { %484 = vmatpush1.bf16.msra.mxu0 %v16836_v1  ;;  %v19056_v1 = vpack.c.bf16 %v14461_v62, %v14460_v61  ;;  %v2091_v62 = vrot.slane %v18897_v13, 1 }
  0x5a   :  { %485 = vmatprep.subr.bf16.mxu0 %v16841_v2  ;;  %v18533_v2 = vld [vmem:[%s22176_s1 + $0xc4] ss:$8 sps:$4 sm:$0xff]  }
  0x5b   :  { %v2090_v61 = vrot.slane %v19056_v1, 1 }
  0x5c   :  { %366 = vmatmul.mubr.bf16.gmra.mrb[4].mxu0 %v18750_v15  ;;  %v18531_v15 = vld [vmem:[%s22176_s1 + $0xb4] ss:$8 sps:$4 sm:$0xff]  }
  0x5d   :  { %486 = vmatpush1.bf16.msra.mxu0 %v16839_v3  ;;  %513 = vmatprep.mubr.bf16.mxu0 %v22187_v0  ;;  %v18534_v3 = vld [vmem:[%s22176_s1 + $0xc0] ss:$8 sps:$4 sm:$0xff]  }
  0x5e   :  { %487 = vmatprep.subr.bf16.mxu0 %v16844_v4  ;;  %v1792_v4 = vshll.u32 %v19056_v1, 16 }
  0x60   :  { %v1794_v8 = vrot.slane %v1792_v4, 1 }
  0x61   :  { %488 = vmatpush1.bf16.msra.mxu0 %v16842_v5  ;;  %v18535_v5 = vld [vmem:[%s22176_s1 + $0xd4] ss:$8 sps:$4 sm:$0xff]  }
  0x62   :  { %489 = vmatprep.subr.bf16.mxu0 %v16847_v6  ;;  %v18536_v6 = vld [vmem:[%s22176_s1 + $0xd0] ss:$8 sps:$4 sm:$0xff]  }
  0x65   :  { %490 = vmatpush1.bf16.msra.mxu0 %v16845_v7  ;;  %v1790_v7 = vshrl.u32 %v19056_v1, 16 }
  0x66   :  { %491 = vmatprep.subr.bf16.mxu0 %v16850_v10  ;;  %v18538_v10 = vld [vmem:[%s22176_s1 + $0xe0] ss:$8 sps:$4 sm:$0xff]  }
  0x69   :  { %492 = vmatpush1.bf16.msra.mxu0 %v16848_v11  ;;  %v1795_v11 = vor.u32 %v1794_v8, %v1790_v7  ;;  %v18572_v8 = vld [vmem:[%s22176_s1 + $0x170] ss:$8 sps:$4 sm:$0xff]  }
  0x6a   :  { %493 = vmatprep.subr.bf16.mxu0 %v16853_v12  ;;  %v1799_v12 = vrot.slane %v1797_v17, 1  ;;  %v18542_v17 = vld [vmem:[%s22176_s1] ss:$8 sps:$4 sm:$0xff]  }
  0x6c   :  { %v1800_v19 = vsel %vm92_vm2, %v1795_v11, %v1799_v12  ;;  %v18573_v11 = vld [vmem:[%s22176_s1 + $0x184] ss:$8 sps:$4 sm:$0xff]  }
  0x6d   :  { %494 = vmatpush1.bf16.msra.mxu0 %v16851_v14  ;;  %v18539_v14 = vld [vmem:[%s22176_s1 + $0xf4] ss:$8 sps:$4 sm:$0xff]  }
  0x6e   :  { %495 = vmatprep.subr.bf16.mxu0 %v16856_v16  ;;  %v18540_v16 = vld [vmem:[%s22176_s1 + $0xf0] ss:$8 sps:$4 sm:$0xff]  }
  0x71   :  { %496 = vmatpush1.bf16.msra.mxu0 %v16854_v20  ;;  %v18541_v20 = vld [vmem:[%s22176_s1 + $0x4] ss:$8 sps:$4 sm:$0xff]  }
  0x72   :  { %649 = vmatprep.subr.bf16.mxu0 %v16859_v22  ;;  %v1803_v22 = vor.u32 %v1801_v18, %v1799_v12  ;;  %v18547_v18 = vld [vmem:[%s22176_s1 + $0x34] ss:$8 sps:$4 sm:$0xff]  }
  0x74   :  { %514 = vmatmul.mubr.bf16.vlgmr.msra.gmra.mrb[0].mxu0 %v18773_v30  ;;  %v16866_v30 = vld [vmem:[%s22176_s1 + $0x1b0] ss:$8 sps:$4 sm:$0xff]  }
  0x75   :  { %650 = vmatpush1.bf16.msra.mxu0 %v16857_v24  ;;  %523 = vmatprep.mubr.bf16.mxu0 %v22187_v0  ;;  %v18544_v24 = vld [vmem:[%s22176_s1 + $0x10] ss:$8 sps:$4 sm:$0xff]  }
  0x76   :  { %651 = vmatprep.subr.bf16.mxu0 %v16862_v25  ;;  %v18545_v25 = vld [vmem:[%s22176_s1 + $0x24] ss:$8 sps:$4 sm:$0xff]  }
  0x79   :  { %652 = vmatpush1.bf16.msra.mxu0 %v16860_v26  ;;  %v18546_v26 = vld [vmem:[%s22176_s1 + $0x20] ss:$8 sps:$4 sm:$0xff]  }
  0x7a   :  { %653 = vmatprep.subr.bf16.mxu0 %v16865_v28  ;;  %v18548_v28 = vld [vmem:[%s22176_s1 + $0x30] ss:$8 sps:$4 sm:$0xff]  }
  0x7c   :  { %524 = vmatmul.mubr.bf16.gmra.mrb[4].mxu0 %v397_v27  ;;  %v16877_v27 = vld [vmem:[%s22176_s1 + $0x1e4] ss:$8 sps:$4 sm:$0xff]  }
  0x7d   :  { %654 = vmatpush1.bf16.msra.mxu0 %v16863_v29  ;;  %681 = vmatprep.mubr.bf16.mxu0 %v22187_v0  ;;  %v18549_v29 = vld [vmem:[%s22176_s1 + $0x44] ss:$8 sps:$4 sm:$0xff]  }
  0x7e   :  { %655 = vmatprep.subr.bf16.mxu0 %v16868_v31  ;;  %v18550_v31 = vld [vmem:[%s22176_s1 + $0x40] ss:$8 sps:$4 sm:$0xff]  }
  0x81   :  { %656 = vmatpush1.bf16.msra.mxu0 %v16866_v30  ;;  %v18551_v30 = vld [vmem:[%s22176_s1 + $0x54] ss:$8 sps:$4 sm:$0xff]  }
  0x82   :  { %657 = vmatprep.subr.bf16.mxu0 %v16871_v32  ;;  %v18552_v32 = vld [vmem:[%s22176_s1 + $0x50] ss:$8 sps:$4 sm:$0xff]  }
  0x85   :  { %658 = vmatpush1.bf16.msra.mxu0 %v16869_v33  ;;  %v18553_v33 = vld [vmem:[%s22176_s1 + $0x64] ss:$8 sps:$4 sm:$0xff]  }
  0x86   :  { %659 = vmatprep.subr.bf16.mxu0 %v16874_v35  ;;  %v18554_v35 = vld [vmem:[%s22176_s1 + $0x60] ss:$8 sps:$4 sm:$0xff]  }
  0x89   :  { %660 = vmatpush1.bf16.msra.mxu0 %v16872_v37  ;;  %v18555_v37 = vld [vmem:[%s22176_s1 + $0x74] ss:$8 sps:$4 sm:$0xff]  }
  0x8a   :  { %661 = vmatprep.subr.bf16.mxu0 %v16877_v27  ;;  %v18556_v27 = vld [vmem:[%s22176_s1 + $0x70] ss:$8 sps:$4 sm:$0xff]  }
  0x8d   :  { %662 = vmatpush1.bf16.msra.mxu0 %v16875_v38  ;;  %v18557_v38 = vld [vmem:[%s22176_s1 + $0x104] ss:$8 sps:$4 sm:$0xff]  }
  0x8e   :  { %663 = vmatprep.subr.bf16.mxu0 %v16880_v39  ;;  %v18558_v39 = vld [vmem:[%s22176_s1 + $0x100] ss:$8 sps:$4 sm:$0xff]  }
  0x91   :  { %664 = vmatpush1.bf16.msra.mxu0 %v16878_v40  ;;  %v18559_v40 = vld [vmem:[%s22176_s1 + $0x114] ss:$8 sps:$4 sm:$0xff]  }
  0x92   :  { %813 = vmatprep.subr.bf16.mxu0 %v16883_v41  ;;  %v18560_v41 = vld [vmem:[%s22176_s1 + $0x110] ss:$8 sps:$4 sm:$0xff]  }
  0x94   :  { %682 = vmatmul.mubr.bf16.vlgmr.msra.gmra.mrb[0].mxu0 %v18785_v36  ;;  %v16890_v36 = vld [vmem:[%s22176_s1 + $0x230] ss:$8 sps:$4 sm:$0xff]  }
  0x95   :  { %814 = vmatpush1.bf16.msra.mxu0 %v16881_v42  ;;  %691 = vmatprep.mubr.bf16.mxu0 %v22187_v0  ;;  %v18561_v42 = vld [vmem:[%s22176_s1 + $0x124] ss:$8 sps:$4 sm:$0xff]  }
  0x96   :  { %815 = vmatprep.subr.bf16.mxu0 %v16886_v43  ;;  %v18562_v43 = vld [vmem:[%s22176_s1 + $0x120] ss:$8 sps:$4 sm:$0xff]  }
  0x99   :  { %816 = vmatpush1.bf16.msra.mxu0 %v16884_v44  ;;  %v18563_v44 = vld [vmem:[%s22176_s1 + $0x134] ss:$8 sps:$4 sm:$0xff]  }
  0x9a   :  { %817 = vmatprep.subr.bf16.mxu0 %v16889_v47  ;;  %v16941_v47 = vld [vmem:[#allocation3 + $0x84] ss:$8 sps:$4 sm:$0xff]  }
  0x9b   :  { %1035 = vmatprep.subr.bf16.mxu1 %v16941_v47  ;;  %v18592_v47 = vld [vmem:[%s22176_s1 + $0x210] ss:$8 sps:$4 sm:$0xff]  }
  0x9c   :  { %692 = vmatmul.mubr.bf16.gmra.mrb[4].mxu0 %v18778_v34  ;;  %v16901_v34 = vld [vmem:[%s22176_s1 + $0x264] ss:$8 sps:$4 sm:$0xff]  }
  0x9d   :  { %818 = vmatpush1.bf16.msra.mxu0 %v16887_v48  ;;  %845 = vmatprep.mubr.bf16.mxu0 %v22187_v0  ;;  %v18564_v48 = vld [vmem:[%s22176_s1 + $0x130] ss:$8 sps:$4 sm:$0xff]  }
  0x9e   :  { %819 = vmatprep.subr.bf16.mxu0 %v16892_v49  ;;  %v16943_v49 = vld [vmem:[#allocation3 + $0x80] ss:$8 sps:$4 sm:$0xff]  }
  0x9f   :  { %1036 = vmatpush1.bf16.msra.mxu1 %v16943_v49  ;;  %v18594_v49 = vld [vmem:[%s22176_s1 + $0x220] ss:$8 sps:$4 sm:$0xff]  }
  0xa1   :  { %820 = vmatpush1.bf16.msra.mxu0 %v16890_v36  ;;  %v18565_v36 = vld [vmem:[%s22176_s1 + $0x144] ss:$8 sps:$4 sm:$0xff]  }
  0xa2   :  { %821 = vmatprep.subr.bf16.mxu0 %v16895_v50  ;;  %v16947_v50 = vld [vmem:[#allocation3 + $0x94] ss:$8 sps:$4 sm:$0xff]  }
  0xa3   :  { %1037 = vmatprep.subr.bf16.mxu1 %v16947_v50  ;;  %v18596_v50 = vld [vmem:[%s22176_s1 + $0x230] ss:$8 sps:$4 sm:$0xff]  }
  0xa5   :  { %822 = vmatpush1.bf16.msra.mxu0 %v16893_v51  ;;  %v18566_v51 = vld [vmem:[%s22176_s1 + $0x140] ss:$8 sps:$4 sm:$0xff]  }
  0xa6   :  { %823 = vmatprep.subr.bf16.mxu0 %v16898_v52  ;;  %v16949_v52 = vld [vmem:[#allocation3 + $0x90] ss:$8 sps:$4 sm:$0xff]  }
  0xa7   :  { %1038 = vmatpush1.bf16.msra.mxu1 %v16949_v52  ;;  %v18599_v52 = vld [vmem:[%s22176_s1 + $0x254] ss:$8 sps:$4 sm:$0xff]  }
  0xa9   :  { %824 = vmatpush1.bf16.msra.mxu0 %v16896_v53  ;;  %v18567_v53 = vld [vmem:[%s22176_s1 + $0x154] ss:$8 sps:$4 sm:$0xff]  }
  0xaa   :  { %825 = vmatprep.subr.bf16.mxu0 %v16901_v34  ;;  %v14693_v34 = vld [vmem:[%s22175_s0 + $0x50] sm:$0xff] }
  0xad   :  { %826 = vmatpush1.bf16.msra.mxu0 %v16899_v54  ;;  %v14694_v54 = vld [vmem:[%s22175_s0 + $0x58] sm:$0xff] }
  0xae   :  { %827 = vmatprep.subr.bf16.mxu0 %v16904_v55  ;;  %v16953_v55 = vld [vmem:[#allocation3 + $0xa4] ss:$8 sps:$4 sm:$0xff]  }
  0xaf   :  { %1039 = vmatprep.subr.bf16.mxu1 %v16953_v55  ;;  %v2418_v55 = vrot.slane %v19056_v1, 2 }
  0xb1   :  { %828 = vmatpush1.bf16.msra.mxu0 %v16902_v56  ;;  %v18568_v56 = vld [vmem:[%s22176_s1 + $0x150] ss:$8 sps:$4 sm:$0xff]  }
  0xb2   :  { %1886 = vmatprep.subr.bf16.mxu0 %v18525_v57  ;;  %v16955_v57 = vld [vmem:[#allocation3 + $0xa0] ss:$8 sps:$4 sm:$0xff]  }
  0xb3   :  { %1040 = vmatpush1.bf16.msra.mxu1 %v16955_v57  ;;  %v16907_v57 = vld [vmem:[%s22176_s1 + $0x84] ss:$8 sps:$4 sm:$0xff]  }
  0xb4   :  { %846 = vmatmul.mubr.bf16.vlgmr.msra.gmra.mrb[0].mxu0 %v18805_v46  ;;  %v18529_v46 = vld [vmem:[%s22176_s1 + $0xa4] ss:$8 sps:$4 sm:$0xff]  }
  0xb5   :  { %1887 = vmatpush1.bf16.msra.mxu0 %v18526_v58  ;;  %855 = vmatprep.mubr.bf16.mxu0 %v22187_v0  ;;  %v18569_v58 = vld [vmem:[%s22176_s1 + $0x164] ss:$8 sps:$4 sm:$0xff]  }
  0xb6   :  { %1888 = vmatprep.subr.bf16.mxu0 %v18527_v59  ;;  %v19192_v59 = vpack.c.bf16 %v14694_v54, %v14693_v34  ;;  %v18601_v34 = vld [vmem:[%s22176_s1 + $0x264] ss:$8 sps:$4 sm:$0xff]   ;;  %v18602_v54 = vld [vmem:[%s22176_s1 + $0x260] ss:$8 sps:$4 sm:$0xff]  }
  0xb9   :  { %1889 = vmatpush1.bf16.msra.mxu0 %v18528_v60  ;;  %v16959_v60 = vld [vmem:[#allocation3 + $0xb4] ss:$8 sps:$4 sm:$0xff]  }
  0xba   :  { %1890 = vmatprep.subr.bf16.mxu0 %v18529_v46  ;;  %v18570_v46 = vld [vmem:[%s22176_s1 + $0x160] ss:$8 sps:$4 sm:$0xff]   ;;  %1041 = vmatprep.subr.bf16.mxu1 %v16959_v60  ;;  %v18604_v60 = vld [vmem:[%s22176_s1 + $0x270] ss:$8 sps:$4 sm:$0xff]  }
  0xbc   :  { %856 = vmatmul.mubr.bf16.gmra.mrb[4].mxu0 %v729_v45  ;;  %v18532_v45 = vld [vmem:[%s22176_s1 + $0xb0] ss:$8 sps:$4 sm:$0xff]  }
  0xbd   :  { %1891 = vmatpush1.bf16.msra.mxu0 %v18530_v63  ;;  %1918 = vmatprep.mubr.bf16.mxu0 %v22187_v0  ;;  %v16961_v63 = vld [vmem:[#allocation3 + $0xb0] ss:$8 sps:$4 sm:$0xff]  }
  0xbe   :  { %1892 = vmatprep.subr.bf16.mxu0 %v18531_v15  ;;  %v18571_v15 = vld [vmem:[%s22176_s1 + $0x174] ss:$8 sps:$4 sm:$0xff]   ;;  %1042 = vmatpush1.bf16.msra.mxu1 %v16961_v63  ;;  %v16911_v63 = vld [vmem:[%s22176_s1 + $0xa0] ss:$8 sps:$4 sm:$0xff]  }
  0xc1   :  { %1893 = vmatpush1.bf16.msra.mxu0 %v18532_v45  ;;  %v3480_v45 = vshll.u32 %v19192_v59, 16 }
  0xc2   :  { %1894 = vmatprep.subr.bf16.mxu0 %v18533_v2  ;;  %v3484_v2 = vshrl.u32 %v19192_v59, 16 }
  0xc5   :  { %1895 = vmatpush1.bf16.msra.mxu0 %v18534_v3  ;;  %v3938_v3 = vrot.slane %v3484_v2, 1 }
  0xc6   :  { %1896 = vmatprep.subr.bf16.mxu0 %v18535_v5  ;;  %v3939_v5 = vrot.slane %v3480_v45, 2 }
  0xc8   :  { %v19215_v12 = vor.u32 %v3939_v5, %v3938_v3  ;;  %v16914_v3 = vld [vmem:[%s22176_s1 + $0xb0] ss:$8 sps:$4 sm:$0xff]   ;;  %v16919_v5 = vld [vmem:[%s22176_s1 + $0xc4] ss:$8 sps:$4 sm:$0xff]  }
  0xc9   :  { %1897 = vmatpush1.bf16.msra.mxu0 %v18536_v6  ;;  %v16965_v6 = vld [vmem:[#allocation3 + $0xc4] ss:$8 sps:$4 sm:$0xff]  }
  0xca   :  { %1898 = vmatprep.subr.bf16.mxu0 %v18537_v9  ;;  %v2092_v9 = vsel %vm395_vm0, %v2090_v61, %v2091_v62  ;;  %1043 = vmatprep.subr.bf16.mxu1 %v16965_v6  ;;  %v16908_v61 = vld [vmem:[%s22176_s1 + $0x90] ss:$8 sps:$4 sm:$0xff]   ;;  %v14691_v6 = vld [vmem:[%s22175_s0 + $0x40] sm:$0xff] }
  0xcd   :  { %1899 = vmatpush1.bf16.msra.mxu0 %v18538_v10  ;;  %v16967_v10 = vld [vmem:[#allocation3 + $0xc0] ss:$8 sps:$4 sm:$0xff]  }
  0xce   :  { %1900 = vmatprep.subr.bf16.mxu0 %v18539_v14  ;;  %1044 = vmatpush1.bf16.msra.mxu1 %v16967_v10  ;;  %v16971_v14 = vld [vmem:[#allocation3 + $0xd4] ss:$8 sps:$4 sm:$0xff]  }
  0xcf   :  { %1045 = vmatprep.subr.bf16.mxu1 %v16971_v14  ;;  %v16920_v14 = vld [vmem:[%s22176_s1 + $0xd0] ss:$8 sps:$4 sm:$0xff]  }
  0xd1   :  { %1901 = vmatpush1.bf16.msra.mxu0 %v18540_v16  ;;  %v18574_v16 = vld [vmem:[%s22176_s1 + $0x180] ss:$8 sps:$4 sm:$0xff]  }
  0xd2   :  { %2019 = vmatprep.subr.bf16.mxu0 %v18541_v20  ;;  %v18575_v20 = vld [vmem:[%s22176_s1 + $0x194] ss:$8 sps:$4 sm:$0xff]  }
  0xd4   :  { %1919 = vmatmul.mubr.bf16.vlgmr.msra.gmra.mrb[8].mxu0 %v1800_v19  ;;  %v16973_v19 = vld [vmem:[#allocation3 + $0xd0] ss:$8 sps:$4 sm:$0xff]  }
  0xd5   :  { %2020 = vmatpush1.bf16.msra.mxu0 %v18542_v17  ;;  %1928 = vmatprep.mubr.bf16.mxu0 %v22187_v0  ;;  %v16977_v17 = vld [vmem:[#allocation3 + $0xe4] ss:$8 sps:$4 sm:$0xff]  }
  0xd6   :  { %2021 = vmatprep.subr.bf16.mxu0 %v18543_v21  ;;  %1046 = vmatpush1.bf16.msra.mxu1 %v16973_v19  ;;  %v18576_v21 = vld [vmem:[%s22176_s1 + $0x190] ss:$8 sps:$4 sm:$0xff]  }
  0xd7   :  { %1047 = vmatprep.subr.bf16.mxu1 %v16977_v17 }
  0xd9   :  { %2022 = vmatpush1.bf16.msra.mxu0 %v18544_v24  ;;  %v18577_v24 = vld [vmem:[%s22176_s1 + $0x1a4] ss:$8 sps:$4 sm:$0xff]  }
  0xda   :  { %2023 = vmatprep.subr.bf16.mxu0 %v18545_v25  ;;  %v16983_v25 = vld [vmem:[#allocation3 + $0xf4] ss:$8 sps:$4 sm:$0xff]  }
  0xdc   :  { %1929 = vmatmul.mubr.bf16.gmra.mrb[12].mxu0 %v1803_v22  ;;  %v16979_v22 = vld [vmem:[#allocation3 + $0xe0] ss:$8 sps:$4 sm:$0xff]  }
  0xdd   :  { %2024 = vmatpush1.bf16.msra.mxu0 %v18546_v26  ;;  %2051 = vmatprep.mubr.bf16.mxu0 %v22187_v0  ;;  %v18578_v26 = vld [vmem:[%s22176_s1 + $0x1a0] ss:$8 sps:$4 sm:$0xff]  }
  0xde   :  { %2025 = vmatprep.subr.bf16.mxu0 %v18547_v18  ;;  %1048 = vmatpush1.bf16.msra.mxu1 %v16979_v22  ;;  %v16985_v18 = vld [vmem:[#allocation3 + $0xf0] ss:$8 sps:$4 sm:$0xff]   ;;  %v16928_v22 = vld [vmem:[%s22176_s1 + $0xf4] ss:$8 sps:$4 sm:$0xff]  }
  0xdf   :  { %1049 = vmatprep.subr.bf16.mxu1 %v16983_v25  ;;  %v16931_v25 = vld [vmem:[%s22176_s1 + $0x4] ss:$8 sps:$4 sm:$0xff]  }
  0xe1   :  { %2026 = vmatpush1.bf16.msra.mxu0 %v18548_v28  ;;  %v18579_v28 = vld [vmem:[%s22176_s1 + $0x1b4] ss:$8 sps:$4 sm:$0xff]  }
  0xe2   :  { %2027 = vmatprep.subr.bf16.mxu0 %v18549_v29  ;;  %1050 = vmatpush1.bf16.msra.mxu1 %v16985_v18  ;;  %v16991_v29 = vld [vmem:[#allocation3 + $0x4] ss:$8 sps:$4 sm:$0xff]   ;;  %v3482_v18 = vrot.slane %v3480_v45, 1 }
  0xe3   :  { %1166 = vmatprep.subr.bf16.mxu1 %v16991_v29  ;;  %v16937_v45 = vld [vmem:[%s22176_s1 + $0x24] ss:$8 sps:$4 sm:$0xff]  }
  0xe5   :  { %2028 = vmatpush1.bf16.msra.mxu0 %v18550_v31  ;;  %v18580_v31 = vld [vmem:[%s22176_s1 + $0x1b0] ss:$8 sps:$4 sm:$0xff]  }
  0xe6   :  { %2029 = vmatprep.subr.bf16.mxu0 %v18551_v30  ;;  %v18581_v30 = vld [vmem:[%s22176_s1 + $0x1c4] ss:$8 sps:$4 sm:$0xff]  }
  0xe9   :  { %2030 = vmatpush1.bf16.msra.mxu0 %v18552_v32  ;;  %v18582_v32 = vld [vmem:[%s22176_s1 + $0x1c0] ss:$8 sps:$4 sm:$0xff]  }
  0xea   :  { %2031 = vmatprep.subr.bf16.mxu0 %v18553_v33  ;;  %v18583_v33 = vld [vmem:[%s22176_s1 + $0x1d4] ss:$8 sps:$4 sm:$0xff]  }
  0xed   :  { %2032 = vmatpush1.bf16.msra.mxu0 %v18554_v35  ;;  %v18584_v35 = vld [vmem:[%s22176_s1 + $0x1d0] ss:$8 sps:$4 sm:$0xff]  }
  0xee   :  { %2033 = vmatprep.subr.bf16.mxu0 %v18555_v37  ;;  %v2252_v37 = vrot.slane %v1790_v7, 1 }
  0xf1   :  { %2034 = vmatpush1.bf16.msra.mxu0 %v18556_v27  ;;  %v2253_v27 = vrot.slane %v1792_v4, 2  ;;  %v18588_v4 = vld [vmem:[%s22176_s1 + $0x1f0] ss:$8 sps:$4 sm:$0xff]  }
  0xf2   :  { %2175 = vmatprep.subr.bf16.mxu0 %v18557_v38  ;;  %v18585_v38 = vld [vmem:[%s22176_s1 + $0x1e4] ss:$8 sps:$4 sm:$0xff]  }
  0xf4   :  { %2052 = vmatmul.mubr.bf16.vlgmr.msra.gmra.mrb[8].mxu0 %v19056_v1  ;;  %v16910_v1 = vld [vmem:[%s22176_s1 + $0x94] ss:$8 sps:$4 sm:$0xff]  }
  0xf5   :  { %2176 = vmatpush1.bf16.msra.mxu0 %v18558_v39  ;;  %2061 = vmatprep.mubr.bf16.mxu0 %v22187_v0  ;;  %v18586_v39 = vld [vmem:[%s22176_s1 + $0x1e0] ss:$8 sps:$4 sm:$0xff]  }
  0xf6   :  { %2177 = vmatprep.subr.bf16.mxu0 %v18559_v40  ;;  %v2254_v40 = vor.u32 %v2253_v27, %v2252_v37  ;;  %v16938_v37 = vld [vmem:[%s22176_s1 + $0x30] ss:$8 sps:$4 sm:$0xff]   ;;  %v16944_v27 = vld [vmem:[%s22176_s1 + $0x40] ss:$8 sps:$4 sm:$0xff]  }
  0xf8   :  { %v2258_v7 = vsel %vm559_vm1, %v2254_v40, %v18917_v23  ;;  %v16958_v40 = vld [vmem:[%s22176_s1 + $0x64] ss:$8 sps:$4 sm:$0xff]  }
  0xf9   :  { %2178 = vmatpush1.bf16.msra.mxu0 %v18560_v41  ;;  %v18587_v41 = vld [vmem:[%s22176_s1 + $0x1f4] ss:$8 sps:$4 sm:$0xff]  }
  0xfa   :  { %2179 = vmatprep.subr.bf16.mxu0 %v18561_v42  ;;  %v18589_v42 = vld [vmem:[%s22176_s1 + $0x204] ss:$8 sps:$4 sm:$0xff]  }
  0xfc   :  { %2062 = vmatmul.mubr.bf16.gmra.mrb[12].mxu0 %v18897_v13 }
  0xfd   :  { %2180 = vmatpush1.bf16.msra.mxu0 %v18562_v43  ;;  %2207 = vmatprep.mubr.bf16.mxu0 %v22187_v0  ;;  %v18590_v43 = vld [vmem:[%s22176_s1 + $0x200] ss:$8 sps:$4 sm:$0xff]  }
  0xfe   :  { %2181 = vmatprep.subr.bf16.mxu0 %v18563_v44  ;;  %v18591_v44 = vld [vmem:[%s22176_s1 + $0x214] ss:$8 sps:$4 sm:$0xff]  }
 0x101   :  { %2182 = vmatpush1.bf16.msra.mxu0 %v18564_v48  ;;  %v18593_v48 = vld [vmem:[%s22176_s1 + $0x224] ss:$8 sps:$4 sm:$0xff]  }
 0x102   :  { %2183 = vmatprep.subr.bf16.mxu0 %v18565_v36  ;;  %v18595_v36 = vld [vmem:[%s22176_s1 + $0x234] ss:$8 sps:$4 sm:$0xff]  }
 0x105   :  { %2184 = vmatpush1.bf16.msra.mxu0 %v18566_v51  ;;  %v18598_v51 = vld [vmem:[%s22176_s1 + $0x240] ss:$8 sps:$4 sm:$0xff]  }
 0x106   :  { %2185 = vmatprep.subr.bf16.mxu0 %v18567_v53  ;;  %v18600_v53 = vld [vmem:[%s22176_s1 + $0x250] ss:$8 sps:$4 sm:$0xff]  }
 0x109   :  { %2186 = vmatpush1.bf16.msra.mxu0 %v18568_v56  ;;  %v2419_v56 = vrot.slane %v18897_v13, 2  ;;  %v16905_v13 = vld [vmem:[%s22176_s1 + $0x80] ss:$8 sps:$4 sm:$0xff]  }
 0x10a   :  { %2187 = vmatprep.subr.bf16.mxu0 %v18569_v58  ;;  %v18603_v58 = vld [vmem:[%s22176_s1 + $0x274] ss:$8 sps:$4 sm:$0xff]  }
 0x10d   :  { %2188 = vmatpush1.bf16.msra.mxu0 %v18570_v46  ;;  %v2420_v46 = vsel %vm727_vm3, %v2418_v55, %v2419_v56 }
 0x10e   :  { %2189 = vmatprep.subr.bf16.mxu0 %v18571_v15  ;;  %v16916_v15 = vld [vmem:[%s22176_s1 + $0xb4] ss:$8 sps:$4 sm:$0xff]  }
 0x111   :  { %2190 = vmatpush1.bf16.msra.mxu0 %v18572_v8  ;;  %v14692_v8 = vld [vmem:[%s22175_s0 + $0x48] sm:$0xff] }
 0x112   :  { %2341 = vmatprep.subr.bf16.mxu0 %v18573_v11  ;;  %v19362_v10 = vpack.c.bf16 %v14692_v8, %v14691_v6  ;;  %v16922_v11 = vld [vmem:[%s22176_s1 + $0xd4] ss:$8 sps:$4 sm:$0xff]  }
 0x114   :  { %2208 = vmatmul.mubr.bf16.vlgmr.msra.gmra.mrb[8].mxu0 %v2092_v9  ;;  %v16917_v9 = vld [vmem:[%s22176_s1 + $0xc0] ss:$8 sps:$4 sm:$0xff]   ;;  %v3475_v19 = vshll.u32 %v19362_v10, 16  ;;  %v3473_v17 = vshrl.u32 %v19362_v10, 16 }
 0x115   :  { %2342 = vmatpush1.bf16.msra.mxu0 %v18574_v16  ;;  %2217 = vmatprep.mubr.bf16.mxu0 %v22187_v0  ;;  %v16925_v16 = vld [vmem:[%s22176_s1 + $0xe4] ss:$8 sps:$4 sm:$0xff]  }
 0x116   :  { %2343 = vmatprep.subr.bf16.mxu0 %v18575_v20  ;;  %v16923_v20 = vld [vmem:[%s22176_s1 + $0xe0] ss:$8 sps:$4 sm:$0xff]  }
 0x119   :  { %2344 = vmatpush1.bf16.msra.mxu0 %v18576_v21  ;;  %v3477_v21 = vrot.slane %v3475_v19, 1 }
 0x11a   :  { %2345 = vmatprep.subr.bf16.mxu0 %v18577_v24  ;;  %v16926_v24 = vld [vmem:[%s22176_s1 + $0xf0] ss:$8 sps:$4 sm:$0xff]  }
 0x11c   :  { %2218 = vmatmul.mubr.bf16.gmra.mrb[12].mxu0 %v2091_v62  ;;  %v16913_v62 = vld [vmem:[%s22176_s1 + $0xa4] ss:$8 sps:$4 sm:$0xff]  }
 0x11d   :  { %2346 = vmatpush1.bf16.msra.mxu0 %v18578_v26  ;;  %2373 = vmatprep.mubr.bf16.mxu0 %v22187_v0  ;;  %v3478_v26 = vor.u32 %v3477_v21, %v3473_v17 }
 0x11e   :  { %2347 = vmatprep.subr.bf16.mxu0 %v18579_v28  ;;  %v16929_v28 = vld [vmem:[%s22176_s1] ss:$8 sps:$4 sm:$0xff]  }
 0x11f   :  { %v3483_v29 = vsel %vm92_vm2, %v3478_v26, %v3482_v18 }
 0x121   :  { %2348 = vmatpush1.bf16.msra.mxu0 %v18580_v31  ;;  %v16934_v31 = vld [vmem:[%s22176_s1 + $0x14] ss:$8 sps:$4 sm:$0xff]  }
 0x122   :  { %2349 = vmatprep.subr.bf16.mxu0 %v18581_v30  ;;  %v16932_v30 = vld [vmem:[%s22176_s1 + $0x10] ss:$8 sps:$4 sm:$0xff]  }
 0x125   :  { %2350 = vmatpush1.bf16.msra.mxu0 %v18582_v32  ;;  %v3486_v32 = vor.u32 %v3484_v2, %v3482_v18  ;;  %v16946_v2 = vld [vmem:[%s22176_s1 + $0x44] ss:$8 sps:$4 sm:$0xff]   ;;  %v16986_v18 = vld [vmem:[%s22176_s1 + $0x130] ss:$8 sps:$4 sm:$0xff]  }
 0x126   :  { %2351 = vmatprep.subr.bf16.mxu0 %v18583_v33  ;;  %v16935_v33 = vld [vmem:[%s22176_s1 + $0x20] ss:$8 sps:$4 sm:$0xff]  }
 0x129   :  { %2352 = vmatpush1.bf16.msra.mxu0 %v18584_v35  ;;  %v16940_v35 = vld [vmem:[%s22176_s1 + $0x34] ss:$8 sps:$4 sm:$0xff]  }
 0x12a   :  { %2353 = vmatprep.subr.bf16.mxu0 %v18585_v38  ;;  %v16952_v38 = vld [vmem:[%s22176_s1 + $0x54] ss:$8 sps:$4 sm:$0xff]  }
 0x12d   :  { %2354 = vmatpush1.bf16.msra.mxu0 %v18586_v39  ;;  %v16950_v39 = vld [vmem:[%s22176_s1 + $0x50] ss:$8 sps:$4 sm:$0xff]  }
 0x12e   :  { %2355 = vmatprep.subr.bf16.mxu0 %v18587_v41 }
 0x131   :  { %2356 = vmatpush1.bf16.msra.mxu0 %v18588_v4 }
 0x132   :  { %2503 = vmatprep.subr.bf16.mxu0 %v18589_v42 }
 0x134   :  { %2374 = vmatmul.mubr.bf16.vlgmr.msra.gmra.mrb[8].mxu0 %v2258_v7 }
 0x135   :  { %2504 = vmatpush1.bf16.msra.mxu0 %v18590_v43  ;;  %2383 = vmatprep.mubr.bf16.mxu0 %v22187_v0  ;;  %v16956_v43 = vld [vmem:[%s22176_s1 + $0x60] ss:$8 sps:$4 sm:$0xff]  }
 0x136   :  { %2505 = vmatprep.subr.bf16.mxu0 %v18591_v44 }
 0x139   :  { %2506 = vmatpush1.bf16.msra.mxu0 %v18592_v47  ;;  %v16964_v47 = vld [vmem:[%s22176_s1 + $0x74] ss:$8 sps:$4 sm:$0xff]  }
 0x13a   :  { %2507 = vmatprep.subr.bf16.mxu0 %v18593_v48 }
 0x13c   :  { %2384 = vmatmul.mubr.bf16.gmra.mrb[12].mxu0 %v18917_v23  ;;  %v18597_v23 = vld [vmem:[%s22176_s1 + $0x244] ss:$8 sps:$4 sm:$0xff]  }
 0x13d   :  { %2508 = vmatpush1.bf16.msra.mxu0 %v18594_v49  ;;  %2535 = vmatprep.mubr.bf16.mxu0 %v22187_v0 }
 0x13e   :  { %2509 = vmatprep.subr.bf16.mxu0 %v18595_v36 }
 0x141   :  { %2510 = vmatpush1.bf16.msra.mxu0 %v18596_v50  ;;  %v16962_v50 = vld [vmem:[%s22176_s1 + $0x70] ss:$8 sps:$4 sm:$0xff]  }
 0x142   :  { %2511 = vmatprep.subr.bf16.mxu0 %v18597_v23  ;;  %v16970_v23 = vld [vmem:[%s22176_s1 + $0x104] ss:$8 sps:$4 sm:$0xff]  }
 0x145   :  { %2512 = vmatpush1.bf16.msra.mxu0 %v18598_v51 }
 0x146   :  { %2513 = vmatprep.subr.bf16.mxu0 %v18599_v52 }
 0x149   :  { %2514 = vmatpush1.bf16.msra.mxu0 %v18600_v53 }
 0x14a   :  { %2515 = vmatprep.subr.bf16.mxu0 %v18601_v34 }
 0x14d   :  { %2516 = vmatpush1.bf16.msra.mxu0 %v18602_v54 }
 0x14e   :  { %2517 = vmatprep.subr.bf16.mxu0 %v18603_v58 }
 0x151   :  { %2518 = vmatpush1.bf16.msra.mxu0 %v18604_v60 }
 0x152   :  { %3569 = vmatprep.subr.bf16.mxu0 %v16907_v57  ;;  %v16976_v57 = vld [vmem:[%s22176_s1 + $0x114] ss:$8 sps:$4 sm:$0xff]  }
 0x154   :  { %2536 = vmatmul.mubr.bf16.vlgmr.msra.gmra.mrb[8].mxu0 %v2420_v46 }
 0x155   :  { %3570 = vmatpush1.bf16.msra.mxu0 %v16905_v13  ;;  %2545 = vmatprep.mubr.bf16.mxu0 %v22187_v0  ;;  %v14377_v13 = vld [vmem:[%s22177_s2] ss:$0 sm:$0xff] }
 0x156   :  { %3571 = vmatprep.subr.bf16.mxu0 %v16910_v1 }
 0x159   :  { %3572 = vmatpush1.bf16.msra.mxu0 %v16908_v61 }
 0x15a   :  { %3573 = vmatprep.subr.bf16.mxu0 %v16913_v62  ;;  %v16974_v62 = vld [vmem:[%s22176_s1 + $0x110] ss:$8 sps:$4 sm:$0xff]  }
 0x15c   :  { %2546 = vmatmul.mubr.bf16.gmra.mrb[12].mxu0 %v2419_v56  ;;  %v16968_v56 = vld [vmem:[%s22176_s1 + $0x100] ss:$8 sps:$4 sm:$0xff]  }
 0x15d   :  { %3574 = vmatpush1.bf16.msra.mxu0 %v16911_v63  ;;  %3601 = vmatprep.mubr.bf16.mxu0 %v22187_v0  ;;  %v16982_v63 = vld [vmem:[%s22176_s1 + $0x124] ss:$8 sps:$4 sm:$0xff]  }
 0x15e   :  { %3575 = vmatprep.subr.bf16.mxu0 %v16916_v15 }
 0x161   :  { %3576 = vmatpush1.bf16.msra.mxu0 %v16914_v3 }
 0x162   :  { %3577 = vmatprep.subr.bf16.mxu0 %v16919_v5 }
 0x165   :  { %3578 = vmatpush1.bf16.msra.mxu0 %v16917_v9 }
 0x166   :  { %3579 = vmatprep.subr.bf16.mxu0 %v16922_v11 }
 0x169   :  { %3580 = vmatpush1.bf16.msra.mxu0 %v16920_v14  ;;  %v16980_v14 = vld [vmem:[%s22176_s1 + $0x120] ss:$8 sps:$4 sm:$0xff]  }
 0x16a   :  { %3581 = vmatprep.subr.bf16.mxu0 %v16925_v16  ;;  %v16988_v16 = vld [vmem:[%s22176_s1 + $0x134] ss:$8 sps:$4 sm:$0xff]  }
 0x16d   :  { %3582 = vmatpush1.bf16.msra.mxu0 %v16923_v20 }
 0x16e   :  { %3583 = vmatprep.subr.bf16.mxu0 %v16928_v22 }
 0x171   :  { %3584 = vmatpush1.bf16.msra.mxu0 %v16926_v24 }
 0x172   :  { %3702 = vmatprep.subr.bf16.mxu0 %v16931_v25 }
 0x174   :  { %3602 = vmatmul.mubr.bf16.vlgmr.msra.gmra.mrb[16].mxu0 %v3483_v29 }
 0x175   :  { %3703 = vmatpush1.bf16.msra.mxu0 %v16929_v28  ;;  %3611 = vmatprep.mubr.bf16.mxu0 %v22187_v0  ;;  %v16994_v28 = vld [vmem:[%s22176_s1 + $0x144] ss:$8 sps:$4 sm:$0xff]  }
 0x176   :  { %3704 = vmatprep.subr.bf16.mxu0 %v16934_v31  ;;  %v16989_v31 = vld [vmem:[#allocation3] ss:$8 sps:$4 sm:$0xff]  }
 0x179   :  { %3705 = vmatpush1.bf16.msra.mxu0 %v16932_v30 }
 0x17a   :  { %3706 = vmatprep.subr.bf16.mxu0 %v16937_v45 }
 0x17c   :  { %3612 = vmatmul.mubr.bf16.gmra.mrb[20].mxu0 %v3486_v32  ;;  %v16992_v32 = vld [vmem:[%s22176_s1 + $0x140] ss:$8 sps:$4 sm:$0xff]  }
 0x17d   :  { %3707 = vmatpush1.bf16.msra.mxu0 %v16935_v33  ;;  %3734 = vmatprep.mubr.bf16.mxu0 %v22187_v0 }
 0x17e   :  { %3708 = vmatprep.subr.bf16.mxu0 %v16940_v35 }
 0x181   :  { %3709 = vmatpush1.bf16.msra.mxu0 %v16938_v37 }
 0x182   :  { %3710 = vmatprep.subr.bf16.mxu0 %v16946_v2 }
 0x185   :  { %3711 = vmatpush1.bf16.msra.mxu0 %v16944_v27 }
 0x186   :  { %3712 = vmatprep.subr.bf16.mxu0 %v16952_v38 }
 0x187   :  { %v847_v41 = vpop.f32.mrb[0].mxu0 }
 0x188   :  { %v849_v4 = vpop.f32.mrb[1].mxu0 }
 0x189   :  { %v874_v7 = vmax.f32 %v847_v41, %v849_v4  ;;  %v851_v42 = vpop.f32.mrb[2].mxu0  ;;  %3713 = vmatpush1.bf16.msra.mxu0 %v16950_v39  ;;  %v16997_v39 = vld [vmem:[#allocation3 + $0x14] ss:$8 sps:$4 sm:$0xff]   ;;  %v16995_v41 = vld [vmem:[#allocation3 + $0x10] ss:$8 sps:$4 sm:$0xff]  }
 0x18a   :  { %v853_v44 = vpop.f32.mrb[3].mxu0  ;;  %3714 = vmatprep.subr.bf16.mxu0 %v16958_v40  ;;  %v17000_v4 = vld [vmem:[%s22176_s1 + $0x154] ss:$8 sps:$4 sm:$0xff]  }
 0x18b   :  { %v875_v48 = vmax.f32 %v851_v42, %v853_v44  ;;  %v883_v49 = vrot.slane %v874_v7, 1  ;;  %v17003_v44 = vld [vmem:[#allocation3 + $0x24] ss:$8 sps:$4 sm:$0xff]  }
 0x18d   :  { %v884_v36 = vrot.slane %v875_v48, 1  ;;  %3715 = vmatpush1.bf16.msra.mxu0 %v16956_v43  ;;  %v16998_v43 = vld [vmem:[%s22176_s1 + $0x150] ss:$8 sps:$4 sm:$0xff]  }
 0x18e   :  { %3716 = vmatprep.subr.bf16.mxu0 %v16964_v47  ;;  %v17006_v47 = vld [vmem:[%s22176_s1 + $0x164] ss:$8 sps:$4 sm:$0xff]  }
 0x18f   :  { %v885_v51 = vsel %vm395_vm0, %v883_v49, %v884_v36  ;;  %v857_v52 = vpop.f32.mrb[4].mxu0  ;;  %v17001_v49 = vld [vmem:[#allocation3 + $0x20] ss:$8 sps:$4 sm:$0xff]  }
 0x190   :  { %v894_v53 = vmax.f32 %v874_v7, %v885_v51  ;;  %v859_v34 = vpop.f32.mrb[5].mxu0  ;;  %v17012_v51 = vld [vmem:[%s22176_s1 + $0x174] ss:$8 sps:$4 sm:$0xff]  }
 0x191   :  { %v876_v54 = vmax.f32 %v857_v52, %v859_v34  ;;  %v861_v55 = vpop.f32.mrb[6].mxu0  ;;  %3717 = vmatpush1.bf16.msra.mxu0 %v16962_v50  ;;  %v17004_v50 = vld [vmem:[%s22176_s1 + $0x160] ss:$8 sps:$4 sm:$0xff]   ;;  %v17010_v34 = vld [vmem:[%s22176_s1 + $0x170] ss:$8 sps:$4 sm:$0xff]  }
 0x192   :  { %v863_v58 = vpop.f32.mrb[7].mxu0  ;;  %3858 = vmatprep.subr.bf16.mxu0 %v16970_v23  ;;  %v905_v3 = vadd.f32 %v14377_v13, %v894_v53  ;;  %v17009_v23 = vld [vmem:[#allocation3 + $0x34] ss:$8 sps:$4 sm:$0xff]   ;;  %v17007_v53 = vld [vmem:[#allocation3 + $0x30] ss:$8 sps:$4 sm:$0xff]  }
 0x193   :  { %v886_v60 = vrot.slane %v876_v54, 1  ;;  %v877_v46 = vmax.f32 %v861_v55, %v863_v58  ;;  %v3773_v55 = vrot.slane %v19362_v10, 1 }
 0x194   :  { %3735 = vmatmul.mubr.bf16.vlgmr.msra.gmra.mrb[16].mxu0 %v19362_v10  ;;  %v909_v21 = vmax.f32 %v905_v3, 0.0 }
 0x195   :  { %v887_v1 = vsel %vm395_vm0, %v884_v36, %v886_v60  ;;  %v888_v61 = vrot.slane %v877_v46, 1  ;;  %3859 = vmatpush1.bf16.msra.mxu0 %v16968_v56  ;;  %3744 = vmatprep.mubr.bf16.mxu0 %v22187_v0  ;;  %v14925_v36 = vld [vmem:[%s22175_s0 + $0x78] sm:$0xff]  ;;  %v3774_v56 = vrot.slane %v19192_v59, 1 }
 0x196   :  { %v895_v15 = vmax.f32 %v875_v48, %v887_v1  ;;  %3860 = vmatprep.subr.bf16.mxu0 %v16976_v57  ;;  %v14924_v48 = vld [vmem:[%s22175_s0 + $0x70] sm:$0xff]  ;;  %v17018_v57 = vld [vmem:[%s22176_s1 + $0x184] ss:$8 sps:$4 sm:$0xff]  }
 0x197   :  { %v889_v5 = vsel %vm395_vm0, %v886_v60, %v888_v61  ;;  %v897_v6 = vmax.f32 %v877_v46, %v888_v61  ;;  %v19531_v52 = vpack.c.bf16 %v14925_v36, %v14924_v48  ;;  %v17013_v46 = vld [vmem:[#allocation3 + $0x40] ss:$8 sps:$4 sm:$0xff]   ;;  %v17063_v48 = vld [vmem:[#allocation3 + $0x144] ss:$8 sps:$4 sm:$0xff]  }
 0x198   :  { %v896_v8 = vmax.f32 %v876_v54, %v889_v5  ;;  %v906_v9 = vadd.f32 %v14377_v13, %v895_v15  ;;  %v17015_v54 = vld [vmem:[#allocation3 + $0x44] ss:$8 sps:$4 sm:$0xff]   ;;  %v17019_v5 = vld [vmem:[#allocation3 + $0x50] ss:$8 sps:$4 sm:$0xff]  }
 0x199   :  { %v908_v11 = vadd.f32 %v14377_v13, %v897_v6  ;;  %3861 = vmatpush1.bf16.msra.mxu0 %v16974_v62  ;;  %v5163_v58 = vshll.u32 %v19531_v52, 16  ;;  %v5167_v60 = vshrl.u32 %v19531_v52, 16  ;;  %v3775_v62 = vsel %vm395_vm0, %v3773_v55, %v3774_v56  ;;  %v17024_v15 = vld [vmem:[%s22176_s1 + $0x194] ss:$8 sps:$4 sm:$0xff]   ;;  %v17022_v6 = vld [vmem:[%s22176_s1 + $0x190] ss:$8 sps:$4 sm:$0xff]  }
 0x19a   :  { %v907_v20 = vadd.f32 %v14377_v13, %v896_v8  ;;  %v910_v22 = vmax.f32 %v906_v9, 0.0  ;;  %3862 = vmatprep.subr.bf16.mxu0 %v16982_v63  ;;  %v17016_v13 = vld [vmem:[%s22176_s1 + $0x180] ss:$8 sps:$4 sm:$0xff]   ;;  %v17021_v63 = vld [vmem:[#allocation3 + $0x54] ss:$8 sps:$4 sm:$0xff]  }
 0x19b   :  { %v19472_v24 = vmax.f32 %v908_v11, 0.0  ;;  %v5621_v1 = vrot.slane %v5167_v60, 1  ;;  %v5622_v61 = vrot.slane %v5163_v58, 2  ;;  %v17027_v8 = vld [vmem:[#allocation3 + $0x64] ss:$8 sps:$4 sm:$0xff]  }
 0x19c   :  { %v911_v25 = vmax.f32 %v907_v20, 0.0  ;;  %v19474_v26 = vpack.c.bf16 %v910_v22, %v909_v21  ;;  %3745 = vmatmul.mubr.bf16.gmra.mrb[20].mxu0 %v19192_v59  ;;  %v17030_v9 = vld [vmem:[%s22176_s1 + $0x1a4] ss:$8 sps:$4 sm:$0xff]   ;;  %v17025_v11 = vld [vmem:[#allocation3 + $0x60] ss:$8 sps:$4 sm:$0xff]  }
 0x19d   :  { %3863 = vmatpush1.bf16.msra.mxu0 %v16980_v14  ;;  %3890 = vmatprep.mubr.bf16.mxu0 %v22187_v0  ;;  %v19555_v3 = vor.u32 %v5622_v61, %v5621_v1  ;;  %v17028_v14 = vld [vmem:[%s22176_s1 + $0x1a0] ss:$8 sps:$4 sm:$0xff]   ;;  %v17036_v20 = vld [vmem:[%s22176_s1 + $0x1b4] ss:$8 sps:$4 sm:$0xff]   ;;  %v17078_v55 = vld [vmem:[%s22176_s1 + $0x224] ss:$8 sps:$4 sm:$0xff]  }
 0x19e   :  { %v1376_v29 = vpack.c.bf16 %v19472_v24, %v911_v25  ;;  %3864 = vmatprep.subr.bf16.mxu0 %v16988_v16  ;;  %v19485_v30 = vpack.c.bf16 %v911_v25, %v911_v25  ;;  %v950_v45 = vrot.slane %v19474_v26, 1  ;;  %v1234_v33 = vrot.slane %v19474_v26, 2  ;;  %v17033_v16 = vld [vmem:[#allocation3 + $0x74] ss:$8 sps:$4 sm:$0xff]   ;;  %v17031_v21 = vld [vmem:[#allocation3 + $0x70] ss:$8 sps:$4 sm:$0xff]  }
 0x19f   :  { %v19492_v35 = vpack.c.bf16 %v911_v25, %v910_v22  ;;  %v1396_v38 = vrot.slane %v19474_v26, 3  ;;  %v17034_v22 = vld [vmem:[%s22176_s1 + $0x1b0] ss:$8 sps:$4 sm:$0xff]   ;;  %v17039_v25 = vld [vmem:[#allocation3 + $0x104] ss:$8 sps:$4 sm:$0xff]  }
 0x1a0   :  { %v19494_v37 = vrot.slane %v1376_v29, 3  ;;  %v951_v2 = vrot.slane %v19485_v30, 1  ;;  %v1235_v27 = vrot.slane %v19485_v30, 2  ;;  %v17040_v29 = vld [vmem:[%s22176_s1 + $0x1c0] ss:$8 sps:$4 sm:$0xff]  }
 0x1a1   :  { %3865 = vmatpush1.bf16.msra.mxu0 %v16986_v18  ;;  %v17042_v18 = vld [vmem:[%s22176_s1 + $0x1c4] ss:$8 sps:$4 sm:$0xff]   ;;  %v17064_v36 = vld [vmem:[%s22176_s1 + $0x200] ss:$8 sps:$4 sm:$0xff]   ;;  %v17082_v61 = vld [vmem:[%s22176_s1 + $0x230] ss:$8 sps:$4 sm:$0xff]  }
 0x1a2   :  { %v952_v40 = vsel %vm395_vm0, %v950_v45, %v951_v2  ;;  %3866 = vmatprep.subr.bf16.mxu0 %v16994_v28  ;;  %v19506_v7 = vsel %vm727_vm3, %v1234_v33, %v1235_v27  ;;  %v19510_v42 = vsel %vm1395_vm4, %v1396_v38, %v19494_v37  ;;  %v17037_v28 = vld [vmem:[#allocation3 + $0x100] ss:$8 sps:$4 sm:$0xff]   ;;  %v17048_v45 = vld [vmem:[%s22176_s1 + $0x1d4] ss:$8 sps:$4 sm:$0xff]   ;;  %v17054_v38 = vld [vmem:[%s22176_s1 + $0x1e4] ss:$8 sps:$4 sm:$0xff]  }
 0x1a3   :  { %1068 = vmatmul.mubr.bf16.vlgmr.msra.gmra.mrb[0].mxu1 %v952_v40  ;;  %v17046_v33 = vld [vmem:[%s22176_s1 + $0x1d0] ss:$8 sps:$4 sm:$0xff]   ;;  %v17057_v40 = vld [vmem:[#allocation3 + $0x134] ss:$8 sps:$4 sm:$0xff]  }
 0x1a4   :  { %1167 = vmatpush1.bf16.msra.mxu1 %v16989_v31  ;;  %1077 = vmatprep.mubr.bf16.mxu1 %v22187_v0  ;;  %v17045_v31 = vld [vmem:[#allocation3 + $0x114] ss:$8 sps:$4 sm:$0xff]   ;;  %v17079_v1 = vld [vmem:[#allocation3 + $0x170] ss:$8 sps:$4 sm:$0xff]  }
 0x1a5   :  { %3867 = vmatpush1.bf16.msra.mxu0 %v16992_v32  ;;  %1168 = vmatprep.subr.bf16.mxu1 %v16997_v39  ;;  %v17043_v32 = vld [vmem:[#allocation3 + $0x110] ss:$8 sps:$4 sm:$0xff]   ;;  %v17049_v39 = vld [vmem:[#allocation3 + $0x120] ss:$8 sps:$4 sm:$0xff]  }
 0x1a6   :  { %3868 = vmatprep.subr.bf16.mxu0 %v17000_v4  ;;  %v3935_v4 = vrot.slane %v3473_v17, 1  ;;  %v17066_v17 = vld [vmem:[%s22176_s1 + $0x204] ss:$8 sps:$4 sm:$0xff]  }
 0x1a8   :  { %1169 = vmatpush1.bf16.msra.mxu1 %v16995_v41  ;;  %v17060_v41 = vld [vmem:[%s22176_s1 + $0x1f4] ss:$8 sps:$4 sm:$0xff]  }
 0x1a9   :  { %3869 = vmatpush1.bf16.msra.mxu0 %v16998_v43  ;;  %1170 = vmatprep.subr.bf16.mxu1 %v17003_v44  ;;  %v3936_v43 = vrot.slane %v3475_v19, 2  ;;  %v17055_v44 = vld [vmem:[#allocation3 + $0x130] ss:$8 sps:$4 sm:$0xff]   ;;  %v17061_v19 = vld [vmem:[#allocation3 + $0x140] ss:$8 sps:$4 sm:$0xff]  }
 0x1aa   :  { %3870 = vmatprep.subr.bf16.mxu0 %v17006_v47  ;;  %v17058_v47 = vld [vmem:[%s22176_s1 + $0x1f0] ss:$8 sps:$4 sm:$0xff]  }
 0x1ab   :  { %1078 = vmatmul.mubr.bf16.gmra.mrb[4].mxu1 %v951_v2  ;;  %v17051_v2 = vld [vmem:[#allocation3 + $0x124] ss:$8 sps:$4 sm:$0xff]  }
 0x1ac   :  { %1171 = vmatpush1.bf16.msra.mxu1 %v17001_v49  ;;  %1198 = vmatprep.mubr.bf16.mxu1 %v22187_v0  ;;  %v3937_v49 = vor.u32 %v3936_v43, %v3935_v4  ;;  %v17127_v4 = vld [vmem:[#allocation3 + $0x1f0] ss:$8 sps:$4 sm:$0xff]  }
 0x1ad   :  { %3871 = vmatpush1.bf16.msra.mxu0 %v17004_v50  ;;  %1172 = vmatprep.subr.bf16.mxu1 %v17009_v23  ;;  %v17069_v23 = vld [vmem:[#allocation3 + $0x154] ss:$8 sps:$4 sm:$0xff]   ;;  %v17130_v43 = vld [vmem:[%s22176_s1 + $0xb0] ss:$8 sps:$4 sm:$0xff]  }
 0x1ae   :  { %3872 = vmatprep.subr.bf16.mxu0 %v17012_v51  ;;  %v3941_v50 = vsel %vm559_vm1, %v3937_v49, %v19215_v12  ;;  %v17072_v51 = vld [vmem:[%s22176_s1 + $0x214] ss:$8 sps:$4 sm:$0xff]   ;;  %v17133_v49 = vld [vmem:[#allocation3 + $0x200] ss:$8 sps:$4 sm:$0xff]  }
 0x1b0   :  { %1173 = vmatpush1.bf16.msra.mxu1 %v17007_v53  ;;  %v17067_v53 = vld [vmem:[#allocation3 + $0x150] ss:$8 sps:$4 sm:$0xff]  }
 0x1b1   :  { %3873 = vmatpush1.bf16.msra.mxu0 %v17010_v34  ;;  %1174 = vmatprep.subr.bf16.mxu1 %v17015_v54  ;;  %v17070_v34 = vld [vmem:[%s22176_s1 + $0x210] ss:$8 sps:$4 sm:$0xff]   ;;  %v17075_v54 = vld [vmem:[#allocation3 + $0x164] ss:$8 sps:$4 sm:$0xff]  }
 0x1b2   :  { %4024 = vmatprep.subr.bf16.mxu0 %v17018_v57  ;;  %v17076_v57 = vld [vmem:[%s22176_s1 + $0x220] ss:$8 sps:$4 sm:$0xff]  }
 0x1b4   :  { %1175 = vmatpush1.bf16.msra.mxu1 %v17013_v46  ;;  %3891 = vmatmul.mubr.bf16.vlgmr.msra.gmra.mrb[16].mxu0 %v3775_v62  ;;  %v17081_v46 = vld [vmem:[#allocation3 + $0x174] ss:$8 sps:$4 sm:$0xff]   ;;  %v17087_v62 = vld [vmem:[#allocation3 + $0x184] ss:$8 sps:$4 sm:$0xff]  }
 0x1b5   :  { %4025 = vmatpush1.bf16.msra.mxu0 %v17016_v13  ;;  %1176 = vmatprep.subr.bf16.mxu1 %v17021_v63  ;;  %v17084_v13 = vld [vmem:[%s22176_s1 + $0x234] ss:$8 sps:$4 sm:$0xff]   ;;  %v17090_v63 = vld [vmem:[%s22176_s1 + $0x244] ss:$8 sps:$4 sm:$0xff]  }
 0x1b6   :  { %4026 = vmatprep.subr.bf16.mxu0 %v17024_v15  ;;  %3900 = vmatprep.mubr.bf16.mxu0 %v22187_v0  ;;  %v17085_v15 = vld [vmem:[#allocation3 + $0x180] ss:$8 sps:$4 sm:$0xff]  }
 0x1b8   :  { %1177 = vmatpush1.bf16.msra.mxu1 %v17019_v5  ;;  %v17088_v5 = vld [vmem:[%s22176_s1 + $0x240] ss:$8 sps:$4 sm:$0xff]  }
 0x1b9   :  { %4027 = vmatpush1.bf16.msra.mxu0 %v17022_v6  ;;  %1178 = vmatprep.subr.bf16.mxu1 %v17027_v8  ;;  %v17093_v6 = vld [vmem:[#allocation3 + $0x194] ss:$8 sps:$4 sm:$0xff]   ;;  %v17091_v8 = vld [vmem:[#allocation3 + $0x190] ss:$8 sps:$4 sm:$0xff]  }
 0x1ba   :  { %4028 = vmatprep.subr.bf16.mxu0 %v17030_v9  ;;  %v17094_v9 = vld [vmem:[%s22176_s1 + $0x250] ss:$8 sps:$4 sm:$0xff]  }
 0x1bc   :  { %1179 = vmatpush1.bf16.msra.mxu1 %v17025_v11  ;;  %3901 = vmatmul.mubr.bf16.gmra.mrb[20].mxu0 %v3774_v56  ;;  %v17073_v56 = vld [vmem:[#allocation3 + $0x160] ss:$8 sps:$4 sm:$0xff]   ;;  %v17099_v11 = vld [vmem:[#allocation3 + $0x1a4] ss:$8 sps:$4 sm:$0xff]  }
 0x1bd   :  { %4029 = vmatpush1.bf16.msra.mxu0 %v17028_v14  ;;  %1180 = vmatprep.subr.bf16.mxu1 %v17033_v16  ;;  %v17102_v14 = vld [vmem:[%s22176_s1 + $0x264] ss:$8 sps:$4 sm:$0xff]   ;;  %v17097_v16 = vld [vmem:[#allocation3 + $0x1a0] ss:$8 sps:$4 sm:$0xff]  }
 0x1be   :  { %4030 = vmatprep.subr.bf16.mxu0 %v17036_v20  ;;  %4056 = vmatprep.mubr.bf16.mxu0 %v22187_v0  ;;  %v17105_v20 = vld [vmem:[#allocation3 + $0x1b4] ss:$8 sps:$4 sm:$0xff]  }
 0x1c0   :  { %1181 = vmatpush1.bf16.msra.mxu1 %v17031_v21  ;;  %v17103_v21 = vld [vmem:[#allocation3 + $0x1b0] ss:$8 sps:$4 sm:$0xff]  }
 0x1c1   :  { %4031 = vmatpush1.bf16.msra.mxu0 %v17034_v22  ;;  %1319 = vmatprep.subr.bf16.mxu1 %v17039_v25  ;;  %v17108_v22 = vld [vmem:[%s22176_s1 + $0x274] ss:$8 sps:$4 sm:$0xff]   ;;  %v17106_v25 = vld [vmem:[%s22176_s1 + $0x270] ss:$8 sps:$4 sm:$0xff]  }
 0x1c2   :  { %4032 = vmatprep.subr.bf16.mxu0 %v17042_v18  ;;  %v17111_v18 = vld [vmem:[#allocation3 + $0x1c4] ss:$8 sps:$4 sm:$0xff]  }
 0x1c3   :  { %1199 = vmatmul.mubr.bf16.vlgmr.msra.gmra.mrb[0].mxu1 %v19474_v26  ;;  %v17052_v26 = vld [vmem:[%s22176_s1 + $0x1e0] ss:$8 sps:$4 sm:$0xff]  }
 0x1c4   :  { %1320 = vmatpush1.bf16.msra.mxu1 %v17037_v28  ;;  %1208 = vmatprep.mubr.bf16.mxu1 %v22187_v0  ;;  %v4101_v28 = vrot.slane %v19362_v10, 2  ;;  %v17115_v10 = vld [vmem:[#allocation3 + $0x1d0] ss:$8 sps:$4 sm:$0xff]  }
 0x1c5   :  { %4033 = vmatpush1.bf16.msra.mxu0 %v17040_v29  ;;  %1321 = vmatprep.subr.bf16.mxu1 %v17045_v31  ;;  %v4102_v29 = vrot.slane %v19192_v59, 2  ;;  %v17114_v31 = vld [vmem:[%s22176_s1 + $0x84] ss:$8 sps:$4 sm:$0xff]   ;;  %v17120_v59 = vld [vmem:[%s22176_s1 + $0x94] ss:$8 sps:$4 sm:$0xff]  }
 0x1c6   :  { %4034 = vmatprep.subr.bf16.mxu0 %v17048_v45  ;;  %v17112_v45 = vld [vmem:[%s22176_s1 + $0x80] ss:$8 sps:$4 sm:$0xff]  }
 0x1c8   :  { %1322 = vmatpush1.bf16.msra.mxu1 %v17043_v32  ;;  %v17117_v32 = vld [vmem:[#allocation3 + $0x1d4] ss:$8 sps:$4 sm:$0xff]  }
 0x1c9   :  { %4035 = vmatpush1.bf16.msra.mxu0 %v17046_v33  ;;  %1323 = vmatprep.subr.bf16.mxu1 %v17051_v2  ;;  %v17118_v33 = vld [vmem:[%s22176_s1 + $0x90] ss:$8 sps:$4 sm:$0xff]   ;;  %v17123_v2 = vld [vmem:[#allocation3 + $0x1e4] ss:$8 sps:$4 sm:$0xff]  }
 0x1ca   :  { %4036 = vmatprep.subr.bf16.mxu0 %v17054_v38  ;;  %v17126_v38 = vld [vmem:[%s22176_s1 + $0xa4] ss:$8 sps:$4 sm:$0xff]  }
 0x1cb   :  { %1209 = vmatmul.mubr.bf16.gmra.mrb[4].mxu1 %v19485_v30  ;;  %v17109_v30 = vld [vmem:[#allocation3 + $0x1c0] ss:$8 sps:$4 sm:$0xff]  }
 0x1cc   :  { %1324 = vmatpush1.bf16.msra.mxu1 %v17049_v39  ;;  %1351 = vmatprep.mubr.bf16.mxu1 %v22187_v0  ;;  %v17121_v39 = vld [vmem:[#allocation3 + $0x1e0] ss:$8 sps:$4 sm:$0xff]  }
 0x1cd   :  { %4037 = vmatpush1.bf16.msra.mxu0 %v17052_v26  ;;  %1325 = vmatprep.subr.bf16.mxu1 %v17057_v40  ;;  %v17124_v26 = vld [vmem:[%s22176_s1 + $0xa0] ss:$8 sps:$4 sm:$0xff]   ;;  %v17129_v40 = vld [vmem:[#allocation3 + $0x1f4] ss:$8 sps:$4 sm:$0xff]  }
 0x1ce   :  { %4038 = vmatprep.subr.bf16.mxu0 %v17060_v41  ;;  %v17132_v41 = vld [vmem:[%s22176_s1 + $0xb4] ss:$8 sps:$4 sm:$0xff]  }
 0x1d0   :  { %1326 = vmatpush1.bf16.msra.mxu1 %v17055_v44  ;;  %v17135_v44 = vld [vmem:[#allocation3 + $0x204] ss:$8 sps:$4 sm:$0xff]  }
 0x1d1   :  { %4039 = vmatpush1.bf16.msra.mxu0 %v17058_v47  ;;  %1327 = vmatprep.subr.bf16.mxu1 %v17063_v48  ;;  %v17138_v47 = vld [vmem:[%s22176_s1 + $0xc4] ss:$8 sps:$4 sm:$0xff]  }
 0x1d2   :  { %4186 = vmatprep.subr.bf16.mxu0 %v17066_v17  ;;  %v14922_v48 = vld [vmem:[%s22175_s0 + $0x60] sm:$0xff]  ;;  %v14923_v17 = vld [vmem:[%s22175_s0 + $0x68] sm:$0xff] }
 0x1d4   :  { %1328 = vmatpush1.bf16.msra.mxu1 %v17061_v19  ;;  %4057 = vmatmul.mubr.bf16.vlgmr.msra.gmra.mrb[16].mxu0 %v3941_v50  ;;  %v17136_v19 = vld [vmem:[%s22176_s1 + $0xc0] ss:$8 sps:$4 sm:$0xff]   ;;  %v19705_v50 = vpack.c.bf16 %v14923_v17, %v14922_v48 }
 0x1d5   :  { %4187 = vmatpush1.bf16.msra.mxu0 %v17064_v36  ;;  %1329 = vmatprep.subr.bf16.mxu1 %v17069_v23  ;;  %v17141_v36 = vld [vmem:[#allocation3 + $0x214] ss:$8 sps:$4 sm:$0xff]   ;;  %v17199_v17 = vld [vmem:[#allocation3 + $0xb0] ss:$8 sps:$4 sm:$0xff]  }
 0x1d6   :  { %4188 = vmatprep.subr.bf16.mxu0 %v17072_v51  ;;  %4066 = vmatprep.mubr.bf16.mxu0 %v22187_v0  ;;  %v17144_v23 = vld [vmem:[%s22176_s1 + $0xd4] ss:$8 sps:$4 sm:$0xff]   ;;  %v17139_v51 = vld [vmem:[#allocation3 + $0x210] ss:$8 sps:$4 sm:$0xff]  }
 0x1d8   :  { %1330 = vmatpush1.bf16.msra.mxu1 %v17067_v53  ;;  %v17142_v53 = vld [vmem:[%s22176_s1 + $0xd0] ss:$8 sps:$4 sm:$0xff]  }
 0x1d9   :  { %4189 = vmatpush1.bf16.msra.mxu0 %v17070_v34  ;;  %1331 = vmatprep.subr.bf16.mxu1 %v17075_v54  ;;  %v17147_v34 = vld [vmem:[#allocation3 + $0x224] ss:$8 sps:$4 sm:$0xff]  }
 0x1da   :  { %4190 = vmatprep.subr.bf16.mxu0 %v17078_v55  ;;  %v17150_v54 = vld [vmem:[%s22176_s1 + $0xe4] ss:$8 sps:$4 sm:$0xff]   ;;  %v5158_v55 = vshll.u32 %v19705_v50, 16 }
 0x1dc   :  { %1332 = vmatpush1.bf16.msra.mxu1 %v17073_v56  ;;  %4067 = vmatmul.mubr.bf16.gmra.mrb[20].mxu0 %v19215_v12  ;;  %v17096_v12 = vld [vmem:[%s22176_s1 + $0x254] ss:$8 sps:$4 sm:$0xff]   ;;  %v17145_v56 = vld [vmem:[#allocation3 + $0x220] ss:$8 sps:$4 sm:$0xff]  }
 0x1dd   :  { %4191 = vmatpush1.bf16.msra.mxu0 %v17076_v57  ;;  %1333 = vmatprep.subr.bf16.mxu1 %v17081_v46  ;;  %v17153_v57 = vld [vmem:[#allocation3 + $0x234] ss:$8 sps:$4 sm:$0xff]   ;;  %v5156_v46 = vshrl.u32 %v19705_v50, 16 }
 0x1de   :  { %4192 = vmatprep.subr.bf16.mxu0 %v17084_v13  ;;  %4218 = vmatprep.mubr.bf16.mxu0 %v22187_v0  ;;  %v5160_v13 = vrot.slane %v5158_v55, 1 }
 0x1e0   :  { %1334 = vmatpush1.bf16.msra.mxu1 %v17079_v1  ;;  %v17151_v1 = vld [vmem:[#allocation3 + $0x230] ss:$8 sps:$4 sm:$0xff]  }
 0x1e1   :  { %4193 = vmatpush1.bf16.msra.mxu0 %v17082_v61  ;;  %1481 = vmatprep.subr.bf16.mxu1 %v17087_v62  ;;  %v17156_v61 = vld [vmem:[%s22176_s1 + $0xf4] ss:$8 sps:$4 sm:$0xff]   ;;  %v17154_v62 = vld [vmem:[%s22176_s1 + $0xf0] ss:$8 sps:$4 sm:$0xff]  }
 0x1e2   :  { %4194 = vmatprep.subr.bf16.mxu0 %v17090_v63  ;;  %v17159_v63 = vld [vmem:[#allocation3 + $0x244] ss:$8 sps:$4 sm:$0xff]  }
 0x1e3   :  { %1352 = vmatmul.mubr.bf16.vlgmr.msra.gmra.mrb[0].mxu1 %v19506_v7  ;;  %v17100_v7 = vld [vmem:[%s22176_s1 + $0x260] ss:$8 sps:$4 sm:$0xff]  }
 0x1e4   :  { %1482 = vmatpush1.bf16.msra.mxu1 %v17085_v15  ;;  %1361 = vmatprep.mubr.bf16.mxu1 %v22187_v0  ;;  %v17162_v15 = vld [vmem:[%s22176_s1 + $0x4] ss:$8 sps:$4 sm:$0xff]  }
 0x1e5   :  { %4195 = vmatpush1.bf16.msra.mxu0 %v17088_v5  ;;  %1483 = vmatprep.subr.bf16.mxu1 %v17093_v6  ;;  %v5161_v5 = vor.u32 %v5160_v13, %v5156_v46  ;;  %v17157_v6 = vld [vmem:[#allocation3 + $0x240] ss:$8 sps:$4 sm:$0xff]  }
 0x1e6   :  { %4196 = vmatprep.subr.bf16.mxu0 %v17096_v12  ;;  %v17160_v12 = vld [vmem:[%s22176_s1] ss:$8 sps:$4 sm:$0xff]  }
 0x1e7   :  { %v17208_v13 = vld [vmem:[%s22176_s1 + $0x100] ss:$8 sps:$4 sm:$0xff]  }
 0x1e8   :  { %1484 = vmatpush1.bf16.msra.mxu1 %v17091_v8 }
 0x1e9   :  { %4197 = vmatpush1.bf16.msra.mxu0 %v17094_v9  ;;  %1485 = vmatprep.subr.bf16.mxu1 %v17099_v11  ;;  %v17165_v9 = vld [vmem:[#allocation3 + $0x254] ss:$8 sps:$4 sm:$0xff]  }
 0x1ea   :  { %4198 = vmatprep.subr.bf16.mxu0 %v17102_v14  ;;  %v17168_v11 = vld [vmem:[%s22176_s1 + $0x14] ss:$8 sps:$4 sm:$0xff]   ;;  %v17163_v14 = vld [vmem:[#allocation3 + $0x250] ss:$8 sps:$4 sm:$0xff]  }
 0x1eb   :  { %1362 = vmatmul.mubr.bf16.gmra.mrb[4].mxu1 %v1235_v27  ;;  %v4103_v27 = vsel %vm727_vm3, %v4101_v28, %v4102_v29  ;;  %v17175_v28 = vld [vmem:[#allocation3 + $0x270] ss:$8 sps:$4 sm:$0xff]  }
 0x1ec   :  { %1486 = vmatpush1.bf16.msra.mxu1 %v17097_v16  ;;  %1513 = vmatprep.mubr.bf16.mxu1 %v22187_v0  ;;  %v17171_v16 = vld [vmem:[#allocation3 + $0x264] ss:$8 sps:$4 sm:$0xff]  }
 0x1ed   :  { %4199 = vmatpush1.bf16.msra.mxu0 %v17100_v7  ;;  %1487 = vmatprep.subr.bf16.mxu1 %v17105_v20  ;;  %v17174_v7 = vld [vmem:[%s22176_s1 + $0x24] ss:$8 sps:$4 sm:$0xff]   ;;  %v17169_v20 = vld [vmem:[#allocation3 + $0x260] ss:$8 sps:$4 sm:$0xff]  }
 0x1ee   :  { %4200 = vmatprep.subr.bf16.mxu0 %v17108_v22 }
 0x1f0   :  { %1488 = vmatpush1.bf16.msra.mxu1 %v17103_v21  ;;  %v17172_v21 = vld [vmem:[%s22176_s1 + $0x20] ss:$8 sps:$4 sm:$0xff]  }
 0x1f1   :  { %4201 = vmatpush1.bf16.msra.mxu0 %v17106_v25  ;;  %1489 = vmatprep.subr.bf16.mxu1 %v17111_v18  ;;  %v17177_v25 = vld [vmem:[#allocation3 + $0x274] ss:$8 sps:$4 sm:$0xff]  }
 0x1f2   :  { %5252 = vmatprep.subr.bf16.mxu0 %v17114_v31  ;;  %v17180_v18 = vld [vmem:[%s22176_s1 + $0x34] ss:$8 sps:$4 sm:$0xff]  }
 0x1f3   :  { %v17183_v31 = vld [vmem:[#allocation3 + $0x84] ss:$8 sps:$4 sm:$0xff]  }
 0x1f4   :  { %1490 = vmatpush1.bf16.msra.mxu1 %v17109_v30  ;;  %4219 = vmatmul.mubr.bf16.vlgmr.msra.gmra.mrb[16].mxu0 %v4103_v27  ;;  %v17181_v30 = vld [vmem:[#allocation3 + $0x80] ss:$8 sps:$4 sm:$0xff]  }
 0x1f5   :  { %5253 = vmatpush1.bf16.msra.mxu0 %v17112_v45  ;;  %1491 = vmatprep.subr.bf16.mxu1 %v17117_v32  ;;  %v17184_v27 = vld [vmem:[%s22176_s1 + $0x40] ss:$8 sps:$4 sm:$0xff]   ;;  %v17189_v45 = vld [vmem:[#allocation3 + $0x94] ss:$8 sps:$4 sm:$0xff]  }
 0x1f6   :  { %5254 = vmatprep.subr.bf16.mxu0 %v17120_v59  ;;  %4228 = vmatprep.mubr.bf16.mxu0 %v22187_v0  ;;  %v17192_v32 = vld [vmem:[%s22176_s1 + $0x54] ss:$8 sps:$4 sm:$0xff]   ;;  %v17187_v59 = vld [vmem:[#allocation3 + $0x90] ss:$8 sps:$4 sm:$0xff]  }
 0x1f8   :  { %1492 = vmatpush1.bf16.msra.mxu1 %v17115_v10  ;;  %v17190_v10 = vld [vmem:[%s22176_s1 + $0x50] ss:$8 sps:$4 sm:$0xff]  }
 0x1f9   :  { %5255 = vmatpush1.bf16.msra.mxu0 %v17118_v33  ;;  %1493 = vmatprep.subr.bf16.mxu1 %v17123_v2  ;;  %v17195_v33 = vld [vmem:[#allocation3 + $0xa4] ss:$8 sps:$4 sm:$0xff]  }
 0x1fa   :  { %5256 = vmatprep.subr.bf16.mxu0 %v17126_v38  ;;  %v17198_v2 = vld [vmem:[%s22176_s1 + $0x64] ss:$8 sps:$4 sm:$0xff]  }
 0x1fc   :  { %1494 = vmatpush1.bf16.msra.mxu1 %v17121_v39  ;;  %4229 = vmatmul.mubr.bf16.gmra.mrb[20].mxu0 %v4102_v29  ;;  %v17178_v29 = vld [vmem:[%s22176_s1 + $0x30] ss:$8 sps:$4 sm:$0xff]  }
 0x1fd   :  { %5257 = vmatpush1.bf16.msra.mxu0 %v17124_v26  ;;  %1495 = vmatprep.subr.bf16.mxu1 %v17129_v40  ;;  %v17193_v39 = vld [vmem:[#allocation3 + $0xa0] ss:$8 sps:$4 sm:$0xff]  }
 0x1fe   :  { %5258 = vmatprep.subr.bf16.mxu0 %v17132_v41  ;;  %5284 = vmatprep.mubr.bf16.mxu0 %v22187_v0  ;;  %v17196_v26 = vld [vmem:[%s22176_s1 + $0x60] ss:$8 sps:$4 sm:$0xff]  }
 0x200   :  { %1496 = vmatpush1.bf16.msra.mxu1 %v17127_v4  ;;  %v1539_v4 = vpack.c.bf16 %v19472_v24, %v19472_v24  ;;  %v17202_v24 = vld [vmem:[%s22176_s1 + $0x70] ss:$8 sps:$4 sm:$0xff]  }
 0x201   :  { %5259 = vmatpush1.bf16.msra.mxu0 %v17130_v43  ;;  %1637 = vmatprep.subr.bf16.mxu1 %v17135_v44  ;;  %v17201_v43 = vld [vmem:[#allocation3 + $0xb4] ss:$8 sps:$4 sm:$0xff]  }
 0x202   :  { %5260 = vmatprep.subr.bf16.mxu0 %v17138_v47  ;;  %v17204_v47 = vld [vmem:[%s22176_s1 + $0x74] ss:$8 sps:$4 sm:$0xff]  }
 0x203   :  { %1514 = vmatmul.mubr.bf16.vlgmr.msra.gmra.mrb[0].mxu1 %v19510_v42  ;;  %v17148_v42 = vld [vmem:[%s22176_s1 + $0xe0] ss:$8 sps:$4 sm:$0xff]  }
 0x204   :  { %1638 = vmatpush1.bf16.msra.mxu1 %v17133_v49  ;;  %1523 = vmatprep.mubr.bf16.mxu1 %v22187_v0 }
 0x205   :  { %5261 = vmatpush1.bf16.msra.mxu0 %v17136_v19  ;;  %1639 = vmatprep.subr.bf16.mxu1 %v17141_v36  ;;  %v17207_v36 = vld [vmem:[#allocation3 + $0xc4] ss:$8 sps:$4 sm:$0xff]  }
 0x206   :  { %5262 = vmatprep.subr.bf16.mxu0 %v17144_v23  ;;  %v17210_v23 = vld [vmem:[%s22176_s1 + $0x104] ss:$8 sps:$4 sm:$0xff]  }
 0x208   :  { %1640 = vmatpush1.bf16.msra.mxu1 %v17139_v51 }
 0x209   :  { %5263 = vmatpush1.bf16.msra.mxu0 %v17142_v53  ;;  %1641 = vmatprep.subr.bf16.mxu1 %v17147_v34 }
 0x20a   :  { %5264 = vmatprep.subr.bf16.mxu0 %v17150_v54 }
 0x20b   :  { %1524 = vmatmul.mubr.bf16.gmra.mrb[4].mxu1 %v19494_v37  ;;  %v5165_v37 = vrot.slane %v5163_v58, 1  ;;  %v17166_v58 = vld [vmem:[%s22176_s1 + $0x10] ss:$8 sps:$4 sm:$0xff]  }
 0x20c   :  { %1642 = vmatpush1.bf16.msra.mxu1 %v17145_v56  ;;  %1669 = vmatprep.mubr.bf16.mxu1 %v22187_v0  ;;  %v17205_v56 = vld [vmem:[#allocation3 + $0xc0] ss:$8 sps:$4 sm:$0xff]  }
 0x20d   :  { %5265 = vmatpush1.bf16.msra.mxu0 %v17148_v42  ;;  %1643 = vmatprep.subr.bf16.mxu1 %v17153_v57  ;;  %v5166_v8 = vsel %vm92_vm2, %v5161_v5, %v5165_v37  ;;  %v5169_v22 = vor.u32 %v5167_v60, %v5165_v37  ;;  %v17186_v60 = vld [vmem:[%s22176_s1 + $0x44] ss:$8 sps:$4 sm:$0xff]   ;;  %v14608_v5 = vld [vmem:[%s22177_s2] ss:$0 sm:$0xff] }
 0x20e   :  { %5266 = vmatprep.subr.bf16.mxu0 %v17156_v61  ;;  %v17211_v37 = vld [vmem:[#allocation3 + $0xd0] ss:$8 sps:$4 sm:$0xff]  }
 0x210   :  { %1644 = vmatpush1.bf16.msra.mxu1 %v17151_v1  ;;  %v17213_v1 = vld [vmem:[#allocation3 + $0xd4] ss:$8 sps:$4 sm:$0xff]  }
 0x211   :  { %5267 = vmatpush1.bf16.msra.mxu0 %v17154_v62  ;;  %1645 = vmatprep.subr.bf16.mxu1 %v17159_v63  ;;  %v17216_v62 = vld [vmem:[%s22176_s1 + $0x114] ss:$8 sps:$4 sm:$0xff]  }
 0x212   :  { %5385 = vmatprep.subr.bf16.mxu0 %v17162_v15 }
 0x214   :  { %1646 = vmatpush1.bf16.msra.mxu1 %v17157_v6  ;;  %5285 = vmatmul.mubr.bf16.vlgmr.msra.gmra.mrb[24].mxu0 %v5166_v8  ;;  %v17214_v6 = vld [vmem:[%s22176_s1 + $0x110] ss:$8 sps:$4 sm:$0xff]  }
 0x215   :  { %5386 = vmatpush1.bf16.msra.mxu0 %v17160_v12  ;;  %1647 = vmatprep.subr.bf16.mxu1 %v17165_v9  ;;  %v17219_v9 = vld [vmem:[#allocation3 + $0xe4] ss:$8 sps:$4 sm:$0xff]  }
 0x216   :  { %5387 = vmatprep.subr.bf16.mxu0 %v17168_v11  ;;  %5294 = vmatprep.mubr.bf16.mxu0 %v22187_v0  ;;  %v17222_v11 = vld [vmem:[%s22176_s1 + $0x124] ss:$8 sps:$4 sm:$0xff]  }
 0x218   :  { %1648 = vmatpush1.bf16.msra.mxu1 %v17163_v14 }
 0x219   :  { %5388 = vmatpush1.bf16.msra.mxu0 %v17166_v58  ;;  %1649 = vmatprep.subr.bf16.mxu1 %v17171_v16 }
 0x21a   :  { %5389 = vmatprep.subr.bf16.mxu0 %v17174_v7 }
 0x21c   :  { %1650 = vmatpush1.bf16.msra.mxu1 %v17169_v20  ;;  %5295 = vmatmul.mubr.bf16.gmra.mrb[28].mxu0 %v5169_v22  ;;  %v17217_v20 = vld [vmem:[#allocation3 + $0xe0] ss:$8 sps:$4 sm:$0xff]  }
 0x21d   :  { %5390 = vmatpush1.bf16.msra.mxu0 %v17172_v21  ;;  %1651 = vmatprep.subr.bf16.mxu1 %v17177_v25  ;;  %v17220_v25 = vld [vmem:[%s22176_s1 + $0x120] ss:$8 sps:$4 sm:$0xff]  }
 0x21e   :  { %5391 = vmatprep.subr.bf16.mxu0 %v17180_v18  ;;  %5417 = vmatprep.mubr.bf16.mxu0 %v22187_v0 }
 0x220   :  { %1652 = vmatpush1.bf16.msra.mxu1 %v17175_v28  ;;  %v17225_v28 = vld [vmem:[#allocation3 + $0xf4] ss:$8 sps:$4 sm:$0xff]  }
 0x221   :  { %5392 = vmatpush1.bf16.msra.mxu0 %v17178_v29  ;;  %2723 = vmatprep.subr.bf16.mxu1 %v17183_v31  ;;  %v17228_v29 = vld [vmem:[%s22176_s1 + $0x134] ss:$8 sps:$4 sm:$0xff]  }
 0x222   :  { %5393 = vmatprep.subr.bf16.mxu0 %v17186_v60 }
 0x223   :  { %1670 = vmatmul.mubr.bf16.vlgmr.msra.gmra.mrb[0].mxu1 %v19492_v35 }
 0x224   :  { %2724 = vmatpush1.bf16.msra.mxu1 %v17181_v30  ;;  %1679 = vmatprep.mubr.bf16.mxu1 %v22187_v0 }
 0x225   :  { %5394 = vmatpush1.bf16.msra.mxu0 %v17184_v27  ;;  %2725 = vmatprep.subr.bf16.mxu1 %v17189_v45 }
 0x226   :  { %5395 = vmatprep.subr.bf16.mxu0 %v17192_v32 }
 0x227   :  { %v2537_v38 = vpop.f32.mrb[8].mxu0 }
 0x228   :  { %2726 = vmatpush1.bf16.msra.mxu1 %v17187_v59  ;;  %v2539_v35 = vpop.f32.mrb[9].mxu0  ;;  %v17223_v59 = vld [vmem:[#allocation3 + $0xf0] ss:$8 sps:$4 sm:$0xff]  }
 0x229   :  { %v2564_v40 = vmax.f32 %v2537_v38, %v2539_v35  ;;  %v2541_v41 = vpop.f32.mrb[10].mxu0  ;;  %5396 = vmatpush1.bf16.msra.mxu0 %v17190_v10  ;;  %2727 = vmatprep.subr.bf16.mxu1 %v17195_v33  ;;  %v17226_v10 = vld [vmem:[%s22176_s1 + $0x130] ss:$8 sps:$4 sm:$0xff]   ;;  %v17231_v33 = vld [vmem:[#allocation3 + $0x4] ss:$8 sps:$4 sm:$0xff]  }
 0x22a   :  { %v2543_v44 = vpop.f32.mrb[11].mxu0  ;;  %5397 = vmatprep.subr.bf16.mxu0 %v17198_v2  ;;  %v17229_v35 = vld [vmem:[#allocation3] ss:$8 sps:$4 sm:$0xff]  }
 0x22b   :  { %1680 = vmatmul.mubr.bf16.gmra.mrb[4].mxu1 %v1539_v4  ;;  %v2565_v48 = vmax.f32 %v2541_v41, %v2543_v44  ;;  %v2572_v49 = vrot.slane %v2564_v40, 1  ;;  %v17232_v44 = vld [vmem:[%s22176_s1 + $0x140] ss:$8 sps:$4 sm:$0xff]  }
 0x22c   :  { %2728 = vmatpush1.bf16.msra.mxu1 %v17193_v39  ;;  %2755 = vmatprep.mubr.bf16.mxu1 %v22187_v0  ;;  %v17234_v39 = vld [vmem:[%s22176_s1 + $0x144] ss:$8 sps:$4 sm:$0xff]  }
 0x22d   :  { %v2573_v19 = vrot.slane %v2565_v48, 1  ;;  %5398 = vmatpush1.bf16.msra.mxu0 %v17196_v26  ;;  %2729 = vmatprep.subr.bf16.mxu1 %v17201_v43 }
 0x22e   :  { %5399 = vmatprep.subr.bf16.mxu0 %v17204_v47 }
 0x22f   :  { %v2574_v51 = vsel %vm395_vm0, %v2572_v49, %v2573_v19  ;;  %v2547_v53 = vpop.f32.mrb[12].mxu0 }
 0x230   :  { %v2583_v34 = vmax.f32 %v2564_v40, %v2574_v51  ;;  %2730 = vmatpush1.bf16.msra.mxu1 %v17199_v17  ;;  %v2549_v54 = vpop.f32.mrb[13].mxu0  ;;  %v17237_v17 = vld [vmem:[#allocation3 + $0x14] ss:$8 sps:$4 sm:$0xff]   ;;  %v17238_v51 = vld [vmem:[%s22176_s1 + $0x150] ss:$8 sps:$4 sm:$0xff]  }
 0x231   :  { %v2566_v42 = vmax.f32 %v2547_v53, %v2549_v54  ;;  %v2551_v57 = vpop.f32.mrb[14].mxu0  ;;  %5400 = vmatpush1.bf16.msra.mxu0 %v17202_v24  ;;  %2731 = vmatprep.subr.bf16.mxu1 %v17207_v36  ;;  %v17240_v24 = vld [vmem:[%s22176_s1 + $0x154] ss:$8 sps:$4 sm:$0xff]  }
 0x232   :  { %v2553_v61 = vpop.f32.mrb[15].mxu0  ;;  %5541 = vmatprep.subr.bf16.mxu0 %v17210_v23  ;;  %v2594_v58 = vadd.f32 %v14608_v5, %v2583_v34  ;;  %v17243_v53 = vld [vmem:[#allocation3 + $0x24] ss:$8 sps:$4 sm:$0xff]  }
 0x233   :  { %v2575_v63 = vrot.slane %v2566_v42, 1  ;;  %v2567_v15 = vmax.f32 %v2551_v57, %v2553_v61  ;;  %v17246_v34 = vld [vmem:[%s22176_s1 + $0x164] ss:$8 sps:$4 sm:$0xff]   ;;  %v15155_v54 = vld [vmem:[%s22175_s0 + $0x90] sm:$0xff]  ;;  %v17244_v57 = vld [vmem:[%s22176_s1 + $0x160] ss:$8 sps:$4 sm:$0xff]  }
 0x234   :  { %2732 = vmatpush1.bf16.msra.mxu1 %v17205_v56  ;;  %5418 = vmatmul.mubr.bf16.vlgmr.msra.gmra.mrb[24].mxu0 %v19705_v50  ;;  %v2598_v60 = vmax.f32 %v2594_v58, 0.0  ;;  %v17241_v56 = vld [vmem:[#allocation3 + $0x20] ss:$8 sps:$4 sm:$0xff]   ;;  %v17252_v61 = vld [vmem:[%s22176_s1 + $0x174] ss:$8 sps:$4 sm:$0xff]  }
 0x235   :  { %v2576_v12 = vsel %vm395_vm0, %v2573_v19, %v2575_v63  ;;  %v2577_v8 = vrot.slane %v2567_v15, 1  ;;  %5542 = vmatpush1.bf16.msra.mxu0 %v17208_v13  ;;  %2733 = vmatprep.subr.bf16.mxu1 %v17213_v1  ;;  %v17235_v19 = vld [vmem:[#allocation3 + $0x10] ss:$8 sps:$4 sm:$0xff]   ;;  %v17249_v13 = vld [vmem:[#allocation3 + $0x34] ss:$8 sps:$4 sm:$0xff]  }
 0x236   :  { %v2584_v14 = vmax.f32 %v2565_v48, %v2576_v12  ;;  %5543 = vmatprep.subr.bf16.mxu0 %v17216_v62  ;;  %5427 = vmatprep.mubr.bf16.mxu0 %v22187_v0  ;;  %v17247_v1 = vld [vmem:[#allocation3 + $0x30] ss:$8 sps:$4 sm:$0xff]  }
 0x237   :  { %v2578_v16 = vsel %vm395_vm0, %v2575_v63, %v2577_v8  ;;  %v2586_v7 = vmax.f32 %v2567_v15, %v2577_v8  ;;  %v17250_v63 = vld [vmem:[%s22176_s1 + $0x170] ss:$8 sps:$4 sm:$0xff]   ;;  %v17255_v15 = vld [vmem:[#allocation3 + $0x44] ss:$8 sps:$4 sm:$0xff]   ;;  %v17256_v58 = vld [vmem:[%s22176_s1 + $0x180] ss:$8 sps:$4 sm:$0xff]  }
 0x238   :  { %v2585_v21 = vmax.f32 %v2566_v42, %v2578_v16  ;;  %v2595_v22 = vadd.f32 %v14608_v5, %v2584_v14  ;;  %2734 = vmatpush1.bf16.msra.mxu1 %v17211_v37  ;;  %v15156_v42 = vld [vmem:[%s22175_s0 + $0x98] sm:$0xff]  ;;  %v5456_v37 = vrot.slane %v19705_v50, 1 }
 0x239   :  { %v2597_v18 = vadd.f32 %v14608_v5, %v2586_v7  ;;  %5544 = vmatpush1.bf16.msra.mxu0 %v17214_v6  ;;  %2735 = vmatprep.subr.bf16.mxu1 %v17219_v9  ;;  %v19883_v62 = vpack.c.bf16 %v15156_v42, %v15155_v54  ;;  %v5457_v6 = vrot.slane %v19531_v52, 1  ;;  %v17253_v9 = vld [vmem:[#allocation3 + $0x40] ss:$8 sps:$4 sm:$0xff]   ;;  %v17261_v7 = vld [vmem:[#allocation3 + $0x54] ss:$8 sps:$4 sm:$0xff]  }
 0x23a   :  { %v2596_v31 = vadd.f32 %v14608_v5, %v2585_v21  ;;  %v2599_v30 = vmax.f32 %v2595_v22, 0.0  ;;  %5545 = vmatprep.subr.bf16.mxu0 %v17222_v11  ;;  %v17258_v5 = vld [vmem:[%s22176_s1 + $0x184] ss:$8 sps:$4 sm:$0xff]   ;;  %v17259_v22 = vld [vmem:[#allocation3 + $0x50] ss:$8 sps:$4 sm:$0xff]  }
 0x23b   :  { %v19824_v27 = vmax.f32 %v2597_v18, 0.0  ;;  %v6846_v12 = vshll.u32 %v19883_v62, 16  ;;  %v6850_v8 = vshrl.u32 %v19883_v62, 16  ;;  %v5458_v16 = vsel %vm395_vm0, %v5456_v37, %v5457_v6  ;;  %v17267_v18 = vld [vmem:[#allocation3 + $0x64] ss:$8 sps:$4 sm:$0xff]  }
 0x23c   :  { %v2600_v45 = vmax.f32 %v2596_v31, 0.0  ;;  %v19826_v32 = vpack.c.bf16 %v2599_v30, %v2598_v60  ;;  %2736 = vmatpush1.bf16.msra.mxu1 %v17217_v20  ;;  %5428 = vmatmul.mubr.bf16.gmra.mrb[28].mxu0 %v19531_v52  ;;  %v17264_v20 = vld [vmem:[%s22176_s1 + $0x194] ss:$8 sps:$4 sm:$0xff]   ;;  %v17268_v31 = vld [vmem:[%s22176_s1 + $0x1a0] ss:$8 sps:$4 sm:$0xff]  }
 0x23d   :  { %5546 = vmatpush1.bf16.msra.mxu0 %v17220_v25  ;;  %2737 = vmatprep.subr.bf16.mxu1 %v17225_v28  ;;  %v7304_v11 = vrot.slane %v6850_v8, 1  ;;  %v7305_v14 = vrot.slane %v6846_v12, 2  ;;  %v17262_v25 = vld [vmem:[%s22176_s1 + $0x190] ss:$8 sps:$4 sm:$0xff]   ;;  %v17270_v28 = vld [vmem:[%s22176_s1 + $0x1a4] ss:$8 sps:$4 sm:$0xff]  }
 0x23e   :  { %v3063_v2 = vpack.c.bf16 %v19824_v27, %v2600_v45  ;;  %5547 = vmatprep.subr.bf16.mxu0 %v17228_v29  ;;  %v19833_v38 = vpack.c.bf16 %v2600_v45, %v2600_v45  ;;  %5573 = vmatprep.mubr.bf16.mxu0 %v22187_v0  ;;  %v2638_v26 = vrot.slane %v19826_v32, 1  ;;  %v2921_v40 = vrot.slane %v19826_v32, 2  ;;  %v17265_v29 = vld [vmem:[#allocation3 + $0x60] ss:$8 sps:$4 sm:$0xff]   ;;  %v17273_v60 = vld [vmem:[#allocation3 + $0x74] ss:$8 sps:$4 sm:$0xff]  }
 0x23f   :  { %v19841_v41 = vpack.c.bf16 %v2600_v45, %v2599_v30  ;;  %v3081_v48 = vrot.slane %v19826_v32, 3  ;;  %v19907_v21 = vor.u32 %v7305_v14, %v7304_v11  ;;  %v17276_v30 = vld [vmem:[%s22176_s1 + $0x1b4] ss:$8 sps:$4 sm:$0xff]   ;;  %v17271_v45 = vld [vmem:[#allocation3 + $0x70] ss:$8 sps:$4 sm:$0xff]  }
 0x240   :  { %v19843_v4 = vrot.slane %v3063_v2, 3  ;;  %2738 = vmatpush1.bf16.msra.mxu1 %v17223_v59  ;;  %v2639_v43 = vrot.slane %v19833_v38, 1  ;;  %v2922_v47 = vrot.slane %v19833_v38, 2  ;;  %v17274_v59 = vld [vmem:[%s22176_s1 + $0x1b0] ss:$8 sps:$4 sm:$0xff]  }
 0x241   :  { %5548 = vmatpush1.bf16.msra.mxu0 %v17226_v10  ;;  %2854 = vmatprep.subr.bf16.mxu1 %v17231_v33  ;;  %v17279_v10 = vld [vmem:[#allocation3 + $0x104] ss:$8 sps:$4 sm:$0xff]   ;;  %v17277_v2 = vld [vmem:[#allocation3 + $0x100] ss:$8 sps:$4 sm:$0xff]   ;;  %v17319_v14 = vld [vmem:[#allocation3 + $0x170] ss:$8 sps:$4 sm:$0xff]  }
 0x242   :  { %v2640_v49 = vsel %vm395_vm0, %v2638_v26, %v2639_v43  ;;  %5549 = vmatprep.subr.bf16.mxu0 %v17234_v39  ;;  %v19858_v36 = vsel %vm727_vm3, %v2921_v40, %v2922_v47  ;;  %v19862_v23 = vsel %vm1395_vm4, %v3081_v48, %v19843_v4  ;;  %v17282_v33 = vld [vmem:[%s22176_s1 + $0x1c4] ss:$8 sps:$4 sm:$0xff]   ;;  %v17280_v39 = vld [vmem:[%s22176_s1 + $0x1c0] ss:$8 sps:$4 sm:$0xff]   ;;  %v17288_v26 = vld [vmem:[%s22176_s1 + $0x1d4] ss:$8 sps:$4 sm:$0xff]  }
 0x243   :  { %2756 = vmatmul.mubr.bf16.vlgmr.msra.gmra.mrb[8].mxu1 %v2640_v49  ;;  %v17283_v40 = vld [vmem:[#allocation3 + $0x110] ss:$8 sps:$4 sm:$0xff]   ;;  %v17294_v48 = vld [vmem:[%s22176_s1 + $0x1e4] ss:$8 sps:$4 sm:$0xff]   ;;  %v17313_v37 = vld [vmem:[#allocation3 + $0x160] ss:$8 sps:$4 sm:$0xff]  }
 0x244   :  { %2855 = vmatpush1.bf16.msra.mxu1 %v17229_v35  ;;  %2765 = vmatprep.mubr.bf16.mxu1 %v22187_v0  ;;  %v17285_v35 = vld [vmem:[#allocation3 + $0x114] ss:$8 sps:$4 sm:$0xff]   ;;  %v17304_v42 = vld [vmem:[%s22176_s1 + $0x200] ss:$8 sps:$4 sm:$0xff]  }
 0x245   :  { %5550 = vmatpush1.bf16.msra.mxu0 %v17232_v44  ;;  %2856 = vmatprep.subr.bf16.mxu1 %v17237_v17  ;;  %v17291_v44 = vld [vmem:[#allocation3 + $0x124] ss:$8 sps:$4 sm:$0xff]   ;;  %v17289_v17 = vld [vmem:[#allocation3 + $0x120] ss:$8 sps:$4 sm:$0xff]   ;;  %v17297_v49 = vld [vmem:[#allocation3 + $0x134] ss:$8 sps:$4 sm:$0xff]  }
 0x246   :  { %5551 = vmatprep.subr.bf16.mxu0 %v17240_v24  ;;  %v5619_v24 = vrot.slane %v5158_v55, 2  ;;  %v17306_v55 = vld [vmem:[%s22176_s1 + $0x204] ss:$8 sps:$4 sm:$0xff]   ;;  %v17324_v11 = vld [vmem:[%s22176_s1 + $0x234] ss:$8 sps:$4 sm:$0xff]  }
 0x248   :  { %2857 = vmatpush1.bf16.msra.mxu1 %v17235_v19  ;;  %v5618_v19 = vrot.slane %v5156_v46, 1  ;;  %v17298_v46 = vld [vmem:[%s22176_s1 + $0x1f0] ss:$8 sps:$4 sm:$0xff]  }
 0x249   :  { %5552 = vmatpush1.bf16.msra.mxu0 %v17238_v51  ;;  %2858 = vmatprep.subr.bf16.mxu1 %v17243_v53  ;;  %v17300_v51 = vld [vmem:[%s22176_s1 + $0x1f4] ss:$8 sps:$4 sm:$0xff]   ;;  %v17295_v53 = vld [vmem:[#allocation3 + $0x130] ss:$8 sps:$4 sm:$0xff]  }
 0x24a   :  { %5553 = vmatprep.subr.bf16.mxu0 %v17246_v34  ;;  %v17303_v34 = vld [vmem:[#allocation3 + $0x144] ss:$8 sps:$4 sm:$0xff]   ;;  %v5620_v54 = vor.u32 %v5619_v24, %v5618_v19  ;;  %v17367_v24 = vld [vmem:[#allocation3 + $0x1f0] ss:$8 sps:$4 sm:$0xff]  }
 0x24b   :  { %2766 = vmatmul.mubr.bf16.gmra.mrb[12].mxu1 %v2639_v43  ;;  %v17286_v43 = vld [vmem:[%s22176_s1 + $0x1d0] ss:$8 sps:$4 sm:$0xff]   ;;  %v17372_v19 = vld [vmem:[%s22176_s1 + $0xb4] ss:$8 sps:$4 sm:$0xff]  }
 0x24c   :  { %2859 = vmatpush1.bf16.msra.mxu1 %v17241_v56  ;;  %2886 = vmatprep.mubr.bf16.mxu1 %v22187_v0  ;;  %v17301_v56 = vld [vmem:[#allocation3 + $0x140] ss:$8 sps:$4 sm:$0xff]  }
 0x24d   :  { %5554 = vmatpush1.bf16.msra.mxu0 %v17244_v57  ;;  %2860 = vmatprep.subr.bf16.mxu1 %v17249_v13  ;;  %v5624_v57 = vsel %vm559_vm1, %v5620_v54, %v19555_v3  ;;  %v17309_v13 = vld [vmem:[#allocation3 + $0x154] ss:$8 sps:$4 sm:$0xff]   ;;  %v15154_v54 = vld [vmem:[%s22175_s0 + $0x88] sm:$0xff] }
 0x24e   :  { %5555 = vmatprep.subr.bf16.mxu0 %v17252_v61  ;;  %v17307_v61 = vld [vmem:[#allocation3 + $0x150] ss:$8 sps:$4 sm:$0xff]  }
 0x250   :  { %2861 = vmatpush1.bf16.msra.mxu1 %v17247_v1  ;;  %v17312_v1 = vld [vmem:[%s22176_s1 + $0x214] ss:$8 sps:$4 sm:$0xff]  }
 0x251   :  { %5556 = vmatpush1.bf16.msra.mxu0 %v17250_v63  ;;  %2862 = vmatprep.subr.bf16.mxu1 %v17255_v15  ;;  %v17310_v63 = vld [vmem:[%s22176_s1 + $0x210] ss:$8 sps:$4 sm:$0xff]   ;;  %v17315_v15 = vld [vmem:[#allocation3 + $0x164] ss:$8 sps:$4 sm:$0xff]  }
 0x252   :  { %5707 = vmatprep.subr.bf16.mxu0 %v17258_v5  ;;  %v17318_v5 = vld [vmem:[%s22176_s1 + $0x224] ss:$8 sps:$4 sm:$0xff]  }
 0x254   :  { %2863 = vmatpush1.bf16.msra.mxu1 %v17253_v9  ;;  %5574 = vmatmul.mubr.bf16.vlgmr.msra.gmra.mrb[24].mxu0 %v5458_v16  ;;  %v17321_v9 = vld [vmem:[#allocation3 + $0x174] ss:$8 sps:$4 sm:$0xff]   ;;  %v17327_v16 = vld [vmem:[#allocation3 + $0x184] ss:$8 sps:$4 sm:$0xff]  }
 0x255   :  { %5708 = vmatpush1.bf16.msra.mxu0 %v17256_v58  ;;  %2864 = vmatprep.subr.bf16.mxu1 %v17261_v7  ;;  %v17322_v58 = vld [vmem:[%s22176_s1 + $0x230] ss:$8 sps:$4 sm:$0xff]   ;;  %v17330_v7 = vld [vmem:[%s22176_s1 + $0x244] ss:$8 sps:$4 sm:$0xff]  }
 0x256   :  { %5709 = vmatprep.subr.bf16.mxu0 %v17264_v20  ;;  %5583 = vmatprep.mubr.bf16.mxu0 %v22187_v0  ;;  %v17325_v20 = vld [vmem:[#allocation3 + $0x180] ss:$8 sps:$4 sm:$0xff]  }
 0x258   :  { %2865 = vmatpush1.bf16.msra.mxu1 %v17259_v22  ;;  %v17333_v22 = vld [vmem:[#allocation3 + $0x194] ss:$8 sps:$4 sm:$0xff]  }
 0x259   :  { %5710 = vmatpush1.bf16.msra.mxu0 %v17262_v25  ;;  %2866 = vmatprep.subr.bf16.mxu1 %v17267_v18  ;;  %v17336_v25 = vld [vmem:[%s22176_s1 + $0x254] ss:$8 sps:$4 sm:$0xff]   ;;  %v17331_v18 = vld [vmem:[#allocation3 + $0x190] ss:$8 sps:$4 sm:$0xff]  }
 0x25a   :  { %5711 = vmatprep.subr.bf16.mxu0 %v17270_v28  ;;  %v17334_v28 = vld [vmem:[%s22176_s1 + $0x250] ss:$8 sps:$4 sm:$0xff]  }
 0x25c   :  { %2867 = vmatpush1.bf16.msra.mxu1 %v17265_v29  ;;  %5584 = vmatmul.mubr.bf16.gmra.mrb[28].mxu0 %v5457_v6  ;;  %v17316_v6 = vld [vmem:[%s22176_s1 + $0x220] ss:$8 sps:$4 sm:$0xff]   ;;  %v17339_v29 = vld [vmem:[#allocation3 + $0x1a4] ss:$8 sps:$4 sm:$0xff]  }
 0x25d   :  { %5712 = vmatpush1.bf16.msra.mxu0 %v17268_v31  ;;  %2868 = vmatprep.subr.bf16.mxu1 %v17273_v60  ;;  %v17342_v31 = vld [vmem:[%s22176_s1 + $0x264] ss:$8 sps:$4 sm:$0xff]   ;;  %v17337_v60 = vld [vmem:[#allocation3 + $0x1a0] ss:$8 sps:$4 sm:$0xff]  }
 0x25e   :  { %5713 = vmatprep.subr.bf16.mxu0 %v17276_v30  ;;  %5739 = vmatprep.mubr.bf16.mxu0 %v22187_v0  ;;  %v17345_v30 = vld [vmem:[#allocation3 + $0x1b4] ss:$8 sps:$4 sm:$0xff]  }
 0x260   :  { %2869 = vmatpush1.bf16.msra.mxu1 %v17271_v45  ;;  %v17348_v45 = vld [vmem:[%s22176_s1 + $0x274] ss:$8 sps:$4 sm:$0xff]  }
 0x261   :  { %5714 = vmatpush1.bf16.msra.mxu0 %v17274_v59  ;;  %3006 = vmatprep.subr.bf16.mxu1 %v17279_v10  ;;  %v17343_v59 = vld [vmem:[#allocation3 + $0x1b0] ss:$8 sps:$4 sm:$0xff]  }
 0x262   :  { %5715 = vmatprep.subr.bf16.mxu0 %v17282_v33  ;;  %v17346_v10 = vld [vmem:[%s22176_s1 + $0x270] ss:$8 sps:$4 sm:$0xff]   ;;  %v17351_v33 = vld [vmem:[#allocation3 + $0x1c4] ss:$8 sps:$4 sm:$0xff]  }
 0x263   :  { %2887 = vmatmul.mubr.bf16.vlgmr.msra.gmra.mrb[8].mxu1 %v19826_v32  ;;  %v17292_v32 = vld [vmem:[%s22176_s1 + $0x1e0] ss:$8 sps:$4 sm:$0xff]  }
 0x264   :  { %3007 = vmatpush1.bf16.msra.mxu1 %v17277_v2  ;;  %2896 = vmatprep.mubr.bf16.mxu1 %v22187_v0  ;;  %v5784_v2 = vrot.slane %v19705_v50, 2  ;;  %v17355_v50 = vld [vmem:[#allocation3 + $0x1d0] ss:$8 sps:$4 sm:$0xff]  }
 0x265   :  { %5716 = vmatpush1.bf16.msra.mxu0 %v17280_v39  ;;  %3008 = vmatprep.subr.bf16.mxu1 %v17285_v35  ;;  %v5785_v39 = vrot.slane %v19531_v52, 2  ;;  %v17360_v52 = vld [vmem:[%s22176_s1 + $0x94] ss:$8 sps:$4 sm:$0xff]  }
 0x266   :  { %5717 = vmatprep.subr.bf16.mxu0 %v17288_v26  ;;  %v17352_v26 = vld [vmem:[%s22176_s1 + $0x80] ss:$8 sps:$4 sm:$0xff]  }
 0x267   :  { %v5786_v35 = vsel %vm727_vm3, %v5784_v2, %v5785_v39  ;;  %v17415_v2 = vld [vmem:[#allocation3 + $0x270] ss:$8 sps:$4 sm:$0xff]  }
 0x268   :  { %3009 = vmatpush1.bf16.msra.mxu1 %v17283_v40  ;;  %v17357_v40 = vld [vmem:[#allocation3 + $0x1d4] ss:$8 sps:$4 sm:$0xff]  }
 0x269   :  { %5718 = vmatpush1.bf16.msra.mxu0 %v17286_v43  ;;  %3010 = vmatprep.subr.bf16.mxu1 %v17291_v44  ;;  %v17358_v43 = vld [vmem:[%s22176_s1 + $0x90] ss:$8 sps:$4 sm:$0xff]   ;;  %v17363_v44 = vld [vmem:[#allocation3 + $0x1e4] ss:$8 sps:$4 sm:$0xff]  }
 0x26a   :  { %5719 = vmatprep.subr.bf16.mxu0 %v17294_v48  ;;  %v17366_v48 = vld [vmem:[%s22176_s1 + $0xa4] ss:$8 sps:$4 sm:$0xff]  }
 0x26b   :  { %2897 = vmatmul.mubr.bf16.gmra.mrb[12].mxu1 %v19833_v38  ;;  %v17354_v38 = vld [vmem:[%s22176_s1 + $0x84] ss:$8 sps:$4 sm:$0xff]  }
 0x26c   :  { %3011 = vmatpush1.bf16.msra.mxu1 %v17289_v17  ;;  %3038 = vmatprep.mubr.bf16.mxu1 %v22187_v0  ;;  %v17361_v17 = vld [vmem:[#allocation3 + $0x1e0] ss:$8 sps:$4 sm:$0xff]  }
 0x26d   :  { %5720 = vmatpush1.bf16.msra.mxu0 %v17292_v32  ;;  %3012 = vmatprep.subr.bf16.mxu1 %v17297_v49  ;;  %v17364_v32 = vld [vmem:[%s22176_s1 + $0xa0] ss:$8 sps:$4 sm:$0xff]   ;;  %v17369_v49 = vld [vmem:[#allocation3 + $0x1f4] ss:$8 sps:$4 sm:$0xff]  }
 0x26e   :  { %5721 = vmatprep.subr.bf16.mxu0 %v17300_v51  ;;  %v17370_v51 = vld [vmem:[%s22176_s1 + $0xb0] ss:$8 sps:$4 sm:$0xff]  }
 0x270   :  { %3013 = vmatpush1.bf16.msra.mxu1 %v17295_v53  ;;  %v17375_v53 = vld [vmem:[#allocation3 + $0x204] ss:$8 sps:$4 sm:$0xff]  }
 0x271   :  { %5722 = vmatpush1.bf16.msra.mxu0 %v17298_v46  ;;  %3014 = vmatprep.subr.bf16.mxu1 %v17303_v34  ;;  %v17378_v46 = vld [vmem:[%s22176_s1 + $0xc4] ss:$8 sps:$4 sm:$0xff]  }
 0x272   :  { %5869 = vmatprep.subr.bf16.mxu0 %v17306_v55  ;;  %v15153_v34 = vld [vmem:[%s22175_s0 + $0x80] sm:$0xff]  ;;  %v17373_v55 = vld [vmem:[#allocation3 + $0x200] ss:$8 sps:$4 sm:$0xff]  }
 0x274   :  { %3015 = vmatpush1.bf16.msra.mxu1 %v17301_v56  ;;  %5740 = vmatmul.mubr.bf16.vlgmr.msra.gmra.mrb[24].mxu0 %v5624_v57  ;;  %v17376_v56 = vld [vmem:[%s22176_s1 + $0xc0] ss:$8 sps:$4 sm:$0xff]   ;;  %v20057_v57 = vpack.c.bf16 %v15154_v54, %v15153_v34 }
 0x275   :  { %5870 = vmatpush1.bf16.msra.mxu0 %v17304_v42  ;;  %3016 = vmatprep.subr.bf16.mxu1 %v17309_v13  ;;  %v17381_v42 = vld [vmem:[#allocation3 + $0x214] ss:$8 sps:$4 sm:$0xff]   ;;  %v17439_v54 = vld [vmem:[#allocation3 + $0xb0] ss:$8 sps:$4 sm:$0xff]  }
 0x276   :  { %5871 = vmatprep.subr.bf16.mxu0 %v17312_v1  ;;  %5749 = vmatprep.mubr.bf16.mxu0 %v22187_v0  ;;  %v17384_v13 = vld [vmem:[%s22176_s1 + $0xd4] ss:$8 sps:$4 sm:$0xff]   ;;  %v17379_v1 = vld [vmem:[#allocation3 + $0x210] ss:$8 sps:$4 sm:$0xff]  }
 0x278   :  { %3017 = vmatpush1.bf16.msra.mxu1 %v17307_v61  ;;  %v17382_v61 = vld [vmem:[%s22176_s1 + $0xd0] ss:$8 sps:$4 sm:$0xff]  }
 0x279   :  { %5872 = vmatpush1.bf16.msra.mxu0 %v17310_v63  ;;  %3018 = vmatprep.subr.bf16.mxu1 %v17315_v15  ;;  %v17387_v63 = vld [vmem:[#allocation3 + $0x224] ss:$8 sps:$4 sm:$0xff]   ;;  %v6841_v15 = vshll.u32 %v20057_v57, 16 }
 0x27a   :  { %5873 = vmatprep.subr.bf16.mxu0 %v17318_v5  ;;  %v17390_v5 = vld [vmem:[%s22176_s1 + $0xe4] ss:$8 sps:$4 sm:$0xff]  }
 0x27c   :  { %3019 = vmatpush1.bf16.msra.mxu1 %v17313_v37  ;;  %5750 = vmatmul.mubr.bf16.gmra.mrb[28].mxu0 %v19555_v3  ;;  %v17328_v3 = vld [vmem:[%s22176_s1 + $0x240] ss:$8 sps:$4 sm:$0xff]  }
 0x27d   :  { %5874 = vmatpush1.bf16.msra.mxu0 %v17316_v6  ;;  %3020 = vmatprep.subr.bf16.mxu1 %v17321_v9  ;;  %v17388_v37 = vld [vmem:[%s22176_s1 + $0xe0] ss:$8 sps:$4 sm:$0xff]   ;;  %v17393_v6 = vld [vmem:[#allocation3 + $0x234] ss:$8 sps:$4 sm:$0xff]   ;;  %v6839_v9 = vshrl.u32 %v20057_v57, 16 }
 0x27e   :  { %5875 = vmatprep.subr.bf16.mxu0 %v17324_v11  ;;  %5901 = vmatprep.mubr.bf16.mxu0 %v22187_v0  ;;  %v6843_v11 = vrot.slane %v6841_v15, 1 }
 0x280   :  { %3021 = vmatpush1.bf16.msra.mxu1 %v17319_v14  ;;  %v17396_v14 = vld [vmem:[%s22176_s1 + $0xf4] ss:$8 sps:$4 sm:$0xff]  }
 0x281   :  { %5876 = vmatpush1.bf16.msra.mxu0 %v17322_v58  ;;  %3166 = vmatprep.subr.bf16.mxu1 %v17327_v16  ;;  %v17391_v58 = vld [vmem:[#allocation3 + $0x230] ss:$8 sps:$4 sm:$0xff]  }
 0x282   :  { %5877 = vmatprep.subr.bf16.mxu0 %v17330_v7  ;;  %v17394_v16 = vld [vmem:[%s22176_s1 + $0xf0] ss:$8 sps:$4 sm:$0xff]   ;;  %v17399_v7 = vld [vmem:[#allocation3 + $0x244] ss:$8 sps:$4 sm:$0xff]  }
 0x283   :  { %3039 = vmatmul.mubr.bf16.vlgmr.msra.gmra.mrb[8].mxu1 %v19858_v36  ;;  %v17340_v36 = vld [vmem:[%s22176_s1 + $0x260] ss:$8 sps:$4 sm:$0xff]  }
 0x284   :  { %3167 = vmatpush1.bf16.msra.mxu1 %v17325_v20  ;;  %3048 = vmatprep.mubr.bf16.mxu1 %v22187_v0  ;;  %v6844_v20 = vor.u32 %v6843_v11, %v6839_v9  ;;  %v17448_v11 = vld [vmem:[%s22176_s1 + $0x100] ss:$8 sps:$4 sm:$0xff]  }
 0x285   :  { %5878 = vmatpush1.bf16.msra.mxu0 %v17328_v3  ;;  %3168 = vmatprep.subr.bf16.mxu1 %v17333_v22  ;;  %v6848_v3 = vrot.slane %v6846_v12, 1  ;;  %v17397_v22 = vld [vmem:[#allocation3 + $0x240] ss:$8 sps:$4 sm:$0xff]   ;;  %v17408_v12 = vld [vmem:[%s22176_s1 + $0x14] ss:$8 sps:$4 sm:$0xff]  }
 0x286   :  { %5879 = vmatprep.subr.bf16.mxu0 %v17336_v25  ;;  %v17400_v25 = vld [vmem:[%s22176_s1] ss:$8 sps:$4 sm:$0xff]  }
 0x288   :  { %3169 = vmatpush1.bf16.msra.mxu1 %v17331_v18  ;;  %v6849_v18 = vsel %vm92_vm2, %v6844_v20, %v6848_v3 }
 0x289   :  { %5880 = vmatpush1.bf16.msra.mxu0 %v17334_v28  ;;  %3170 = vmatprep.subr.bf16.mxu1 %v17339_v29  ;;  %v17405_v28 = vld [vmem:[#allocation3 + $0x254] ss:$8 sps:$4 sm:$0xff]   ;;  %v17403_v29 = vld [vmem:[#allocation3 + $0x250] ss:$8 sps:$4 sm:$0xff]  }
 0x28a   :  { %5881 = vmatprep.subr.bf16.mxu0 %v17342_v31  ;;  %v17406_v31 = vld [vmem:[%s22176_s1 + $0x10] ss:$8 sps:$4 sm:$0xff]  }
 0x28b   :  { %3049 = vmatmul.mubr.bf16.gmra.mrb[12].mxu1 %v2922_v47  ;;  %v17349_v47 = vld [vmem:[#allocation3 + $0x1c0] ss:$8 sps:$4 sm:$0xff]  }
 0x28c   :  { %3171 = vmatpush1.bf16.msra.mxu1 %v17337_v60  ;;  %3198 = vmatprep.mubr.bf16.mxu1 %v22187_v0  ;;  %v17411_v60 = vld [vmem:[#allocation3 + $0x264] ss:$8 sps:$4 sm:$0xff]  }
 0x28d   :  { %5882 = vmatpush1.bf16.msra.mxu0 %v17340_v36  ;;  %3172 = vmatprep.subr.bf16.mxu1 %v17345_v30  ;;  %v17414_v36 = vld [vmem:[%s22176_s1 + $0x24] ss:$8 sps:$4 sm:$0xff]   ;;  %v17409_v30 = vld [vmem:[#allocation3 + $0x260] ss:$8 sps:$4 sm:$0xff]  }
 0x28e   :  { %5883 = vmatprep.subr.bf16.mxu0 %v17348_v45  ;;  %v6852_v45 = vor.u32 %v6850_v8, %v6848_v3  ;;  %v17418_v8 = vld [vmem:[%s22176_s1 + $0x30] ss:$8 sps:$4 sm:$0xff]   ;;  %v14839_v3 = vld [vmem:[%s22177_s2] ss:$0 sm:$0xff] }
 0x290   :  { %3173 = vmatpush1.bf16.msra.mxu1 %v17343_v59  ;;  %v17412_v59 = vld [vmem:[%s22176_s1 + $0x20] ss:$8 sps:$4 sm:$0xff]  }
 0x291   :  { %5884 = vmatpush1.bf16.msra.mxu0 %v17346_v10  ;;  %3174 = vmatprep.subr.bf16.mxu1 %v17351_v33  ;;  %v17417_v10 = vld [vmem:[#allocation3 + $0x274] ss:$8 sps:$4 sm:$0xff]  }
 0x292   :  { %6935 = vmatprep.subr.bf16.mxu0 %v17354_v38  ;;  %v17420_v33 = vld [vmem:[%s22176_s1 + $0x34] ss:$8 sps:$4 sm:$0xff]   ;;  %v17426_v38 = vld [vmem:[%s22176_s1 + $0x44] ss:$8 sps:$4 sm:$0xff]  }
 0x294   :  { %3175 = vmatpush1.bf16.msra.mxu1 %v17349_v47  ;;  %5902 = vmatmul.mubr.bf16.vlgmr.msra.gmra.mrb[24].mxu0 %v5786_v35  ;;  %v17421_v47 = vld [vmem:[#allocation3 + $0x80] ss:$8 sps:$4 sm:$0xff]  }
 0x295   :  { %6936 = vmatpush1.bf16.msra.mxu0 %v17352_v26  ;;  %3176 = vmatprep.subr.bf16.mxu1 %v17357_v40  ;;  %v17424_v35 = vld [vmem:[%s22176_s1 + $0x40] ss:$8 sps:$4 sm:$0xff]   ;;  %v17429_v26 = vld [vmem:[#allocation3 + $0x94] ss:$8 sps:$4 sm:$0xff]  }
 0x296   :  { %6937 = vmatprep.subr.bf16.mxu0 %v17360_v52  ;;  %5911 = vmatprep.mubr.bf16.mxu0 %v22187_v0  ;;  %v17432_v40 = vld [vmem:[%s22176_s1 + $0x54] ss:$8 sps:$4 sm:$0xff]   ;;  %v17427_v52 = vld [vmem:[#allocation3 + $0x90] ss:$8 sps:$4 sm:$0xff]  }
 0x298   :  { %3177 = vmatpush1.bf16.msra.mxu1 %v17355_v50  ;;  %v17430_v50 = vld [vmem:[%s22176_s1 + $0x50] ss:$8 sps:$4 sm:$0xff]  }
 0x299   :  { %6938 = vmatpush1.bf16.msra.mxu0 %v17358_v43  ;;  %3178 = vmatprep.subr.bf16.mxu1 %v17363_v44  ;;  %v17435_v43 = vld [vmem:[#allocation3 + $0xa4] ss:$8 sps:$4 sm:$0xff]  }
 0x29a   :  { %6939 = vmatprep.subr.bf16.mxu0 %v17366_v48  ;;  %v17438_v44 = vld [vmem:[%s22176_s1 + $0x64] ss:$8 sps:$4 sm:$0xff]  }
 0x29c   :  { %3179 = vmatpush1.bf16.msra.mxu1 %v17361_v17  ;;  %5912 = vmatmul.mubr.bf16.gmra.mrb[28].mxu0 %v5785_v39  ;;  %v17423_v39 = vld [vmem:[#allocation3 + $0x84] ss:$8 sps:$4 sm:$0xff]  }
 0x29d   :  { %6940 = vmatpush1.bf16.msra.mxu0 %v17364_v32  ;;  %3180 = vmatprep.subr.bf16.mxu1 %v17369_v49 }
 0x29e   :  { %6941 = vmatprep.subr.bf16.mxu0 %v17372_v19  ;;  %6967 = vmatprep.mubr.bf16.mxu0 %v22187_v0  ;;  %v3224_v19 = vpack.c.bf16 %v19824_v27, %v19824_v27 }
 0x2a0   :  { %3181 = vmatpush1.bf16.msra.mxu1 %v17367_v24  ;;  %v17436_v24 = vld [vmem:[%s22176_s1 + $0x60] ss:$8 sps:$4 sm:$0xff]  }
 0x2a1   :  { %6942 = vmatpush1.bf16.msra.mxu0 %v17370_v51  ;;  %3321 = vmatprep.subr.bf16.mxu1 %v17375_v53  ;;  %v17441_v51 = vld [vmem:[#allocation3 + $0xb4] ss:$8 sps:$4 sm:$0xff]  }
 0x2a2   :  { %6943 = vmatprep.subr.bf16.mxu0 %v17378_v46  ;;  %v17444_v46 = vld [vmem:[%s22176_s1 + $0x74] ss:$8 sps:$4 sm:$0xff]  }
 0x2a3   :  { %3199 = vmatmul.mubr.bf16.vlgmr.msra.gmra.mrb[8].mxu1 %v19862_v23  ;;  %v17385_v23 = vld [vmem:[#allocation3 + $0x220] ss:$8 sps:$4 sm:$0xff]  }
 0x2a4   :  { %3322 = vmatpush1.bf16.msra.mxu1 %v17373_v55  ;;  %3208 = vmatprep.mubr.bf16.mxu1 %v22187_v0 }
 0x2a5   :  { %6944 = vmatpush1.bf16.msra.mxu0 %v17376_v56  ;;  %3323 = vmatprep.subr.bf16.mxu1 %v17381_v42  ;;  %v17442_v56 = vld [vmem:[%s22176_s1 + $0x70] ss:$8 sps:$4 sm:$0xff]   ;;  %v17447_v42 = vld [vmem:[#allocation3 + $0xc4] ss:$8 sps:$4 sm:$0xff]  }
 0x2a6   :  { %6945 = vmatprep.subr.bf16.mxu0 %v17384_v13  ;;  %v17450_v13 = vld [vmem:[%s22176_s1 + $0x104] ss:$8 sps:$4 sm:$0xff]  }
 0x2a8   :  { %3324 = vmatpush1.bf16.msra.mxu1 %v17379_v1 }
 0x2a9   :  { %6946 = vmatpush1.bf16.msra.mxu0 %v17382_v61  ;;  %3325 = vmatprep.subr.bf16.mxu1 %v17387_v63 }
 0x2aa   :  { %6947 = vmatprep.subr.bf16.mxu0 %v17390_v5 }
 0x2ab   :  { %3209 = vmatmul.mubr.bf16.gmra.mrb[12].mxu1 %v19843_v4  ;;  %v17402_v4 = vld [vmem:[%s22176_s1 + $0x4] ss:$8 sps:$4 sm:$0xff]  }
 0x2ac   :  { %3326 = vmatpush1.bf16.msra.mxu1 %v17385_v23  ;;  %3353 = vmatprep.mubr.bf16.mxu1 %v22187_v0  ;;  %v17445_v23 = vld [vmem:[#allocation3 + $0xc0] ss:$8 sps:$4 sm:$0xff]  }
 0x2ad   :  { %6948 = vmatpush1.bf16.msra.mxu0 %v17388_v37  ;;  %3327 = vmatprep.subr.bf16.mxu1 %v17393_v6 }
 0x2ae   :  { %6949 = vmatprep.subr.bf16.mxu0 %v17396_v14  ;;  %v17453_v14 = vld [vmem:[#allocation3 + $0xd4] ss:$8 sps:$4 sm:$0xff]  }
 0x2b0   :  { %3328 = vmatpush1.bf16.msra.mxu1 %v17391_v58 }
 0x2b1   :  { %6950 = vmatpush1.bf16.msra.mxu0 %v17394_v16  ;;  %3329 = vmatprep.subr.bf16.mxu1 %v17399_v7  ;;  %v17456_v16 = vld [vmem:[%s22176_s1 + $0x114] ss:$8 sps:$4 sm:$0xff]  }
 0x2b2   :  { %7068 = vmatprep.subr.bf16.mxu0 %v17402_v4  ;;  %v17451_v4 = vld [vmem:[#allocation3 + $0xd0] ss:$8 sps:$4 sm:$0xff]  }
 0x2b4   :  { %3330 = vmatpush1.bf16.msra.mxu1 %v17397_v22  ;;  %6968 = vmatmul.mubr.bf16.vlgmr.msra.gmra.mrb[32].mxu0 %v6849_v18  ;;  %v17454_v18 = vld [vmem:[%s22176_s1 + $0x110] ss:$8 sps:$4 sm:$0xff]  }
 0x2b5   :  { %7069 = vmatpush1.bf16.msra.mxu0 %v17400_v25  ;;  %3331 = vmatprep.subr.bf16.mxu1 %v17405_v28  ;;  %v17459_v28 = vld [vmem:[#allocation3 + $0xe4] ss:$8 sps:$4 sm:$0xff]  }
 0x2b6   :  { %7070 = vmatprep.subr.bf16.mxu0 %v17408_v12  ;;  %6977 = vmatprep.mubr.bf16.mxu0 %v22187_v0 }
 0x2b8   :  { %3332 = vmatpush1.bf16.msra.mxu1 %v17403_v29 }
 0x2b9   :  { %7071 = vmatpush1.bf16.msra.mxu0 %v17406_v31  ;;  %3333 = vmatprep.subr.bf16.mxu1 %v17411_v60  ;;  %v17462_v31 = vld [vmem:[%s22176_s1 + $0x124] ss:$8 sps:$4 sm:$0xff]  }
 0x2ba   :  { %7072 = vmatprep.subr.bf16.mxu0 %v17414_v36 }
 0x2bc   :  { %3334 = vmatpush1.bf16.msra.mxu1 %v17409_v30  ;;  %6978 = vmatmul.mubr.bf16.gmra.mrb[36].mxu0 %v6852_v45 }
 0x2bd   :  { %7073 = vmatpush1.bf16.msra.mxu0 %v17412_v59  ;;  %3335 = vmatprep.subr.bf16.mxu1 %v17417_v10  ;;  %v17457_v59 = vld [vmem:[#allocation3 + $0xe0] ss:$8 sps:$4 sm:$0xff]  }
 0x2be   :  { %7074 = vmatprep.subr.bf16.mxu0 %v17420_v33  ;;  %7100 = vmatprep.mubr.bf16.mxu0 %v22187_v0  ;;  %v17460_v33 = vld [vmem:[%s22176_s1 + $0x120] ss:$8 sps:$4 sm:$0xff]  }
 0x2c0   :  { %3336 = vmatpush1.bf16.msra.mxu1 %v17415_v2  ;;  %v17465_v2 = vld [vmem:[#allocation3 + $0xf4] ss:$8 sps:$4 sm:$0xff]  }
 0x2c1   :  { %7075 = vmatpush1.bf16.msra.mxu0 %v17418_v8  ;;  %4406 = vmatprep.subr.bf16.mxu1 %v17423_v39 }
 0x2c2   :  { %7076 = vmatprep.subr.bf16.mxu0 %v17426_v38 }
 0x2c3   :  { %3354 = vmatmul.mubr.bf16.vlgmr.msra.gmra.mrb[8].mxu1 %v19841_v41  ;;  %v17433_v41 = vld [vmem:[#allocation3 + $0xa0] ss:$8 sps:$4 sm:$0xff]  }
 0x2c4   :  { %4407 = vmatpush1.bf16.msra.mxu1 %v17421_v47  ;;  %3363 = vmatprep.mubr.bf16.mxu1 %v22187_v0  ;;  %v17468_v47 = vld [vmem:[%s22176_s1 + $0x134] ss:$8 sps:$4 sm:$0xff]  }
 0x2c5   :  { %7077 = vmatpush1.bf16.msra.mxu0 %v17424_v35  ;;  %4408 = vmatprep.subr.bf16.mxu1 %v17429_v26 }
 0x2c6   :  { %7078 = vmatprep.subr.bf16.mxu0 %v17432_v40 }
 0x2c7   :  { %v4220_v48 = vpop.f32.mrb[16].mxu0 }
 0x2c8   :  { %4409 = vmatpush1.bf16.msra.mxu1 %v17427_v52  ;;  %v4222_v17 = vpop.f32.mrb[17].mxu0  ;;  %v17463_v52 = vld [vmem:[#allocation3 + $0xf0] ss:$8 sps:$4 sm:$0xff]  }
 0x2c9   :  { %v4247_v32 = vmax.f32 %v4220_v48, %v4222_v17  ;;  %v4224_v49 = vpop.f32.mrb[18].mxu0  ;;  %7079 = vmatpush1.bf16.msra.mxu0 %v17430_v50  ;;  %4410 = vmatprep.subr.bf16.mxu1 %v17435_v43  ;;  %v17466_v50 = vld [vmem:[%s22176_s1 + $0x130] ss:$8 sps:$4 sm:$0xff]   ;;  %v17471_v43 = vld [vmem:[#allocation3 + $0x4] ss:$8 sps:$4 sm:$0xff]  }
 0x2ca   :  { %v4226_v53 = vpop.f32.mrb[19].mxu0  ;;  %7080 = vmatprep.subr.bf16.mxu0 %v17438_v44  ;;  %v17474_v17 = vld [vmem:[%s22176_s1 + $0x144] ss:$8 sps:$4 sm:$0xff]  }
 0x2cb   :  { %3364 = vmatmul.mubr.bf16.gmra.mrb[12].mxu1 %v3224_v19  ;;  %v4248_v34 = vmax.f32 %v4224_v49, %v4226_v53  ;;  %v4255_v55 = vrot.slane %v4247_v32, 1 }
 0x2cc   :  { %4411 = vmatpush1.bf16.msra.mxu1 %v17433_v41  ;;  %4438 = vmatprep.mubr.bf16.mxu1 %v22187_v0 }
 0x2cd   :  { %v4256_v27 = vrot.slane %v4248_v34, 1  ;;  %7081 = vmatpush1.bf16.msra.mxu0 %v17436_v24  ;;  %4412 = vmatprep.subr.bf16.mxu1 %v17441_v51  ;;  %v17469_v24 = vld [vmem:[#allocation3] ss:$8 sps:$4 sm:$0xff]  }
 0x2ce   :  { %7082 = vmatprep.subr.bf16.mxu0 %v17444_v46 }
 0x2cf   :  { %v4257_v1 = vsel %vm395_vm0, %v4255_v55, %v4256_v27  ;;  %v4230_v61 = vpop.f32.mrb[20].mxu0 }
 0x2d0   :  { %v4266_v63 = vmax.f32 %v4247_v32, %v4257_v1  ;;  %4413 = vmatpush1.bf16.msra.mxu1 %v17439_v54  ;;  %v4232_v5 = vpop.f32.mrb[21].mxu0  ;;  %v17477_v54 = vld [vmem:[#allocation3 + $0x14] ss:$8 sps:$4 sm:$0xff]   ;;  %v17478_v1 = vld [vmem:[%s22176_s1 + $0x150] ss:$8 sps:$4 sm:$0xff]  }
 0x2d1   :  { %v4249_v37 = vmax.f32 %v4230_v61, %v4232_v5  ;;  %v4234_v6 = vpop.f32.mrb[22].mxu0  ;;  %7083 = vmatpush1.bf16.msra.mxu0 %v17442_v56  ;;  %4414 = vmatprep.subr.bf16.mxu1 %v17447_v42  ;;  %v17483_v61 = vld [vmem:[#allocation3 + $0x24] ss:$8 sps:$4 sm:$0xff]  }
 0x2d2   :  { %v4236_v58 = vpop.f32.mrb[23].mxu0  ;;  %7224 = vmatprep.subr.bf16.mxu0 %v17450_v13  ;;  %v4277_v29 = vadd.f32 %v14839_v3, %v4266_v63  ;;  %v17475_v13 = vld [vmem:[#allocation3 + $0x10] ss:$8 sps:$4 sm:$0xff]   ;;  %v17486_v63 = vld [vmem:[%s22176_s1 + $0x164] ss:$8 sps:$4 sm:$0xff]   ;;  %v15386_v5 = vld [vmem:[%s22175_s0 + $0xb0] sm:$0xff] }
 0x2d3   :  { %v4258_v7 = vrot.slane %v4249_v37, 1  ;;  %v4250_v20 = vmax.f32 %v4234_v6, %v4236_v58  ;;  %v17484_v6 = vld [vmem:[%s22176_s1 + $0x160] ss:$8 sps:$4 sm:$0xff]  }
 0x2d4   :  { %4415 = vmatpush1.bf16.msra.mxu1 %v17445_v23  ;;  %7101 = vmatmul.mubr.bf16.vlgmr.msra.gmra.mrb[32].mxu0 %v20057_v57  ;;  %v4281_v39 = vmax.f32 %v4277_v29, 0.0  ;;  %v15387_v23 = vld [vmem:[%s22175_s0 + $0xb8] sm:$0xff] }
 0x2d5   :  { %v4259_v22 = vsel %vm395_vm0, %v4256_v27, %v4258_v7  ;;  %v4260_v25 = vrot.slane %v4250_v20, 1  ;;  %7225 = vmatpush1.bf16.msra.mxu0 %v17448_v11  ;;  %4416 = vmatprep.subr.bf16.mxu1 %v17453_v14  ;;  %v17480_v27 = vld [vmem:[%s22176_s1 + $0x154] ss:$8 sps:$4 sm:$0xff]   ;;  %v20235_v58 = vpack.c.bf16 %v15387_v23, %v15386_v5  ;;  %v17517_v23 = vld [vmem:[#allocation3 + $0x100] ss:$8 sps:$4 sm:$0xff]  }
 0x2d6   :  { %v4267_v12 = vmax.f32 %v4248_v34, %v4259_v22  ;;  %7226 = vmatprep.subr.bf16.mxu0 %v17456_v16  ;;  %7110 = vmatprep.mubr.bf16.mxu0 %v22187_v0  ;;  %v17472_v34 = vld [vmem:[%s22176_s1 + $0x140] ss:$8 sps:$4 sm:$0xff]   ;;  %v17489_v11 = vld [vmem:[#allocation3 + $0x34] ss:$8 sps:$4 sm:$0xff]  }
 0x2d7   :  { %v4261_v60 = vsel %vm395_vm0, %v4258_v7, %v4260_v25  ;;  %v4269_v36 = vmax.f32 %v4250_v20, %v4260_v25  ;;  %v17492_v14 = vld [vmem:[%s22176_s1 + $0x174] ss:$8 sps:$4 sm:$0xff]   ;;  %v17487_v16 = vld [vmem:[#allocation3 + $0x30] ss:$8 sps:$4 sm:$0xff]   ;;  %v17498_v22 = vld [vmem:[%s22176_s1 + $0x184] ss:$8 sps:$4 sm:$0xff]  }
 0x2d8   :  { %v4268_v30 = vmax.f32 %v4249_v37, %v4261_v60  ;;  %v4278_v45 = vadd.f32 %v14839_v3, %v4267_v12  ;;  %4417 = vmatpush1.bf16.msra.mxu1 %v17451_v4  ;;  %v17481_v37 = vld [vmem:[#allocation3 + $0x20] ss:$8 sps:$4 sm:$0xff]   ;;  %v17495_v20 = vld [vmem:[#allocation3 + $0x44] ss:$8 sps:$4 sm:$0xff]   ;;  %v7140_v4 = vrot.slane %v19883_v62, 1  ;;  %v8529_v25 = vshll.u32 %v20235_v58, 16 }
 0x2d9   :  { %v4280_v10 = vadd.f32 %v14839_v3, %v4269_v36  ;;  %7227 = vmatpush1.bf16.msra.mxu0 %v17454_v18  ;;  %4418 = vmatprep.subr.bf16.mxu1 %v17459_v28  ;;  %v17490_v7 = vld [vmem:[%s22176_s1 + $0x170] ss:$8 sps:$4 sm:$0xff]   ;;  %v8533_v18 = vshrl.u32 %v20235_v58, 16  ;;  %v17501_v36 = vld [vmem:[#allocation3 + $0x54] ss:$8 sps:$4 sm:$0xff]  }
 0x2da   :  { %v4279_v8 = vadd.f32 %v14839_v3, %v4268_v30  ;;  %v4282_v38 = vmax.f32 %v4278_v45, 0.0  ;;  %7228 = vmatprep.subr.bf16.mxu0 %v17462_v31  ;;  %v7139_v3 = vrot.slane %v20057_v57, 1  ;;  %v17493_v28 = vld [vmem:[#allocation3 + $0x40] ss:$8 sps:$4 sm:$0xff]   ;;  %v8988_v29 = vrot.slane %v8529_v25, 2 }
 0x2db   :  { %v20176_v35 = vmax.f32 %v4280_v10, 0.0  ;;  %v8987_v12 = vrot.slane %v8533_v18, 1  ;;  %v17496_v31 = vld [vmem:[%s22176_s1 + $0x180] ss:$8 sps:$4 sm:$0xff]   ;;  %v17504_v30 = vld [vmem:[%s22176_s1 + $0x194] ss:$8 sps:$4 sm:$0xff]  }
 0x2dc   :  { %v4283_v26 = vmax.f32 %v4279_v8, 0.0  ;;  %v20178_v40 = vpack.c.bf16 %v4282_v38, %v4281_v39  ;;  %4419 = vmatpush1.bf16.msra.mxu1 %v17457_v59  ;;  %7111 = vmatmul.mubr.bf16.gmra.mrb[36].mxu0 %v19883_v62  ;;  %v7141_v60 = vsel %vm395_vm0, %v7139_v3, %v7140_v4  ;;  %v17499_v59 = vld [vmem:[#allocation3 + $0x50] ss:$8 sps:$4 sm:$0xff]   ;;  %v17510_v8 = vld [vmem:[%s22176_s1 + $0x1a4] ss:$8 sps:$4 sm:$0xff]  }
 0x2dd   :  { %7229 = vmatpush1.bf16.msra.mxu0 %v17460_v33  ;;  %4420 = vmatprep.subr.bf16.mxu1 %v17465_v2  ;;  %v20259_v45 = vor.u32 %v8988_v29, %v8987_v12  ;;  %v17502_v10 = vld [vmem:[%s22176_s1 + $0x190] ss:$8 sps:$4 sm:$0xff]   ;;  %v17507_v33 = vld [vmem:[#allocation3 + $0x64] ss:$8 sps:$4 sm:$0xff]   ;;  %v1729_v29 = vld [vmem:[%s22179_s4] sm:$0x1] }
 0x2de   :  { %v4746_v44 = vpack.c.bf16 %v20176_v35, %v4283_v26  ;;  %7230 = vmatprep.subr.bf16.mxu0 %v17468_v47  ;;  %v20185_v48 = vpack.c.bf16 %v4283_v26, %v4283_v26  ;;  %7256 = vmatprep.mubr.bf16.mxu0 %v22187_v0  ;;  %v4321_v41 = vrot.slane %v20178_v40, 1  ;;  %v4604_v32 = vrot.slane %v20178_v40, 2 }
 0x2df   :  { %v20193_v49 = vpack.c.bf16 %v4283_v26, %v4282_v38  ;;  %v4764_v46 = vrot.slane %v20178_v40, 3  ;;  %v17505_v26 = vld [vmem:[#allocation3 + $0x60] ss:$8 sps:$4 sm:$0xff]  }
 0x2e0   :  { %v20195_v19 = vrot.slane %v4746_v44, 3  ;;  %4421 = vmatpush1.bf16.msra.mxu1 %v17463_v52  ;;  %v4322_v51 = vrot.slane %v20185_v48, 1  ;;  %v4605_v53 = vrot.slane %v20185_v48, 2 }
 0x2e1   :  { %7231 = vmatpush1.bf16.msra.mxu0 %v17466_v50  ;;  %4537 = vmatprep.subr.bf16.mxu1 %v17471_v43  ;;  %v17508_v50 = vld [vmem:[%s22176_s1 + $0x1a0] ss:$8 sps:$4 sm:$0xff]   ;;  %v17513_v43 = vld [vmem:[#allocation3 + $0x74] ss:$8 sps:$4 sm:$0xff]  }
 0x2e2   :  { %v4323_v55 = vsel %vm395_vm0, %v4321_v41, %v4322_v51  ;;  %7232 = vmatprep.subr.bf16.mxu0 %v17474_v17  ;;  %v20210_v56 = vsel %vm727_vm3, %v4604_v32, %v4605_v53  ;;  %v20214_v42 = vsel %vm1395_vm4, %v4764_v46, %v20195_v19  ;;  %v17516_v17 = vld [vmem:[%s22176_s1 + $0x1b4] ss:$8 sps:$4 sm:$0xff]   ;;  %v17514_v46 = vld [vmem:[%s22176_s1 + $0x1b0] ss:$8 sps:$4 sm:$0xff]  }
 0x2e3   :  { %4439 = vmatmul.mubr.bf16.vlgmr.msra.gmra.mrb[16].mxu1 %v4323_v55  ;;  %v14458_v55 = vld [vmem:[%s22179_s4] ss:$0 sm:$0xff] }
 0x2e4   :  { %4538 = vmatpush1.bf16.msra.mxu1 %v17469_v24  ;;  %4448 = vmatprep.mubr.bf16.mxu1 %v22187_v0  ;;  %v17511_v24 = vld [vmem:[#allocation3 + $0x70] ss:$8 sps:$4 sm:$0xff]  }
 0x2e5   :  { %7233 = vmatpush1.bf16.msra.mxu0 %v17472_v34  ;;  %4539 = vmatprep.subr.bf16.mxu1 %v17477_v54  ;;  %v17519_v34 = vld [vmem:[#allocation3 + $0x104] ss:$8 sps:$4 sm:$0xff]  }
 0x2e6   :  { %7234 = vmatprep.subr.bf16.mxu0 %v17480_v27 }
 0x2e8   :  { %4540 = vmatpush1.bf16.msra.mxu1 %v17475_v13  ;;  %v17522_v13 = vld [vmem:[%s22176_s1 + $0x1c4] ss:$8 sps:$4 sm:$0xff]  }
 0x2e9   :  { %7235 = vmatpush1.bf16.msra.mxu0 %v17478_v1  ;;  %4541 = vmatprep.subr.bf16.mxu1 %v17483_v61 }
 0x2ea   :  { %7236 = vmatprep.subr.bf16.mxu0 %v17486_v63 }
 0x2eb   :  { %4449 = vmatmul.mubr.bf16.gmra.mrb[20].mxu1 %v4322_v51  ;;  %v1712_v51 = vld [vmem:[%s22179_s4] sm:$0x1] }
 0x2ec   :  { %4542 = vmatpush1.bf16.msra.mxu1 %v17481_v37  ;;  %4569 = vmatprep.mubr.bf16.mxu1 %v22187_v0 }
 0x2ed   :  { %7237 = vmatpush1.bf16.msra.mxu0 %v17484_v6  ;;  %4543 = vmatprep.subr.bf16.mxu1 %v17489_v11 }
 0x2ee   :  { %7238 = vmatprep.subr.bf16.mxu0 %v17492_v14  ;;  %v17520_v14 = vld [vmem:[%s22176_s1 + $0x1c0] ss:$8 sps:$4 sm:$0xff]  }
 0x2f0   :  { %4544 = vmatpush1.bf16.msra.mxu1 %v17487_v16  ;;  %v17525_v16 = vld [vmem:[#allocation3 + $0x114] ss:$8 sps:$4 sm:$0xff]  }
 0x2f1   :  { %7239 = vmatpush1.bf16.msra.mxu0 %v17490_v7  ;;  %4545 = vmatprep.subr.bf16.mxu1 %v17495_v20  ;;  %v17528_v20 = vld [vmem:[%s22176_s1 + $0x1d4] ss:$8 sps:$4 sm:$0xff]  }
 0x2f2   :  { %7390 = vmatprep.subr.bf16.mxu0 %v17498_v22  ;;  %v1746_v22 = vld [vmem:[%s22179_s4] sm:$0x1] }
 0x2f4   :  { %4546 = vmatpush1.bf16.msra.mxu1 %v17493_v28  ;;  %7257 = vmatmul.mubr.bf16.vlgmr.msra.gmra.mrb[32].mxu0 %v7141_v60 }
 0x2f5   :  { %7391 = vmatpush1.bf16.msra.mxu0 %v17496_v31  ;;  %4547 = vmatprep.subr.bf16.mxu1 %v17501_v36  ;;  %v17523_v31 = vld [vmem:[#allocation3 + $0x110] ss:$8 sps:$4 sm:$0xff]  }
 0x2f6   :  { %v1671_v2 = vpop.f32.mrb[0].mxu1  ;;  %7392 = vmatprep.subr.bf16.mxu0 %v17504_v30  ;;  %7266 = vmatprep.mubr.bf16.mxu0 %v22187_v0  ;;  %v17531_v30 = vld [vmem:[#allocation3 + $0x124] ss:$8 sps:$4 sm:$0xff]  }
 0x2f7   :  { %v1673_v39 = vpop.f32.mrb[1].mxu1 }
 0x2f8   :  { %v1694_v38 = vmax.f32 %v1671_v2, %v1673_v39  ;;  %v1675_v47 = vpop.f32.mrb[2].mxu1  ;;  %4548 = vmatpush1.bf16.msra.mxu1 %v17499_v59  ;;  %v17529_v39 = vld [vmem:[#allocation3 + $0x120] ss:$8 sps:$4 sm:$0xff]  }
 0x2f9   :  { %v1677_v52 = vpop.f32.mrb[3].mxu1  ;;  %7393 = vmatpush1.bf16.msra.mxu0 %v17502_v10  ;;  %4549 = vmatprep.subr.bf16.mxu1 %v17507_v33  ;;  %v17534_v10 = vld [vmem:[%s22176_s1 + $0x1e4] ss:$8 sps:$4 sm:$0xff]  }
 0x2fa   :  { %v1695_v44 = vmax.f32 %v1675_v47, %v1677_v52  ;;  %7394 = vmatprep.subr.bf16.mxu0 %v17510_v8  ;;  %v1701_v41 = vrot.slane %v1694_v38, 2  ;;  %v17537_v52 = vld [vmem:[#allocation3 + $0x134] ss:$8 sps:$4 sm:$0xff]  }
 0x2fc   :  { %v1702_v32 = vrot.slane %v1695_v44, 2  ;;  %4550 = vmatpush1.bf16.msra.mxu1 %v17505_v26  ;;  %7267 = vmatmul.mubr.bf16.gmra.mrb[36].mxu0 %v7140_v4 }
 0x2fd   :  { %7395 = vmatpush1.bf16.msra.mxu0 %v17508_v50  ;;  %4551 = vmatprep.subr.bf16.mxu1 %v17513_v43  ;;  %v7301_v50 = vrot.slane %v6839_v9, 1  ;;  %v7302_v43 = vrot.slane %v6841_v15, 2  ;;  %v17538_v15 = vld [vmem:[%s22176_s1 + $0x1f0] ss:$8 sps:$4 sm:$0xff]   ;;  %v17543_v9 = vld [vmem:[#allocation3 + $0x144] ss:$8 sps:$4 sm:$0xff]  }
 0x2fe   :  { %v1703_v54 = vsel %vm727_vm3, %v1701_v41, %v1702_v32  ;;  %v1681_v27 = vpop.f32.mrb[4].mxu1  ;;  %7396 = vmatprep.subr.bf16.mxu0 %v17516_v17  ;;  %7422 = vmatprep.mubr.bf16.mxu0 %v22187_v0  ;;  %v17535_v41 = vld [vmem:[#allocation3 + $0x130] ss:$8 sps:$4 sm:$0xff]  }
 0x2ff   :  { %v1709_v1 = vmax.f32 %v1694_v38, %v1703_v54  ;;  %v1683_v61 = vpop.f32.mrb[5].mxu1  ;;  %v17532_v38 = vld [vmem:[%s22176_s1 + $0x1e0] ss:$8 sps:$4 sm:$0xff]   ;;  %v17549_v54 = vld [vmem:[#allocation3 + $0x154] ss:$8 sps:$4 sm:$0xff]  }
 0x300   :  { %v1696_v63 = vmax.f32 %v1681_v27, %v1683_v61  ;;  %v1685_v5 = vpop.f32.mrb[6].mxu1  ;;  %4552 = vmatpush1.bf16.msra.mxu1 %v17511_v24  ;;  %v17546_v24 = vld [vmem:[%s22176_s1 + $0x204] ss:$8 sps:$4 sm:$0xff]   ;;  %v17547_v27 = vld [vmem:[#allocation3 + $0x150] ss:$8 sps:$4 sm:$0xff]  }
 0x301   :  { %v1713_v37 = vadd.f32 %v1712_v51, %v1709_v1  ;;  %v1723_v6 = vadd.f32 %v14458_v55, %v1709_v1  ;;  %v1686_v11 = vpop.f32.mrb[7].mxu1  ;;  %7397 = vmatpush1.bf16.msra.mxu0 %v17514_v46  ;;  %4689 = vmatprep.subr.bf16.mxu1 %v17519_v34  ;;  %v17541_v51 = vld [vmem:[#allocation3 + $0x140] ss:$8 sps:$4 sm:$0xff]   ;;  %v17555_v1 = vld [vmem:[#allocation3 + $0x164] ss:$8 sps:$4 sm:$0xff]  }
 0x302   :  { %v1704_v7 = vrot.slane %v1696_v63, 2  ;;  %7398 = vmatprep.subr.bf16.mxu0 %v17522_v13  ;;  %v17544_v46 = vld [vmem:[%s22176_s1 + $0x200] ss:$8 sps:$4 sm:$0xff]   ;;  %v17550_v13 = vld [vmem:[%s22176_s1 + $0x210] ss:$8 sps:$4 sm:$0xff]  }
 0x303   :  { %v1714_v3 = vmax.f32 %v1713_v37, 0.0  ;;  %v1724_v4 = vmax.f32 %v1723_v6, 0.0  ;;  %4570 = vmatmul.mubr.bf16.vlgmr.msra.gmra.mrb[16].mxu1 %v20178_v40  ;;  %v17526_v40 = vld [vmem:[%s22176_s1 + $0x1d0] ss:$8 sps:$4 sm:$0xff]   ;;  %v17558_v61 = vld [vmem:[%s22176_s1 + $0x224] ss:$8 sps:$4 sm:$0xff]  }
 0x304   :  { %v1705_v28 = vsel %vm727_vm3, %v1702_v32, %v1704_v7  ;;  %v1711_v12 = vmax.f32 %v1696_v63, %v1704_v7  ;;  %4690 = vmatpush1.bf16.msra.mxu1 %v17517_v23  ;;  %4579 = vmatprep.mubr.bf16.mxu1 %v22187_v0  ;;  %v7303_v32 = vor.u32 %v7302_v43, %v7301_v50  ;;  %v17553_v63 = vld [vmem:[#allocation3 + $0x160] ss:$8 sps:$4 sm:$0xff]   ;;  %v17561_v23 = vld [vmem:[#allocation3 + $0x174] ss:$8 sps:$4 sm:$0xff]   ;;  %v17559_v6 = vld [vmem:[#allocation3 + $0x170] ss:$8 sps:$4 sm:$0xff]  }
 0x305   :  { %1715 = vst [vmem:[#allocation2] sm:$0x1] %v1714_v3  ;;  %v1726_v60 = vrot.slane %v1724_v4, 4  ;;  %v1710_v36 = vmax.f32 %v1695_v44, %v1705_v28  ;;  %7399 = vmatpush1.bf16.msra.mxu0 %v17520_v14  ;;  %4691 = vmatprep.subr.bf16.mxu1 %v17525_v16  ;;  %v17540_v44 = vld [vmem:[%s22176_s1 + $0x1f4] ss:$8 sps:$4 sm:$0xff]  }
 0x306   :  { %v1747_v59 = vadd.f32 %v1746_v22, %v1711_v12  ;;  %7400 = vmatprep.subr.bf16.mxu0 %v17528_v20  ;;  %v7307_v34 = vsel %vm559_vm1, %v7303_v32, %v19907_v21  ;;  %v17556_v5 = vld [vmem:[%s22176_s1 + $0x220] ss:$8 sps:$4 sm:$0xff]   ;;  %v17564_v37 = vld [vmem:[%s22176_s1 + $0x234] ss:$8 sps:$4 sm:$0xff]   ;;  %v17562_v11 = vld [vmem:[%s22176_s1 + $0x230] ss:$8 sps:$4 sm:$0xff]  }
 0x307   :  { %1728 = vst [vmem:[#allocation2 + $0x8] sm:$0x1] %v1726_v60  ;;  %v1730_v33 = vadd.f32 %v1729_v29, %v1710_v36  ;;  %v1740_v2 = vadd.f32 %v14458_v55, %v1710_v36  ;;  %v17552_v55 = vld [vmem:[%s22176_s1 + $0x214] ss:$8 sps:$4 sm:$0xff]   ;;  %v17570_v16 = vld [vmem:[%s22176_s1 + $0x244] ss:$8 sps:$4 sm:$0xff]  }
 0x308   :  { %v1748_v8 = vmax.f32 %v1747_v59, 0.0  ;;  %4692 = vmatpush1.bf16.msra.mxu1 %v17523_v31  ;;  %v17567_v14 = vld [vmem:[#allocation3 + $0x184] ss:$8 sps:$4 sm:$0xff]   ;;  %v17565_v7 = vld [vmem:[#allocation3 + $0x180] ss:$8 sps:$4 sm:$0xff]   ;;  %v7467_v59 = vrot.slane %v20057_v57, 2 }
 0x309   :  { %v1731_v47 = vmax.f32 %v1730_v33, 0.0  ;;  %v1741_v26 = vmax.f32 %v1740_v2, 0.0  ;;  %7401 = vmatpush1.bf16.msra.mxu0 %v17526_v40  ;;  %4693 = vmatprep.subr.bf16.mxu1 %v17531_v30  ;;  %v17573_v20 = vld [vmem:[#allocation3 + $0x194] ss:$8 sps:$4 sm:$0xff]   ;;  %v17571_v4 = vld [vmem:[#allocation3 + $0x190] ss:$8 sps:$4 sm:$0xff]  }
 0x30a   :  { %1749 = vst [vmem:[#allocation2 + $0x20] sm:$0x1] %v1748_v8  ;;  %7402 = vmatprep.subr.bf16.mxu0 %v17534_v10  ;;  %v17576_v3 = vld [vmem:[%s22176_s1 + $0x254] ss:$8 sps:$4 sm:$0xff]   ;;  %v17574_v22 = vld [vmem:[%s22176_s1 + $0x250] ss:$8 sps:$4 sm:$0xff]  }
 0x30b   :  { %1732 = vst [vmem:[#allocation2 + $0x10] sm:$0x1] %v1731_v47  ;;  %v1743_v17 = vrot.slane %v1741_v26, 4  ;;  %4580 = vmatmul.mubr.bf16.gmra.mrb[20].mxu1 %v20185_v48  ;;  %v17579_v28 = vld [vmem:[#allocation3 + $0x1a4] ss:$8 sps:$4 sm:$0xff]   ;;  %v7468_v10 = vrot.slane %v19883_v62, 2 }
 0x30c   :  { %4694 = vmatpush1.bf16.msra.mxu1 %v17529_v39  ;;  %4721 = vmatprep.mubr.bf16.mxu1 %v22187_v0  ;;  %v17582_v12 = vld [vmem:[%s22176_s1 + $0x264] ss:$8 sps:$4 sm:$0xff]   ;;  %v17577_v29 = vld [vmem:[#allocation3 + $0x1a0] ss:$8 sps:$4 sm:$0xff]   ;;  %v17588_v60 = vld [vmem:[%s22176_s1 + $0x274] ss:$8 sps:$4 sm:$0xff]  }
 0x30d   :  { %1745 = vst [vmem:[#allocation2 + $0x18] sm:$0x1] %v1743_v17  ;;  %7403 = vmatpush1.bf16.msra.mxu0 %v17532_v38  ;;  %4695 = vmatprep.subr.bf16.mxu1 %v17537_v52  ;;  %v17585_v31 = vld [vmem:[#allocation3 + $0x1b4] ss:$8 sps:$4 sm:$0xff]   ;;  %v17583_v36 = vld [vmem:[#allocation3 + $0x1b0] ss:$8 sps:$4 sm:$0xff]   ;;  %v7469_v33 = vsel %vm727_vm3, %v7467_v59, %v7468_v10 }
 0x30e   :  { %7404 = vmatprep.subr.bf16.mxu0 %v17540_v44  ;;  %v17586_v40 = vld [vmem:[%s22176_s1 + $0x270] ss:$8 sps:$4 sm:$0xff]   ;;  %v17591_v30 = vld [vmem:[#allocation3 + $0x1c4] ss:$8 sps:$4 sm:$0xff]   ;;  %v17592_v2 = vld [vmem:[%s22176_s1 + $0x80] ss:$8 sps:$4 sm:$0xff]  }
 0x30f   :  { %v17594_v48 = vld [vmem:[%s22176_s1 + $0x84] ss:$8 sps:$4 sm:$0xff]   ;;  %v17600_v62 = vld [vmem:[%s22176_s1 + $0x94] ss:$8 sps:$4 sm:$0xff]   ;;  %v17595_v57 = vld [vmem:[#allocation3 + $0x1d0] ss:$8 sps:$4 sm:$0xff]  }
 0x310   :  { %4696 = vmatpush1.bf16.msra.mxu1 %v17535_v41  ;;  %v17597_v8 = vld [vmem:[#allocation3 + $0x1d4] ss:$8 sps:$4 sm:$0xff]   ;;  %v17598_v39 = vld [vmem:[%s22176_s1 + $0x90] ss:$8 sps:$4 sm:$0xff]   ;;  %v17603_v38 = vld [vmem:[#allocation3 + $0x1e4] ss:$8 sps:$4 sm:$0xff]  }
 0x311   :  { %7405 = vmatpush1.bf16.msra.mxu0 %v17538_v15  ;;  %4697 = vmatprep.subr.bf16.mxu1 %v17543_v9  ;;  %v17606_v47 = vld [vmem:[%s22176_s1 + $0xa4] ss:$8 sps:$4 sm:$0xff]   ;;  %v17601_v26 = vld [vmem:[#allocation3 + $0x1e0] ss:$8 sps:$4 sm:$0xff]   ;;  %v17612_v43 = vld [vmem:[%s22176_s1 + $0xb4] ss:$8 sps:$4 sm:$0xff]  }
 0x312   :  { %7552 = vmatprep.subr.bf16.mxu0 %v17546_v24  ;;  %v17604_v52 = vld [vmem:[%s22176_s1 + $0xa0] ss:$8 sps:$4 sm:$0xff]   ;;  %v17609_v50 = vld [vmem:[#allocation3 + $0x1f4] ss:$8 sps:$4 sm:$0xff]   ;;  %v17610_v17 = vld [vmem:[%s22176_s1 + $0xb0] ss:$8 sps:$4 sm:$0xff]  }
 0x313   :  { %v17607_v44 = vld [vmem:[#allocation3 + $0x1f0] ss:$8 sps:$4 sm:$0xff]   ;;  %v17615_v41 = vld [vmem:[#allocation3 + $0x204] ss:$8 sps:$4 sm:$0xff]   ;;  %v17613_v24 = vld [vmem:[#allocation3 + $0x200] ss:$8 sps:$4 sm:$0xff]  }
 0x314   :  { %4698 = vmatpush1.bf16.msra.mxu1 %v17541_v51  ;;  %7423 = vmatmul.mubr.bf16.vlgmr.msra.gmra.mrb[32].mxu0 %v7307_v34  ;;  %v17618_v15 = vld [vmem:[%s22176_s1 + $0xc4] ss:$8 sps:$4 sm:$0xff]   ;;  %v17616_v51 = vld [vmem:[%s22176_s1 + $0xc0] ss:$8 sps:$4 sm:$0xff]  }
 0x315   :  { %7553 = vmatpush1.bf16.msra.mxu0 %v17544_v46  ;;  %4699 = vmatprep.subr.bf16.mxu1 %v17549_v54  ;;  %v15384_v9 = vld [vmem:[%s22175_s0 + $0xa0] sm:$0xff]  ;;  %v15385_v32 = vld [vmem:[%s22175_s0 + $0xa8] sm:$0xff]  ;;  %v17624_v54 = vld [vmem:[%s22176_s1 + $0xd4] ss:$8 sps:$4 sm:$0xff]  }
 0x316   :  { %7554 = vmatprep.subr.bf16.mxu0 %v17552_v55  ;;  %7432 = vmatprep.mubr.bf16.mxu0 %v22187_v0  ;;  %v17621_v46 = vld [vmem:[#allocation3 + $0x214] ss:$8 sps:$4 sm:$0xff]   ;;  %v20423_v34 = vpack.c.bf16 %v15385_v32, %v15384_v9  ;;  %v17619_v55 = vld [vmem:[#allocation3 + $0x210] ss:$8 sps:$4 sm:$0xff]  }
 0x317   :  { %v17655_v59 = vld [vmem:[#allocation3 + $0x270] ss:$8 sps:$4 sm:$0xff]  }
 0x318   :  { %4700 = vmatpush1.bf16.msra.mxu1 %v17547_v27  ;;  %v17622_v27 = vld [vmem:[%s22176_s1 + $0xd0] ss:$8 sps:$4 sm:$0xff]  }
 0x319   :  { %7555 = vmatpush1.bf16.msra.mxu0 %v17550_v13  ;;  %4701 = vmatprep.subr.bf16.mxu1 %v17555_v1  ;;  %v17627_v13 = vld [vmem:[#allocation3 + $0x224] ss:$8 sps:$4 sm:$0xff]   ;;  %v8524_v1 = vshll.u32 %v20423_v34, 16  ;;  %v17679_v32 = vld [vmem:[#allocation3 + $0xb0] ss:$8 sps:$4 sm:$0xff]  }
 0x31a   :  { %7556 = vmatprep.subr.bf16.mxu0 %v17558_v61  ;;  %v17630_v61 = vld [vmem:[%s22176_s1 + $0xe4] ss:$8 sps:$4 sm:$0xff]  }
 0x31c   :  { %4702 = vmatpush1.bf16.msra.mxu1 %v17553_v63  ;;  %7433 = vmatmul.mubr.bf16.gmra.mrb[36].mxu0 %v19907_v21  ;;  %v17568_v21 = vld [vmem:[%s22176_s1 + $0x240] ss:$8 sps:$4 sm:$0xff]  }
 0x31d   :  { %7557 = vmatpush1.bf16.msra.mxu0 %v17556_v5  ;;  %4703 = vmatprep.subr.bf16.mxu1 %v17561_v23  ;;  %v17628_v63 = vld [vmem:[%s22176_s1 + $0xe0] ss:$8 sps:$4 sm:$0xff]   ;;  %v17633_v5 = vld [vmem:[#allocation3 + $0x234] ss:$8 sps:$4 sm:$0xff]   ;;  %v8522_v23 = vshrl.u32 %v20423_v34, 16 }
 0x31e   :  { %7558 = vmatprep.subr.bf16.mxu0 %v17564_v37  ;;  %7584 = vmatprep.mubr.bf16.mxu0 %v22187_v0  ;;  %v8526_v37 = vrot.slane %v8524_v1, 1 }
 0x320   :  { %4704 = vmatpush1.bf16.msra.mxu1 %v17559_v6  ;;  %v17636_v6 = vld [vmem:[%s22176_s1 + $0xf4] ss:$8 sps:$4 sm:$0xff]  }
 0x321   :  { %7559 = vmatpush1.bf16.msra.mxu0 %v17562_v11  ;;  %4849 = vmatprep.subr.bf16.mxu1 %v17567_v14  ;;  %v17631_v11 = vld [vmem:[#allocation3 + $0x230] ss:$8 sps:$4 sm:$0xff]  }
 0x322   :  { %7560 = vmatprep.subr.bf16.mxu0 %v17570_v16  ;;  %v17634_v14 = vld [vmem:[%s22176_s1 + $0xf0] ss:$8 sps:$4 sm:$0xff]   ;;  %v17639_v16 = vld [vmem:[#allocation3 + $0x244] ss:$8 sps:$4 sm:$0xff]  }
 0x323   :  { %4722 = vmatmul.mubr.bf16.vlgmr.msra.gmra.mrb[16].mxu1 %v20210_v56  ;;  %v17580_v56 = vld [vmem:[%s22176_s1 + $0x260] ss:$8 sps:$4 sm:$0xff]  }
 0x324   :  { %4850 = vmatpush1.bf16.msra.mxu1 %v17565_v7  ;;  %4731 = vmatprep.mubr.bf16.mxu1 %v22187_v0  ;;  %v8527_v7 = vor.u32 %v8526_v37, %v8522_v23  ;;  %v17688_v37 = vld [vmem:[%s22176_s1 + $0x100] ss:$8 sps:$4 sm:$0xff]  }
 0x325   :  { %7561 = vmatpush1.bf16.msra.mxu0 %v17568_v21  ;;  %4851 = vmatprep.subr.bf16.mxu1 %v17573_v20  ;;  %v8531_v21 = vrot.slane %v8529_v25, 1  ;;  %v17637_v20 = vld [vmem:[#allocation3 + $0x240] ss:$8 sps:$4 sm:$0xff]   ;;  %v17648_v25 = vld [vmem:[%s22176_s1 + $0x14] ss:$8 sps:$4 sm:$0xff]  }
 0x326   :  { %7562 = vmatprep.subr.bf16.mxu0 %v17576_v3  ;;  %v17640_v3 = vld [vmem:[%s22176_s1] ss:$8 sps:$4 sm:$0xff]  }
 0x328   :  { %4852 = vmatpush1.bf16.msra.mxu1 %v17571_v4  ;;  %v8532_v4 = vsel %vm92_vm2, %v8527_v7, %v8531_v21 }
 0x329   :  { %7563 = vmatpush1.bf16.msra.mxu0 %v17574_v22  ;;  %4853 = vmatprep.subr.bf16.mxu1 %v17579_v28  ;;  %v17645_v22 = vld [vmem:[#allocation3 + $0x254] ss:$8 sps:$4 sm:$0xff]   ;;  %v17643_v28 = vld [vmem:[#allocation3 + $0x250] ss:$8 sps:$4 sm:$0xff]  }
 0x32a   :  { %7564 = vmatprep.subr.bf16.mxu0 %v17582_v12  ;;  %v17646_v12 = vld [vmem:[%s22176_s1 + $0x10] ss:$8 sps:$4 sm:$0xff]  }
 0x32b   :  { %4732 = vmatmul.mubr.bf16.gmra.mrb[20].mxu1 %v4605_v53  ;;  %v17589_v53 = vld [vmem:[#allocation3 + $0x1c0] ss:$8 sps:$4 sm:$0xff]  }
 0x32c   :  { %4854 = vmatpush1.bf16.msra.mxu1 %v17577_v29  ;;  %4881 = vmatprep.mubr.bf16.mxu1 %v22187_v0  ;;  %v17651_v29 = vld [vmem:[#allocation3 + $0x264] ss:$8 sps:$4 sm:$0xff]  }
 0x32d   :  { %7565 = vmatpush1.bf16.msra.mxu0 %v17580_v56  ;;  %4855 = vmatprep.subr.bf16.mxu1 %v17585_v31  ;;  %v17654_v56 = vld [vmem:[%s22176_s1 + $0x24] ss:$8 sps:$4 sm:$0xff]   ;;  %v17649_v31 = vld [vmem:[#allocation3 + $0x260] ss:$8 sps:$4 sm:$0xff]  }
 0x32e   :  { %7566 = vmatprep.subr.bf16.mxu0 %v17588_v60  ;;  %v8535_v60 = vor.u32 %v8533_v18, %v8531_v21  ;;  %v17658_v18 = vld [vmem:[%s22176_s1 + $0x30] ss:$8 sps:$4 sm:$0xff]   ;;  %v15070_v21 = vld [vmem:[%s22177_s2] ss:$0 sm:$0xff] }
 0x330   :  { %4856 = vmatpush1.bf16.msra.mxu1 %v17583_v36  ;;  %v17652_v36 = vld [vmem:[%s22176_s1 + $0x20] ss:$8 sps:$4 sm:$0xff]  }
 0x331   :  { %7567 = vmatpush1.bf16.msra.mxu0 %v17586_v40  ;;  %4857 = vmatprep.subr.bf16.mxu1 %v17591_v30  ;;  %v17657_v40 = vld [vmem:[#allocation3 + $0x274] ss:$8 sps:$4 sm:$0xff]  }
 0x332   :  { %8618 = vmatprep.subr.bf16.mxu0 %v17594_v48  ;;  %v17660_v30 = vld [vmem:[%s22176_s1 + $0x34] ss:$8 sps:$4 sm:$0xff]   ;;  %v17666_v48 = vld [vmem:[%s22176_s1 + $0x44] ss:$8 sps:$4 sm:$0xff]  }
 0x334   :  { %4858 = vmatpush1.bf16.msra.mxu1 %v17589_v53  ;;  %7585 = vmatmul.mubr.bf16.vlgmr.msra.gmra.mrb[32].mxu0 %v7469_v33  ;;  %v17661_v53 = vld [vmem:[#allocation3 + $0x80] ss:$8 sps:$4 sm:$0xff]  }
 0x335   :  { %8619 = vmatpush1.bf16.msra.mxu0 %v17592_v2  ;;  %4859 = vmatprep.subr.bf16.mxu1 %v17597_v8  ;;  %v17664_v33 = vld [vmem:[%s22176_s1 + $0x40] ss:$8 sps:$4 sm:$0xff]   ;;  %v17669_v2 = vld [vmem:[#allocation3 + $0x94] ss:$8 sps:$4 sm:$0xff]  }
 0x336   :  { %8620 = vmatprep.subr.bf16.mxu0 %v17600_v62  ;;  %7594 = vmatprep.mubr.bf16.mxu0 %v22187_v0  ;;  %v17672_v8 = vld [vmem:[%s22176_s1 + $0x54] ss:$8 sps:$4 sm:$0xff]   ;;  %v17667_v62 = vld [vmem:[#allocation3 + $0x90] ss:$8 sps:$4 sm:$0xff]  }
 0x338   :  { %4860 = vmatpush1.bf16.msra.mxu1 %v17595_v57  ;;  %v17670_v57 = vld [vmem:[%s22176_s1 + $0x50] ss:$8 sps:$4 sm:$0xff]  }
 0x339   :  { %8621 = vmatpush1.bf16.msra.mxu0 %v17598_v39  ;;  %4861 = vmatprep.subr.bf16.mxu1 %v17603_v38  ;;  %v17675_v39 = vld [vmem:[#allocation3 + $0xa4] ss:$8 sps:$4 sm:$0xff]  }
 0x33a   :  { %8622 = vmatprep.subr.bf16.mxu0 %v17606_v47  ;;  %v17678_v38 = vld [vmem:[%s22176_s1 + $0x64] ss:$8 sps:$4 sm:$0xff]  }
 0x33c   :  { %4862 = vmatpush1.bf16.msra.mxu1 %v17601_v26  ;;  %7595 = vmatmul.mubr.bf16.gmra.mrb[36].mxu0 %v7468_v10  ;;  %v17663_v10 = vld [vmem:[#allocation3 + $0x84] ss:$8 sps:$4 sm:$0xff]  }
 0x33d   :  { %8623 = vmatpush1.bf16.msra.mxu0 %v17604_v52  ;;  %4863 = vmatprep.subr.bf16.mxu1 %v17609_v50 }
 0x33e   :  { %8624 = vmatprep.subr.bf16.mxu0 %v17612_v43  ;;  %8650 = vmatprep.mubr.bf16.mxu0 %v22187_v0  ;;  %v4907_v43 = vpack.c.bf16 %v20176_v35, %v20176_v35 }
 0x340   :  { %4864 = vmatpush1.bf16.msra.mxu1 %v17607_v44  ;;  %v17676_v44 = vld [vmem:[%s22176_s1 + $0x60] ss:$8 sps:$4 sm:$0xff]  }
 0x341   :  { %8625 = vmatpush1.bf16.msra.mxu0 %v17610_v17  ;;  %5004 = vmatprep.subr.bf16.mxu1 %v17615_v41  ;;  %v17681_v17 = vld [vmem:[#allocation3 + $0xb4] ss:$8 sps:$4 sm:$0xff]  }
 0x342   :  { %8626 = vmatprep.subr.bf16.mxu0 %v17618_v15  ;;  %v17684_v15 = vld [vmem:[%s22176_s1 + $0x74] ss:$8 sps:$4 sm:$0xff]  }
 0x343   :  { %4882 = vmatmul.mubr.bf16.vlgmr.msra.gmra.mrb[16].mxu1 %v20214_v42  ;;  %v17625_v42 = vld [vmem:[#allocation3 + $0x220] ss:$8 sps:$4 sm:$0xff]  }
 0x344   :  { %5005 = vmatpush1.bf16.msra.mxu1 %v17613_v24  ;;  %4891 = vmatprep.mubr.bf16.mxu1 %v22187_v0 }
 0x345   :  { %8627 = vmatpush1.bf16.msra.mxu0 %v17616_v51  ;;  %5006 = vmatprep.subr.bf16.mxu1 %v17621_v46  ;;  %v17682_v51 = vld [vmem:[%s22176_s1 + $0x70] ss:$8 sps:$4 sm:$0xff]   ;;  %v17687_v46 = vld [vmem:[#allocation3 + $0xc4] ss:$8 sps:$4 sm:$0xff]  }
 0x346   :  { %8628 = vmatprep.subr.bf16.mxu0 %v17624_v54  ;;  %v17690_v54 = vld [vmem:[%s22176_s1 + $0x104] ss:$8 sps:$4 sm:$0xff]  }
 0x348   :  { %5007 = vmatpush1.bf16.msra.mxu1 %v17619_v55 }
 0x349   :  { %8629 = vmatpush1.bf16.msra.mxu0 %v17622_v27  ;;  %5008 = vmatprep.subr.bf16.mxu1 %v17627_v13 }
 0x34a   :  { %8630 = vmatprep.subr.bf16.mxu0 %v17630_v61 }
 0x34b   :  { %4892 = vmatmul.mubr.bf16.gmra.mrb[20].mxu1 %v20195_v19  ;;  %v17642_v19 = vld [vmem:[%s22176_s1 + $0x4] ss:$8 sps:$4 sm:$0xff]  }
 0x34c   :  { %5009 = vmatpush1.bf16.msra.mxu1 %v17625_v42  ;;  %5036 = vmatprep.mubr.bf16.mxu1 %v22187_v0  ;;  %v17685_v42 = vld [vmem:[#allocation3 + $0xc0] ss:$8 sps:$4 sm:$0xff]  }
 0x34d   :  { %8631 = vmatpush1.bf16.msra.mxu0 %v17628_v63  ;;  %5010 = vmatprep.subr.bf16.mxu1 %v17633_v5 }
 0x34e   :  { %8632 = vmatprep.subr.bf16.mxu0 %v17636_v6  ;;  %v17693_v6 = vld [vmem:[#allocation3 + $0xd4] ss:$8 sps:$4 sm:$0xff]  }
 0x350   :  { %5011 = vmatpush1.bf16.msra.mxu1 %v17631_v11 }
 0x351   :  { %8633 = vmatpush1.bf16.msra.mxu0 %v17634_v14  ;;  %5012 = vmatprep.subr.bf16.mxu1 %v17639_v16  ;;  %v17696_v14 = vld [vmem:[%s22176_s1 + $0x114] ss:$8 sps:$4 sm:$0xff]  }
 0x352   :  { %8751 = vmatprep.subr.bf16.mxu0 %v17642_v19  ;;  %v17691_v19 = vld [vmem:[#allocation3 + $0xd0] ss:$8 sps:$4 sm:$0xff]  }
 0x354   :  { %5013 = vmatpush1.bf16.msra.mxu1 %v17637_v20  ;;  %8651 = vmatmul.mubr.bf16.vlgmr.msra.gmra.mrb[40].mxu0 %v8532_v4  ;;  %v17694_v4 = vld [vmem:[%s22176_s1 + $0x110] ss:$8 sps:$4 sm:$0xff]  }
 0x355   :  { %8752 = vmatpush1.bf16.msra.mxu0 %v17640_v3  ;;  %5014 = vmatprep.subr.bf16.mxu1 %v17645_v22  ;;  %v17699_v22 = vld [vmem:[#allocation3 + $0xe4] ss:$8 sps:$4 sm:$0xff]  }
 0x356   :  { %8753 = vmatprep.subr.bf16.mxu0 %v17648_v25  ;;  %8660 = vmatprep.mubr.bf16.mxu0 %v22187_v0 }
 0x358   :  { %5015 = vmatpush1.bf16.msra.mxu1 %v17643_v28 }
 0x359   :  { %8754 = vmatpush1.bf16.msra.mxu0 %v17646_v12  ;;  %5016 = vmatprep.subr.bf16.mxu1 %v17651_v29  ;;  %v17702_v12 = vld [vmem:[%s22176_s1 + $0x124] ss:$8 sps:$4 sm:$0xff]  }
 0x35a   :  { %8755 = vmatprep.subr.bf16.mxu0 %v17654_v56 }
 0x35c   :  { %5017 = vmatpush1.bf16.msra.mxu1 %v17649_v31  ;;  %8661 = vmatmul.mubr.bf16.gmra.mrb[44].mxu0 %v8535_v60 }
 0x35d   :  { %8756 = vmatpush1.bf16.msra.mxu0 %v17652_v36  ;;  %5018 = vmatprep.subr.bf16.mxu1 %v17657_v40  ;;  %v17697_v36 = vld [vmem:[#allocation3 + $0xe0] ss:$8 sps:$4 sm:$0xff]  }
 0x35e   :  { %8757 = vmatprep.subr.bf16.mxu0 %v17660_v30  ;;  %8783 = vmatprep.mubr.bf16.mxu0 %v22187_v0  ;;  %v17700_v30 = vld [vmem:[%s22176_s1 + $0x120] ss:$8 sps:$4 sm:$0xff]  }
 0x360   :  { %5019 = vmatpush1.bf16.msra.mxu1 %v17655_v59  ;;  %v17705_v59 = vld [vmem:[#allocation3 + $0xf4] ss:$8 sps:$4 sm:$0xff]  }
 0x361   :  { %8758 = vmatpush1.bf16.msra.mxu0 %v17658_v18  ;;  %6089 = vmatprep.subr.bf16.mxu1 %v17663_v10 }
 0x362   :  { %8759 = vmatprep.subr.bf16.mxu0 %v17666_v48 }
 0x363   :  { %5037 = vmatmul.mubr.bf16.vlgmr.msra.gmra.mrb[16].mxu1 %v20193_v49  ;;  %v17673_v49 = vld [vmem:[#allocation3 + $0xa0] ss:$8 sps:$4 sm:$0xff]  }
 0x364   :  { %6090 = vmatpush1.bf16.msra.mxu1 %v17661_v53  ;;  %5046 = vmatprep.mubr.bf16.mxu1 %v22187_v0  ;;  %v17708_v53 = vld [vmem:[%s22176_s1 + $0x134] ss:$8 sps:$4 sm:$0xff]  }
 0x365   :  { %8760 = vmatpush1.bf16.msra.mxu0 %v17664_v33  ;;  %6091 = vmatprep.subr.bf16.mxu1 %v17669_v2 }
 0x366   :  { %8761 = vmatprep.subr.bf16.mxu0 %v17672_v8 }
 0x367   :  { %v5903_v47 = vpop.f32.mrb[24].mxu0 }
 0x368   :  { %6092 = vmatpush1.bf16.msra.mxu1 %v17667_v62  ;;  %v5905_v26 = vpop.f32.mrb[25].mxu0  ;;  %v17703_v62 = vld [vmem:[#allocation3 + $0xf0] ss:$8 sps:$4 sm:$0xff]  }
 0x369   :  { %v5930_v52 = vmax.f32 %v5903_v47, %v5905_v26  ;;  %v5907_v50 = vpop.f32.mrb[26].mxu0  ;;  %8762 = vmatpush1.bf16.msra.mxu0 %v17670_v57  ;;  %6093 = vmatprep.subr.bf16.mxu1 %v17675_v39  ;;  %v17706_v57 = vld [vmem:[%s22176_s1 + $0x130] ss:$8 sps:$4 sm:$0xff]   ;;  %v17711_v39 = vld [vmem:[#allocation3 + $0x4] ss:$8 sps:$4 sm:$0xff]  }
 0x36a   :  { %v5909_v41 = vpop.f32.mrb[27].mxu0  ;;  %8763 = vmatprep.subr.bf16.mxu0 %v17678_v38  ;;  %v17714_v26 = vld [vmem:[%s22176_s1 + $0x144] ss:$8 sps:$4 sm:$0xff]  }
 0x36b   :  { %5047 = vmatmul.mubr.bf16.gmra.mrb[20].mxu1 %v4907_v43  ;;  %v5931_v9 = vmax.f32 %v5907_v50, %v5909_v41  ;;  %v5938_v24 = vrot.slane %v5930_v52, 1 }
 0x36c   :  { %6094 = vmatpush1.bf16.msra.mxu1 %v17673_v49  ;;  %6121 = vmatprep.mubr.bf16.mxu1 %v22187_v0 }
 0x36d   :  { %v5939_v35 = vrot.slane %v5931_v9, 1  ;;  %8764 = vmatpush1.bf16.msra.mxu0 %v17676_v44  ;;  %6095 = vmatprep.subr.bf16.mxu1 %v17681_v17  ;;  %v17709_v44 = vld [vmem:[#allocation3] ss:$8 sps:$4 sm:$0xff]  }
 0x36e   :  { %8765 = vmatprep.subr.bf16.mxu0 %v17684_v15 }
 0x36f   :  { %v5940_v55 = vsel %vm395_vm0, %v5938_v24, %v5939_v35  ;;  %v5913_v27 = vpop.f32.mrb[28].mxu0 }
 0x370   :  { %v5949_v13 = vmax.f32 %v5930_v52, %v5940_v55  ;;  %6096 = vmatpush1.bf16.msra.mxu1 %v17679_v32  ;;  %v5915_v61 = vpop.f32.mrb[29].mxu0  ;;  %v17717_v32 = vld [vmem:[#allocation3 + $0x14] ss:$8 sps:$4 sm:$0xff]   ;;  %v17718_v55 = vld [vmem:[%s22176_s1 + $0x150] ss:$8 sps:$4 sm:$0xff]  }
 0x371   :  { %v5932_v63 = vmax.f32 %v5913_v27, %v5915_v61  ;;  %v5917_v5 = vpop.f32.mrb[30].mxu0  ;;  %8766 = vmatpush1.bf16.msra.mxu0 %v17682_v51  ;;  %6097 = vmatprep.subr.bf16.mxu1 %v17687_v46  ;;  %v17723_v27 = vld [vmem:[#allocation3 + $0x24] ss:$8 sps:$4 sm:$0xff]  }
 0x372   :  { %v5919_v11 = vpop.f32.mrb[31].mxu0  ;;  %8907 = vmatprep.subr.bf16.mxu0 %v17690_v54  ;;  %v5960_v28 = vadd.f32 %v15070_v21, %v5949_v13  ;;  %v17715_v54 = vld [vmem:[#allocation3 + $0x10] ss:$8 sps:$4 sm:$0xff]   ;;  %v17726_v13 = vld [vmem:[%s22176_s1 + $0x164] ss:$8 sps:$4 sm:$0xff]   ;;  %v15617_v61 = vld [vmem:[%s22175_s0 + $0xd0] sm:$0xff] }
 0x373   :  { %v5941_v16 = vrot.slane %v5932_v63, 1  ;;  %v5933_v7 = vmax.f32 %v5917_v5, %v5919_v11  ;;  %v17724_v5 = vld [vmem:[%s22176_s1 + $0x160] ss:$8 sps:$4 sm:$0xff]  }
 0x374   :  { %6098 = vmatpush1.bf16.msra.mxu1 %v17685_v42  ;;  %8784 = vmatmul.mubr.bf16.vlgmr.msra.gmra.mrb[40].mxu0 %v20423_v34  ;;  %v5964_v10 = vmax.f32 %v5960_v28, 0.0  ;;  %v15618_v42 = vld [vmem:[%s22175_s0 + $0xd8] sm:$0xff] }
 0x375   :  { %v5942_v20 = vsel %vm395_vm0, %v5939_v35, %v5941_v16  ;;  %v5943_v3 = vrot.slane %v5933_v7, 1  ;;  %8908 = vmatpush1.bf16.msra.mxu0 %v17688_v37  ;;  %6099 = vmatprep.subr.bf16.mxu1 %v17693_v6  ;;  %v17720_v35 = vld [vmem:[%s22176_s1 + $0x154] ss:$8 sps:$4 sm:$0xff]   ;;  %v20601_v11 = vpack.c.bf16 %v15618_v42, %v15617_v61  ;;  %v17757_v42 = vld [vmem:[#allocation3 + $0x100] ss:$8 sps:$4 sm:$0xff]  }
 0x376   :  { %v5950_v25 = vmax.f32 %v5931_v9, %v5942_v20  ;;  %8909 = vmatprep.subr.bf16.mxu0 %v17696_v14  ;;  %8793 = vmatprep.mubr.bf16.mxu0 %v22187_v0  ;;  %v17712_v9 = vld [vmem:[%s22176_s1 + $0x140] ss:$8 sps:$4 sm:$0xff]   ;;  %v17729_v37 = vld [vmem:[#allocation3 + $0x34] ss:$8 sps:$4 sm:$0xff]  }
 0x377   :  { %v5944_v29 = vsel %vm395_vm0, %v5941_v16, %v5943_v3  ;;  %v5952_v56 = vmax.f32 %v5933_v7, %v5943_v3  ;;  %v17732_v6 = vld [vmem:[%s22176_s1 + $0x174] ss:$8 sps:$4 sm:$0xff]   ;;  %v17727_v14 = vld [vmem:[#allocation3 + $0x30] ss:$8 sps:$4 sm:$0xff]   ;;  %v17738_v20 = vld [vmem:[%s22176_s1 + $0x184] ss:$8 sps:$4 sm:$0xff]  }
 0x378   :  { %v5951_v31 = vmax.f32 %v5932_v63, %v5944_v29  ;;  %v5961_v60 = vadd.f32 %v15070_v21, %v5950_v25  ;;  %6100 = vmatpush1.bf16.msra.mxu1 %v17691_v19  ;;  %v17721_v63 = vld [vmem:[#allocation3 + $0x20] ss:$8 sps:$4 sm:$0xff]   ;;  %v17735_v7 = vld [vmem:[#allocation3 + $0x44] ss:$8 sps:$4 sm:$0xff]   ;;  %v8823_v19 = vrot.slane %v20235_v58, 1  ;;  %v10212_v3 = vshll.u32 %v20601_v11, 16 }
 0x379   :  { %v5963_v40 = vadd.f32 %v15070_v21, %v5952_v56  ;;  %8910 = vmatpush1.bf16.msra.mxu0 %v17694_v4  ;;  %6101 = vmatprep.subr.bf16.mxu1 %v17699_v22  ;;  %v17730_v16 = vld [vmem:[%s22176_s1 + $0x170] ss:$8 sps:$4 sm:$0xff]   ;;  %v10216_v4 = vshrl.u32 %v20601_v11, 16  ;;  %v17741_v56 = vld [vmem:[#allocation3 + $0x54] ss:$8 sps:$4 sm:$0xff]  }
 0x37a   :  { %v5962_v18 = vadd.f32 %v15070_v21, %v5951_v31  ;;  %v5965_v48 = vmax.f32 %v5961_v60, 0.0  ;;  %8911 = vmatprep.subr.bf16.mxu0 %v17702_v12  ;;  %v8822_v21 = vrot.slane %v20423_v34, 1  ;;  %v17733_v22 = vld [vmem:[#allocation3 + $0x40] ss:$8 sps:$4 sm:$0xff]   ;;  %v10671_v28 = vrot.slane %v10212_v3, 2 }
 0x37b   :  { %v20542_v33 = vmax.f32 %v5963_v40, 0.0  ;;  %v10670_v25 = vrot.slane %v10216_v4, 1  ;;  %v17736_v12 = vld [vmem:[%s22176_s1 + $0x180] ss:$8 sps:$4 sm:$0xff]   ;;  %v17744_v31 = vld [vmem:[%s22176_s1 + $0x194] ss:$8 sps:$4 sm:$0xff]  }
 0x37c   :  { %v5966_v2 = vmax.f32 %v5962_v18, 0.0  ;;  %v20544_v8 = vpack.c.bf16 %v5965_v48, %v5964_v10  ;;  %6102 = vmatpush1.bf16.msra.mxu1 %v17697_v36  ;;  %8794 = vmatmul.mubr.bf16.gmra.mrb[44].mxu0 %v20235_v58  ;;  %v8824_v29 = vsel %vm395_vm0, %v8822_v21, %v8823_v19  ;;  %v17739_v36 = vld [vmem:[#allocation3 + $0x50] ss:$8 sps:$4 sm:$0xff]   ;;  %v17750_v18 = vld [vmem:[%s22176_s1 + $0x1a4] ss:$8 sps:$4 sm:$0xff]  }
 0x37d   :  { %8912 = vmatpush1.bf16.msra.mxu0 %v17700_v30  ;;  %6103 = vmatprep.subr.bf16.mxu1 %v17705_v59  ;;  %v20625_v60 = vor.u32 %v10671_v28, %v10670_v25  ;;  %v17742_v40 = vld [vmem:[%s22176_s1 + $0x190] ss:$8 sps:$4 sm:$0xff]   ;;  %v17747_v30 = vld [vmem:[#allocation3 + $0x64] ss:$8 sps:$4 sm:$0xff]   ;;  %v3412_v28 = vld [vmem:[%s22179_s4] sm:$0x1] }
 0x37e   :  { %v6429_v38 = vpack.c.bf16 %v20542_v33, %v5966_v2  ;;  %8913 = vmatprep.subr.bf16.mxu0 %v17708_v53  ;;  %v20551_v47 = vpack.c.bf16 %v5966_v2, %v5966_v2  ;;  %8939 = vmatprep.mubr.bf16.mxu0 %v22187_v0  ;;  %v6004_v49 = vrot.slane %v20544_v8, 1  ;;  %v6287_v52 = vrot.slane %v20544_v8, 2 }
 0x37f   :  { %v20559_v50 = vpack.c.bf16 %v5966_v2, %v5965_v48  ;;  %v6447_v15 = vrot.slane %v20544_v8, 3  ;;  %v17745_v2 = vld [vmem:[#allocation3 + $0x60] ss:$8 sps:$4 sm:$0xff]  }
 0x380   :  { %v20561_v43 = vrot.slane %v6429_v38, 3  ;;  %6104 = vmatpush1.bf16.msra.mxu1 %v17703_v62  ;;  %v6005_v17 = vrot.slane %v20551_v47, 1  ;;  %v6288_v41 = vrot.slane %v20551_v47, 2 }
 0x381   :  { %8914 = vmatpush1.bf16.msra.mxu0 %v17706_v57  ;;  %6220 = vmatprep.subr.bf16.mxu1 %v17711_v39  ;;  %v17748_v57 = vld [vmem:[%s22176_s1 + $0x1a0] ss:$8 sps:$4 sm:$0xff]   ;;  %v17753_v39 = vld [vmem:[#allocation3 + $0x74] ss:$8 sps:$4 sm:$0xff]  }
 0x382   :  { %v6006_v24 = vsel %vm395_vm0, %v6004_v49, %v6005_v17  ;;  %8915 = vmatprep.subr.bf16.mxu0 %v17714_v26  ;;  %v20576_v51 = vsel %vm727_vm3, %v6287_v52, %v6288_v41  ;;  %v20580_v46 = vsel %vm1395_vm4, %v6447_v15, %v20561_v43  ;;  %v17756_v26 = vld [vmem:[%s22176_s1 + $0x1b4] ss:$8 sps:$4 sm:$0xff]   ;;  %v17754_v15 = vld [vmem:[%s22176_s1 + $0x1b0] ss:$8 sps:$4 sm:$0xff]  }
 0x383   :  { %6122 = vmatmul.mubr.bf16.vlgmr.msra.gmra.mrb[24].mxu1 %v6006_v24  ;;  %v14689_v24 = vld [vmem:[%s22179_s4] ss:$0 sm:$0xff] }
 0x384   :  { %6221 = vmatpush1.bf16.msra.mxu1 %v17709_v44  ;;  %6131 = vmatprep.mubr.bf16.mxu1 %v22187_v0  ;;  %v17751_v44 = vld [vmem:[#allocation3 + $0x70] ss:$8 sps:$4 sm:$0xff]  }
 0x385   :  { %8916 = vmatpush1.bf16.msra.mxu0 %v17712_v9  ;;  %6222 = vmatprep.subr.bf16.mxu1 %v17717_v32  ;;  %v17759_v9 = vld [vmem:[#allocation3 + $0x104] ss:$8 sps:$4 sm:$0xff]  }
 0x386   :  { %8917 = vmatprep.subr.bf16.mxu0 %v17720_v35 }
 0x388   :  { %6223 = vmatpush1.bf16.msra.mxu1 %v17715_v54  ;;  %v17762_v54 = vld [vmem:[%s22176_s1 + $0x1c4] ss:$8 sps:$4 sm:$0xff]  }
 0x389   :  { %8918 = vmatpush1.bf16.msra.mxu0 %v17718_v55  ;;  %6224 = vmatprep.subr.bf16.mxu1 %v17723_v27 }
 0x38a   :  { %8919 = vmatprep.subr.bf16.mxu0 %v17726_v13 }
 0x38b   :  { %6132 = vmatmul.mubr.bf16.gmra.mrb[28].mxu1 %v6005_v17  ;;  %v3395_v17 = vld [vmem:[%s22179_s4] sm:$0x1] }
 0x38c   :  { %6225 = vmatpush1.bf16.msra.mxu1 %v17721_v63  ;;  %6252 = vmatprep.mubr.bf16.mxu1 %v22187_v0 }
 0x38d   :  { %8920 = vmatpush1.bf16.msra.mxu0 %v17724_v5  ;;  %6226 = vmatprep.subr.bf16.mxu1 %v17729_v37 }
 0x38e   :  { %8921 = vmatprep.subr.bf16.mxu0 %v17732_v6  ;;  %v17760_v6 = vld [vmem:[%s22176_s1 + $0x1c0] ss:$8 sps:$4 sm:$0xff]  }
 0x390   :  { %6227 = vmatpush1.bf16.msra.mxu1 %v17727_v14  ;;  %v17765_v14 = vld [vmem:[#allocation3 + $0x114] ss:$8 sps:$4 sm:$0xff]  }
 0x391   :  { %8922 = vmatpush1.bf16.msra.mxu0 %v17730_v16  ;;  %6228 = vmatprep.subr.bf16.mxu1 %v17735_v7  ;;  %v17768_v7 = vld [vmem:[%s22176_s1 + $0x1d4] ss:$8 sps:$4 sm:$0xff]  }
 0x392   :  { %9073 = vmatprep.subr.bf16.mxu0 %v17738_v20  ;;  %v3429_v20 = vld [vmem:[%s22179_s4] sm:$0x1] }
 0x394   :  { %6229 = vmatpush1.bf16.msra.mxu1 %v17733_v22  ;;  %8940 = vmatmul.mubr.bf16.vlgmr.msra.gmra.mrb[40].mxu0 %v8824_v29 }
 0x395   :  { %9074 = vmatpush1.bf16.msra.mxu0 %v17736_v12  ;;  %6230 = vmatprep.subr.bf16.mxu1 %v17741_v56  ;;  %v17763_v12 = vld [vmem:[#allocation3 + $0x110] ss:$8 sps:$4 sm:$0xff]  }
 0x396   :  { %v3355_v59 = vpop.f32.mrb[8].mxu1  ;;  %9075 = vmatprep.subr.bf16.mxu0 %v17744_v31  ;;  %8949 = vmatprep.mubr.bf16.mxu0 %v22187_v0  ;;  %v17771_v31 = vld [vmem:[#allocation3 + $0x124] ss:$8 sps:$4 sm:$0xff]  }
 0x397   :  { %v3357_v10 = vpop.f32.mrb[9].mxu1 }
 0x398   :  { %v3378_v48 = vmax.f32 %v3355_v59, %v3357_v10  ;;  %v3359_v53 = vpop.f32.mrb[10].mxu1  ;;  %6231 = vmatpush1.bf16.msra.mxu1 %v17739_v36  ;;  %v17769_v10 = vld [vmem:[#allocation3 + $0x120] ss:$8 sps:$4 sm:$0xff]  }
 0x399   :  { %v3361_v62 = vpop.f32.mrb[11].mxu1  ;;  %9076 = vmatpush1.bf16.msra.mxu0 %v17742_v40  ;;  %6232 = vmatprep.subr.bf16.mxu1 %v17747_v30  ;;  %v17774_v40 = vld [vmem:[%s22176_s1 + $0x1e4] ss:$8 sps:$4 sm:$0xff]  }
 0x39a   :  { %v3379_v38 = vmax.f32 %v3359_v53, %v3361_v62  ;;  %9077 = vmatprep.subr.bf16.mxu0 %v17750_v18  ;;  %v3384_v49 = vrot.slane %v3378_v48, 2  ;;  %v17777_v62 = vld [vmem:[#allocation3 + $0x134] ss:$8 sps:$4 sm:$0xff]  }
 0x39c   :  { %v3385_v52 = vrot.slane %v3379_v38, 2  ;;  %6233 = vmatpush1.bf16.msra.mxu1 %v17745_v2  ;;  %8950 = vmatmul.mubr.bf16.gmra.mrb[44].mxu0 %v8823_v19 }
 0x39d   :  { %9078 = vmatpush1.bf16.msra.mxu0 %v17748_v57  ;;  %6234 = vmatprep.subr.bf16.mxu1 %v17753_v39  ;;  %v8984_v57 = vrot.slane %v8522_v23, 1  ;;  %v8985_v39 = vrot.slane %v8524_v1, 2  ;;  %v17778_v1 = vld [vmem:[%s22176_s1 + $0x1f0] ss:$8 sps:$4 sm:$0xff]   ;;  %v17783_v23 = vld [vmem:[#allocation3 + $0x144] ss:$8 sps:$4 sm:$0xff]  }
 0x39e   :  { %v3386_v32 = vsel %vm727_vm3, %v3384_v49, %v3385_v52  ;;  %v3365_v35 = vpop.f32.mrb[12].mxu1  ;;  %9079 = vmatprep.subr.bf16.mxu0 %v17756_v26  ;;  %9105 = vmatprep.mubr.bf16.mxu0 %v22187_v0  ;;  %v17775_v49 = vld [vmem:[#allocation3 + $0x130] ss:$8 sps:$4 sm:$0xff]  }
 0x39f   :  { %v3392_v55 = vmax.f32 %v3378_v48, %v3386_v32  ;;  %v3367_v27 = vpop.f32.mrb[13].mxu1  ;;  %v17772_v48 = vld [vmem:[%s22176_s1 + $0x1e0] ss:$8 sps:$4 sm:$0xff]   ;;  %v17789_v32 = vld [vmem:[#allocation3 + $0x154] ss:$8 sps:$4 sm:$0xff]  }
 0x3a0   :  { %v3380_v13 = vmax.f32 %v3365_v35, %v3367_v27  ;;  %v3369_v61 = vpop.f32.mrb[14].mxu1  ;;  %6235 = vmatpush1.bf16.msra.mxu1 %v17751_v44  ;;  %v17786_v44 = vld [vmem:[%s22176_s1 + $0x204] ss:$8 sps:$4 sm:$0xff]   ;;  %v17787_v35 = vld [vmem:[#allocation3 + $0x150] ss:$8 sps:$4 sm:$0xff]  }
 0x3a1   :  { %v3396_v63 = vadd.f32 %v3395_v17, %v3392_v55  ;;  %v3406_v5 = vadd.f32 %v14689_v24, %v3392_v55  ;;  %v3370_v37 = vpop.f32.mrb[15].mxu1  ;;  %9080 = vmatpush1.bf16.msra.mxu0 %v17754_v15  ;;  %6372 = vmatprep.subr.bf16.mxu1 %v17759_v9  ;;  %v17781_v17 = vld [vmem:[#allocation3 + $0x140] ss:$8 sps:$4 sm:$0xff]   ;;  %v17795_v55 = vld [vmem:[#allocation3 + $0x164] ss:$8 sps:$4 sm:$0xff]  }
 0x3a2   :  { %v3387_v16 = vrot.slane %v3380_v13, 2  ;;  %9081 = vmatprep.subr.bf16.mxu0 %v17762_v54  ;;  %v17784_v15 = vld [vmem:[%s22176_s1 + $0x200] ss:$8 sps:$4 sm:$0xff]   ;;  %v17790_v54 = vld [vmem:[%s22176_s1 + $0x210] ss:$8 sps:$4 sm:$0xff]  }
 0x3a3   :  { %v3397_v21 = vmax.f32 %v3396_v63, 0.0  ;;  %v3407_v19 = vmax.f32 %v3406_v5, 0.0  ;;  %6253 = vmatmul.mubr.bf16.vlgmr.msra.gmra.mrb[24].mxu1 %v20544_v8  ;;  %v17766_v8 = vld [vmem:[%s22176_s1 + $0x1d0] ss:$8 sps:$4 sm:$0xff]   ;;  %v17798_v27 = vld [vmem:[%s22176_s1 + $0x224] ss:$8 sps:$4 sm:$0xff]  }
 0x3a4   :  { %v3388_v22 = vsel %vm727_vm3, %v3385_v52, %v3387_v16  ;;  %v3394_v25 = vmax.f32 %v3380_v13, %v3387_v16  ;;  %6373 = vmatpush1.bf16.msra.mxu1 %v17757_v42  ;;  %6262 = vmatprep.mubr.bf16.mxu1 %v22187_v0  ;;  %v8986_v52 = vor.u32 %v8985_v39, %v8984_v57  ;;  %v17793_v13 = vld [vmem:[#allocation3 + $0x160] ss:$8 sps:$4 sm:$0xff]   ;;  %v17801_v42 = vld [vmem:[#allocation3 + $0x174] ss:$8 sps:$4 sm:$0xff]   ;;  %v17799_v5 = vld [vmem:[#allocation3 + $0x170] ss:$8 sps:$4 sm:$0xff]  }
 0x3a5   :  { %3398 = vst [vmem:[#allocation2 + $0x1] sm:$0x1] %v3397_v21  ;;  %v3409_v29 = vrot.slane %v3407_v19, 4  ;;  %v3393_v56 = vmax.f32 %v3379_v38, %v3388_v22  ;;  %9082 = vmatpush1.bf16.msra.mxu0 %v17760_v6  ;;  %6374 = vmatprep.subr.bf16.mxu1 %v17765_v14  ;;  %v17780_v38 = vld [vmem:[%s22176_s1 + $0x1f4] ss:$8 sps:$4 sm:$0xff]  }
 0x3a6   :  { %v3430_v36 = vadd.f32 %v3429_v20, %v3394_v25  ;;  %9083 = vmatprep.subr.bf16.mxu0 %v17768_v7  ;;  %v8990_v9 = vsel %vm559_vm1, %v8986_v52, %v20259_v45  ;;  %v17796_v61 = vld [vmem:[%s22176_s1 + $0x220] ss:$8 sps:$4 sm:$0xff]   ;;  %v17804_v63 = vld [vmem:[%s22176_s1 + $0x234] ss:$8 sps:$4 sm:$0xff]   ;;  %v17802_v37 = vld [vmem:[%s22176_s1 + $0x230] ss:$8 sps:$4 sm:$0xff]  }
 0x3a7   :  { %3411 = vst [vmem:[#allocation2 + $0x9] sm:$0x1] %v3409_v29  ;;  %v3413_v30 = vadd.f32 %v3412_v28, %v3393_v56  ;;  %v3423_v59 = vadd.f32 %v14689_v24, %v3393_v56  ;;  %v17792_v24 = vld [vmem:[%s22176_s1 + $0x214] ss:$8 sps:$4 sm:$0xff]   ;;  %v17810_v14 = vld [vmem:[%s22176_s1 + $0x244] ss:$8 sps:$4 sm:$0xff]  }
 0x3a8   :  { %v3431_v18 = vmax.f32 %v3430_v36, 0.0  ;;  %6375 = vmatpush1.bf16.msra.mxu1 %v17763_v12  ;;  %v17807_v6 = vld [vmem:[#allocation3 + $0x184] ss:$8 sps:$4 sm:$0xff]   ;;  %v17805_v16 = vld [vmem:[#allocation3 + $0x180] ss:$8 sps:$4 sm:$0xff]   ;;  %v9150_v36 = vrot.slane %v20423_v34, 2 }
 0x3a9   :  { %v3414_v53 = vmax.f32 %v3413_v30, 0.0  ;;  %v3424_v2 = vmax.f32 %v3423_v59, 0.0  ;;  %9084 = vmatpush1.bf16.msra.mxu0 %v17766_v8  ;;  %6376 = vmatprep.subr.bf16.mxu1 %v17771_v31  ;;  %v17813_v7 = vld [vmem:[#allocation3 + $0x194] ss:$8 sps:$4 sm:$0xff]   ;;  %v17811_v19 = vld [vmem:[#allocation3 + $0x190] ss:$8 sps:$4 sm:$0xff]  }
 0x3aa   :  { %3432 = vst [vmem:[#allocation2 + $0x21] sm:$0x1] %v3431_v18  ;;  %9085 = vmatprep.subr.bf16.mxu0 %v17774_v40  ;;  %v17816_v21 = vld [vmem:[%s22176_s1 + $0x254] ss:$8 sps:$4 sm:$0xff]   ;;  %v17814_v20 = vld [vmem:[%s22176_s1 + $0x250] ss:$8 sps:$4 sm:$0xff]  }
 0x3ab   :  { %3415 = vst [vmem:[#allocation2 + $0x11] sm:$0x1] %v3414_v53  ;;  %v3426_v26 = vrot.slane %v3424_v2, 4  ;;  %6263 = vmatmul.mubr.bf16.gmra.mrb[28].mxu1 %v20551_v47  ;;  %v17819_v22 = vld [vmem:[#allocation3 + $0x1a4] ss:$8 sps:$4 sm:$0xff]   ;;  %v9151_v40 = vrot.slane %v20235_v58, 2 }
 0x3ac   :  { %6377 = vmatpush1.bf16.msra.mxu1 %v17769_v10  ;;  %6404 = vmatprep.mubr.bf16.mxu1 %v22187_v0  ;;  %v17822_v25 = vld [vmem:[%s22176_s1 + $0x264] ss:$8 sps:$4 sm:$0xff]   ;;  %v17817_v28 = vld [vmem:[#allocation3 + $0x1a0] ss:$8 sps:$4 sm:$0xff]   ;;  %v17828_v29 = vld [vmem:[%s22176_s1 + $0x274] ss:$8 sps:$4 sm:$0xff]  }
 0x3ad   :  { %3428 = vst [vmem:[#allocation2 + $0x19] sm:$0x1] %v3426_v26  ;;  %9086 = vmatpush1.bf16.msra.mxu0 %v17772_v48  ;;  %6378 = vmatprep.subr.bf16.mxu1 %v17777_v62  ;;  %v17825_v12 = vld [vmem:[#allocation3 + $0x1b4] ss:$8 sps:$4 sm:$0xff]   ;;  %v17823_v56 = vld [vmem:[#allocation3 + $0x1b0] ss:$8 sps:$4 sm:$0xff]   ;;  %v9152_v30 = vsel %vm727_vm3, %v9150_v36, %v9151_v40 }
 0x3ae   :  { %9087 = vmatprep.subr.bf16.mxu0 %v17780_v38  ;;  %v17826_v8 = vld [vmem:[%s22176_s1 + $0x270] ss:$8 sps:$4 sm:$0xff]   ;;  %v17831_v31 = vld [vmem:[#allocation3 + $0x1c4] ss:$8 sps:$4 sm:$0xff]   ;;  %v17832_v59 = vld [vmem:[%s22176_s1 + $0x80] ss:$8 sps:$4 sm:$0xff]  }
 0x3af   :  { %v17834_v47 = vld [vmem:[%s22176_s1 + $0x84] ss:$8 sps:$4 sm:$0xff]   ;;  %v17840_v58 = vld [vmem:[%s22176_s1 + $0x94] ss:$8 sps:$4 sm:$0xff]   ;;  %v17835_v34 = vld [vmem:[#allocation3 + $0x1d0] ss:$8 sps:$4 sm:$0xff]  }
 0x3b0   :  { %6379 = vmatpush1.bf16.msra.mxu1 %v17775_v49  ;;  %v17837_v18 = vld [vmem:[#allocation3 + $0x1d4] ss:$8 sps:$4 sm:$0xff]   ;;  %v17838_v10 = vld [vmem:[%s22176_s1 + $0x90] ss:$8 sps:$4 sm:$0xff]   ;;  %v17843_v48 = vld [vmem:[#allocation3 + $0x1e4] ss:$8 sps:$4 sm:$0xff]  }
 0x3b1   :  { %9088 = vmatpush1.bf16.msra.mxu0 %v17778_v1  ;;  %6380 = vmatprep.subr.bf16.mxu1 %v17783_v23  ;;  %v17846_v53 = vld [vmem:[%s22176_s1 + $0xa4] ss:$8 sps:$4 sm:$0xff]   ;;  %v17841_v2 = vld [vmem:[#allocation3 + $0x1e0] ss:$8 sps:$4 sm:$0xff]   ;;  %v17852_v39 = vld [vmem:[%s22176_s1 + $0xb4] ss:$8 sps:$4 sm:$0xff]  }
 0x3b2   :  { %9235 = vmatprep.subr.bf16.mxu0 %v17786_v44  ;;  %v17844_v62 = vld [vmem:[%s22176_s1 + $0xa0] ss:$8 sps:$4 sm:$0xff]   ;;  %v17849_v57 = vld [vmem:[#allocation3 + $0x1f4] ss:$8 sps:$4 sm:$0xff]   ;;  %v17850_v26 = vld [vmem:[%s22176_s1 + $0xb0] ss:$8 sps:$4 sm:$0xff]  }
 0x3b3   :  { %v17847_v38 = vld [vmem:[#allocation3 + $0x1f0] ss:$8 sps:$4 sm:$0xff]   ;;  %v17855_v49 = vld [vmem:[#allocation3 + $0x204] ss:$8 sps:$4 sm:$0xff]   ;;  %v17853_v44 = vld [vmem:[#allocation3 + $0x200] ss:$8 sps:$4 sm:$0xff]  }
 0x3b4   :  { %6381 = vmatpush1.bf16.msra.mxu1 %v17781_v17  ;;  %9106 = vmatmul.mubr.bf16.vlgmr.msra.gmra.mrb[40].mxu0 %v8990_v9  ;;  %v17858_v1 = vld [vmem:[%s22176_s1 + $0xc4] ss:$8 sps:$4 sm:$0xff]   ;;  %v17856_v17 = vld [vmem:[%s22176_s1 + $0xc0] ss:$8 sps:$4 sm:$0xff]  }
 0x3b5   :  { %9236 = vmatpush1.bf16.msra.mxu0 %v17784_v15  ;;  %6382 = vmatprep.subr.bf16.mxu1 %v17789_v32  ;;  %v15615_v23 = vld [vmem:[%s22175_s0 + $0xc0] sm:$0xff]  ;;  %v15616_v52 = vld [vmem:[%s22175_s0 + $0xc8] sm:$0xff]  ;;  %v17864_v32 = vld [vmem:[%s22176_s1 + $0xd4] ss:$8 sps:$4 sm:$0xff]  }
 0x3b6   :  { %9237 = vmatprep.subr.bf16.mxu0 %v17792_v24  ;;  %9115 = vmatprep.mubr.bf16.mxu0 %v22187_v0  ;;  %v17861_v15 = vld [vmem:[#allocation3 + $0x214] ss:$8 sps:$4 sm:$0xff]   ;;  %v20789_v9 = vpack.c.bf16 %v15616_v52, %v15615_v23  ;;  %v17859_v24 = vld [vmem:[#allocation3 + $0x210] ss:$8 sps:$4 sm:$0xff]  }
 0x3b7   :  { %v17895_v36 = vld [vmem:[#allocation3 + $0x270] ss:$8 sps:$4 sm:$0xff]  }
 0x3b8   :  { %6383 = vmatpush1.bf16.msra.mxu1 %v17787_v35  ;;  %v17862_v35 = vld [vmem:[%s22176_s1 + $0xd0] ss:$8 sps:$4 sm:$0xff]  }
 0x3b9   :  { %9238 = vmatpush1.bf16.msra.mxu0 %v17790_v54  ;;  %6384 = vmatprep.subr.bf16.mxu1 %v17795_v55  ;;  %v17867_v54 = vld [vmem:[#allocation3 + $0x224] ss:$8 sps:$4 sm:$0xff]   ;;  %v10207_v55 = vshll.u32 %v20789_v9, 16  ;;  %v17919_v52 = vld [vmem:[#allocation3 + $0xb0] ss:$8 sps:$4 sm:$0xff]  }
 0x3ba   :  { %9239 = vmatprep.subr.bf16.mxu0 %v17798_v27  ;;  %v17870_v27 = vld [vmem:[%s22176_s1 + $0xe4] ss:$8 sps:$4 sm:$0xff]  }
 0x3bc   :  { %6385 = vmatpush1.bf16.msra.mxu1 %v17793_v13  ;;  %9116 = vmatmul.mubr.bf16.gmra.mrb[44].mxu0 %v20259_v45  ;;  %v17808_v45 = vld [vmem:[%s22176_s1 + $0x240] ss:$8 sps:$4 sm:$0xff]  }
 0x3bd   :  { %9240 = vmatpush1.bf16.msra.mxu0 %v17796_v61  ;;  %6386 = vmatprep.subr.bf16.mxu1 %v17801_v42  ;;  %v17868_v13 = vld [vmem:[%s22176_s1 + $0xe0] ss:$8 sps:$4 sm:$0xff]   ;;  %v17873_v61 = vld [vmem:[#allocation3 + $0x234] ss:$8 sps:$4 sm:$0xff]   ;;  %v10205_v42 = vshrl.u32 %v20789_v9, 16 }
 0x3be   :  { %9241 = vmatprep.subr.bf16.mxu0 %v17804_v63  ;;  %9267 = vmatprep.mubr.bf16.mxu0 %v22187_v0  ;;  %v10209_v63 = vrot.slane %v10207_v55, 1 }
 0x3c0   :  { %6387 = vmatpush1.bf16.msra.mxu1 %v17799_v5  ;;  %v17876_v5 = vld [vmem:[%s22176_s1 + $0xf4] ss:$8 sps:$4 sm:$0xff]  }
 0x3c1   :  { %9242 = vmatpush1.bf16.msra.mxu0 %v17802_v37  ;;  %6532 = vmatprep.subr.bf16.mxu1 %v17807_v6  ;;  %v17871_v37 = vld [vmem:[#allocation3 + $0x230] ss:$8 sps:$4 sm:$0xff]  }
 0x3c2   :  { %9243 = vmatprep.subr.bf16.mxu0 %v17810_v14  ;;  %v17874_v6 = vld [vmem:[%s22176_s1 + $0xf0] ss:$8 sps:$4 sm:$0xff]   ;;  %v17879_v14 = vld [vmem:[#allocation3 + $0x244] ss:$8 sps:$4 sm:$0xff]  }
 0x3c3   :  { %6405 = vmatmul.mubr.bf16.vlgmr.msra.gmra.mrb[24].mxu1 %v20576_v51  ;;  %v17820_v51 = vld [vmem:[%s22176_s1 + $0x260] ss:$8 sps:$4 sm:$0xff]  }
 0x3c4   :  { %6533 = vmatpush1.bf16.msra.mxu1 %v17805_v16  ;;  %6414 = vmatprep.mubr.bf16.mxu1 %v22187_v0  ;;  %v10210_v16 = vor.u32 %v10209_v63, %v10205_v42  ;;  %v17928_v63 = vld [vmem:[%s22176_s1 + $0x100] ss:$8 sps:$4 sm:$0xff]  }
 0x3c5   :  { %9244 = vmatpush1.bf16.msra.mxu0 %v17808_v45  ;;  %6534 = vmatprep.subr.bf16.mxu1 %v17813_v7  ;;  %v10214_v45 = vrot.slane %v10212_v3, 1  ;;  %v17877_v7 = vld [vmem:[#allocation3 + $0x240] ss:$8 sps:$4 sm:$0xff]   ;;  %v17888_v3 = vld [vmem:[%s22176_s1 + $0x14] ss:$8 sps:$4 sm:$0xff]  }
 0x3c6   :  { %9245 = vmatprep.subr.bf16.mxu0 %v17816_v21  ;;  %v17880_v21 = vld [vmem:[%s22176_s1] ss:$8 sps:$4 sm:$0xff]  }
 0x3c8   :  { %6535 = vmatpush1.bf16.msra.mxu1 %v17811_v19  ;;  %v10215_v19 = vsel %vm92_vm2, %v10210_v16, %v10214_v45 }
 0x3c9   :  { %9246 = vmatpush1.bf16.msra.mxu0 %v17814_v20  ;;  %6536 = vmatprep.subr.bf16.mxu1 %v17819_v22  ;;  %v17885_v20 = vld [vmem:[#allocation3 + $0x254] ss:$8 sps:$4 sm:$0xff]   ;;  %v17883_v22 = vld [vmem:[#allocation3 + $0x250] ss:$8 sps:$4 sm:$0xff]  }
 0x3ca   :  { %9247 = vmatprep.subr.bf16.mxu0 %v17822_v25  ;;  %v17886_v25 = vld [vmem:[%s22176_s1 + $0x10] ss:$8 sps:$4 sm:$0xff]  }
 0x3cb   :  { %6415 = vmatmul.mubr.bf16.gmra.mrb[28].mxu1 %v6288_v41  ;;  %v17829_v41 = vld [vmem:[#allocation3 + $0x1c0] ss:$8 sps:$4 sm:$0xff]  }
 0x3cc   :  { %6537 = vmatpush1.bf16.msra.mxu1 %v17817_v28  ;;  %6564 = vmatprep.mubr.bf16.mxu1 %v22187_v0  ;;  %v17891_v28 = vld [vmem:[#allocation3 + $0x264] ss:$8 sps:$4 sm:$0xff]  }
 0x3cd   :  { %9248 = vmatpush1.bf16.msra.mxu0 %v17820_v51  ;;  %6538 = vmatprep.subr.bf16.mxu1 %v17825_v12  ;;  %v17894_v51 = vld [vmem:[%s22176_s1 + $0x24] ss:$8 sps:$4 sm:$0xff]   ;;  %v17889_v12 = vld [vmem:[#allocation3 + $0x260] ss:$8 sps:$4 sm:$0xff]  }
 0x3ce   :  { %9249 = vmatprep.subr.bf16.mxu0 %v17828_v29  ;;  %v10218_v29 = vor.u32 %v10216_v4, %v10214_v45  ;;  %v17898_v4 = vld [vmem:[%s22176_s1 + $0x30] ss:$8 sps:$4 sm:$0xff]   ;;  %v15301_v45 = vld [vmem:[%s22177_s2] ss:$0 sm:$0xff] }
 0x3d0   :  { %6539 = vmatpush1.bf16.msra.mxu1 %v17823_v56  ;;  %v17892_v56 = vld [vmem:[%s22176_s1 + $0x20] ss:$8 sps:$4 sm:$0xff]  }
 0x3d1   :  { %9250 = vmatpush1.bf16.msra.mxu0 %v17826_v8  ;;  %6540 = vmatprep.subr.bf16.mxu1 %v17831_v31  ;;  %v17897_v8 = vld [vmem:[#allocation3 + $0x274] ss:$8 sps:$4 sm:$0xff]  }
 0x3d2   :  { %10301 = vmatprep.subr.bf16.mxu0 %v17834_v47  ;;  %v17900_v31 = vld [vmem:[%s22176_s1 + $0x34] ss:$8 sps:$4 sm:$0xff]   ;;  %v17906_v47 = vld [vmem:[%s22176_s1 + $0x44] ss:$8 sps:$4 sm:$0xff]  }
 0x3d4   :  { %6541 = vmatpush1.bf16.msra.mxu1 %v17829_v41  ;;  %9268 = vmatmul.mubr.bf16.vlgmr.msra.gmra.mrb[40].mxu0 %v9152_v30  ;;  %v17901_v41 = vld [vmem:[#allocation3 + $0x80] ss:$8 sps:$4 sm:$0xff]  }
 0x3d5   :  { %10302 = vmatpush1.bf16.msra.mxu0 %v17832_v59  ;;  %6542 = vmatprep.subr.bf16.mxu1 %v17837_v18  ;;  %v17904_v30 = vld [vmem:[%s22176_s1 + $0x40] ss:$8 sps:$4 sm:$0xff]   ;;  %v17909_v59 = vld [vmem:[#allocation3 + $0x94] ss:$8 sps:$4 sm:$0xff]  }
 0x3d6   :  { %10303 = vmatprep.subr.bf16.mxu0 %v17840_v58  ;;  %9277 = vmatprep.mubr.bf16.mxu0 %v22187_v0  ;;  %v17912_v18 = vld [vmem:[%s22176_s1 + $0x54] ss:$8 sps:$4 sm:$0xff]   ;;  %v17907_v58 = vld [vmem:[#allocation3 + $0x90] ss:$8 sps:$4 sm:$0xff]  }
 0x3d8   :  { %6543 = vmatpush1.bf16.msra.mxu1 %v17835_v34  ;;  %v17910_v34 = vld [vmem:[%s22176_s1 + $0x50] ss:$8 sps:$4 sm:$0xff]  }
 0x3d9   :  { %10304 = vmatpush1.bf16.msra.mxu0 %v17838_v10  ;;  %6544 = vmatprep.subr.bf16.mxu1 %v17843_v48  ;;  %v17915_v10 = vld [vmem:[#allocation3 + $0xa4] ss:$8 sps:$4 sm:$0xff]  }
 0x3da   :  { %10305 = vmatprep.subr.bf16.mxu0 %v17846_v53  ;;  %v17918_v48 = vld [vmem:[%s22176_s1 + $0x64] ss:$8 sps:$4 sm:$0xff]  }
 0x3dc   :  { %6545 = vmatpush1.bf16.msra.mxu1 %v17841_v2  ;;  %9278 = vmatmul.mubr.bf16.gmra.mrb[44].mxu0 %v9151_v40  ;;  %v17903_v40 = vld [vmem:[#allocation3 + $0x84] ss:$8 sps:$4 sm:$0xff]  }
 0x3dd   :  { %10306 = vmatpush1.bf16.msra.mxu0 %v17844_v62  ;;  %6546 = vmatprep.subr.bf16.mxu1 %v17849_v57 }
 0x3de   :  { %10307 = vmatprep.subr.bf16.mxu0 %v17852_v39  ;;  %10333 = vmatprep.mubr.bf16.mxu0 %v22187_v0  ;;  %v6590_v39 = vpack.c.bf16 %v20542_v33, %v20542_v33 }
 0x3e0   :  { %6547 = vmatpush1.bf16.msra.mxu1 %v17847_v38  ;;  %v17916_v38 = vld [vmem:[%s22176_s1 + $0x60] ss:$8 sps:$4 sm:$0xff]  }
 0x3e1   :  { %10308 = vmatpush1.bf16.msra.mxu0 %v17850_v26  ;;  %6687 = vmatprep.subr.bf16.mxu1 %v17855_v49  ;;  %v17921_v26 = vld [vmem:[#allocation3 + $0xb4] ss:$8 sps:$4 sm:$0xff]  }
 0x3e2   :  { %10309 = vmatprep.subr.bf16.mxu0 %v17858_v1  ;;  %v17924_v1 = vld [vmem:[%s22176_s1 + $0x74] ss:$8 sps:$4 sm:$0xff]  }
 0x3e3   :  { %6565 = vmatmul.mubr.bf16.vlgmr.msra.gmra.mrb[24].mxu1 %v20580_v46  ;;  %v17865_v46 = vld [vmem:[#allocation3 + $0x220] ss:$8 sps:$4 sm:$0xff]  }
 0x3e4   :  { %6688 = vmatpush1.bf16.msra.mxu1 %v17853_v44  ;;  %6574 = vmatprep.mubr.bf16.mxu1 %v22187_v0 }
 0x3e5   :  { %10310 = vmatpush1.bf16.msra.mxu0 %v17856_v17  ;;  %6689 = vmatprep.subr.bf16.mxu1 %v17861_v15  ;;  %v17922_v17 = vld [vmem:[%s22176_s1 + $0x70] ss:$8 sps:$4 sm:$0xff]   ;;  %v17927_v15 = vld [vmem:[#allocation3 + $0xc4] ss:$8 sps:$4 sm:$0xff]  }
 0x3e6   :  { %10311 = vmatprep.subr.bf16.mxu0 %v17864_v32  ;;  %v17930_v32 = vld [vmem:[%s22176_s1 + $0x104] ss:$8 sps:$4 sm:$0xff]  }
 0x3e8   :  { %6690 = vmatpush1.bf16.msra.mxu1 %v17859_v24 }
 0x3e9   :  { %10312 = vmatpush1.bf16.msra.mxu0 %v17862_v35  ;;  %6691 = vmatprep.subr.bf16.mxu1 %v17867_v54 }
 0x3ea   :  { %10313 = vmatprep.subr.bf16.mxu0 %v17870_v27 }
 0x3eb   :  { %6575 = vmatmul.mubr.bf16.gmra.mrb[28].mxu1 %v20561_v43  ;;  %v17882_v43 = vld [vmem:[%s22176_s1 + $0x4] ss:$8 sps:$4 sm:$0xff]  }
 0x3ec   :  { %6692 = vmatpush1.bf16.msra.mxu1 %v17865_v46  ;;  %6719 = vmatprep.mubr.bf16.mxu1 %v22187_v0  ;;  %v17925_v46 = vld [vmem:[#allocation3 + $0xc0] ss:$8 sps:$4 sm:$0xff]  }
 0x3ed   :  { %10314 = vmatpush1.bf16.msra.mxu0 %v17868_v13  ;;  %6693 = vmatprep.subr.bf16.mxu1 %v17873_v61 }
 0x3ee   :  { %10315 = vmatprep.subr.bf16.mxu0 %v17876_v5  ;;  %v17933_v5 = vld [vmem:[#allocation3 + $0xd4] ss:$8 sps:$4 sm:$0xff]  }
 0x3f0   :  { %6694 = vmatpush1.bf16.msra.mxu1 %v17871_v37 }
 0x3f1   :  { %10316 = vmatpush1.bf16.msra.mxu0 %v17874_v6  ;;  %6695 = vmatprep.subr.bf16.mxu1 %v17879_v14  ;;  %v17936_v6 = vld [vmem:[%s22176_s1 + $0x114] ss:$8 sps:$4 sm:$0xff]  }
 0x3f2   :  { %10434 = vmatprep.subr.bf16.mxu0 %v17882_v43  ;;  %v17931_v43 = vld [vmem:[#allocation3 + $0xd0] ss:$8 sps:$4 sm:$0xff]  }
 0x3f4   :  { %6696 = vmatpush1.bf16.msra.mxu1 %v17877_v7  ;;  %10334 = vmatmul.mubr.bf16.vlgmr.msra.gmra.mrb[48].mxu0 %v10215_v19  ;;  %v17934_v19 = vld [vmem:[%s22176_s1 + $0x110] ss:$8 sps:$4 sm:$0xff]  }
 0x3f5   :  { %10435 = vmatpush1.bf16.msra.mxu0 %v17880_v21  ;;  %6697 = vmatprep.subr.bf16.mxu1 %v17885_v20  ;;  %v17939_v20 = vld [vmem:[#allocation3 + $0xe4] ss:$8 sps:$4 sm:$0xff]  }
 0x3f6   :  { %10436 = vmatprep.subr.bf16.mxu0 %v17888_v3  ;;  %10343 = vmatprep.mubr.bf16.mxu0 %v22187_v0 }
 0x3f8   :  { %6698 = vmatpush1.bf16.msra.mxu1 %v17883_v22 }
 0x3f9   :  { %10437 = vmatpush1.bf16.msra.mxu0 %v17886_v25  ;;  %6699 = vmatprep.subr.bf16.mxu1 %v17891_v28  ;;  %v17942_v25 = vld [vmem:[%s22176_s1 + $0x124] ss:$8 sps:$4 sm:$0xff]  }
 0x3fa   :  { %10438 = vmatprep.subr.bf16.mxu0 %v17894_v51 }
 0x3fc   :  { %6700 = vmatpush1.bf16.msra.mxu1 %v17889_v12  ;;  %10344 = vmatmul.mubr.bf16.gmra.mrb[52].mxu0 %v10218_v29 }
 0x3fd   :  { %10439 = vmatpush1.bf16.msra.mxu0 %v17892_v56  ;;  %6701 = vmatprep.subr.bf16.mxu1 %v17897_v8  ;;  %v17937_v56 = vld [vmem:[#allocation3 + $0xe0] ss:$8 sps:$4 sm:$0xff]  }
 0x3fe   :  { %10440 = vmatprep.subr.bf16.mxu0 %v17900_v31  ;;  %10466 = vmatprep.mubr.bf16.mxu0 %v22187_v0  ;;  %v17940_v31 = vld [vmem:[%s22176_s1 + $0x120] ss:$8 sps:$4 sm:$0xff]  }
 0x400   :  { %6702 = vmatpush1.bf16.msra.mxu1 %v17895_v36  ;;  %v17945_v36 = vld [vmem:[#allocation3 + $0xf4] ss:$8 sps:$4 sm:$0xff]  }
 0x401   :  { %10441 = vmatpush1.bf16.msra.mxu0 %v17898_v4  ;;  %7772 = vmatprep.subr.bf16.mxu1 %v17903_v40 }
 0x402   :  { %10442 = vmatprep.subr.bf16.mxu0 %v17906_v47 }
 0x403   :  { %6720 = vmatmul.mubr.bf16.vlgmr.msra.gmra.mrb[24].mxu1 %v20559_v50  ;;  %v17913_v50 = vld [vmem:[#allocation3 + $0xa0] ss:$8 sps:$4 sm:$0xff]  }
 0x404   :  { %7773 = vmatpush1.bf16.msra.mxu1 %v17901_v41  ;;  %6729 = vmatprep.mubr.bf16.mxu1 %v22187_v0  ;;  %v17948_v41 = vld [vmem:[%s22176_s1 + $0x134] ss:$8 sps:$4 sm:$0xff]  }
 0x405   :  { %10443 = vmatpush1.bf16.msra.mxu0 %v17904_v30  ;;  %7774 = vmatprep.subr.bf16.mxu1 %v17909_v59 }
 0x406   :  { %10444 = vmatprep.subr.bf16.mxu0 %v17912_v18 }
 0x407   :  { %v7586_v53 = vpop.f32.mrb[32].mxu0 }
 0x408   :  { %7775 = vmatpush1.bf16.msra.mxu1 %v17907_v58  ;;  %v7588_v2 = vpop.f32.mrb[33].mxu0  ;;  %v17943_v58 = vld [vmem:[#allocation3 + $0xf0] ss:$8 sps:$4 sm:$0xff]  }
 0x409   :  { %v7613_v62 = vmax.f32 %v7586_v53, %v7588_v2  ;;  %v7590_v57 = vpop.f32.mrb[34].mxu0  ;;  %10445 = vmatpush1.bf16.msra.mxu0 %v17910_v34  ;;  %7776 = vmatprep.subr.bf16.mxu1 %v17915_v10  ;;  %v17946_v34 = vld [vmem:[%s22176_s1 + $0x130] ss:$8 sps:$4 sm:$0xff]   ;;  %v17951_v10 = vld [vmem:[#allocation3 + $0x4] ss:$8 sps:$4 sm:$0xff]  }
 0x40a   :  { %v7592_v49 = vpop.f32.mrb[35].mxu0  ;;  %10446 = vmatprep.subr.bf16.mxu0 %v17918_v48  ;;  %v17954_v2 = vld [vmem:[%s22176_s1 + $0x144] ss:$8 sps:$4 sm:$0xff]  }
 0x40b   :  { %6730 = vmatmul.mubr.bf16.gmra.mrb[28].mxu1 %v6590_v39  ;;  %v7614_v23 = vmax.f32 %v7590_v57, %v7592_v49  ;;  %v7621_v44 = vrot.slane %v7613_v62, 1 }
 0x40c   :  { %7777 = vmatpush1.bf16.msra.mxu1 %v17913_v50  ;;  %7804 = vmatprep.mubr.bf16.mxu1 %v22187_v0 }
 0x40d   :  { %v7622_v33 = vrot.slane %v7614_v23, 1  ;;  %10447 = vmatpush1.bf16.msra.mxu0 %v17916_v38  ;;  %7778 = vmatprep.subr.bf16.mxu1 %v17921_v26  ;;  %v17949_v38 = vld [vmem:[#allocation3] ss:$8 sps:$4 sm:$0xff]  }
 0x40e   :  { %10448 = vmatprep.subr.bf16.mxu0 %v17924_v1 }
 0x40f   :  { %v7623_v24 = vsel %vm395_vm0, %v7621_v44, %v7622_v33  ;;  %v7596_v35 = vpop.f32.mrb[36].mxu0 }
 0x410   :  { %v7632_v54 = vmax.f32 %v7613_v62, %v7623_v24  ;;  %7779 = vmatpush1.bf16.msra.mxu1 %v17919_v52  ;;  %v7598_v27 = vpop.f32.mrb[37].mxu0  ;;  %v17957_v52 = vld [vmem:[#allocation3 + $0x14] ss:$8 sps:$4 sm:$0xff]   ;;  %v17958_v24 = vld [vmem:[%s22176_s1 + $0x150] ss:$8 sps:$4 sm:$0xff]  }
 0x411   :  { %v7615_v13 = vmax.f32 %v7596_v35, %v7598_v27  ;;  %v7600_v61 = vpop.f32.mrb[38].mxu0  ;;  %10449 = vmatpush1.bf16.msra.mxu0 %v17922_v17  ;;  %7780 = vmatprep.subr.bf16.mxu1 %v17927_v15  ;;  %v17963_v35 = vld [vmem:[#allocation3 + $0x24] ss:$8 sps:$4 sm:$0xff]  }
 0x412   :  { %v7602_v37 = vpop.f32.mrb[39].mxu0  ;;  %10590 = vmatprep.subr.bf16.mxu0 %v17930_v32  ;;  %v7643_v22 = vadd.f32 %v15301_v45, %v7632_v54  ;;  %v17955_v32 = vld [vmem:[#allocation3 + $0x10] ss:$8 sps:$4 sm:$0xff]   ;;  %v17966_v54 = vld [vmem:[%s22176_s1 + $0x164] ss:$8 sps:$4 sm:$0xff]   ;;  %v15848_v27 = vld [vmem:[%s22175_s0 + $0xf0] sm:$0xff] }
 0x413   :  { %v7624_v14 = vrot.slane %v7615_v13, 1  ;;  %v7616_v16 = vmax.f32 %v7600_v61, %v7602_v37  ;;  %v17964_v61 = vld [vmem:[%s22176_s1 + $0x160] ss:$8 sps:$4 sm:$0xff]  }
 0x414   :  { %7781 = vmatpush1.bf16.msra.mxu1 %v17925_v46  ;;  %10467 = vmatmul.mubr.bf16.vlgmr.msra.gmra.mrb[48].mxu0 %v20789_v9  ;;  %v7647_v40 = vmax.f32 %v7643_v22, 0.0  ;;  %v15849_v46 = vld [vmem:[%s22175_s0 + $0xf8] sm:$0xff] }
 0x415   :  { %v7625_v7 = vsel %vm395_vm0, %v7622_v33, %v7624_v14  ;;  %v7626_v21 = vrot.slane %v7616_v16, 1  ;;  %10591 = vmatpush1.bf16.msra.mxu0 %v17928_v63  ;;  %7782 = vmatprep.subr.bf16.mxu1 %v17933_v5  ;;  %v17960_v33 = vld [vmem:[%s22176_s1 + $0x154] ss:$8 sps:$4 sm:$0xff]   ;;  %v20967_v37 = vpack.c.bf16 %v15849_v46, %v15848_v27  ;;  %v17997_v46 = vld [vmem:[#allocation3 + $0x100] ss:$8 sps:$4 sm:$0xff]  }
 0x416   :  { %v7633_v3 = vmax.f32 %v7614_v23, %v7625_v7  ;;  %10592 = vmatprep.subr.bf16.mxu0 %v17936_v6  ;;  %10476 = vmatprep.mubr.bf16.mxu0 %v22187_v0  ;;  %v17952_v23 = vld [vmem:[%s22176_s1 + $0x140] ss:$8 sps:$4 sm:$0xff]   ;;  %v17969_v63 = vld [vmem:[#allocation3 + $0x34] ss:$8 sps:$4 sm:$0xff]  }
 0x417   :  { %v7627_v28 = vsel %vm395_vm0, %v7624_v14, %v7626_v21  ;;  %v7635_v51 = vmax.f32 %v7616_v16, %v7626_v21  ;;  %v17972_v5 = vld [vmem:[%s22176_s1 + $0x174] ss:$8 sps:$4 sm:$0xff]   ;;  %v17967_v6 = vld [vmem:[#allocation3 + $0x30] ss:$8 sps:$4 sm:$0xff]   ;;  %v17978_v7 = vld [vmem:[%s22176_s1 + $0x184] ss:$8 sps:$4 sm:$0xff]  }
 0x418   :  { %v7634_v12 = vmax.f32 %v7615_v13, %v7627_v28  ;;  %v7644_v29 = vadd.f32 %v15301_v45, %v7633_v3  ;;  %7783 = vmatpush1.bf16.msra.mxu1 %v17931_v43  ;;  %v17961_v13 = vld [vmem:[#allocation3 + $0x20] ss:$8 sps:$4 sm:$0xff]   ;;  %v17975_v16 = vld [vmem:[#allocation3 + $0x44] ss:$8 sps:$4 sm:$0xff]   ;;  %v10506_v43 = vrot.slane %v20601_v11, 1  ;;  %v11895_v21 = vshll.u32 %v20967_v37, 16 }
 0x419   :  { %v7646_v8 = vadd.f32 %v15301_v45, %v7635_v51  ;;  %10593 = vmatpush1.bf16.msra.mxu0 %v17934_v19  ;;  %7784 = vmatprep.subr.bf16.mxu1 %v17939_v20  ;;  %v17970_v14 = vld [vmem:[%s22176_s1 + $0x170] ss:$8 sps:$4 sm:$0xff]   ;;  %v11899_v19 = vshrl.u32 %v20967_v37, 16  ;;  %v17981_v51 = vld [vmem:[#allocation3 + $0x54] ss:$8 sps:$4 sm:$0xff]  }
 0x41a   :  { %v7645_v4 = vadd.f32 %v15301_v45, %v7634_v12  ;;  %v7648_v47 = vmax.f32 %v7644_v29, 0.0  ;;  %10594 = vmatprep.subr.bf16.mxu0 %v17942_v25  ;;  %v10505_v45 = vrot.slane %v20789_v9, 1  ;;  %v17973_v20 = vld [vmem:[#allocation3 + $0x40] ss:$8 sps:$4 sm:$0xff]   ;;  %v12354_v22 = vrot.slane %v11895_v21, 2 }
 0x41b   :  { %v20908_v30 = vmax.f32 %v7646_v8, 0.0  ;;  %v12353_v3 = vrot.slane %v11899_v19, 1  ;;  %v17976_v25 = vld [vmem:[%s22176_s1 + $0x180] ss:$8 sps:$4 sm:$0xff]   ;;  %v17984_v12 = vld [vmem:[%s22176_s1 + $0x194] ss:$8 sps:$4 sm:$0xff]  }
 0x41c   :  { %v7649_v59 = vmax.f32 %v7645_v4, 0.0  ;;  %v20910_v18 = vpack.c.bf16 %v7648_v47, %v7647_v40  ;;  %7785 = vmatpush1.bf16.msra.mxu1 %v17937_v56  ;;  %10477 = vmatmul.mubr.bf16.gmra.mrb[52].mxu0 %v20601_v11  ;;  %v10507_v28 = vsel %vm395_vm0, %v10505_v45, %v10506_v43  ;;  %v17979_v56 = vld [vmem:[#allocation3 + $0x50] ss:$8 sps:$4 sm:$0xff]   ;;  %v17990_v4 = vld [vmem:[%s22176_s1 + $0x1a4] ss:$8 sps:$4 sm:$0xff]  }
 0x41d   :  { %10595 = vmatpush1.bf16.msra.mxu0 %v17940_v31  ;;  %7786 = vmatprep.subr.bf16.mxu1 %v17945_v36  ;;  %v20991_v29 = vor.u32 %v12354_v22, %v12353_v3  ;;  %v17982_v8 = vld [vmem:[%s22176_s1 + $0x190] ss:$8 sps:$4 sm:$0xff]   ;;  %v17987_v31 = vld [vmem:[#allocation3 + $0x64] ss:$8 sps:$4 sm:$0xff]   ;;  %v5095_v22 = vld [vmem:[%s22179_s4] sm:$0x1] }
 0x41e   :  { %v8112_v48 = vpack.c.bf16 %v20908_v30, %v7649_v59  ;;  %10596 = vmatprep.subr.bf16.mxu0 %v17948_v41  ;;  %v20917_v53 = vpack.c.bf16 %v7649_v59, %v7649_v59  ;;  %10622 = vmatprep.mubr.bf16.mxu0 %v22187_v0  ;;  %v7687_v50 = vrot.slane %v20910_v18, 1  ;;  %v7970_v62 = vrot.slane %v20910_v18, 2 }
 0x41f   :  { %v20925_v57 = vpack.c.bf16 %v7649_v59, %v7648_v47  ;;  %v8130_v1 = vrot.slane %v20910_v18, 3  ;;  %v17985_v59 = vld [vmem:[#allocation3 + $0x60] ss:$8 sps:$4 sm:$0xff]  }
 0x420   :  { %v20927_v39 = vrot.slane %v8112_v48, 3  ;;  %7787 = vmatpush1.bf16.msra.mxu1 %v17943_v58  ;;  %v7688_v26 = vrot.slane %v20917_v53, 1  ;;  %v7971_v49 = vrot.slane %v20917_v53, 2 }
 0x421   :  { %10597 = vmatpush1.bf16.msra.mxu0 %v17946_v34  ;;  %7903 = vmatprep.subr.bf16.mxu1 %v17951_v10  ;;  %v17988_v34 = vld [vmem:[%s22176_s1 + $0x1a0] ss:$8 sps:$4 sm:$0xff]   ;;  %v17993_v10 = vld [vmem:[#allocation3 + $0x74] ss:$8 sps:$4 sm:$0xff]  }
 0x422   :  { %v7689_v44 = vsel %vm395_vm0, %v7687_v50, %v7688_v26  ;;  %10598 = vmatprep.subr.bf16.mxu0 %v17954_v2  ;;  %v20942_v17 = vsel %vm727_vm3, %v7970_v62, %v7971_v49  ;;  %v20946_v15 = vsel %vm1395_vm4, %v8130_v1, %v20927_v39  ;;  %v17996_v2 = vld [vmem:[%s22176_s1 + $0x1b4] ss:$8 sps:$4 sm:$0xff]   ;;  %v17994_v1 = vld [vmem:[%s22176_s1 + $0x1b0] ss:$8 sps:$4 sm:$0xff]  }
 0x423   :  { %7805 = vmatmul.mubr.bf16.vlgmr.msra.gmra.mrb[32].mxu1 %v7689_v44  ;;  %v14920_v44 = vld [vmem:[%s22179_s4] ss:$0 sm:$0xff] }
 0x424   :  { %7904 = vmatpush1.bf16.msra.mxu1 %v17949_v38  ;;  %7814 = vmatprep.mubr.bf16.mxu1 %v22187_v0  ;;  %v17991_v38 = vld [vmem:[#allocation3 + $0x70] ss:$8 sps:$4 sm:$0xff]  }
 0x425   :  { %10599 = vmatpush1.bf16.msra.mxu0 %v17952_v23  ;;  %7905 = vmatprep.subr.bf16.mxu1 %v17957_v52  ;;  %v17999_v23 = vld [vmem:[#allocation3 + $0x104] ss:$8 sps:$4 sm:$0xff]  }
 0x426   :  { %10600 = vmatprep.subr.bf16.mxu0 %v17960_v33 }
 0x428   :  { %7906 = vmatpush1.bf16.msra.mxu1 %v17955_v32  ;;  %v18002_v32 = vld [vmem:[%s22176_s1 + $0x1c4] ss:$8 sps:$4 sm:$0xff]  }
 0x429   :  { %10601 = vmatpush1.bf16.msra.mxu0 %v17958_v24  ;;  %7907 = vmatprep.subr.bf16.mxu1 %v17963_v35 }
 0x42a   :  { %10602 = vmatprep.subr.bf16.mxu0 %v17966_v54 }
 0x42b   :  { %7815 = vmatmul.mubr.bf16.gmra.mrb[36].mxu1 %v7688_v26  ;;  %v5078_v26 = vld [vmem:[%s22179_s4] sm:$0x1] }
 0x42c   :  { %7908 = vmatpush1.bf16.msra.mxu1 %v17961_v13  ;;  %7935 = vmatprep.mubr.bf16.mxu1 %v22187_v0 }
 0x42d   :  { %10603 = vmatpush1.bf16.msra.mxu0 %v17964_v61  ;;  %7909 = vmatprep.subr.bf16.mxu1 %v17969_v63 }
 0x42e   :  { %10604 = vmatprep.subr.bf16.mxu0 %v17972_v5  ;;  %v18000_v5 = vld [vmem:[%s22176_s1 + $0x1c0] ss:$8 sps:$4 sm:$0xff]  }
 0x430   :  { %7910 = vmatpush1.bf16.msra.mxu1 %v17967_v6  ;;  %v18005_v6 = vld [vmem:[#allocation3 + $0x114] ss:$8 sps:$4 sm:$0xff]  }
 0x431   :  { %10605 = vmatpush1.bf16.msra.mxu0 %v17970_v14  ;;  %7911 = vmatprep.subr.bf16.mxu1 %v17975_v16  ;;  %v18008_v16 = vld [vmem:[%s22176_s1 + $0x1d4] ss:$8 sps:$4 sm:$0xff]  }
 0x432   :  { %10756 = vmatprep.subr.bf16.mxu0 %v17978_v7  ;;  %v5112_v7 = vld [vmem:[%s22179_s4] sm:$0x1] }
 0x434   :  { %7912 = vmatpush1.bf16.msra.mxu1 %v17973_v20  ;;  %10623 = vmatmul.mubr.bf16.vlgmr.msra.gmra.mrb[48].mxu0 %v10507_v28 }
 0x435   :  { %10757 = vmatpush1.bf16.msra.mxu0 %v17976_v25  ;;  %7913 = vmatprep.subr.bf16.mxu1 %v17981_v51  ;;  %v18003_v25 = vld [vmem:[#allocation3 + $0x110] ss:$8 sps:$4 sm:$0xff]  }
 0x436   :  { %v5038_v36 = vpop.f32.mrb[16].mxu1  ;;  %10758 = vmatprep.subr.bf16.mxu0 %v17984_v12  ;;  %10632 = vmatprep.mubr.bf16.mxu0 %v22187_v0  ;;  %v18011_v12 = vld [vmem:[#allocation3 + $0x124] ss:$8 sps:$4 sm:$0xff]  }
 0x437   :  { %v5040_v40 = vpop.f32.mrb[17].mxu1 }
 0x438   :  { %v5061_v47 = vmax.f32 %v5038_v36, %v5040_v40  ;;  %v5042_v41 = vpop.f32.mrb[18].mxu1  ;;  %7914 = vmatpush1.bf16.msra.mxu1 %v17979_v56  ;;  %v18009_v40 = vld [vmem:[#allocation3 + $0x120] ss:$8 sps:$4 sm:$0xff]  }
 0x439   :  { %v5044_v58 = vpop.f32.mrb[19].mxu1  ;;  %10759 = vmatpush1.bf16.msra.mxu0 %v17982_v8  ;;  %7915 = vmatprep.subr.bf16.mxu1 %v17987_v31  ;;  %v18014_v8 = vld [vmem:[%s22176_s1 + $0x1e4] ss:$8 sps:$4 sm:$0xff]  }
 0x43a   :  { %v5062_v48 = vmax.f32 %v5042_v41, %v5044_v58  ;;  %10760 = vmatprep.subr.bf16.mxu0 %v17990_v4  ;;  %v5067_v50 = vrot.slane %v5061_v47, 2  ;;  %v18017_v58 = vld [vmem:[#allocation3 + $0x134] ss:$8 sps:$4 sm:$0xff]  }
 0x43c   :  { %v5068_v62 = vrot.slane %v5062_v48, 2  ;;  %7916 = vmatpush1.bf16.msra.mxu1 %v17985_v59  ;;  %10633 = vmatmul.mubr.bf16.gmra.mrb[52].mxu0 %v10506_v43 }
 0x43d   :  { %10761 = vmatpush1.bf16.msra.mxu0 %v17988_v34  ;;  %7917 = vmatprep.subr.bf16.mxu1 %v17993_v10  ;;  %v10667_v34 = vrot.slane %v10205_v42, 1  ;;  %v10668_v10 = vrot.slane %v10207_v55, 2  ;;  %v18018_v55 = vld [vmem:[%s22176_s1 + $0x1f0] ss:$8 sps:$4 sm:$0xff]   ;;  %v18023_v42 = vld [vmem:[#allocation3 + $0x144] ss:$8 sps:$4 sm:$0xff]  }
 0x43e   :  { %v5069_v52 = vsel %vm727_vm3, %v5067_v50, %v5068_v62  ;;  %v5048_v33 = vpop.f32.mrb[20].mxu1  ;;  %10762 = vmatprep.subr.bf16.mxu0 %v17996_v2  ;;  %10788 = vmatprep.mubr.bf16.mxu0 %v22187_v0  ;;  %v18015_v50 = vld [vmem:[#allocation3 + $0x130] ss:$8 sps:$4 sm:$0xff]  }
 0x43f   :  { %v5075_v24 = vmax.f32 %v5061_v47, %v5069_v52  ;;  %v5050_v35 = vpop.f32.mrb[21].mxu1  ;;  %v18012_v47 = vld [vmem:[%s22176_s1 + $0x1e0] ss:$8 sps:$4 sm:$0xff]   ;;  %v18029_v52 = vld [vmem:[#allocation3 + $0x154] ss:$8 sps:$4 sm:$0xff]  }
 0x440   :  { %v5063_v54 = vmax.f32 %v5048_v33, %v5050_v35  ;;  %v5052_v27 = vpop.f32.mrb[22].mxu1  ;;  %7918 = vmatpush1.bf16.msra.mxu1 %v17991_v38  ;;  %v18026_v38 = vld [vmem:[%s22176_s1 + $0x204] ss:$8 sps:$4 sm:$0xff]   ;;  %v18027_v33 = vld [vmem:[#allocation3 + $0x150] ss:$8 sps:$4 sm:$0xff]  }
 0x441   :  { %v5079_v13 = vadd.f32 %v5078_v26, %v5075_v24  ;;  %v5089_v61 = vadd.f32 %v14920_v44, %v5075_v24  ;;  %v5053_v63 = vpop.f32.mrb[23].mxu1  ;;  %10763 = vmatpush1.bf16.msra.mxu0 %v17994_v1  ;;  %8055 = vmatprep.subr.bf16.mxu1 %v17999_v23  ;;  %v18021_v26 = vld [vmem:[#allocation3 + $0x140] ss:$8 sps:$4 sm:$0xff]   ;;  %v18035_v24 = vld [vmem:[#allocation3 + $0x164] ss:$8 sps:$4 sm:$0xff]  }
 0x442   :  { %v5070_v14 = vrot.slane %v5063_v54, 2  ;;  %10764 = vmatprep.subr.bf16.mxu0 %v18002_v32  ;;  %v18024_v1 = vld [vmem:[%s22176_s1 + $0x200] ss:$8 sps:$4 sm:$0xff]   ;;  %v18030_v32 = vld [vmem:[%s22176_s1 + $0x210] ss:$8 sps:$4 sm:$0xff]  }
 0x443   :  { %v5080_v45 = vmax.f32 %v5079_v13, 0.0  ;;  %v5090_v43 = vmax.f32 %v5089_v61, 0.0  ;;  %7936 = vmatmul.mubr.bf16.vlgmr.msra.gmra.mrb[32].mxu1 %v20910_v18  ;;  %v18006_v18 = vld [vmem:[%s22176_s1 + $0x1d0] ss:$8 sps:$4 sm:$0xff]   ;;  %v18038_v35 = vld [vmem:[%s22176_s1 + $0x224] ss:$8 sps:$4 sm:$0xff]  }
 0x444   :  { %v5071_v20 = vsel %vm727_vm3, %v5068_v62, %v5070_v14  ;;  %v5077_v3 = vmax.f32 %v5063_v54, %v5070_v14  ;;  %8056 = vmatpush1.bf16.msra.mxu1 %v17997_v46  ;;  %7945 = vmatprep.mubr.bf16.mxu1 %v22187_v0  ;;  %v10669_v62 = vor.u32 %v10668_v10, %v10667_v34  ;;  %v18033_v54 = vld [vmem:[#allocation3 + $0x160] ss:$8 sps:$4 sm:$0xff]   ;;  %v18041_v46 = vld [vmem:[#allocation3 + $0x174] ss:$8 sps:$4 sm:$0xff]   ;;  %v18039_v61 = vld [vmem:[#allocation3 + $0x170] ss:$8 sps:$4 sm:$0xff]  }
 0x445   :  { %5081 = vst [vmem:[#allocation2 + $0x2] sm:$0x1] %v5080_v45  ;;  %v5092_v28 = vrot.slane %v5090_v43, 4  ;;  %v5076_v51 = vmax.f32 %v5062_v48, %v5071_v20  ;;  %10765 = vmatpush1.bf16.msra.mxu0 %v18000_v5  ;;  %8057 = vmatprep.subr.bf16.mxu1 %v18005_v6  ;;  %v18020_v48 = vld [vmem:[%s22176_s1 + $0x1f4] ss:$8 sps:$4 sm:$0xff]  }
 0x446   :  { %v5113_v56 = vadd.f32 %v5112_v7, %v5077_v3  ;;  %10766 = vmatprep.subr.bf16.mxu0 %v18008_v16  ;;  %v10673_v23 = vsel %vm559_vm1, %v10669_v62, %v20625_v60  ;;  %v18036_v27 = vld [vmem:[%s22176_s1 + $0x220] ss:$8 sps:$4 sm:$0xff]   ;;  %v18044_v13 = vld [vmem:[%s22176_s1 + $0x234] ss:$8 sps:$4 sm:$0xff]   ;;  %v18042_v63 = vld [vmem:[%s22176_s1 + $0x230] ss:$8 sps:$4 sm:$0xff]  }
 0x447   :  { %5094 = vst [vmem:[#allocation2 + $0xa] sm:$0x1] %v5092_v28  ;;  %v5096_v31 = vadd.f32 %v5095_v22, %v5076_v51  ;;  %v5106_v36 = vadd.f32 %v14920_v44, %v5076_v51  ;;  %v18032_v44 = vld [vmem:[%s22176_s1 + $0x214] ss:$8 sps:$4 sm:$0xff]   ;;  %v18050_v6 = vld [vmem:[%s22176_s1 + $0x244] ss:$8 sps:$4 sm:$0xff]  }
 0x448   :  { %v5114_v4 = vmax.f32 %v5113_v56, 0.0  ;;  %8058 = vmatpush1.bf16.msra.mxu1 %v18003_v25  ;;  %v18047_v5 = vld [vmem:[#allocation3 + $0x184] ss:$8 sps:$4 sm:$0xff]   ;;  %v18045_v14 = vld [vmem:[#allocation3 + $0x180] ss:$8 sps:$4 sm:$0xff]   ;;  %v10833_v56 = vrot.slane %v20789_v9, 2 }
 0x449   :  { %v5097_v41 = vmax.f32 %v5096_v31, 0.0  ;;  %v5107_v59 = vmax.f32 %v5106_v36, 0.0  ;;  %10767 = vmatpush1.bf16.msra.mxu0 %v18006_v18  ;;  %8059 = vmatprep.subr.bf16.mxu1 %v18011_v12  ;;  %v18053_v16 = vld [vmem:[#allocation3 + $0x194] ss:$8 sps:$4 sm:$0xff]   ;;  %v18051_v43 = vld [vmem:[#allocation3 + $0x190] ss:$8 sps:$4 sm:$0xff]  }
 0x44a   :  { %5115 = vst [vmem:[#allocation2 + $0x22] sm:$0x1] %v5114_v4  ;;  %10768 = vmatprep.subr.bf16.mxu0 %v18014_v8  ;;  %v18056_v45 = vld [vmem:[%s22176_s1 + $0x254] ss:$8 sps:$4 sm:$0xff]   ;;  %v18054_v7 = vld [vmem:[%s22176_s1 + $0x250] ss:$8 sps:$4 sm:$0xff]  }
 0x44b   :  { %5098 = vst [vmem:[#allocation2 + $0x12] sm:$0x1] %v5097_v41  ;;  %v5109_v2 = vrot.slane %v5107_v59, 4  ;;  %7946 = vmatmul.mubr.bf16.gmra.mrb[36].mxu1 %v20917_v53  ;;  %v18059_v20 = vld [vmem:[#allocation3 + $0x1a4] ss:$8 sps:$4 sm:$0xff]   ;;  %v10834_v8 = vrot.slane %v20601_v11, 2 }
 0x44c   :  { %8060 = vmatpush1.bf16.msra.mxu1 %v18009_v40  ;;  %8087 = vmatprep.mubr.bf16.mxu1 %v22187_v0  ;;  %v18062_v3 = vld [vmem:[%s22176_s1 + $0x264] ss:$8 sps:$4 sm:$0xff]   ;;  %v18057_v22 = vld [vmem:[#allocation3 + $0x1a0] ss:$8 sps:$4 sm:$0xff]   ;;  %v18068_v28 = vld [vmem:[%s22176_s1 + $0x274] ss:$8 sps:$4 sm:$0xff]  }
 0x44d   :  { %5111 = vst [vmem:[#allocation2 + $0x1a] sm:$0x1] %v5109_v2  ;;  %10769 = vmatpush1.bf16.msra.mxu0 %v18012_v47  ;;  %8061 = vmatprep.subr.bf16.mxu1 %v18017_v58  ;;  %v18065_v25 = vld [vmem:[#allocation3 + $0x1b4] ss:$8 sps:$4 sm:$0xff]   ;;  %v18063_v51 = vld [vmem:[#allocation3 + $0x1b0] ss:$8 sps:$4 sm:$0xff]   ;;  %v10835_v31 = vsel %vm727_vm3, %v10833_v56, %v10834_v8 }
 0x44e   :  { %10770 = vmatprep.subr.bf16.mxu0 %v18020_v48  ;;  %v18066_v18 = vld [vmem:[%s22176_s1 + $0x270] ss:$8 sps:$4 sm:$0xff]   ;;  %v18071_v12 = vld [vmem:[#allocation3 + $0x1c4] ss:$8 sps:$4 sm:$0xff]   ;;  %v18072_v36 = vld [vmem:[%s22176_s1 + $0x80] ss:$8 sps:$4 sm:$0xff]  }
 0x44f   :  { %v18074_v53 = vld [vmem:[%s22176_s1 + $0x84] ss:$8 sps:$4 sm:$0xff]   ;;  %v18080_v11 = vld [vmem:[%s22176_s1 + $0x94] ss:$8 sps:$4 sm:$0xff]   ;;  %v18075_v9 = vld [vmem:[#allocation3 + $0x1d0] ss:$8 sps:$4 sm:$0xff]  }
 0x450   :  { %8062 = vmatpush1.bf16.msra.mxu1 %v18015_v50  ;;  %v18077_v4 = vld [vmem:[#allocation3 + $0x1d4] ss:$8 sps:$4 sm:$0xff]   ;;  %v18078_v40 = vld [vmem:[%s22176_s1 + $0x90] ss:$8 sps:$4 sm:$0xff]   ;;  %v18083_v47 = vld [vmem:[#allocation3 + $0x1e4] ss:$8 sps:$4 sm:$0xff]  }
 0x451   :  { %10771 = vmatpush1.bf16.msra.mxu0 %v18018_v55  ;;  %8063 = vmatprep.subr.bf16.mxu1 %v18023_v42  ;;  %v18086_v41 = vld [vmem:[%s22176_s1 + $0xa4] ss:$8 sps:$4 sm:$0xff]   ;;  %v18081_v59 = vld [vmem:[#allocation3 + $0x1e0] ss:$8 sps:$4 sm:$0xff]   ;;  %v18092_v10 = vld [vmem:[%s22176_s1 + $0xb4] ss:$8 sps:$4 sm:$0xff]  }
 0x452   :  { %10918 = vmatprep.subr.bf16.mxu0 %v18026_v38  ;;  %v18084_v58 = vld [vmem:[%s22176_s1 + $0xa0] ss:$8 sps:$4 sm:$0xff]   ;;  %v18089_v34 = vld [vmem:[#allocation3 + $0x1f4] ss:$8 sps:$4 sm:$0xff]   ;;  %v18090_v2 = vld [vmem:[%s22176_s1 + $0xb0] ss:$8 sps:$4 sm:$0xff]  }
 0x453   :  { %v18087_v48 = vld [vmem:[#allocation3 + $0x1f0] ss:$8 sps:$4 sm:$0xff]   ;;  %v18095_v50 = vld [vmem:[#allocation3 + $0x204] ss:$8 sps:$4 sm:$0xff]   ;;  %v18093_v38 = vld [vmem:[#allocation3 + $0x200] ss:$8 sps:$4 sm:$0xff]  }
 0x454   :  { %8064 = vmatpush1.bf16.msra.mxu1 %v18021_v26  ;;  %10789 = vmatmul.mubr.bf16.vlgmr.msra.gmra.mrb[48].mxu0 %v10673_v23  ;;  %v18098_v55 = vld [vmem:[%s22176_s1 + $0xc4] ss:$8 sps:$4 sm:$0xff]   ;;  %v18096_v26 = vld [vmem:[%s22176_s1 + $0xc0] ss:$8 sps:$4 sm:$0xff]  }
 0x455   :  { %10919 = vmatpush1.bf16.msra.mxu0 %v18024_v1  ;;  %8065 = vmatprep.subr.bf16.mxu1 %v18029_v52  ;;  %v15846_v42 = vld [vmem:[%s22175_s0 + $0xe0] sm:$0xff]  ;;  %v15847_v62 = vld [vmem:[%s22175_s0 + $0xe8] sm:$0xff]  ;;  %v18104_v52 = vld [vmem:[%s22176_s1 + $0xd4] ss:$8 sps:$4 sm:$0xff]  }
 0x456   :  { %10920 = vmatprep.subr.bf16.mxu0 %v18032_v44  ;;  %10798 = vmatprep.mubr.bf16.mxu0 %v22187_v0  ;;  %v18101_v1 = vld [vmem:[#allocation3 + $0x214] ss:$8 sps:$4 sm:$0xff]   ;;  %v21155_v23 = vpack.c.bf16 %v15847_v62, %v15846_v42  ;;  %v18099_v44 = vld [vmem:[#allocation3 + $0x210] ss:$8 sps:$4 sm:$0xff]  }
 0x457   :  { %v18135_v56 = vld [vmem:[#allocation3 + $0x270] ss:$8 sps:$4 sm:$0xff]  }
 0x458   :  { %8066 = vmatpush1.bf16.msra.mxu1 %v18027_v33  ;;  %v18102_v33 = vld [vmem:[%s22176_s1 + $0xd0] ss:$8 sps:$4 sm:$0xff]  }
 0x459   :  { %10921 = vmatpush1.bf16.msra.mxu0 %v18030_v32  ;;  %8067 = vmatprep.subr.bf16.mxu1 %v18035_v24  ;;  %v18107_v32 = vld [vmem:[#allocation3 + $0x224] ss:$8 sps:$4 sm:$0xff]   ;;  %v11890_v24 = vshll.u32 %v21155_v23, 16  ;;  %v18159_v62 = vld [vmem:[#allocation3 + $0xb0] ss:$8 sps:$4 sm:$0xff]  }
 0x45a   :  { %10922 = vmatprep.subr.bf16.mxu0 %v18038_v35  ;;  %v18110_v35 = vld [vmem:[%s22176_s1 + $0xe4] ss:$8 sps:$4 sm:$0xff]  }
 0x45c   :  { %8068 = vmatpush1.bf16.msra.mxu1 %v18033_v54  ;;  %10799 = vmatmul.mubr.bf16.gmra.mrb[52].mxu0 %v20625_v60  ;;  %v18048_v60 = vld [vmem:[%s22176_s1 + $0x240] ss:$8 sps:$4 sm:$0xff]  }
 0x45d   :  { %10923 = vmatpush1.bf16.msra.mxu0 %v18036_v27  ;;  %8069 = vmatprep.subr.bf16.mxu1 %v18041_v46  ;;  %v18108_v54 = vld [vmem:[%s22176_s1 + $0xe0] ss:$8 sps:$4 sm:$0xff]   ;;  %v18113_v27 = vld [vmem:[#allocation3 + $0x234] ss:$8 sps:$4 sm:$0xff]   ;;  %v11888_v46 = vshrl.u32 %v21155_v23, 16 }
 0x45e   :  { %10924 = vmatprep.subr.bf16.mxu0 %v18044_v13  ;;  %10950 = vmatprep.mubr.bf16.mxu0 %v22187_v0  ;;  %v11892_v13 = vrot.slane %v11890_v24, 1 }
 0x460   :  { %8070 = vmatpush1.bf16.msra.mxu1 %v18039_v61  ;;  %v18116_v61 = vld [vmem:[%s22176_s1 + $0xf4] ss:$8 sps:$4 sm:$0xff]  }
 0x461   :  { %10925 = vmatpush1.bf16.msra.mxu0 %v18042_v63  ;;  %8215 = vmatprep.subr.bf16.mxu1 %v18047_v5  ;;  %v18111_v63 = vld [vmem:[#allocation3 + $0x230] ss:$8 sps:$4 sm:$0xff]  }
 0x462   :  { %10926 = vmatprep.subr.bf16.mxu0 %v18050_v6  ;;  %v18114_v5 = vld [vmem:[%s22176_s1 + $0xf0] ss:$8 sps:$4 sm:$0xff]   ;;  %v18119_v6 = vld [vmem:[#allocation3 + $0x244] ss:$8 sps:$4 sm:$0xff]  }
 0x463   :  { %8088 = vmatmul.mubr.bf16.vlgmr.msra.gmra.mrb[32].mxu1 %v20942_v17  ;;  %v18060_v17 = vld [vmem:[%s22176_s1 + $0x260] ss:$8 sps:$4 sm:$0xff]  }
 0x464   :  { %8216 = vmatpush1.bf16.msra.mxu1 %v18045_v14  ;;  %8097 = vmatprep.mubr.bf16.mxu1 %v22187_v0  ;;  %v11893_v14 = vor.u32 %v11892_v13, %v11888_v46  ;;  %v18168_v13 = vld [vmem:[%s22176_s1 + $0x100] ss:$8 sps:$4 sm:$0xff]  }
 0x465   :  { %10927 = vmatpush1.bf16.msra.mxu0 %v18048_v60  ;;  %8217 = vmatprep.subr.bf16.mxu1 %v18053_v16  ;;  %v11897_v60 = vrot.slane %v11895_v21, 1  ;;  %v18117_v16 = vld [vmem:[#allocation3 + $0x240] ss:$8 sps:$4 sm:$0xff]   ;;  %v18128_v21 = vld [vmem:[%s22176_s1 + $0x14] ss:$8 sps:$4 sm:$0xff]  }
 0x466   :  { %10928 = vmatprep.subr.bf16.mxu0 %v18056_v45  ;;  %v18120_v45 = vld [vmem:[%s22176_s1] ss:$8 sps:$4 sm:$0xff]  }
 0x468   :  { %8218 = vmatpush1.bf16.msra.mxu1 %v18051_v43  ;;  %v11898_v43 = vsel %vm92_vm2, %v11893_v14, %v11897_v60 }
 0x469   :  { %10929 = vmatpush1.bf16.msra.mxu0 %v18054_v7  ;;  %8219 = vmatprep.subr.bf16.mxu1 %v18059_v20  ;;  %v18125_v7 = vld [vmem:[#allocation3 + $0x254] ss:$8 sps:$4 sm:$0xff]   ;;  %v18123_v20 = vld [vmem:[#allocation3 + $0x250] ss:$8 sps:$4 sm:$0xff]  }
 0x46a   :  { %10930 = vmatprep.subr.bf16.mxu0 %v18062_v3  ;;  %v18126_v3 = vld [vmem:[%s22176_s1 + $0x10] ss:$8 sps:$4 sm:$0xff]  }
 0x46b   :  { %8098 = vmatmul.mubr.bf16.gmra.mrb[36].mxu1 %v7971_v49  ;;  %v18069_v49 = vld [vmem:[#allocation3 + $0x1c0] ss:$8 sps:$4 sm:$0xff]  }
 0x46c   :  { %8220 = vmatpush1.bf16.msra.mxu1 %v18057_v22  ;;  %8247 = vmatprep.mubr.bf16.mxu1 %v22187_v0  ;;  %v18131_v22 = vld [vmem:[#allocation3 + $0x264] ss:$8 sps:$4 sm:$0xff]  }
 0x46d   :  { %10931 = vmatpush1.bf16.msra.mxu0 %v18060_v17  ;;  %8221 = vmatprep.subr.bf16.mxu1 %v18065_v25  ;;  %v18134_v17 = vld [vmem:[%s22176_s1 + $0x24] ss:$8 sps:$4 sm:$0xff]   ;;  %v18129_v25 = vld [vmem:[#allocation3 + $0x260] ss:$8 sps:$4 sm:$0xff]  }
 0x46e   :  { %10932 = vmatprep.subr.bf16.mxu0 %v18068_v28  ;;  %v11901_v28 = vor.u32 %v11899_v19, %v11897_v60  ;;  %v18138_v19 = vld [vmem:[%s22176_s1 + $0x30] ss:$8 sps:$4 sm:$0xff]   ;;  %v15532_v60 = vld [vmem:[%s22177_s2] ss:$0 sm:$0xff] }
 0x470   :  { %8222 = vmatpush1.bf16.msra.mxu1 %v18063_v51  ;;  %v18132_v51 = vld [vmem:[%s22176_s1 + $0x20] ss:$8 sps:$4 sm:$0xff]  }
 0x471   :  { %10933 = vmatpush1.bf16.msra.mxu0 %v18066_v18  ;;  %8223 = vmatprep.subr.bf16.mxu1 %v18071_v12  ;;  %v18137_v18 = vld [vmem:[#allocation3 + $0x274] ss:$8 sps:$4 sm:$0xff]  }
 0x472   :  { %11984 = vmatprep.subr.bf16.mxu0 %v18074_v53  ;;  %v18140_v12 = vld [vmem:[%s22176_s1 + $0x34] ss:$8 sps:$4 sm:$0xff]   ;;  %v18146_v53 = vld [vmem:[%s22176_s1 + $0x44] ss:$8 sps:$4 sm:$0xff]  }
 0x474   :  { %8224 = vmatpush1.bf16.msra.mxu1 %v18069_v49  ;;  %10951 = vmatmul.mubr.bf16.vlgmr.msra.gmra.mrb[48].mxu0 %v10835_v31  ;;  %v18141_v49 = vld [vmem:[#allocation3 + $0x80] ss:$8 sps:$4 sm:$0xff]  }
 0x475   :  { %11985 = vmatpush1.bf16.msra.mxu0 %v18072_v36  ;;  %8225 = vmatprep.subr.bf16.mxu1 %v18077_v4  ;;  %v18144_v31 = vld [vmem:[%s22176_s1 + $0x40] ss:$8 sps:$4 sm:$0xff]   ;;  %v18149_v36 = vld [vmem:[#allocation3 + $0x94] ss:$8 sps:$4 sm:$0xff]  }
 0x476   :  { %11986 = vmatprep.subr.bf16.mxu0 %v18080_v11  ;;  %10960 = vmatprep.mubr.bf16.mxu0 %v22187_v0  ;;  %v18152_v4 = vld [vmem:[%s22176_s1 + $0x54] ss:$8 sps:$4 sm:$0xff]   ;;  %v18147_v11 = vld [vmem:[#allocation3 + $0x90] ss:$8 sps:$4 sm:$0xff]  }
 0x478   :  { %8226 = vmatpush1.bf16.msra.mxu1 %v18075_v9  ;;  %v18150_v9 = vld [vmem:[%s22176_s1 + $0x50] ss:$8 sps:$4 sm:$0xff]  }
 0x479   :  { %11987 = vmatpush1.bf16.msra.mxu0 %v18078_v40  ;;  %8227 = vmatprep.subr.bf16.mxu1 %v18083_v47  ;;  %v18155_v40 = vld [vmem:[#allocation3 + $0xa4] ss:$8 sps:$4 sm:$0xff]  }
 0x47a   :  { %11988 = vmatprep.subr.bf16.mxu0 %v18086_v41  ;;  %v18158_v47 = vld [vmem:[%s22176_s1 + $0x64] ss:$8 sps:$4 sm:$0xff]  }
 0x47c   :  { %8228 = vmatpush1.bf16.msra.mxu1 %v18081_v59  ;;  %10961 = vmatmul.mubr.bf16.gmra.mrb[52].mxu0 %v10834_v8  ;;  %v18143_v8 = vld [vmem:[#allocation3 + $0x84] ss:$8 sps:$4 sm:$0xff]  }
 0x47d   :  { %11989 = vmatpush1.bf16.msra.mxu0 %v18084_v58  ;;  %8229 = vmatprep.subr.bf16.mxu1 %v18089_v34 }
 0x47e   :  { %11990 = vmatprep.subr.bf16.mxu0 %v18092_v10  ;;  %12016 = vmatprep.mubr.bf16.mxu0 %v22187_v0  ;;  %v8273_v10 = vpack.c.bf16 %v20908_v30, %v20908_v30 }
 0x480   :  { %8230 = vmatpush1.bf16.msra.mxu1 %v18087_v48  ;;  %v18156_v48 = vld [vmem:[%s22176_s1 + $0x60] ss:$8 sps:$4 sm:$0xff]  }
 0x481   :  { %11991 = vmatpush1.bf16.msra.mxu0 %v18090_v2  ;;  %8370 = vmatprep.subr.bf16.mxu1 %v18095_v50  ;;  %v18161_v2 = vld [vmem:[#allocation3 + $0xb4] ss:$8 sps:$4 sm:$0xff]  }
 0x482   :  { %11992 = vmatprep.subr.bf16.mxu0 %v18098_v55  ;;  %v18164_v55 = vld [vmem:[%s22176_s1 + $0x74] ss:$8 sps:$4 sm:$0xff]  }
 0x483   :  { %8248 = vmatmul.mubr.bf16.vlgmr.msra.gmra.mrb[32].mxu1 %v20946_v15  ;;  %v18105_v15 = vld [vmem:[#allocation3 + $0x220] ss:$8 sps:$4 sm:$0xff]  }
 0x484   :  { %8371 = vmatpush1.bf16.msra.mxu1 %v18093_v38  ;;  %8257 = vmatprep.mubr.bf16.mxu1 %v22187_v0 }
 0x485   :  { %11993 = vmatpush1.bf16.msra.mxu0 %v18096_v26  ;;  %8372 = vmatprep.subr.bf16.mxu1 %v18101_v1  ;;  %v18162_v26 = vld [vmem:[%s22176_s1 + $0x70] ss:$8 sps:$4 sm:$0xff]   ;;  %v18167_v1 = vld [vmem:[#allocation3 + $0xc4] ss:$8 sps:$4 sm:$0xff]  }
 0x486   :  { %11994 = vmatprep.subr.bf16.mxu0 %v18104_v52  ;;  %v18170_v52 = vld [vmem:[%s22176_s1 + $0x104] ss:$8 sps:$4 sm:$0xff]  }
 0x488   :  { %8373 = vmatpush1.bf16.msra.mxu1 %v18099_v44 }
 0x489   :  { %11995 = vmatpush1.bf16.msra.mxu0 %v18102_v33  ;;  %8374 = vmatprep.subr.bf16.mxu1 %v18107_v32 }
 0x48a   :  { %11996 = vmatprep.subr.bf16.mxu0 %v18110_v35 }
 0x48b   :  { %8258 = vmatmul.mubr.bf16.gmra.mrb[36].mxu1 %v20927_v39  ;;  %v18122_v39 = vld [vmem:[%s22176_s1 + $0x4] ss:$8 sps:$4 sm:$0xff]  }
 0x48c   :  { %8375 = vmatpush1.bf16.msra.mxu1 %v18105_v15  ;;  %8402 = vmatprep.mubr.bf16.mxu1 %v22187_v0  ;;  %v18165_v15 = vld [vmem:[#allocation3 + $0xc0] ss:$8 sps:$4 sm:$0xff]  }
 0x48d   :  { %11997 = vmatpush1.bf16.msra.mxu0 %v18108_v54  ;;  %8376 = vmatprep.subr.bf16.mxu1 %v18113_v27 }
 0x48e   :  { %11998 = vmatprep.subr.bf16.mxu0 %v18116_v61  ;;  %v21252_v61 = vld [vmem:[#allocation3 + $0xd4] ss:$8 sps:$4 sm:$0xff]  }
 0x490   :  { %8377 = vmatpush1.bf16.msra.mxu1 %v18111_v63 }
 0x491   :  { %11999 = vmatpush1.bf16.msra.mxu0 %v18114_v5  ;;  %8378 = vmatprep.subr.bf16.mxu1 %v18119_v6  ;;  %v18176_v5 = vld [vmem:[%s22176_s1 + $0x114] ss:$8 sps:$4 sm:$0xff]  }
 0x492   :  { %12117 = vmatprep.subr.bf16.mxu0 %v18122_v39  ;;  %v21261_v39 = vld [vmem:[#allocation3 + $0xd0] ss:$8 sps:$4 sm:$0xff]  }
 0x494   :  { %8379 = vmatpush1.bf16.msra.mxu1 %v18117_v16  ;;  %12017 = vmatmul.mubr.bf16.vlgmr.msra.gmra.mrb[56].mxu0 %v11898_v43  ;;  %v18174_v43 = vld [vmem:[%s22176_s1 + $0x110] ss:$8 sps:$4 sm:$0xff]  }
 0x495   :  { %12118 = vmatpush1.bf16.msra.mxu0 %v18120_v45  ;;  %8380 = vmatprep.subr.bf16.mxu1 %v18125_v7  ;;  %v21268_v7 = vld [vmem:[#allocation3 + $0xe4] ss:$8 sps:$4 sm:$0xff]  }
 0x496   :  { %12119 = vmatprep.subr.bf16.mxu0 %v18128_v21  ;;  %12026 = vmatprep.mubr.bf16.mxu0 %v22187_v0 }
 0x498   :  { %8381 = vmatpush1.bf16.msra.mxu1 %v18123_v20 }
 0x499   :  { %12120 = vmatpush1.bf16.msra.mxu0 %v18126_v3  ;;  %8382 = vmatprep.subr.bf16.mxu1 %v18131_v22  ;;  %v18182_v3 = vld [vmem:[%s22176_s1 + $0x124] ss:$8 sps:$4 sm:$0xff]  }
 0x49a   :  { %12121 = vmatprep.subr.bf16.mxu0 %v18134_v17 }
 0x49c   :  { %8383 = vmatpush1.bf16.msra.mxu1 %v18129_v25  ;;  %12027 = vmatmul.mubr.bf16.gmra.mrb[60].mxu0 %v11901_v28 }
 0x49d   :  { %12122 = vmatpush1.bf16.msra.mxu0 %v18132_v51  ;;  %8384 = vmatprep.subr.bf16.mxu1 %v18137_v18  ;;  %v21276_v51 = vld [vmem:[#allocation3 + $0xe0] ss:$8 sps:$4 sm:$0xff]  }
 0x49e   :  { %12123 = vmatprep.subr.bf16.mxu0 %v18140_v12  ;;  %12149 = vmatprep.mubr.bf16.mxu0 %v22187_v0  ;;  %v18180_v12 = vld [vmem:[%s22176_s1 + $0x120] ss:$8 sps:$4 sm:$0xff]  }
 0x4a0   :  { %8385 = vmatpush1.bf16.msra.mxu1 %v18135_v56  ;;  %v21282_v56 = vld [vmem:[#allocation3 + $0xf4] ss:$8 sps:$4 sm:$0xff]  }
 0x4a1   :  { %12124 = vmatpush1.bf16.msra.mxu0 %v18138_v19  ;;  %9455 = vmatprep.subr.bf16.mxu1 %v18143_v8 }
 0x4a2   :  { %12125 = vmatprep.subr.bf16.mxu0 %v18146_v53 }
 0x4a3   :  { %8403 = vmatmul.mubr.bf16.vlgmr.msra.gmra.mrb[32].mxu1 %v20925_v57  ;;  %v18153_v57 = vld [vmem:[#allocation3 + $0xa0] ss:$8 sps:$4 sm:$0xff]  }
 0x4a4   :  { %9456 = vmatpush1.bf16.msra.mxu1 %v18141_v49  ;;  %8412 = vmatprep.mubr.bf16.mxu1 %v22187_v0  ;;  %v18188_v49 = vld [vmem:[%s22176_s1 + $0x134] ss:$8 sps:$4 sm:$0xff]  }
 0x4a5   :  { %12126 = vmatpush1.bf16.msra.mxu0 %v18144_v31  ;;  %9457 = vmatprep.subr.bf16.mxu1 %v18149_v36 }
 0x4a6   :  { %12127 = vmatprep.subr.bf16.mxu0 %v18152_v4 }
 0x4a7   :  { %v9269_v41 = vpop.f32.mrb[40].mxu0 }
 0x4a8   :  { %9458 = vmatpush1.bf16.msra.mxu1 %v18147_v11  ;;  %v9271_v59 = vpop.f32.mrb[41].mxu0  ;;  %v21292_v11 = vld [vmem:[#allocation3 + $0xf0] ss:$8 sps:$4 sm:$0xff]  }
 0x4a9   :  { %v9296_v58 = vmax.f32 %v9269_v41, %v9271_v59  ;;  %v9273_v34 = vpop.f32.mrb[42].mxu0  ;;  %12128 = vmatpush1.bf16.msra.mxu0 %v18150_v9  ;;  %9459 = vmatprep.subr.bf16.mxu1 %v18155_v40  ;;  %v18186_v9 = vld [vmem:[%s22176_s1 + $0x130] ss:$8 sps:$4 sm:$0xff]   ;;  %v21299_v40 = vld [vmem:[#allocation3 + $0x4] ss:$8 sps:$4 sm:$0xff]  }
 0x4aa   :  { %v9275_v50 = vpop.f32.mrb[43].mxu0  ;;  %12129 = vmatprep.subr.bf16.mxu0 %v18158_v47  ;;  %v18194_v59 = vld [vmem:[%s22176_s1 + $0x144] ss:$8 sps:$4 sm:$0xff]  }
 0x4ab   :  { %8413 = vmatmul.mubr.bf16.gmra.mrb[36].mxu1 %v8273_v10  ;;  %v9297_v42 = vmax.f32 %v9273_v34, %v9275_v50  ;;  %v9304_v38 = vrot.slane %v9296_v58, 1 }
 0x4ac   :  { %9460 = vmatpush1.bf16.msra.mxu1 %v18153_v57  ;;  %9487 = vmatprep.mubr.bf16.mxu1 %v22187_v0 }
 0x4ad   :  { %v9305_v30 = vrot.slane %v9297_v42, 1  ;;  %12130 = vmatpush1.bf16.msra.mxu0 %v18156_v48  ;;  %9461 = vmatprep.subr.bf16.mxu1 %v18161_v2  ;;  %v21315_v48 = vld [vmem:[#allocation3] ss:$8 sps:$4 sm:$0xff]  }
 0x4ae   :  { %12131 = vmatprep.subr.bf16.mxu0 %v18164_v55 }
 0x4af   :  { %v9306_v44 = vsel %vm395_vm0, %v9304_v38, %v9305_v30  ;;  %v9279_v33 = vpop.f32.mrb[44].mxu0 }
 0x4b0   :  { %v9315_v32 = vmax.f32 %v9296_v58, %v9306_v44  ;;  %9462 = vmatpush1.bf16.msra.mxu1 %v18159_v62  ;;  %v9281_v35 = vpop.f32.mrb[45].mxu0  ;;  %v21324_v62 = vld [vmem:[#allocation3 + $0x14] ss:$8 sps:$4 sm:$0xff]   ;;  %v18198_v44 = vld [vmem:[%s22176_s1 + $0x150] ss:$8 sps:$4 sm:$0xff]  }
 0x4b1   :  { %v9298_v54 = vmax.f32 %v9279_v33, %v9281_v35  ;;  %v9283_v27 = vpop.f32.mrb[46].mxu0  ;;  %12132 = vmatpush1.bf16.msra.mxu0 %v18162_v26  ;;  %9463 = vmatprep.subr.bf16.mxu1 %v18167_v1  ;;  %v21347_v33 = vld [vmem:[#allocation3 + $0x24] ss:$8 sps:$4 sm:$0xff]   ;;  %v21353_v35 = vld [vmem:[#allocation3 + $0x20] ss:$8 sps:$4 sm:$0xff]  }
 0x4b2   :  { %v9285_v63 = vpop.f32.mrb[47].mxu0  ;;  %12273 = vmatprep.subr.bf16.mxu0 %v18170_v52  ;;  %v9326_v20 = vadd.f32 %v15532_v60, %v9315_v32  ;;  %v21340_v52 = vld [vmem:[#allocation3 + $0x10] ss:$8 sps:$4 sm:$0xff]   ;;  %v18206_v32 = vld [vmem:[%s22176_s1 + $0x164] ss:$8 sps:$4 sm:$0xff]  }
 0x4b3   :  { %v9307_v6 = vrot.slane %v9298_v54, 1  ;;  %v9299_v14 = vmax.f32 %v9283_v27, %v9285_v63  ;;  %v18212_v27 = vld [vmem:[%s22176_s1 + $0x174] ss:$8 sps:$4 sm:$0xff]   ;;  %v18210_v63 = vld [vmem:[%s22176_s1 + $0x170] ss:$8 sps:$4 sm:$0xff]  }
 0x4b4   :  { %9464 = vmatpush1.bf16.msra.mxu1 %v18165_v15  ;;  %12150 = vmatmul.mubr.bf16.vlgmr.msra.gmra.mrb[56].mxu0 %v21155_v23  ;;  %v9330_v8 = vmax.f32 %v9326_v20, 0.0  ;;  %v18204_v15 = vld [vmem:[%s22176_s1 + $0x160] ss:$8 sps:$4 sm:$0xff]   ;;  %v18224_v20 = vld [vmem:[%s22176_s1 + $0x194] ss:$8 sps:$4 sm:$0xff]  }
 0x4b5   :  { %v9308_v16 = vsel %vm395_vm0, %v9305_v30, %v9307_v6  ;;  %v9309_v45 = vrot.slane %v9299_v14, 1  ;;  %12274 = vmatpush1.bf16.msra.mxu0 %v18168_v13  ;;  %9465 = vmatprep.subr.bf16.mxu1 %v21252_v61  ;;  %v18200_v30 = vld [vmem:[%s22176_s1 + $0x154] ss:$8 sps:$4 sm:$0xff]   ;;  %v21365_v13 = vld [vmem:[#allocation3 + $0x30] ss:$8 sps:$4 sm:$0xff]  }
 0x4b6   :  { %v9316_v21 = vmax.f32 %v9297_v42, %v9308_v16  ;;  %12275 = vmatprep.subr.bf16.mxu0 %v18176_v5  ;;  %12159 = vmatprep.mubr.bf16.mxu0 %v22187_v0  ;;  %v18192_v42 = vld [vmem:[%s22176_s1 + $0x140] ss:$8 sps:$4 sm:$0xff]   ;;  %v21372_v5 = vld [vmem:[#allocation3 + $0x44] ss:$8 sps:$4 sm:$0xff]  }
 0x4b7   :  { %v9310_v22 = vsel %vm395_vm0, %v9307_v6, %v9309_v45  ;;  %v9318_v17 = vmax.f32 %v9299_v14, %v9309_v45  ;;  %v12188_v6 = vrot.slane %v21155_v23, 1  ;;  %v12189_v14 = vrot.slane %v20967_v37, 1  ;;  %v21380_v16 = vld [vmem:[#allocation3 + $0x40] ss:$8 sps:$4 sm:$0xff]  }
 0x4b8   :  { %v9317_v25 = vmax.f32 %v9298_v54, %v9310_v22  ;;  %v9327_v28 = vadd.f32 %v15532_v60, %v9316_v21  ;;  %9466 = vmatpush1.bf16.msra.mxu1 %v21261_v39  ;;  %v21359_v54 = vld [vmem:[#allocation3 + $0x34] ss:$8 sps:$4 sm:$0xff]   ;;  %v18216_v45 = vld [vmem:[%s22176_s1 + $0x180] ss:$8 sps:$4 sm:$0xff]   ;;  %v18222_v22 = vld [vmem:[%s22176_s1 + $0x190] ss:$8 sps:$4 sm:$0xff]  }
 0x4b9   :  { %v9329_v18 = vadd.f32 %v15532_v60, %v9318_v17  ;;  %12276 = vmatpush1.bf16.msra.mxu0 %v18174_v43  ;;  %9467 = vmatprep.subr.bf16.mxu1 %v21268_v7  ;;  %v12190_v43 = vsel %vm395_vm0, %v12188_v6, %v12189_v14  ;;  %v21387_v21 = vld [vmem:[#allocation3 + $0x54] ss:$8 sps:$4 sm:$0xff]   ;;  %v21399_v17 = vld [vmem:[#allocation3 + $0x64] ss:$8 sps:$4 sm:$0xff]  }
 0x4ba   :  { %v9328_v19 = vadd.f32 %v15532_v60, %v9317_v25  ;;  %v9331_v53 = vmax.f32 %v9327_v28, 0.0  ;;  %12277 = vmatprep.subr.bf16.mxu0 %v18182_v3  ;;  %v18218_v60 = vld [vmem:[%s22176_s1 + $0x184] ss:$8 sps:$4 sm:$0xff]   ;;  %v21393_v3 = vld [vmem:[#allocation3 + $0x50] ss:$8 sps:$4 sm:$0xff]  }
 0x4bb   :  { %v21287_v31 = vmax.f32 %v9329_v18, 0.0  ;;  %v18230_v28 = vld [vmem:[%s22176_s1 + $0x1a4] ss:$8 sps:$4 sm:$0xff]  }
 0x4bc   :  { %v9332_v36 = vmax.f32 %v9328_v19, 0.0  ;;  %v21289_v4 = vpack.c.bf16 %v9331_v53, %v9330_v8  ;;  %9468 = vmatpush1.bf16.msra.mxu1 %v21276_v51  ;;  %12160 = vmatmul.mubr.bf16.gmra.mrb[60].mxu0 %v20967_v37  ;;  %v21406_v8 = vld [vmem:[#allocation3 + $0x60] ss:$8 sps:$4 sm:$0xff]  }
 0x4bd   :  { %12278 = vmatpush1.bf16.msra.mxu0 %v18180_v12  ;;  %9469 = vmatprep.subr.bf16.mxu1 %v21282_v56 }
 0x4be   :  { %v9795_v47 = vpack.c.bf16 %v21287_v31, %v9332_v36  ;;  %12279 = vmatprep.subr.bf16.mxu0 %v18188_v49  ;;  %v21302_v41 = vpack.c.bf16 %v9332_v36, %v9332_v36  ;;  %12305 = vmatprep.mubr.bf16.mxu0 %v22187_v0  ;;  %v9370_v57 = vrot.slane %v21289_v4, 1  ;;  %v9653_v58 = vrot.slane %v21289_v4, 2  ;;  %v18228_v49 = vld [vmem:[%s22176_s1 + $0x1a0] ss:$8 sps:$4 sm:$0xff]  }
 0x4bf   :  { %v21310_v34 = vpack.c.bf16 %v9332_v36, %v9331_v53  ;;  %v9813_v55 = vrot.slane %v21289_v4, 3  ;;  %v21412_v36 = vld [vmem:[#allocation3 + $0x74] ss:$8 sps:$4 sm:$0xff]  }
 0x4c0   :  { %v21312_v10 = vrot.slane %v9795_v47, 3  ;;  %9470 = vmatpush1.bf16.msra.mxu1 %v21292_v11  ;;  %v9371_v2 = vrot.slane %v21302_v41, 1  ;;  %v9654_v50 = vrot.slane %v21302_v41, 2  ;;  %v18236_v47 = vld [vmem:[%s22176_s1 + $0x1b4] ss:$8 sps:$4 sm:$0xff]  }
 0x4c1   :  { %12280 = vmatpush1.bf16.msra.mxu0 %v18186_v9  ;;  %9586 = vmatprep.subr.bf16.mxu1 %v21299_v40 }
 0x4c2   :  { %v9372_v38 = vsel %vm395_vm0, %v9370_v57, %v9371_v2  ;;  %12281 = vmatprep.subr.bf16.mxu0 %v18194_v59  ;;  %v21333_v26 = vsel %vm727_vm3, %v9653_v58, %v9654_v50  ;;  %v21337_v1 = vsel %vm1395_vm4, %v9813_v55, %v21312_v10  ;;  %v21418_v58 = vld [vmem:[#allocation3 + $0x70] ss:$8 sps:$4 sm:$0xff]  }
 0x4c3   :  { %9488 = vmatmul.mubr.bf16.vlgmr.msra.gmra.mrb[40].mxu1 %v9372_v38  ;;  %v18234_v55 = vld [vmem:[%s22176_s1 + $0x1b0] ss:$8 sps:$4 sm:$0xff]  }
 0x4c4   :  { %9587 = vmatpush1.bf16.msra.mxu1 %v21315_v48  ;;  %9497 = vmatprep.mubr.bf16.mxu1 %v22187_v0 }
 0x4c5   :  { %12282 = vmatpush1.bf16.msra.mxu0 %v18192_v42  ;;  %9588 = vmatprep.subr.bf16.mxu1 %v21324_v62  ;;  %v21427_v42 = vld [vmem:[#allocation3 + $0x104] ss:$8 sps:$4 sm:$0xff]  }
 0x4c6   :  { %12283 = vmatprep.subr.bf16.mxu0 %v18200_v30  ;;  %v21433_v30 = vld [vmem:[%s22179_s4] ss:$0 sm:$0xff] }
 0x4c8   :  { %9589 = vmatpush1.bf16.msra.mxu1 %v21340_v52 }
 0x4c9   :  { %12284 = vmatpush1.bf16.msra.mxu0 %v18198_v44  ;;  %9590 = vmatprep.subr.bf16.mxu1 %v21347_v33 }
 0x4ca   :  { %12285 = vmatprep.subr.bf16.mxu0 %v18206_v32  ;;  %v18242_v32 = vld [vmem:[%s22176_s1 + $0x1c4] ss:$8 sps:$4 sm:$0xff]  }
 0x4cb   :  { %9498 = vmatmul.mubr.bf16.gmra.mrb[44].mxu1 %v9371_v2  ;;  %v6761_v2 = vld [vmem:[%s22179_s4] sm:$0x1] }
 0x4cc   :  { %9591 = vmatpush1.bf16.msra.mxu1 %v21353_v35  ;;  %9618 = vmatprep.mubr.bf16.mxu1 %v22187_v0 }
 0x4cd   :  { %12286 = vmatpush1.bf16.msra.mxu0 %v18204_v15  ;;  %9592 = vmatprep.subr.bf16.mxu1 %v21359_v54 }
 0x4ce   :  { %12287 = vmatprep.subr.bf16.mxu0 %v18212_v27 }
 0x4d0   :  { %9593 = vmatpush1.bf16.msra.mxu1 %v21365_v13 }
 0x4d1   :  { %12288 = vmatpush1.bf16.msra.mxu0 %v18210_v63  ;;  %9594 = vmatprep.subr.bf16.mxu1 %v21372_v5 }
 0x4d2   :  { %12439 = vmatprep.subr.bf16.mxu0 %v18218_v60 }
 0x4d4   :  { %9595 = vmatpush1.bf16.msra.mxu1 %v21380_v16  ;;  %12306 = vmatmul.mubr.bf16.vlgmr.msra.gmra.mrb[56].mxu0 %v12190_v43 }
 0x4d5   :  { %12440 = vmatpush1.bf16.msra.mxu0 %v18216_v45  ;;  %9596 = vmatprep.subr.bf16.mxu1 %v21387_v21 }
 0x4d6   :  { %v6721_v25 = vpop.f32.mrb[24].mxu1  ;;  %12441 = vmatprep.subr.bf16.mxu0 %v18224_v20  ;;  %12315 = vmatprep.mubr.bf16.mxu0 %v22187_v0  ;;  %v18240_v20 = vld [vmem:[%s22176_s1 + $0x1c0] ss:$8 sps:$4 sm:$0xff]  }
 0x4d7   :  { %v6723_v18 = vpop.f32.mrb[25].mxu1 }
 0x4d8   :  { %v6744_v12 = vmax.f32 %v6721_v25, %v6723_v18  ;;  %v6725_v19 = vpop.f32.mrb[26].mxu1  ;;  %9597 = vmatpush1.bf16.msra.mxu1 %v21393_v3 }
 0x4d9   :  { %v6727_v53 = vpop.f32.mrb[27].mxu1  ;;  %12442 = vmatpush1.bf16.msra.mxu0 %v18222_v22  ;;  %9598 = vmatprep.subr.bf16.mxu1 %v21399_v17  ;;  %v21447_v22 = vld [vmem:[#allocation3 + $0x114] ss:$8 sps:$4 sm:$0xff]  }
 0x4da   :  { %v6745_v9 = vmax.f32 %v6725_v19, %v6727_v53  ;;  %12443 = vmatprep.subr.bf16.mxu0 %v18230_v28  ;;  %v6750_v59 = vrot.slane %v6744_v12, 2  ;;  %v18248_v28 = vld [vmem:[%s22176_s1 + $0x1d4] ss:$8 sps:$4 sm:$0xff]   ;;  %v6795_v19 = vld [vmem:[%s22179_s4] sm:$0x1] }
 0x4dc   :  { %v6751_v57 = vrot.slane %v6745_v9, 2  ;;  %9599 = vmatpush1.bf16.msra.mxu1 %v21406_v8  ;;  %12316 = vmatmul.mubr.bf16.gmra.mrb[60].mxu0 %v12189_v14  ;;  %v21440_v14 = vld [vmem:[#allocation3 + $0x100] ss:$8 sps:$4 sm:$0xff]  }
 0x4dd   :  { %12444 = vmatpush1.bf16.msra.mxu0 %v18228_v49  ;;  %9600 = vmatprep.subr.bf16.mxu1 %v21412_v36 }
 0x4de   :  { %v6752_v38 = vsel %vm727_vm3, %v6750_v59, %v6751_v57  ;;  %v6731_v44 = vpop.f32.mrb[28].mxu1  ;;  %12445 = vmatprep.subr.bf16.mxu0 %v18236_v47  ;;  %12471 = vmatprep.mubr.bf16.mxu0 %v22187_v0  ;;  %v6778_v47 = vld [vmem:[%s22179_s4] sm:$0x1] }
 0x4df   :  { %v6758_v15 = vmax.f32 %v6744_v12, %v6752_v38  ;;  %v6733_v27 = vpop.f32.mrb[29].mxu1  ;;  %v21461_v59 = vld [vmem:[#allocation3 + $0x110] ss:$8 sps:$4 sm:$0xff]  }
 0x4e0   :  { %v6746_v63 = vmax.f32 %v6731_v44, %v6733_v27  ;;  %v6735_v6 = vpop.f32.mrb[30].mxu1  ;;  %9601 = vmatpush1.bf16.msra.mxu1 %v21418_v58  ;;  %v18254_v44 = vld [vmem:[%s22176_s1 + $0x1e4] ss:$8 sps:$4 sm:$0xff]   ;;  %v21475_v27 = vld [vmem:[#allocation3 + $0x120] ss:$8 sps:$4 sm:$0xff]  }
 0x4e1   :  { %v6762_v60 = vadd.f32 %v6761_v2, %v6758_v15  ;;  %v6772_v45 = vadd.f32 %v21433_v30, %v6758_v15  ;;  %v6736_v43 = vpop.f32.mrb[31].mxu1  ;;  %12446 = vmatpush1.bf16.msra.mxu0 %v18234_v55  ;;  %9738 = vmatprep.subr.bf16.mxu1 %v21427_v42 }
 0x4e2   :  { %v6753_v25 = vrot.slane %v6746_v63, 2  ;;  %12447 = vmatprep.subr.bf16.mxu0 %v18242_v32  ;;  %v12350_v43 = vrot.slane %v11888_v46, 1  ;;  %v21499_v46 = vld [vmem:[#allocation3 + $0x144] ss:$8 sps:$4 sm:$0xff]  }
 0x4e3   :  { %v6763_v18 = vmax.f32 %v6762_v60, 0.0  ;;  %v6773_v12 = vmax.f32 %v6772_v45, 0.0  ;;  %9619 = vmatmul.mubr.bf16.vlgmr.msra.gmra.mrb[40].mxu1 %v21289_v4  ;;  %v18246_v4 = vld [vmem:[%s22176_s1 + $0x1d0] ss:$8 sps:$4 sm:$0xff]   ;;  %v21481_v45 = vld [vmem:[#allocation3 + $0x134] ss:$8 sps:$4 sm:$0xff]  }
 0x4e4   :  { %v6754_v53 = vsel %vm727_vm3, %v6751_v57, %v6753_v25  ;;  %v6760_v49 = vmax.f32 %v6746_v63, %v6753_v25  ;;  %9739 = vmatpush1.bf16.msra.mxu1 %v21440_v14  ;;  %9628 = vmatprep.mubr.bf16.mxu1 %v22187_v0  ;;  %v21468_v57 = vld [vmem:[#allocation3 + $0x124] ss:$8 sps:$4 sm:$0xff]   ;;  %v18252_v63 = vld [vmem:[%s22176_s1 + $0x1e0] ss:$8 sps:$4 sm:$0xff]  }
 0x4e5   :  { %6764 = vst [vmem:[#allocation2 + $0x3] sm:$0x1] %v6763_v18  ;;  %v6775_v2 = vrot.slane %v6773_v12, 4  ;;  %v6759_v55 = vmax.f32 %v6745_v9, %v6754_v53  ;;  %12448 = vmatpush1.bf16.msra.mxu0 %v18240_v20  ;;  %9740 = vmatprep.subr.bf16.mxu1 %v21447_v22  ;;  %v12351_v20 = vrot.slane %v11890_v24, 2  ;;  %v18260_v25 = vld [vmem:[%s22176_s1 + $0x1f4] ss:$8 sps:$4 sm:$0xff]  }
 0x4e6   :  { %v6796_v38 = vadd.f32 %v6795_v19, %v6760_v49  ;;  %12449 = vmatprep.subr.bf16.mxu0 %v18248_v28  ;;  %v21492_v18 = vld [vmem:[#allocation3 + $0x130] ss:$8 sps:$4 sm:$0xff]   ;;  %v18266_v19 = vld [vmem:[%s22176_s1 + $0x204] ss:$8 sps:$4 sm:$0xff]   ;;  %v21505_v53 = vld [vmem:[#allocation3 + $0x140] ss:$8 sps:$4 sm:$0xff]  }
 0x4e7   :  { %6777 = vst [vmem:[#allocation2 + $0xb] sm:$0x1] %v6775_v2  ;;  %v6779_v32 = vadd.f32 %v6778_v47, %v6759_v55  ;;  %v6789_v15 = vadd.f32 %v21433_v30, %v6759_v55  ;;  %v18258_v24 = vld [vmem:[%s22176_s1 + $0x1f0] ss:$8 sps:$4 sm:$0xff]   ;;  %v12352_v12 = vor.u32 %v12351_v20, %v12350_v43  ;;  %v18264_v49 = vld [vmem:[%s22176_s1 + $0x200] ss:$8 sps:$4 sm:$0xff]  }
 0x4e8   :  { %v6797_v9 = vmax.f32 %v6796_v38, 0.0  ;;  %9741 = vmatpush1.bf16.msra.mxu1 %v21461_v59  ;;  %v21513_v2 = vld [vmem:[#allocation3 + $0x154] ss:$8 sps:$4 sm:$0xff]   ;;  %v18270_v38 = vld [vmem:[%s22176_s1 + $0x210] ss:$8 sps:$4 sm:$0xff]  }
 0x4e9   :  { %v6780_v6 = vmax.f32 %v6779_v32, 0.0  ;;  %v6790_v60 = vmax.f32 %v6789_v15, 0.0  ;;  %12450 = vmatpush1.bf16.msra.mxu0 %v18246_v4  ;;  %9742 = vmatprep.subr.bf16.mxu1 %v21468_v57  ;;  %v12356_v47 = vsel %vm559_vm1, %v12352_v12, %v20991_v29  ;;  %v18272_v55 = vld [vmem:[%s22176_s1 + $0x214] ss:$8 sps:$4 sm:$0xff]   ;;  %v21519_v4 = vld [vmem:[#allocation3 + $0x150] ss:$8 sps:$4 sm:$0xff]  }
 0x4ea   :  { %6798 = vst [vmem:[#allocation2 + $0x23] sm:$0x1] %v6797_v9  ;;  %12451 = vmatprep.subr.bf16.mxu0 %v18254_v44  ;;  %v21525_v44 = vld [vmem:[#allocation3 + $0x164] ss:$8 sps:$4 sm:$0xff]   ;;  %v21532_v15 = vld [vmem:[#allocation3 + $0x160] ss:$8 sps:$4 sm:$0xff]  }
 0x4eb   :  { %6781 = vst [vmem:[#allocation2 + $0x13] sm:$0x1] %v6780_v6  ;;  %v6792_v28 = vrot.slane %v6790_v60, 4  ;;  %9629 = vmatmul.mubr.bf16.gmra.mrb[44].mxu1 %v21302_v41  ;;  %v18278_v32 = vld [vmem:[%s22176_s1 + $0x224] ss:$8 sps:$4 sm:$0xff]   ;;  %v12517_v41 = vrot.slane %v20967_v37, 2 }
 0x4ec   :  { %9743 = vmatpush1.bf16.msra.mxu1 %v21475_v27  ;;  %9770 = vmatprep.mubr.bf16.mxu1 %v22187_v0  ;;  %v18276_v9 = vld [vmem:[%s22176_s1 + $0x220] ss:$8 sps:$4 sm:$0xff]   ;;  %v18284_v6 = vld [vmem:[%s22176_s1 + $0x234] ss:$8 sps:$4 sm:$0xff]   ;;  %v18282_v43 = vld [vmem:[%s22176_s1 + $0x230] ss:$8 sps:$4 sm:$0xff]  }
 0x4ed   :  { %6794 = vst [vmem:[#allocation2 + $0x1b] sm:$0x1] %v6792_v28  ;;  %12452 = vmatpush1.bf16.msra.mxu0 %v18252_v63  ;;  %9744 = vmatprep.subr.bf16.mxu1 %v21481_v45  ;;  %v21538_v63 = vld [vmem:[#allocation3 + $0x174] ss:$8 sps:$4 sm:$0xff]   ;;  %v21544_v60 = vld [vmem:[#allocation3 + $0x170] ss:$8 sps:$4 sm:$0xff]  }
 0x4ee   :  { %12453 = vmatprep.subr.bf16.mxu0 %v18260_v25  ;;  %v21551_v20 = vld [vmem:[#allocation3 + $0x184] ss:$8 sps:$4 sm:$0xff]   ;;  %v21558_v28 = vld [vmem:[#allocation3 + $0x180] ss:$8 sps:$4 sm:$0xff]  }
 0x4ef   :  { %v18290_v25 = vld [vmem:[%s22176_s1 + $0x244] ss:$8 sps:$4 sm:$0xff]   ;;  %v18296_v12 = vld [vmem:[%s22176_s1 + $0x254] ss:$8 sps:$4 sm:$0xff]  }
 0x4f0   :  { %9745 = vmatpush1.bf16.msra.mxu1 %v21492_v18  ;;  %v21620_v37 = vld [vmem:[#allocation3 + $0x1e4] ss:$8 sps:$4 sm:$0xff]  }
 0x4f1   :  { %12454 = vmatpush1.bf16.msra.mxu0 %v18258_v24  ;;  %9746 = vmatprep.subr.bf16.mxu1 %v21499_v46  ;;  %v21564_v24 = vld [vmem:[#allocation3 + $0x194] ss:$8 sps:$4 sm:$0xff]   ;;  %22231 = vst [vmem:[#allocation12_spill] sm:$0xff] %v21620_v37 }
 0x4f2   :  { %12601 = vmatprep.subr.bf16.mxu0 %v18266_v19  ;;  %v21571_v19 = vld [vmem:[#allocation3 + $0x190] ss:$8 sps:$4 sm:$0xff]  }
 0x4f4   :  { %9747 = vmatpush1.bf16.msra.mxu1 %v21505_v53  ;;  %12472 = vmatmul.mubr.bf16.vlgmr.msra.gmra.mrb[56].mxu0 %v12356_v47  ;;  %v21578_v47 = vld [vmem:[#allocation3 + $0x1a4] ss:$8 sps:$4 sm:$0xff]  }
 0x4f5   :  { %12602 = vmatpush1.bf16.msra.mxu0 %v18264_v49  ;;  %9748 = vmatprep.subr.bf16.mxu1 %v21513_v2  ;;  %v18294_v49 = vld [vmem:[%s22176_s1 + $0x250] ss:$8 sps:$4 sm:$0xff]  }
 0x4f6   :  { %12603 = vmatprep.subr.bf16.mxu0 %v18272_v55  ;;  %12481 = vmatprep.mubr.bf16.mxu0 %v22187_v0  ;;  %v21584_v55 = vld [vmem:[#allocation3 + $0x1a0] ss:$8 sps:$4 sm:$0xff]  }
 0x4f8   :  { %9749 = vmatpush1.bf16.msra.mxu1 %v21519_v4 }
 0x4f9   :  { %12604 = vmatpush1.bf16.msra.mxu0 %v18270_v38  ;;  %9750 = vmatprep.subr.bf16.mxu1 %v21525_v44  ;;  %v18300_v38 = vld [vmem:[%s22176_s1 + $0x260] ss:$8 sps:$4 sm:$0xff]  }
 0x4fa   :  { %12605 = vmatprep.subr.bf16.mxu0 %v18278_v32  ;;  %v21590_v32 = vld [vmem:[#allocation3 + $0x1b4] ss:$8 sps:$4 sm:$0xff]  }
 0x4fb   :  { %22225 = vst [vmem:[#allocation6_spill] sm:$0xff] %v21590_v32 }
 0x4fc   :  { %9751 = vmatpush1.bf16.msra.mxu1 %v21532_v15  ;;  %12482 = vmatmul.mubr.bf16.gmra.mrb[60].mxu0 %v20991_v29  ;;  %v18288_v29 = vld [vmem:[%s22176_s1 + $0x240] ss:$8 sps:$4 sm:$0xff]  }
 0x4fd   :  { %12606 = vmatpush1.bf16.msra.mxu0 %v18276_v9  ;;  %9752 = vmatprep.subr.bf16.mxu1 %v21538_v63  ;;  %v18308_v9 = vld [vmem:[%s22176_s1 + $0x274] ss:$8 sps:$4 sm:$0xff]  }
 0x4fe   :  { %12607 = vmatprep.subr.bf16.mxu0 %v18284_v6  ;;  %12633 = vmatprep.mubr.bf16.mxu0 %v22187_v0  ;;  %v21598_v6 = vld [vmem:[#allocation3 + $0x1b0] ss:$8 sps:$4 sm:$0xff]  }
 0x4ff   :  { %22226 = vst [vmem:[#allocation7_spill] sm:$0xff] %v21598_v6 }
 0x500   :  { %9753 = vmatpush1.bf16.msra.mxu1 %v21544_v60 }
 0x501   :  { %12608 = vmatpush1.bf16.msra.mxu0 %v18282_v43  ;;  %9898 = vmatprep.subr.bf16.mxu1 %v21551_v20  ;;  %v18306_v43 = vld [vmem:[%s22176_s1 + $0x270] ss:$8 sps:$4 sm:$0xff]  }
 0x502   :  { %12609 = vmatprep.subr.bf16.mxu0 %v18290_v25  ;;  %v21605_v25 = vld [vmem:[#allocation3 + $0x1c4] ss:$8 sps:$4 sm:$0xff]  }
 0x503   :  { %9771 = vmatmul.mubr.bf16.vlgmr.msra.gmra.mrb[40].mxu1 %v21333_v26  ;;  %v18302_v26 = vld [vmem:[%s22176_s1 + $0x264] ss:$8 sps:$4 sm:$0xff]   ;;  %22227 = vst [vmem:[#allocation8_spill] sm:$0xff] %v21605_v25 }
 0x504   :  { %9899 = vmatpush1.bf16.msra.mxu1 %v21558_v28  ;;  %9780 = vmatprep.mubr.bf16.mxu1 %v22187_v0 }
 0x505   :  { %12610 = vmatpush1.bf16.msra.mxu0 %v18288_v29  ;;  %9900 = vmatprep.subr.bf16.mxu1 %v21564_v24  ;;  %v12516_v29 = vrot.slane %v21155_v23, 2  ;;  %v21624_v23 = vld [vmem:[#allocation3 + $0x1e0] ss:$8 sps:$4 sm:$0xff]  }
 0x506   :  { %12611 = vmatprep.subr.bf16.mxu0 %v18296_v12  ;;  %22232 = vst [vmem:[#allocation13_spill] sm:$0xff] %v21624_v23 }
 0x507   :  { %v12518_v12 = vsel %vm727_vm3, %v12516_v29, %v12517_v41  ;;  %v21636_v29 = vld [vmem:[#allocation3 + $0x200] ss:$8 sps:$4 sm:$0xff]  }
 0x508   :  { %9901 = vmatpush1.bf16.msra.mxu1 %v21571_v19  ;;  %22236 = vst [vmem:[#allocation17_spill] sm:$0xff] %v21636_v29 }
 0x509   :  { %12612 = vmatpush1.bf16.msra.mxu0 %v18294_v49  ;;  %9902 = vmatprep.subr.bf16.mxu1 %v21578_v47  ;;  %v21614_v49 = vld [vmem:[#allocation3 + $0x1d4] ss:$8 sps:$4 sm:$0xff]  }
 0x50a   :  { %12613 = vmatprep.subr.bf16.mxu0 %v18302_v26  ;;  %22229 = vst [vmem:[#allocation10_spill] sm:$0xff] %v21614_v49  ;;  %v21617_v26 = vld [vmem:[#allocation3 + $0x1d0] ss:$8 sps:$4 sm:$0xff]  }
 0x50b   :  { %9781 = vmatmul.mubr.bf16.gmra.mrb[44].mxu1 %v9654_v50  ;;  %v21610_v50 = vld [vmem:[#allocation3 + $0x1c0] ss:$8 sps:$4 sm:$0xff]   ;;  %22230 = vst [vmem:[#allocation11_spill] sm:$0xff] %v21617_v26 }
 0x50c   :  { %9903 = vmatpush1.bf16.msra.mxu1 %v21584_v55  ;;  %9930 = vmatprep.mubr.bf16.mxu1 %v22187_v0  ;;  %22228 = vst [vmem:[#allocation9_spill] sm:$0xff] %v21610_v50 }
 0x50d   :  { %12614 = vmatpush1.bf16.msra.mxu0 %v18300_v38  ;;  %9904 = vmatprep.subr.bf16.mxu1 %v21590_v32  ;;  %v21627_v38 = vld [vmem:[#allocation3 + $0x1f4] ss:$8 sps:$4 sm:$0xff]  }
 0x50e   :  { %12615 = vmatprep.subr.bf16.mxu0 %v18308_v9  ;;  %22233 = vst [vmem:[#allocation14_spill] sm:$0xff] %v21627_v38  ;;  %v21630_v9 = vld [vmem:[#allocation3 + $0x1f0] ss:$8 sps:$4 sm:$0xff]  }
 0x50f   :  { %22234 = vst [vmem:[#allocation15_spill] sm:$0xff] %v21630_v9 }
 0x510   :  { %9905 = vmatpush1.bf16.msra.mxu1 %v21598_v6 }
 0x511   :  { %12616 = vmatpush1.bf16.msra.mxu0 %v18306_v43  ;;  %9906 = vmatprep.subr.bf16.mxu1 %v21605_v25  ;;  %v21633_v43 = vld [vmem:[#allocation3 + $0x204] ss:$8 sps:$4 sm:$0xff]  }
 0x512   :  { %22235 = vst [vmem:[#allocation16_spill] sm:$0xff] %v21633_v43 }
 0x514   :  { %9907 = vmatpush1.bf16.msra.mxu1 %v21610_v50  ;;  %12634 = vmatmul.mubr.bf16.vlgmr.msra.gmra.mrb[56].mxu0 %v12518_v12  ;;  %v21639_v12 = vld [vmem:[#allocation3 + $0x214] ss:$8 sps:$4 sm:$0xff]  }
 0x515   :  { %9908 = vmatprep.subr.bf16.mxu1 %v21614_v49  ;;  %12643 = vmatprep.mubr.bf16.mxu0 %v22187_v0  ;;  %22237 = vst [vmem:[#allocation18_spill] sm:$0xff] %v21639_v12  ;;  %v21643_v0 = vld [vmem:[#allocation3 + $0x210] ss:$8 sps:$4 sm:$0xff]  }
 0x516   :  { %22238 = vst [vmem:[#allocation19_spill] sm:$0xff] %v21643_v0 }
 0x518   :  { %9909 = vmatpush1.bf16.msra.mxu1 %v21617_v26  ;;  %v21710_v26 = vld [vmem:[#allocation3 + $0xb0] ss:$8 sps:$4 sm:$0xff]  }
 0x519   :  { %9910 = vmatprep.subr.bf16.mxu1 %v21620_v37  ;;  %22259 = vst [vmem:[#allocation39_spill] sm:$0xff] %v21710_v26 }
 0x51c   :  { %9911 = vmatpush1.bf16.msra.mxu1 %v21624_v23  ;;  %12644 = vmatmul.mubr.bf16.gmra.mrb[60].mxu0 %v12517_v41  ;;  %v22239_v41 = vmov 0  }
 0x51d   :  { %9912 = vmatprep.subr.bf16.mxu1 %v21627_v38  ;;  %v21647_v38 = vld [vmem:[#allocation3 + $0x224] ss:$8 sps:$4 sm:$0xff]  }
 0x51e   :  { %22240 = vst [vmem:[#allocation20_spill] sm:$0xff] %v21647_v38 }
 0x520   :  { %9913 = vmatpush1.bf16.msra.mxu1 %v21630_v9  ;;  %v21650_v9 = vld [vmem:[#allocation3 + $0x220] ss:$8 sps:$4 sm:$0xff]  }
 0x521   :  { %10053 = vmatprep.subr.bf16.mxu1 %v21633_v43  ;;  %22241 = vst [vmem:[#allocation21_spill] sm:$0xff] %v21650_v9  ;;  %v21653_v43 = vld [vmem:[#allocation3 + $0x234] ss:$8 sps:$4 sm:$0xff]  }
 0x522   :  { %22242 = vst [vmem:[#allocation22_spill] sm:$0xff] %v21653_v43 }
 0x523   :  { %9931 = vmatmul.mubr.bf16.vlgmr.msra.gmra.mrb[40].mxu1 %v21337_v1  ;;  %v21657_v1 = vld [vmem:[#allocation3 + $0x230] ss:$8 sps:$4 sm:$0xff]  }
 0x524   :  { %10054 = vmatpush1.bf16.msra.mxu1 %v21636_v29  ;;  %9940 = vmatprep.mubr.bf16.mxu1 %v22239_v41  ;;  %22243 = vst [vmem:[#allocation23_spill] sm:$0xff] %v21657_v1  ;;  %v21702_v29 = vld [vmem:[#allocation3 + $0xa0] ss:$8 sps:$4 sm:$0xff]  }
 0x525   :  { %10055 = vmatprep.subr.bf16.mxu1 %v21639_v12  ;;  %v21661_v12 = vld [vmem:[#allocation3 + $0x244] ss:$8 sps:$4 sm:$0xff]   ;;  %22257 = vst [vmem:[#allocation37_spill] sm:$0xff] %v21702_v29 }
 0x526   :  { %22244 = vst [vmem:[#allocation24_spill] sm:$0xff] %v21661_v12 }
 0x528   :  { %10056 = vmatpush1.bf16.msra.mxu1 %v21643_v0  ;;  %v21664_v0 = vld [vmem:[#allocation3 + $0x240] ss:$8 sps:$4 sm:$0xff]  }
 0x529   :  { %10057 = vmatprep.subr.bf16.mxu1 %v21647_v38  ;;  %22245 = vst [vmem:[#allocation25_spill] sm:$0xff] %v21664_v0  ;;  %v21667_v38 = vld [vmem:[#allocation3 + $0x254] ss:$8 sps:$4 sm:$0xff]  }
 0x52a   :  { %22246 = vst [vmem:[#allocation26_spill] sm:$0xff] %v21667_v38 }
 0x52b   :  { %9941 = vmatmul.mubr.bf16.gmra.mrb[44].mxu1 %v21312_v10  ;;  %v21670_v10 = vld [vmem:[#allocation3 + $0x250] ss:$8 sps:$4 sm:$0xff]  }
 0x52c   :  { %10058 = vmatpush1.bf16.msra.mxu1 %v21650_v9  ;;  %10085 = vmatprep.mubr.bf16.mxu1 %v22239_v41  ;;  %22247 = vst [vmem:[#allocation27_spill] sm:$0xff] %v21670_v10  ;;  %v21673_v9 = vld [vmem:[#allocation3 + $0x264] ss:$8 sps:$4 sm:$0xff]  }
 0x52d   :  { %10059 = vmatprep.subr.bf16.mxu1 %v21653_v43  ;;  %22248 = vst [vmem:[#allocation28_spill] sm:$0xff] %v21673_v9  ;;  %v21676_v43 = vld [vmem:[#allocation3 + $0x260] ss:$8 sps:$4 sm:$0xff]  }
 0x52e   :  { %22249 = vst [vmem:[#allocation29_spill] sm:$0xff] %v21676_v43 }
 0x530   :  { %10060 = vmatpush1.bf16.msra.mxu1 %v21657_v1  ;;  %v21679_v1 = vld [vmem:[#allocation3 + $0x274] ss:$8 sps:$4 sm:$0xff]  }
 0x531   :  { %10061 = vmatprep.subr.bf16.mxu1 %v21661_v12  ;;  %22250 = vst [vmem:[#allocation30_spill] sm:$0xff] %v21679_v1  ;;  %v21682_v12 = vld [vmem:[#allocation3 + $0x270] ss:$8 sps:$4 sm:$0xff]  }
 0x532   :  { %22251 = vst [vmem:[#allocation31_spill] sm:$0xff] %v21682_v12 }
 0x534   :  { %10062 = vmatpush1.bf16.msra.mxu1 %v21664_v0  ;;  %v21685_v0 = vld [vmem:[#allocation3 + $0x84] ss:$8 sps:$4 sm:$0xff]  }
 0x535   :  { %10063 = vmatprep.subr.bf16.mxu1 %v21667_v38  ;;  %22252 = vst [vmem:[#allocation32_spill] sm:$0xff] %v21685_v0  ;;  %v21688_v38 = vld [vmem:[#allocation3 + $0x80] ss:$8 sps:$4 sm:$0xff]  }
 0x536   :  { %22253 = vst [vmem:[#allocation33_spill] sm:$0xff] %v21688_v38 }
 0x538   :  { %10064 = vmatpush1.bf16.msra.mxu1 %v21670_v10  ;;  %v21691_v10 = vld [vmem:[#allocation3 + $0x94] ss:$8 sps:$4 sm:$0xff]  }
 0x539   :  { %10065 = vmatprep.subr.bf16.mxu1 %v21673_v9  ;;  %22254 = vst [vmem:[#allocation34_spill] sm:$0xff] %v21691_v10  ;;  %v21695_v9 = vld [vmem:[#allocation3 + $0x90] ss:$8 sps:$4 sm:$0xff]  }
 0x53a   :  { %22255 = vst [vmem:[#allocation35_spill] sm:$0xff] %v21695_v9 }
 0x53c   :  { %10066 = vmatpush1.bf16.msra.mxu1 %v21676_v43 }
 0x53d   :  { %10067 = vmatprep.subr.bf16.mxu1 %v21679_v1  ;;  %v21699_v1 = vld [vmem:[#allocation3 + $0xa4] ss:$8 sps:$4 sm:$0xff]  }
 0x53e   :  { %22256 = vst [vmem:[#allocation36_spill] sm:$0xff] %v21699_v1 }
 0x540   :  { %10068 = vmatpush1.bf16.msra.mxu1 %v21682_v12 }
 0x541   :  { %11138 = vmatprep.subr.bf16.mxu1 %v21685_v0 }
 0x543   :  { %10086 = vmatmul.mubr.bf16.vlgmr.msra.gmra.mrb[40].mxu1 %v21310_v34  ;;  %v9956_v34 = vpack.c.bf16 %v21287_v31, %v21287_v31 }
 0x544   :  { %11139 = vmatpush1.bf16.msra.mxu1 %v21688_v38  ;;  %10095 = vmatprep.mubr.bf16.mxu1 %v22239_v41  ;;  %v21707_v38 = vld [vmem:[#allocation3 + $0xb4] ss:$8 sps:$4 sm:$0xff]  }
 0x545   :  { %11140 = vmatprep.subr.bf16.mxu1 %v21691_v10  ;;  %22258 = vst [vmem:[#allocation38_spill] sm:$0xff] %v21707_v38 }
 0x547   :  { %v10952_v43 = vpop.f32.mrb[48].mxu0 }
 0x548   :  { %11141 = vmatpush1.bf16.msra.mxu1 %v21695_v9  ;;  %v10954_v12 = vpop.f32.mrb[49].mxu0 }
 0x549   :  { %v10979_v0 = vmax.f32 %v10952_v43, %v10954_v12  ;;  %v10956_v23 = vpop.f32.mrb[50].mxu0  ;;  %11142 = vmatprep.subr.bf16.mxu1 %v21699_v1  ;;  %v21714_v43 = vld [vmem:[#allocation3 + $0xc4] ss:$8 sps:$4 sm:$0xff]  }
 0x54a   :  { %v10958_v37 = vpop.f32.mrb[51].mxu0  ;;  %22260 = vst [vmem:[#allocation40_spill] sm:$0xff] %v21714_v43 }
 0x54b   :  { %10096 = vmatmul.mubr.bf16.gmra.mrb[44].mxu1 %v9956_v34  ;;  %v10980_v10 = vmax.f32 %v10956_v23, %v10958_v37  ;;  %v10987_v9 = vrot.slane %v10979_v0, 1  ;;  %v21718_v37 = vld [vmem:[#allocation3 + $0xc0] ss:$8 sps:$4 sm:$0xff]  }
 0x54c   :  { %11143 = vmatpush1.bf16.msra.mxu1 %v21702_v29  ;;  %11170 = vmatprep.mubr.bf16.mxu1 %v22239_v41  ;;  %22261 = vst [vmem:[#allocation41_spill] sm:$0xff] %v21718_v37 }
 0x54d   :  { %v10988_v49 = vrot.slane %v10980_v10, 1  ;;  %11144 = vmatprep.subr.bf16.mxu1 %v21707_v38  ;;  %v21724_v38 = vld [vmem:[%s22177_s2] ss:$0 sm:$0xff] }
 0x54f   :  { %v10989_v31 = vsel %vm395_vm0, %v10987_v9, %v10988_v49  ;;  %v10962_v12 = vpop.f32.mrb[52].mxu0 }
 0x550   :  { %v10998_v1 = vmax.f32 %v10979_v0, %v10989_v31  ;;  %11145 = vmatpush1.bf16.msra.mxu1 %v21710_v26  ;;  %v10964_v34 = vpop.f32.mrb[53].mxu0 }
 0x551   :  { %v10981_v23 = vmax.f32 %v10962_v12, %v10964_v34  ;;  %v10966_v29 = vpop.f32.mrb[54].mxu0  ;;  %11146 = vmatprep.subr.bf16.mxu1 %v21714_v43 }
 0x552   :  { %v10968_v50 = vpop.f32.mrb[55].mxu0  ;;  %v11009_v12 = vadd.f32 %v21724_v38, %v10998_v1 }
 0x553   :  { %v10990_v25 = vrot.slane %v10981_v23, 1  ;;  %v10982_v6 = vmax.f32 %v10966_v29, %v10968_v50 }
 0x554   :  { %11147 = vmatpush1.bf16.msra.mxu1 %v21718_v37  ;;  %v11013_v37 = vmax.f32 %v11009_v12, 0.0 }
 0x555   :  { %v10991_v0 = vsel %vm395_vm0, %v10988_v49, %v10990_v25  ;;  %v10992_v9 = vrot.slane %v10982_v6, 1  ;;  %11148 = vmatprep.subr.bf16.mxu1 %v21252_v61 }
 0x556   :  { %v10999_v31 = vmax.f32 %v10980_v10, %v10991_v0 }
 0x557   :  { %v10993_v34 = vsel %vm395_vm0, %v10990_v25, %v10992_v9  ;;  %v11001_v43 = vmax.f32 %v10982_v6, %v10992_v9 }
 0x558   :  { %v11000_v26 = vmax.f32 %v10981_v23, %v10993_v34  ;;  %v11010_v50 = vadd.f32 %v21724_v38, %v10999_v31  ;;  %11149 = vmatpush1.bf16.msra.mxu1 %v21261_v39 }
 0x559   :  { %v11012_v29 = vadd.f32 %v21724_v38, %v11001_v43  ;;  %11150 = vmatprep.subr.bf16.mxu1 %v21268_v7 }
 0x55a   :  { %v11011_v49 = vadd.f32 %v21724_v38, %v11000_v26  ;;  %v11014_v32 = vmax.f32 %v11010_v50, 0.0 }
 0x55b   :  { %v21736_v61 = vmax.f32 %v11012_v29, 0.0  ;;  %v8478_v29 = vld [vmem:[%s22179_s4] sm:$0x1] }
 0x55c   :  { %v11015_v10 = vmax.f32 %v11011_v49, 0.0  ;;  %v11017_v1 = vpack.c.bf16 %v11014_v32, %v11013_v37  ;;  %11151 = vmatpush1.bf16.msra.mxu1 %v21276_v51 }
 0x55d   :  { %11152 = vmatprep.subr.bf16.mxu1 %v21282_v56 }
 0x55e   :  { %v11478_v6 = vpack.c.bf16 %v21736_v61, %v11015_v10  ;;  %v21741_v25 = vpack.c.bf16 %v11015_v10, %v11015_v10  ;;  %v11053_v39 = vrot.slane %v11017_v1, 1  ;;  %v11336_v43 = vrot.slane %v11017_v1, 2 }
 0x55f   :  { %v21743_v23 = vpack.c.bf16 %v11015_v10, %v11014_v32  ;;  %v11496_v0 = vrot.slane %v11017_v1, 3 }
 0x560   :  { %v21745_v7 = vrot.slane %v11478_v6, 3  ;;  %11153 = vmatpush1.bf16.msra.mxu1 %v21292_v11  ;;  %v11054_v26 = vrot.slane %v21741_v25, 1  ;;  %v11337_v37 = vrot.slane %v21741_v25, 2 }
 0x561   :  { %11269 = vmatprep.subr.bf16.mxu1 %v21299_v40 }
 0x562   :  { %v11055_v51 = vsel %vm395_vm0, %v11053_v39, %v11054_v26  ;;  %v21755_v56 = vsel %vm727_vm3, %v11336_v43, %v11337_v37  ;;  %v21759_v32 = vsel %vm1395_vm4, %v11496_v0, %v21745_v7 }
 0x563   :  { %11171 = vmatmul.mubr.bf16.vlgmr.msra.gmra.mrb[48].mxu1 %v11055_v51 }
 0x564   :  { %11270 = vmatpush1.bf16.msra.mxu1 %v21315_v48  ;;  %11180 = vmatprep.mubr.bf16.mxu1 %v22239_v41 }
 0x565   :  { %11271 = vmatprep.subr.bf16.mxu1 %v21324_v62 }
 0x568   :  { %11272 = vmatpush1.bf16.msra.mxu1 %v21340_v52 }
 0x569   :  { %11273 = vmatprep.subr.bf16.mxu1 %v21347_v33 }
 0x56b   :  { %11181 = vmatmul.mubr.bf16.gmra.mrb[52].mxu1 %v11054_v26 }
 0x56c   :  { %11274 = vmatpush1.bf16.msra.mxu1 %v21353_v35  ;;  %11301 = vmatprep.mubr.bf16.mxu1 %v22239_v41 }
 0x56d   :  { %11275 = vmatprep.subr.bf16.mxu1 %v21359_v54 }
 0x570   :  { %11276 = vmatpush1.bf16.msra.mxu1 %v21365_v13 }
 0x571   :  { %11277 = vmatprep.subr.bf16.mxu1 %v21372_v5  ;;  %v8444_v5 = vld [vmem:[%s22179_s4] sm:$0x1] }
 0x574   :  { %11278 = vmatpush1.bf16.msra.mxu1 %v21380_v16 }
 0x575   :  { %11279 = vmatprep.subr.bf16.mxu1 %v21387_v21 }
 0x576   :  { %v8404_v11 = vpop.f32.mrb[32].mxu1 }
 0x577   :  { %v8406_v40 = vpop.f32.mrb[33].mxu1 }
 0x578   :  { %v8427_v48 = vmax.f32 %v8404_v11, %v8406_v40  ;;  %v8408_v62 = vpop.f32.mrb[34].mxu1  ;;  %11280 = vmatpush1.bf16.msra.mxu1 %v21393_v3  ;;  %v22288_v11 = vld [vmem:[#allocation32_spill] sm:$0xff]  ;;  %v22289_v40 = vld [vmem:[#allocation33_spill] sm:$0xff] }
 0x579   :  { %v8410_v52 = vpop.f32.mrb[35].mxu1  ;;  %11281 = vmatprep.subr.bf16.mxu1 %v21399_v17 }
 0x57a   :  { %v8428_v33 = vmax.f32 %v8408_v62, %v8410_v52  ;;  %v8433_v35 = vrot.slane %v8427_v48, 2  ;;  %v22291_v52 = vld [vmem:[#allocation35_spill] sm:$0xff] }
 0x57c   :  { %v8434_v54 = vrot.slane %v8428_v33, 2  ;;  %11282 = vmatpush1.bf16.msra.mxu1 %v21406_v8 }
 0x57d   :  { %11283 = vmatprep.subr.bf16.mxu1 %v21412_v36 }
 0x57e   :  { %v8435_v13 = vsel %vm727_vm3, %v8433_v35, %v8434_v54  ;;  %v8414_v16 = vpop.f32.mrb[36].mxu1 }
 0x57f   :  { %v8441_v21 = vmax.f32 %v8427_v48, %v8435_v13  ;;  %v8416_v9 = vpop.f32.mrb[37].mxu1  ;;  %v22290_v48 = vld [vmem:[#allocation34_spill] sm:$0xff]  ;;  %v11639_v13 = vpack.c.bf16 %v21736_v61, %v21736_v61 }
 0x580   :  { %v8429_v3 = vmax.f32 %v8414_v16, %v8416_v9  ;;  %v8418_v31 = vpop.f32.mrb[38].mxu1  ;;  %11284 = vmatpush1.bf16.msra.mxu1 %v21418_v58  ;;  %v8461_v58 = vld [vmem:[%s22179_s4] sm:$0x1] }
 0x581   :  { %v8445_v17 = vadd.f32 %v8444_v5, %v8441_v21  ;;  %v8455_v12 = vadd.f32 %v21433_v30, %v8441_v21  ;;  %v8419_v34 = vpop.f32.mrb[39].mxu1  ;;  %11421 = vmatprep.subr.bf16.mxu1 %v21427_v42  ;;  %v22292_v5 = vld [vmem:[#allocation36_spill] sm:$0xff]  ;;  %v22293_v21 = vld [vmem:[#allocation37_spill] sm:$0xff]  ;;  %v22294_v31 = vld [vmem:[#allocation38_spill] sm:$0xff] }
 0x582   :  { %v8436_v8 = vrot.slane %v8429_v3, 2 }
 0x583   :  { %v8446_v36 = vmax.f32 %v8445_v17, 0.0  ;;  %v8456_v50 = vmax.f32 %v8455_v12, 0.0  ;;  %11302 = vmatmul.mubr.bf16.vlgmr.msra.gmra.mrb[48].mxu1 %v11017_v1 }
 0x584   :  { %v8437_v49 = vsel %vm727_vm3, %v8434_v54, %v8436_v8  ;;  %v8443_v10 = vmax.f32 %v8429_v3, %v8436_v8  ;;  %11422 = vmatpush1.bf16.msra.mxu1 %v21440_v14  ;;  %11311 = vmatprep.mubr.bf16.mxu1 %v22239_v41  ;;  %v22295_v8 = vld [vmem:[#allocation39_spill] sm:$0xff] }
 0x585   :  { %8447 = vst [vmem:[#allocation2 + $0x4] sm:$0x1] %v8446_v36  ;;  %v8458_v42 = vrot.slane %v8456_v50, 4  ;;  %v8442_v6 = vmax.f32 %v8428_v33, %v8437_v49  ;;  %11423 = vmatprep.subr.bf16.mxu1 %v21447_v22  ;;  %v22263_v22 = vld [vmem:[#allocation7_spill] sm:$0xff]  ;;  %v18362_v49 = vld [vmem:[#allocation3 + $0xd4] ss:$8 sps:$4 sm:$0xff]  }
 0x586   :  { %v8479_v39 = vadd.f32 %v8478_v29, %v8443_v10  ;;  %v22296_v29 = vld [vmem:[#allocation40_spill] sm:$0xff] }
 0x587   :  { %8460 = vst [vmem:[#allocation2 + $0xc] sm:$0x1] %v8458_v42  ;;  %v8462_v43 = vadd.f32 %v8461_v58, %v8442_v6  ;;  %v8472_v1 = vadd.f32 %v21433_v30, %v8442_v6  ;;  %v22262_v30 = vld [vmem:[#allocation6_spill] sm:$0xff]  ;;  %v22297_v6 = vld [vmem:[#allocation41_spill] sm:$0xff] }
 0x588   :  { %v8480_v26 = vmax.f32 %v8479_v39, 0.0  ;;  %11424 = vmatpush1.bf16.msra.mxu1 %v21461_v59  ;;  %v22264_v59 = vld [vmem:[#allocation8_spill] sm:$0xff] }
 0x589   :  { %v8463_v0 = vmax.f32 %v8462_v43, 0.0  ;;  %v8473_v51 = vmax.f32 %v8472_v1, 0.0  ;;  %11425 = vmatprep.subr.bf16.mxu1 %v21468_v57  ;;  %v22265_v57 = vld [vmem:[#allocation9_spill] sm:$0xff] }
 0x58a   :  { %8481 = vst [vmem:[#allocation2 + $0x24] sm:$0x1] %v8480_v26  ;;  %v18360_v39 = vld [vmem:[#allocation3 + $0xd0] ss:$8 sps:$4 sm:$0xff]   ;;  %v18365_v26 = vld [vmem:[#allocation3 + $0xe4] ss:$8 sps:$4 sm:$0xff]  }
 0x58b   :  { %8464 = vst [vmem:[#allocation2 + $0x14] sm:$0x1] %v8463_v0  ;;  %v8475_v14 = vrot.slane %v8473_v51, 4  ;;  %11312 = vmatmul.mubr.bf16.gmra.mrb[52].mxu1 %v21741_v25  ;;  %v22283_v25 = vld [vmem:[#allocation27_spill] sm:$0xff] }
 0x58c   :  { %11426 = vmatpush1.bf16.msra.mxu1 %v21475_v27  ;;  %11453 = vmatprep.mubr.bf16.mxu1 %v22239_v41  ;;  %v22266_v27 = vld [vmem:[#allocation10_spill] sm:$0xff] }
 0x58d   :  { %8477 = vst [vmem:[#allocation2 + $0x1c] sm:$0x1] %v8475_v14  ;;  %11427 = vmatprep.subr.bf16.mxu1 %v21481_v45  ;;  %v22267_v45 = vld [vmem:[#allocation11_spill] sm:$0xff] }
 0x590   :  { %11428 = vmatpush1.bf16.msra.mxu1 %v21492_v18  ;;  %v22268_v18 = vld [vmem:[#allocation12_spill] sm:$0xff] }
 0x591   :  { %11429 = vmatprep.subr.bf16.mxu1 %v21499_v46  ;;  %v22269_v46 = vld [vmem:[#allocation13_spill] sm:$0xff] }
 0x594   :  { %11430 = vmatpush1.bf16.msra.mxu1 %v21505_v53  ;;  %v22270_v53 = vld [vmem:[#allocation14_spill] sm:$0xff] }
 0x595   :  { %11431 = vmatprep.subr.bf16.mxu1 %v21513_v2  ;;  %v22271_v2 = vld [vmem:[#allocation15_spill] sm:$0xff] }
 0x598   :  { %11432 = vmatpush1.bf16.msra.mxu1 %v21519_v4  ;;  %v22272_v4 = vld [vmem:[#allocation16_spill] sm:$0xff] }
 0x599   :  { %11433 = vmatprep.subr.bf16.mxu1 %v21525_v44  ;;  %v22273_v44 = vld [vmem:[#allocation17_spill] sm:$0xff] }
 0x59c   :  { %11434 = vmatpush1.bf16.msra.mxu1 %v21532_v15  ;;  %v22274_v15 = vld [vmem:[#allocation18_spill] sm:$0xff] }
 0x59d   :  { %11435 = vmatprep.subr.bf16.mxu1 %v21538_v63  ;;  %v22275_v63 = vld [vmem:[#allocation19_spill] sm:$0xff] }
 0x5a0   :  { %11436 = vmatpush1.bf16.msra.mxu1 %v21544_v60  ;;  %v22276_v60 = vld [vmem:[#allocation20_spill] sm:$0xff] }
 0x5a1   :  { %11581 = vmatprep.subr.bf16.mxu1 %v21551_v20  ;;  %v22277_v20 = vld [vmem:[#allocation21_spill] sm:$0xff] }
 0x5a3   :  { %11454 = vmatmul.mubr.bf16.vlgmr.msra.gmra.mrb[48].mxu1 %v21755_v56  ;;  %v22285_v56 = vld [vmem:[#allocation29_spill] sm:$0xff] }
 0x5a4   :  { %11582 = vmatpush1.bf16.msra.mxu1 %v21558_v28  ;;  %11463 = vmatprep.mubr.bf16.mxu1 %v22239_v41  ;;  %v22278_v28 = vld [vmem:[#allocation22_spill] sm:$0xff] }
 0x5a5   :  { %11583 = vmatprep.subr.bf16.mxu1 %v21564_v24  ;;  %v22279_v24 = vld [vmem:[#allocation23_spill] sm:$0xff] }
 0x5a8   :  { %11584 = vmatpush1.bf16.msra.mxu1 %v21571_v19  ;;  %v22280_v19 = vld [vmem:[#allocation24_spill] sm:$0xff] }
 0x5a9   :  { %11585 = vmatprep.subr.bf16.mxu1 %v21578_v47  ;;  %v22281_v47 = vld [vmem:[#allocation25_spill] sm:$0xff] }
 0x5ab   :  { %11464 = vmatmul.mubr.bf16.gmra.mrb[52].mxu1 %v11337_v37  ;;  %v22284_v37 = vld [vmem:[#allocation28_spill] sm:$0xff] }
 0x5ac   :  { %11586 = vmatpush1.bf16.msra.mxu1 %v21584_v55  ;;  %11613 = vmatprep.mubr.bf16.mxu1 %v22239_v41  ;;  %v22282_v55 = vld [vmem:[#allocation26_spill] sm:$0xff] }
 0x5ad   :  { %11587 = vmatprep.subr.bf16.mxu1 %v22262_v30 }
 0x5b0   :  { %11588 = vmatpush1.bf16.msra.mxu1 %v22263_v22 }
 0x5b1   :  { %11589 = vmatprep.subr.bf16.mxu1 %v22264_v59 }
 0x5b4   :  { %11590 = vmatpush1.bf16.msra.mxu1 %v22265_v57  ;;  %v18363_v57 = vld [vmem:[#allocation3 + $0xe0] ss:$8 sps:$4 sm:$0xff]  }
 0x5b5   :  { %11591 = vmatprep.subr.bf16.mxu1 %v22266_v27 }
 0x5b8   :  { %11592 = vmatpush1.bf16.msra.mxu1 %v22267_v45  ;;  %v18368_v45 = vld [vmem:[#allocation3 + $0xf4] ss:$8 sps:$4 sm:$0xff]  }
 0x5b9   :  { %11593 = vmatprep.subr.bf16.mxu1 %v22268_v18 }
 0x5bc   :  { %11594 = vmatpush1.bf16.msra.mxu1 %v22269_v46 }
 0x5bd   :  { %11595 = vmatprep.subr.bf16.mxu1 %v22270_v53 }
 0x5c0   :  { %11596 = vmatpush1.bf16.msra.mxu1 %v22271_v2 }
 0x5c1   :  { %11736 = vmatprep.subr.bf16.mxu1 %v22272_v4 }
 0x5c3   :  { %11614 = vmatmul.mubr.bf16.vlgmr.msra.gmra.mrb[48].mxu1 %v21759_v32  ;;  %v22287_v32 = vld [vmem:[#allocation31_spill] sm:$0xff] }
 0x5c4   :  { %11737 = vmatpush1.bf16.msra.mxu1 %v22273_v44  ;;  %11623 = vmatprep.mubr.bf16.mxu1 %v22239_v41 }
 0x5c5   :  { %11738 = vmatprep.subr.bf16.mxu1 %v22274_v15  ;;  %v18366_v15 = vld [vmem:[#allocation3 + $0xf0] ss:$8 sps:$4 sm:$0xff]  }
 0x5c8   :  { %11739 = vmatpush1.bf16.msra.mxu1 %v22275_v63  ;;  %v18371_v63 = vld [vmem:[#allocation3 + $0x4] ss:$8 sps:$4 sm:$0xff]  }
 0x5c9   :  { %11740 = vmatprep.subr.bf16.mxu1 %v22276_v60 }
 0x5cb   :  { %11624 = vmatmul.mubr.bf16.gmra.mrb[52].mxu1 %v21745_v7  ;;  %v22286_v7 = vld [vmem:[#allocation30_spill] sm:$0xff] }
 0x5cc   :  { %11741 = vmatpush1.bf16.msra.mxu1 %v22277_v20  ;;  %11768 = vmatprep.mubr.bf16.mxu1 %v22239_v41 }
 0x5cd   :  { %11742 = vmatprep.subr.bf16.mxu1 %v22278_v28 }
 0x5d0   :  { %11743 = vmatpush1.bf16.msra.mxu1 %v22279_v24 }
 0x5d1   :  { %11744 = vmatprep.subr.bf16.mxu1 %v22280_v19 }
 0x5d4   :  { %11745 = vmatpush1.bf16.msra.mxu1 %v22281_v47  ;;  %v18369_v47 = vld [vmem:[#allocation3] ss:$8 sps:$4 sm:$0xff]  }
 0x5d5   :  { %11746 = vmatprep.subr.bf16.mxu1 %v22282_v55 }
 0x5d8   :  { %11747 = vmatpush1.bf16.msra.mxu1 %v22283_v25 }
 0x5d9   :  { %11748 = vmatprep.subr.bf16.mxu1 %v22284_v37 }
 0x5dc   :  { %11749 = vmatpush1.bf16.msra.mxu1 %v22285_v56  ;;  %v18374_v56 = vld [vmem:[#allocation3 + $0x14] ss:$8 sps:$4 sm:$0xff]  }
 0x5dd   :  { %11750 = vmatprep.subr.bf16.mxu1 %v22286_v7 }
 0x5e0   :  { %11751 = vmatpush1.bf16.msra.mxu1 %v22287_v32 }
 0x5e1   :  { %12821 = vmatprep.subr.bf16.mxu1 %v22288_v11 }
 0x5e3   :  { %11769 = vmatmul.mubr.bf16.vlgmr.msra.gmra.mrb[48].mxu1 %v21743_v23 }
 0x5e4   :  { %12822 = vmatpush1.bf16.msra.mxu1 %v22289_v40  ;;  %11778 = vmatprep.mubr.bf16.mxu1 %v22239_v41  ;;  %v18372_v40 = vld [vmem:[#allocation3 + $0x10] ss:$8 sps:$4 sm:$0xff]  }
 0x5e5   :  { %12823 = vmatprep.subr.bf16.mxu1 %v22290_v48  ;;  %v18377_v48 = vld [vmem:[#allocation3 + $0x24] ss:$8 sps:$4 sm:$0xff]  }
 0x5e7   :  { %v12635_v62 = vpop.f32.mrb[56].mxu0 }
 0x5e8   :  { %12824 = vmatpush1.bf16.msra.mxu1 %v22291_v52  ;;  %v12637_v33 = vpop.f32.mrb[57].mxu0  ;;  %v18380_v52 = vld [vmem:[#allocation3 + $0x34] ss:$8 sps:$4 sm:$0xff]  }
 0x5e9   :  { %v12662_v35 = vmax.f32 %v12635_v62, %v12637_v33  ;;  %v12639_v54 = vpop.f32.mrb[58].mxu0  ;;  %12825 = vmatprep.subr.bf16.mxu1 %v22292_v5  ;;  %v18375_v62 = vld [vmem:[#allocation3 + $0x20] ss:$8 sps:$4 sm:$0xff]   ;;  %v18378_v33 = vld [vmem:[#allocation3 + $0x30] ss:$8 sps:$4 sm:$0xff]  }
 0x5ea   :  { %v12641_v16 = vpop.f32.mrb[59].mxu0  ;;  %v18384_v5 = vld [vmem:[#allocation3 + $0x50] ss:$8 sps:$4 sm:$0xff]  }
 0x5eb   :  { %11779 = vmatmul.mubr.bf16.gmra.mrb[52].mxu1 %v11639_v13  ;;  %v12663_v23 = vmax.f32 %v12639_v54, %v12641_v16  ;;  %v12670_v9 = vrot.slane %v12662_v35, 1  ;;  %v18381_v54 = vld [vmem:[#allocation3 + $0x40] ss:$8 sps:$4 sm:$0xff]   ;;  %v18386_v13 = vld [vmem:[#allocation3 + $0x54] ss:$8 sps:$4 sm:$0xff]  }
 0x5ec   :  { %12826 = vmatpush1.bf16.msra.mxu1 %v22293_v21  ;;  %12853 = vmatprep.mubr.bf16.mxu1 %v22239_v41  ;;  %v18389_v16 = vld [vmem:[#allocation3 + $0x64] ss:$8 sps:$4 sm:$0xff]  }
 0x5ed   :  { %v12671_v3 = vrot.slane %v12663_v23, 1  ;;  %12827 = vmatprep.subr.bf16.mxu1 %v22294_v31  ;;  %v18387_v31 = vld [vmem:[#allocation3 + $0x60] ss:$8 sps:$4 sm:$0xff]  }
 0x5ef   :  { %v12672_v17 = vsel %vm395_vm0, %v12670_v9, %v12671_v3  ;;  %v12645_v12 = vpop.f32.mrb[60].mxu0 }
 0x5f0   :  { %v12681_v34 = vmax.f32 %v12662_v35, %v12672_v17  ;;  %12828 = vmatpush1.bf16.msra.mxu1 %v22295_v8  ;;  %v12647_v61 = vpop.f32.mrb[61].mxu0  ;;  %v18383_v35 = vld [vmem:[#allocation3 + $0x44] ss:$8 sps:$4 sm:$0xff]  }
 0x5f1   :  { %v12664_v36 = vmax.f32 %v12645_v12, %v12647_v61  ;;  %v12649_v50 = vpop.f32.mrb[62].mxu0  ;;  %12829 = vmatprep.subr.bf16.mxu1 %v22296_v29  ;;  %v18392_v12 = vld [vmem:[#allocation3 + $0x74] ss:$8 sps:$4 sm:$0xff]  }
 0x5f2   :  { %v12651_v10 = vpop.f32.mrb[63].mxu0  ;;  %v12692_v51 = vadd.f32 %v21724_v38, %v12681_v34 }
 0x5f3   :  { %v12673_v58 = vrot.slane %v12664_v36, 1  ;;  %v12665_v42 = vmax.f32 %v12649_v50, %v12651_v10  ;;  %v18395_v50 = vld [vmem:[#allocation3 + $0x104] ss:$8 sps:$4 sm:$0xff]   ;;  %v21908_v10 = vld [vmem:[%s22179_s4] ss:$0 sm:$0xff] }
 0x5f4   :  { %12830 = vmatpush1.bf16.msra.mxu1 %v22297_v6  ;;  %v12696_v46 = vmax.f32 %v12692_v51, 0.0 }
 0x5f5   :  { %v12674_v43 = vsel %vm395_vm0, %v12671_v3, %v12673_v58  ;;  %v12675_v1 = vrot.slane %v12665_v42, 1  ;;  %12831 = vmatprep.subr.bf16.mxu1 %v18362_v49  ;;  %v10127_v49 = vld [vmem:[%s22179_s4] sm:$0x1] }
 0x5f6   :  { %v12682_v0 = vmax.f32 %v12663_v23, %v12674_v43 }
 0x5f7   :  { %v12676_v14 = vsel %vm395_vm0, %v12673_v58, %v12675_v1  ;;  %v12684_v30 = vmax.f32 %v12665_v42, %v12675_v1  ;;  %v18393_v1 = vld [vmem:[#allocation3 + $0x100] ss:$8 sps:$4 sm:$0xff]  }
 0x5f8   :  { %v12683_v22 = vmax.f32 %v12664_v36, %v12676_v14  ;;  %v12693_v59 = vadd.f32 %v21724_v38, %v12682_v0  ;;  %12832 = vmatpush1.bf16.msra.mxu1 %v18360_v39  ;;  %v18390_v36 = vld [vmem:[#allocation3 + $0x70] ss:$8 sps:$4 sm:$0xff]   ;;  %v18398_v14 = vld [vmem:[#allocation3 + $0x114] ss:$8 sps:$4 sm:$0xff]  }
 0x5f9   :  { %v12695_v27 = vadd.f32 %v21724_v38, %v12684_v30  ;;  %12833 = vmatprep.subr.bf16.mxu1 %v18365_v26 }
 0x5fa   :  { %v12694_v18 = vadd.f32 %v21724_v38, %v12683_v22  ;;  %v12697_v53 = vmax.f32 %v12693_v59, 0.0 }
 0x5fb   :  { %v21873_v2 = vmax.f32 %v12695_v27, 0.0 }
 0x5fc   :  { %v12698_v4 = vmax.f32 %v12694_v18, 0.0  ;;  %v21875_v44 = vpack.c.bf16 %v12697_v53, %v12696_v46  ;;  %12834 = vmatpush1.bf16.msra.mxu1 %v18363_v57  ;;  %v10161_v57 = vld [vmem:[%s22179_s4] sm:$0x1] }
 0x5fd   :  { %12835 = vmatprep.subr.bf16.mxu1 %v18368_v45  ;;  %v10144_v18 = vld [vmem:[%s22179_s4] sm:$0x1] }
 0x5fe   :  { %v13161_v60 = vpack.c.bf16 %v21873_v2, %v12698_v4  ;;  %v21878_v20 = vpack.c.bf16 %v12698_v4, %v12698_v4  ;;  %v12736_v28 = vrot.slane %v21875_v44, 1  ;;  %v13019_v24 = vrot.slane %v21875_v44, 2  ;;  %v18396_v46 = vld [vmem:[#allocation3 + $0x110] ss:$8 sps:$4 sm:$0xff]  }
 0x5ff   :  { %v21882_v38 = vpack.c.bf16 %v12698_v4, %v12697_v53  ;;  %v13179_v37 = vrot.slane %v21875_v44, 3 }
 0x600   :  { %v21884_v19 = vrot.slane %v13161_v60, 3  ;;  %12836 = vmatpush1.bf16.msra.mxu1 %v18366_v15  ;;  %v12737_v55 = vrot.slane %v21878_v20, 1  ;;  %v13020_v25 = vrot.slane %v21878_v20, 2  ;;  %v18401_v15 = vld [vmem:[#allocation3 + $0x124] ss:$8 sps:$4 sm:$0xff]  }
 0x601   :  { %12952 = vmatprep.subr.bf16.mxu1 %v18371_v63 }
 0x602   :  { %v12738_v7 = vsel %vm395_vm0, %v12736_v28, %v12737_v55  ;;  %v21893_v32 = vsel %vm727_vm3, %v13019_v24, %v13020_v25  ;;  %v21897_v11 = vsel %vm1395_vm4, %v13179_v37, %v21884_v19  ;;  %v18399_v24 = vld [vmem:[#allocation3 + $0x120] ss:$8 sps:$4 sm:$0xff]   ;;  %v18404_v37 = vld [vmem:[#allocation3 + $0x134] ss:$8 sps:$4 sm:$0xff]  }
 0x603   :  { %12854 = vmatmul.mubr.bf16.vlgmr.msra.gmra.mrb[56].mxu1 %v12738_v7  ;;  %v18402_v7 = vld [vmem:[#allocation3 + $0x130] ss:$8 sps:$4 sm:$0xff]  }
 0x604   :  { %12953 = vmatpush1.bf16.msra.mxu1 %v18369_v47  ;;  %12863 = vmatprep.mubr.bf16.mxu1 %v22239_v41 }
 0x605   :  { %12954 = vmatprep.subr.bf16.mxu1 %v18374_v56 }
 0x608   :  { %12955 = vmatpush1.bf16.msra.mxu1 %v18372_v40  ;;  %v18407_v40 = vld [vmem:[#allocation3 + $0x144] ss:$8 sps:$4 sm:$0xff]  }
 0x609   :  { %12956 = vmatprep.subr.bf16.mxu1 %v18377_v48  ;;  %v18405_v48 = vld [vmem:[#allocation3 + $0x140] ss:$8 sps:$4 sm:$0xff]  }
 0x60b   :  { %12864 = vmatmul.mubr.bf16.gmra.mrb[60].mxu1 %v12737_v55 }
 0x60c   :  { %12957 = vmatpush1.bf16.msra.mxu1 %v18375_v62  ;;  %12984 = vmatprep.mubr.bf16.mxu1 %v22239_v41  ;;  %v18410_v62 = vld [vmem:[#allocation3 + $0x154] ss:$8 sps:$4 sm:$0xff]  }
 0x60d   :  { %12958 = vmatprep.subr.bf16.mxu1 %v18380_v52  ;;  %v18408_v52 = vld [vmem:[#allocation3 + $0x150] ss:$8 sps:$4 sm:$0xff]  }
 0x610   :  { %12959 = vmatpush1.bf16.msra.mxu1 %v18378_v33  ;;  %v18413_v33 = vld [vmem:[#allocation3 + $0x164] ss:$8 sps:$4 sm:$0xff]  }
 0x611   :  { %12960 = vmatprep.subr.bf16.mxu1 %v18383_v35  ;;  %v18411_v35 = vld [vmem:[#allocation3 + $0x160] ss:$8 sps:$4 sm:$0xff]  }
 0x614   :  { %12961 = vmatpush1.bf16.msra.mxu1 %v18381_v54  ;;  %v18416_v54 = vld [vmem:[#allocation3 + $0x174] ss:$8 sps:$4 sm:$0xff]  }
 0x615   :  { %12962 = vmatprep.subr.bf16.mxu1 %v18386_v13  ;;  %v18414_v13 = vld [vmem:[#allocation3 + $0x170] ss:$8 sps:$4 sm:$0xff]  }
 0x616   :  { %v10087_v23 = vpop.f32.mrb[40].mxu1 }
 0x617   :  { %v10089_v21 = vpop.f32.mrb[41].mxu1 }
 0x618   :  { %v10110_v9 = vmax.f32 %v10087_v23, %v10089_v21  ;;  %v10091_v3 = vpop.f32.mrb[42].mxu1  ;;  %12963 = vmatpush1.bf16.msra.mxu1 %v18384_v5  ;;  %v18419_v5 = vld [vmem:[#allocation3 + $0x184] ss:$8 sps:$4 sm:$0xff]   ;;  %v18422_v23 = vld [vmem:[#allocation3 + $0x194] ss:$8 sps:$4 sm:$0xff]  }
 0x619   :  { %v10093_v17 = vpop.f32.mrb[43].mxu1  ;;  %12964 = vmatprep.subr.bf16.mxu1 %v18389_v16  ;;  %v18417_v16 = vld [vmem:[#allocation3 + $0x180] ss:$8 sps:$4 sm:$0xff]   ;;  %v18420_v21 = vld [vmem:[#allocation3 + $0x190] ss:$8 sps:$4 sm:$0xff]  }
 0x61a   :  { %v10111_v34 = vmax.f32 %v10091_v3, %v10093_v17  ;;  %v10116_v8 = vrot.slane %v10110_v9, 2  ;;  %v18423_v3 = vld [vmem:[#allocation3 + $0x1a0] ss:$8 sps:$4 sm:$0xff]   ;;  %v18426_v17 = vld [vmem:[#allocation3 + $0x1b0] ss:$8 sps:$4 sm:$0xff]  }
 0x61c   :  { %v10117_v61 = vrot.slane %v10111_v34, 2  ;;  %12965 = vmatpush1.bf16.msra.mxu1 %v18387_v31  ;;  %v18428_v31 = vld [vmem:[#allocation3 + $0x1b4] ss:$8 sps:$4 sm:$0xff]  }
 0x61d   :  { %12966 = vmatprep.subr.bf16.mxu1 %v18392_v12  ;;  %v18431_v12 = vld [vmem:[#allocation3 + $0x1c4] ss:$8 sps:$4 sm:$0xff]  }
 0x61e   :  { %v10118_v29 = vsel %vm727_vm3, %v10116_v8, %v10117_v61  ;;  %v10097_v58 = vpop.f32.mrb[44].mxu1  ;;  %v18467_v8 = vld [vmem:[%s22180_s5 + $0x48] sm:$0xff]  }
 0x61f   :  { %v10124_v42 = vmax.f32 %v10110_v9, %v10118_v29  ;;  %v10099_v6 = vpop.f32.mrb[45].mxu1  ;;  %v18425_v9 = vld [vmem:[#allocation3 + $0x1a4] ss:$8 sps:$4 sm:$0xff]   ;;  %v18440_v29 = vld [vmem:[#allocation3 + $0x1f4] ss:$8 sps:$4 sm:$0xff]  }
 0x620   :  { %v10112_v39 = vmax.f32 %v10097_v58, %v10099_v6  ;;  %v10101_v43 = vpop.f32.mrb[46].mxu1  ;;  %12967 = vmatpush1.bf16.msra.mxu1 %v18390_v36  ;;  %v18437_v36 = vld [vmem:[#allocation3 + $0x1e4] ss:$8 sps:$4 sm:$0xff]   ;;  %v18446_v6 = vld [vmem:[#allocation3 + $0x214] ss:$8 sps:$4 sm:$0xff]  }
 0x621   :  { %v10128_v26 = vadd.f32 %v10127_v49, %v10124_v42  ;;  %v10138_v0 = vadd.f32 %v21908_v10, %v10124_v42  ;;  %v10102_v51 = vpop.f32.mrb[47].mxu1  ;;  %13104 = vmatprep.subr.bf16.mxu1 %v18395_v50  ;;  %v18435_v50 = vld [vmem:[#allocation3 + $0x1e0] ss:$8 sps:$4 sm:$0xff]   ;;  %v18438_v49 = vld [vmem:[#allocation3 + $0x1f0] ss:$8 sps:$4 sm:$0xff]  }
 0x622   :  { %v10119_v30 = vrot.slane %v10112_v39, 2  ;;  %v18443_v58 = vld [vmem:[#allocation3 + $0x204] ss:$8 sps:$4 sm:$0xff]   ;;  %v18441_v42 = vld [vmem:[#allocation3 + $0x200] ss:$8 sps:$4 sm:$0xff]  }
 0x623   :  { %v10129_v22 = vmax.f32 %v10128_v26, 0.0  ;;  %v10139_v59 = vmax.f32 %v10138_v0, 0.0  ;;  %12985 = vmatmul.mubr.bf16.vlgmr.msra.gmra.mrb[56].mxu1 %v21875_v44  ;;  %v18449_v43 = vld [vmem:[#allocation3 + $0x224] ss:$8 sps:$4 sm:$0xff]   ;;  %v18452_v26 = vld [vmem:[#allocation3 + $0x234] ss:$8 sps:$4 sm:$0xff]  }
 0x624   :  { %v10120_v27 = vsel %vm727_vm3, %v10117_v61, %v10119_v30  ;;  %v10126_v45 = vmax.f32 %v10112_v39, %v10119_v30  ;;  %13105 = vmatpush1.bf16.msra.mxu1 %v18393_v1  ;;  %12994 = vmatprep.mubr.bf16.mxu1 %v22239_v41  ;;  %v18432_v61 = vld [vmem:[#allocation3 + $0x1d0] ss:$8 sps:$4 sm:$0xff]   ;;  %v18447_v1 = vld [vmem:[#allocation3 + $0x220] ss:$8 sps:$4 sm:$0xff]   ;;  %v18455_v51 = vld [vmem:[#allocation3 + $0x244] ss:$8 sps:$4 sm:$0xff]  }
 0x625   :  { %10130 = vst [vmem:[#allocation2 + $0x5] sm:$0x1] %v10129_v22  ;;  %v10141_v53 = vrot.slane %v10139_v59, 4  ;;  %v10125_v4 = vmax.f32 %v10111_v34, %v10120_v27  ;;  %13106 = vmatprep.subr.bf16.mxu1 %v18398_v14  ;;  %v18466_v34 = vld [vmem:[%s22180_s5] sm:$0xff]   ;;  %v18461_v22 = vld [vmem:[#allocation3 + $0x264] ss:$8 sps:$4 sm:$0xff]   ;;  %v13322_v27 = vpack.c.bf16 %v21873_v2, %v21873_v2 }
 0x626   :  { %v10162_v63 = vadd.f32 %v10161_v57, %v10126_v45  ;;  %v18444_v39 = vld [vmem:[#allocation3 + $0x210] ss:$8 sps:$4 sm:$0xff]   ;;  %v18458_v14 = vld [vmem:[#allocation3 + $0x254] ss:$8 sps:$4 sm:$0xff]   ;;  %v18459_v59 = vld [vmem:[#allocation3 + $0x260] ss:$8 sps:$4 sm:$0xff]  }
 0x627   :  { %10143 = vst [vmem:[#allocation2 + $0xd] sm:$0x1] %v10141_v53  ;;  %v10145_v60 = vadd.f32 %v10144_v18, %v10125_v4  ;;  %v10155_v44 = vadd.f32 %v21908_v10, %v10125_v4  ;;  %v18450_v0 = vld [vmem:[#allocation3 + $0x230] ss:$8 sps:$4 sm:$0xff]   ;;  %v18464_v57 = vld [vmem:[#allocation3 + $0x274] ss:$8 sps:$4 sm:$0xff]  }
 0x628   :  { %v10163_v28 = vmax.f32 %v10162_v63, 0.0  ;;  %13107 = vmatpush1.bf16.msra.mxu1 %v18396_v46  ;;  %v18456_v30 = vld [vmem:[#allocation3 + $0x250] ss:$8 sps:$4 sm:$0xff]  }
 0x629   :  { %v10146_v47 = vmax.f32 %v10145_v60, 0.0  ;;  %v10156_v55 = vmax.f32 %v10155_v44, 0.0  ;;  %13108 = vmatprep.subr.bf16.mxu1 %v18401_v15 }
 0x62a   :  { %10164 = vst [vmem:[#allocation2 + $0x25] sm:$0x1] %v10163_v28 }
 0x62b   :  { %10147 = vst [vmem:[#allocation2 + $0x15] sm:$0x1] %v10146_v47  ;;  %v10158_v56 = vrot.slane %v10156_v55, 4  ;;  %12995 = vmatmul.mubr.bf16.gmra.mrb[60].mxu1 %v21878_v20  ;;  %v18429_v20 = vld [vmem:[#allocation3 + $0x1c0] ss:$8 sps:$4 sm:$0xff]  }
 0x62c   :  { %13109 = vmatpush1.bf16.msra.mxu1 %v18399_v24  ;;  %13136 = vmatprep.mubr.bf16.mxu1 %v22239_v41 }
 0x62d   :  { %10160 = vst [vmem:[#allocation2 + $0x1d] sm:$0x1] %v10158_v56  ;;  %13110 = vmatprep.subr.bf16.mxu1 %v18404_v37 }
 0x630   :  { %13111 = vmatpush1.bf16.msra.mxu1 %v18402_v7 }
 0x631   :  { %13112 = vmatprep.subr.bf16.mxu1 %v18407_v40 }
 0x634   :  { %13113 = vmatpush1.bf16.msra.mxu1 %v18405_v48 }
 0x635   :  { %13114 = vmatprep.subr.bf16.mxu1 %v18410_v62  ;;  %v11844_v62 = vld [vmem:[%s22179_s4] sm:$0x1] }
 0x638   :  { %13115 = vmatpush1.bf16.msra.mxu1 %v18408_v52 }
 0x639   :  { %13116 = vmatprep.subr.bf16.mxu1 %v18413_v33 }
 0x63c   :  { %13117 = vmatpush1.bf16.msra.mxu1 %v18411_v35  ;;  %v11827_v35 = vld [vmem:[%s22179_s4] sm:$0x1] }
 0x63d   :  { %13118 = vmatprep.subr.bf16.mxu1 %v18416_v54 }
 0x640   :  { %13119 = vmatpush1.bf16.msra.mxu1 %v18414_v13 }
 0x641   :  { %13264 = vmatprep.subr.bf16.mxu1 %v18419_v5 }
 0x643   :  { %13137 = vmatmul.mubr.bf16.vlgmr.msra.gmra.mrb[56].mxu1 %v21893_v32  ;;  %v18465_v32 = vld [vmem:[%s22180_s5 + $0x40] sm:$0xff]  }
 0x644   :  { %13265 = vmatpush1.bf16.msra.mxu1 %v18417_v16  ;;  %13146 = vmatprep.mubr.bf16.mxu1 %v22239_v41 }
 0x645   :  { %13266 = vmatprep.subr.bf16.mxu1 %v18422_v23  ;;  %16136 = vmatprep.subr.bf16.mxu0 %v18465_v32  ;;  %v18470_v32 = vld [vmem:[%s22180_s5 + $0x50] sm:$0xff]  }
 0x646   :  { %16137 = vmatpush3.bf16.msra.mxu0 %v18466_v34  ;;  %v18471_v34 = vld [vmem:[%s22180_s5 + $0x80] sm:$0xff]  }
 0x647   :  { %16138 = vmatprep.subr.bf16.mxu0 %v18467_v8  ;;  %v18472_v8 = vld [vmem:[%s22180_s5 + $0x10] sm:$0xff]  }
 0x648   :  { %13267 = vmatpush1.bf16.msra.mxu1 %v18420_v21 }
 0x649   :  { %13268 = vmatprep.subr.bf16.mxu1 %v18425_v9 }
 0x64b   :  { %13147 = vmatmul.mubr.bf16.gmra.mrb[60].mxu1 %v13020_v25  ;;  %v18434_v25 = vld [vmem:[#allocation3 + $0x1d4] ss:$8 sps:$4 sm:$0xff]  }
 0x64c   :  { %13269 = vmatpush1.bf16.msra.mxu1 %v18423_v3  ;;  %13296 = vmatprep.mubr.bf16.mxu1 %v22239_v41 }
 0x64d   :  { %13270 = vmatprep.subr.bf16.mxu1 %v18428_v31 }
 0x650   :  { %13271 = vmatpush1.bf16.msra.mxu1 %v18426_v17  ;;  %v18468_v17 = vld [vmem:[%s22180_s5 + $0x8] sm:$0xff]  }
 0x651   :  { %13272 = vmatprep.subr.bf16.mxu1 %v18431_v12  ;;  %16139 = vmatpush3.bf16.msra.mxu0 %v18468_v17  ;;  %v18469_v12 = vld [vmem:[%s22180_s5 + $0xc0] sm:$0xff]  }
 0x652   :  { %16140 = vmatprep.subr.bf16.mxu0 %v18470_v32 }
 0x654   :  { %13273 = vmatpush1.bf16.msra.mxu1 %v18429_v20  ;;  %v18473_v20 = vld [vmem:[%s22180_s5 + $0xc8] sm:$0xff]  }
 0x655   :  { %13274 = vmatprep.subr.bf16.mxu1 %v18434_v25  ;;  %16141 = vmatpush3.bf16.msra.mxu0 %v18472_v8  ;;  %v18474_v25 = vld [vmem:[%s22180_s5 + $0x58] sm:$0xff]   ;;  %v18495_v8 = vld [vmem:[%s22180_s5 + $0x100] sm:$0xff]  }
 0x656   :  { %16142 = vmatprep.subr.bf16.mxu0 %v18474_v25 }
 0x658   :  { %13275 = vmatpush1.bf16.msra.mxu1 %v18432_v61  ;;  %v18475_v61 = vld [vmem:[%s22180_s5 + $0x88] sm:$0xff]  }
 0x659   :  { %13276 = vmatprep.subr.bf16.mxu1 %v18437_v36  ;;  %v18476_v36 = vld [vmem:[%s22180_s5 + $0x18] sm:$0xff]  }
 0x65a   :  { %16143 = vmatpush3.bf16.msra.mxu0 %v18476_v36 }
 0x65c   :  { %13277 = vmatpush1.bf16.msra.mxu1 %v18435_v50  ;;  %v18477_v50 = vld [vmem:[%s22180_s5 + $0xd0] sm:$0xff]  }
 0x65d   :  { %13278 = vmatprep.subr.bf16.mxu1 %v18440_v29  ;;  %v18478_v29 = vld [vmem:[%s22180_s5 + $0x60] sm:$0xff]  }
 0x65e   :  { %16144 = vmatprep.subr.bf16.mxu0 %v18478_v29  ;;  %v18499_v29 = vld [vmem:[%s22180_s5 + $0x110] sm:$0xff]  }
 0x660   :  { %13279 = vmatpush1.bf16.msra.mxu1 %v18438_v49  ;;  %v18479_v49 = vld [vmem:[%s22180_s5 + $0x90] sm:$0xff]  }
 0x661   :  { %13419 = vmatprep.subr.bf16.mxu1 %v18443_v58  ;;  %v18480_v58 = vld [vmem:[%s22180_s5 + $0x20] sm:$0xff]  }
 0x662   :  { %16145 = vmatpush3.bf16.msra.mxu0 %v18480_v58  ;;  %v18501_v58 = vld [vmem:[%s22180_s5 + $0x120] sm:$0xff]  }
 0x663   :  { %13297 = vmatmul.mubr.bf16.vlgmr.msra.gmra.mrb[56].mxu1 %v21897_v11  ;;  %v18453_v11 = vld [vmem:[#allocation3 + $0x240] ss:$8 sps:$4 sm:$0xff]  }
 0x664   :  { %13420 = vmatpush1.bf16.msra.mxu1 %v18441_v42  ;;  %13306 = vmatprep.mubr.bf16.mxu1 %v22239_v41  ;;  %v18481_v42 = vld [vmem:[%s22180_s5 + $0xd8] sm:$0xff]  }
 0x665   :  { %13421 = vmatprep.subr.bf16.mxu1 %v18446_v6  ;;  %v18482_v6 = vld [vmem:[%s22180_s5 + $0x68] sm:$0xff]  }
 0x666   :  { %16146 = vmatprep.subr.bf16.mxu0 %v18482_v6  ;;  %v18503_v6 = vld [vmem:[%s22180_s5 + $0x130] sm:$0xff]  }
 0x668   :  { %13422 = vmatpush1.bf16.msra.mxu1 %v18444_v39  ;;  %v18483_v39 = vld [vmem:[%s22180_s5 + $0x98] sm:$0xff]  }
 0x669   :  { %13423 = vmatprep.subr.bf16.mxu1 %v18449_v43  ;;  %v18484_v43 = vld [vmem:[%s22180_s5 + $0x28] sm:$0xff]  }
 0x66a   :  { %16147 = vmatpush3.bf16.msra.mxu0 %v18484_v43 }
 0x66b   :  { %13307 = vmatmul.mubr.bf16.gmra.mrb[60].mxu1 %v21884_v19  ;;  %v18462_v19 = vld [vmem:[#allocation3 + $0x270] ss:$8 sps:$4 sm:$0xff]  }
 0x66c   :  { %13424 = vmatpush1.bf16.msra.mxu1 %v18447_v1  ;;  %13451 = vmatprep.mubr.bf16.mxu1 %v22239_v41  ;;  %v18485_v1 = vld [vmem:[%s22180_s5 + $0xe0] sm:$0xff]  }
 0x66d   :  { %13425 = vmatprep.subr.bf16.mxu1 %v18452_v26  ;;  %v18486_v26 = vld [vmem:[%s22180_s5 + $0x70] sm:$0xff]  }
 0x66e   :  { %16148 = vmatprep.subr.bf16.mxu0 %v18486_v26  ;;  %v18505_v26 = vld [vmem:[%s22182_s7] sm:$0xff]  }
 0x670   :  { %13426 = vmatpush1.bf16.msra.mxu1 %v18450_v0  ;;  %v18487_v0 = vld [vmem:[%s22180_s5 + $0xa0] sm:$0xff]  }
 0x671   :  { %13427 = vmatprep.subr.bf16.mxu1 %v18455_v51  ;;  %v18488_v51 = vld [vmem:[%s22180_s5 + $0x30] sm:$0xff]  }
 0x672   :  { %16149 = vmatpush3.bf16.msra.mxu0 %v18488_v51  ;;  %v18507_v51 = vld [vmem:[%s22182_s7 + $0x10] sm:$0xff]  }
 0x674   :  { %13428 = vmatpush1.bf16.msra.mxu1 %v18453_v11  ;;  %v18489_v11 = vld [vmem:[%s22180_s5 + $0xe8] sm:$0xff]  }
 0x675   :  { %13429 = vmatprep.subr.bf16.mxu1 %v18458_v14  ;;  %v18490_v14 = vld [vmem:[%s22180_s5 + $0x78] sm:$0xff]  }
 0x676   :  { %16150 = vmatprep.subr.bf16.mxu0 %v18490_v14  ;;  %v18509_v14 = vld [vmem:[%s22182_s7 + $0x20] sm:$0xff]  }
 0x678   :  { %13430 = vmatpush1.bf16.msra.mxu1 %v18456_v30  ;;  %v18491_v30 = vld [vmem:[%s22180_s5 + $0xa8] sm:$0xff]  }
 0x679   :  { %13431 = vmatprep.subr.bf16.mxu1 %v18461_v22  ;;  %v18492_v22 = vld [vmem:[%s22180_s5 + $0x38] sm:$0xff]  }
 0x67a   :  { %16151 = vmatpush3.bf16.msra.mxu0 %v18492_v22  ;;  %v18511_v22 = vld [vmem:[%s22182_s7 + $0x30] sm:$0xff]  }
 0x67c   :  { %13432 = vmatpush1.bf16.msra.mxu1 %v18459_v59  ;;  %v18493_v59 = vld [vmem:[%s22180_s5 + $0xf0] sm:$0xff]  }
 0x67d   :  { %13433 = vmatprep.subr.bf16.mxu1 %v18464_v57  ;;  %v18494_v57 = vld [vmem:[%s22180_s5 + $0xb0] sm:$0xff]  }
 0x680   :  { %13434 = vmatpush1.bf16.msra.mxu1 %v18462_v19  ;;  %v18633_v19 = vmov 0.0  }
 0x681   :  { %16158 = vmatprep.subr.bf16.mxu1 %v18469_v12  ;;  %16207 = vmatprep.subr.bf16.mxu0 %v18633_v19 }
 0x683   :  { %13452 = vmatmul.mubr.bf16.vlgmr.msra.gmra.mrb[56].mxu1 %v21882_v38  ;;  %v11810_v38 = vld [vmem:[%s22179_s4] sm:$0x1] }
 0x684   :  { %13461 = vmatprep.mubr.bf16.mxu1 %v22239_v41  ;;  %16159 = vmatpush3.bf16.msra.mxu1 %v18471_v34 }
 0x685   :  { %16160 = vmatprep.subr.bf16.mxu1 %v18473_v20 }
 0x688   :  { %16161 = vmatpush3.bf16.msra.mxu1 %v18475_v61 }
 0x689   :  { %16162 = vmatprep.subr.bf16.mxu1 %v18477_v50 }
 0x68b   :  { %13462 = vmatmul.mubr.bf16.gmra.mrb[60].mxu1 %v13322_v27  ;;  %v18496_v27 = vld [vmem:[%s22180_s5 + $0xf8] sm:$0xff]  }
 0x68c   :  { %16163 = vmatpush3.bf16.msra.mxu1 %v18479_v49  ;;  %v18500_v49 = vld [vmem:[%s22180_s5 + $0x118] sm:$0xff]  }
 0x68d   :  { %16164 = vmatprep.subr.bf16.mxu1 %v18481_v42  ;;  %v18502_v42 = vld [vmem:[%s22180_s5 + $0x128] sm:$0xff]  }
 0x690   :  { %16165 = vmatpush3.bf16.msra.mxu1 %v18483_v39  ;;  %v18504_v39 = vld [vmem:[%s22180_s5 + $0x138] sm:$0xff]  }
 0x691   :  { %16166 = vmatprep.subr.bf16.mxu1 %v18485_v1 }
 0x694   :  { %16167 = vmatpush3.bf16.msra.mxu1 %v18487_v0  ;;  %v18506_v0 = vld [vmem:[%s22182_s7 + $0x8] sm:$0xff]  }
 0x695   :  { %16168 = vmatprep.subr.bf16.mxu1 %v18489_v11  ;;  %v18508_v11 = vld [vmem:[%s22182_s7 + $0x18] sm:$0xff]  }
 0x698   :  { %16169 = vmatpush3.bf16.msra.mxu1 %v18491_v30  ;;  %v18510_v30 = vld [vmem:[%s22182_s7 + $0x28] sm:$0xff]  }
 0x699   :  { %16170 = vmatprep.subr.bf16.mxu1 %v18493_v59  ;;  %v18512_v59 = vld [vmem:[%s22182_s7 + $0x38] sm:$0xff]  }
 0x69c   :  { %16171 = vmatpush3.bf16.msra.mxu1 %v18494_v57  ;;  %v18513_v57 = vld [vmem:[%s22184_s9] sm:$0xff]  }
 0x69d   :  { %16172 = vmatprep.subr.bf16.mxu1 %v18496_v27  ;;  %v18514_v27 = vld [vmem:[%s22184_s9 + $0x8] sm:$0xff]  }
 0x6b6   :  { %v11770_v45 = vpop.f32.mrb[48].mxu1 }
 0x6b7   :  { %v11772_v18 = vpop.f32.mrb[49].mxu1 }
 0x6b8   :  { %v11793_v46 = vmax.f32 %v11770_v45, %v11772_v18  ;;  %v11774_v53 = vpop.f32.mrb[50].mxu1  ;;  %v18497_v45 = vld [vmem:[%s22180_s5 + $0xb8] sm:$0xff]  }
 0x6b9   :  { %v11776_v4 = vpop.f32.mrb[51].mxu1  ;;  %16173 = vmatpush3.bf16.msra.mxu1 %v18497_v45  ;;  %v18515_v45 = vld [vmem:[%s22184_s9 + $0x10] sm:$0xff]  }
 0x6ba   :  { %v11794_v15 = vmax.f32 %v11774_v53, %v11776_v4  ;;  %v11799_v63 = vrot.slane %v11793_v46, 2  ;;  %16227 = vmatprep.subr.bf16.mxu1 %v18633_v19 }
 0x6bc   :  { %v11800_v60 = vrot.slane %v11794_v15, 2 }
 0x6be   :  { %v11801_v44 = vsel %vm727_vm3, %v11799_v63, %v11800_v60  ;;  %v11780_v28 = vpop.f32.mrb[52].mxu1 }
 0x6bf   :  { %v11807_v41 = vmax.f32 %v11793_v46, %v11801_v44  ;;  %v11782_v24 = vpop.f32.mrb[53].mxu1 }
 0x6c0   :  { %v11795_v47 = vmax.f32 %v11780_v28, %v11782_v24  ;;  %v11784_v2 = vpop.f32.mrb[54].mxu1  ;;  %v13493_v28 = vld [vmem:[%s22179_s4] sm:$0x1] }
 0x6c1   :  { %v11811_v55 = vadd.f32 %v11810_v38, %v11807_v41  ;;  %v11821_v37 = vadd.f32 %v21908_v10, %v11807_v41  ;;  %v11785_v56 = vpop.f32.mrb[55].mxu1 }
 0x6c2   :  { %v11802_v7 = vrot.slane %v11795_v47, 2 }
 0x6c3   :  { %v11812_v40 = vmax.f32 %v11811_v55, 0.0  ;;  %v11822_v48 = vmax.f32 %v11821_v37, 0.0 }
 0x6c4   :  { %v11803_v52 = vsel %vm727_vm3, %v11800_v60, %v11802_v7  ;;  %v11809_v33 = vmax.f32 %v11795_v47, %v11802_v7 }
 0x6c5   :  { %11813 = vst [vmem:[#allocation2 + $0x6] sm:$0x1] %v11812_v40  ;;  %v11824_v54 = vrot.slane %v11822_v48, 4  ;;  %v11808_v13 = vmax.f32 %v11794_v15, %v11803_v52  ;;  %v13527_v52 = vld [vmem:[%s22179_s4] sm:$0x1] }
 0x6c6   :  { %v11845_v5 = vadd.f32 %v11844_v62, %v11809_v33 }
 0x6c7   :  { %11826 = vst [vmem:[#allocation2 + $0xe] sm:$0x1] %v11824_v54  ;;  %v11828_v16 = vadd.f32 %v11827_v35, %v11808_v13  ;;  %v11838_v23 = vadd.f32 %v21908_v10, %v11808_v13  ;;  %v13510_v54 = vld [vmem:[%s22179_s4] sm:$0x1] }
 0x6c8   :  { %v11846_v21 = vmax.f32 %v11845_v5, 0.0 }
 0x6c9   :  { %v11829_v9 = vmax.f32 %v11828_v16, 0.0  ;;  %v11839_v3 = vmax.f32 %v11838_v23, 0.0 }
 0x6ca   :  { %11847 = vst [vmem:[#allocation2 + $0x26] sm:$0x1] %v11846_v21 }
 0x6cb   :  { %11830 = vst [vmem:[#allocation2 + $0x16] sm:$0x1] %v11829_v9  ;;  %v11841_v31 = vrot.slane %v11839_v3, 4 }
 0x6cd   :  { %11843 = vst [vmem:[#allocation2 + $0x1e] sm:$0x1] %v11841_v31 }
 0x756   :  { %v13453_v18 = vpop.f32.mrb[56].mxu1 }
 0x757   :  { %v13455_v46 = vpop.f32.mrb[57].mxu1 }
 0x758   :  { %v13476_v53 = vmax.f32 %v13453_v18, %v13455_v46  ;;  %v13457_v4 = vpop.f32.mrb[58].mxu1  ;;  %v18516_v18 = vld [vmem:[%s22184_s9 + $0x18] sm:$0xff]   ;;  %v18517_v46 = vld [vmem:[%s22184_s9 + $0x20] sm:$0xff]  }
 0x759   :  { %v13459_v15 = vpop.f32.mrb[59].mxu1 }
 0x75a   :  { %v13477_v63 = vmax.f32 %v13457_v4, %v13459_v15  ;;  %v13482_v60 = vrot.slane %v13476_v53, 2 }
 0x75c   :  { %v13483_v44 = vrot.slane %v13477_v63, 2 }
 0x75e   :  { %v13484_v38 = vsel %vm727_vm3, %v13482_v60, %v13483_v44  ;;  %v13463_v41 = vpop.f32.mrb[60].mxu1 }
 0x75f   :  { %v13490_v24 = vmax.f32 %v13476_v53, %v13484_v38  ;;  %v13465_v47 = vpop.f32.mrb[61].mxu1  ;;  %v18518_v53 = vld [vmem:[%s22184_s9 + $0x28] sm:$0xff]   ;;  %v16077_v38 = vld [vmem:[%s22181_s6] ss:$0 sm:$0xff] }
 0x760   :  { %v13478_v2 = vmax.f32 %v13463_v41, %v13465_v47  ;;  %v13467_v55 = vpop.f32.mrb[62].mxu1 }
 0x761   :  { %v13494_v37 = vadd.f32 %v13493_v28, %v13490_v24  ;;  %v13504_v56 = vadd.f32 %v21908_v10, %v13490_v24  ;;  %v13468_v7 = vpop.f32.mrb[63].mxu1 }
 0x762   :  { %v13485_v40 = vrot.slane %v13478_v2, 2 }
 0x763   :  { %v13495_v48 = vmax.f32 %v13494_v37, 0.0  ;;  %v13505_v62 = vmax.f32 %v13504_v56, 0.0 }
 0x764   :  { %v13486_v33 = vsel %vm727_vm3, %v13483_v44, %v13485_v40  ;;  %v13492_v35 = vmax.f32 %v13478_v2, %v13485_v40 }
 0x765   :  { %13496 = vst [vmem:[#allocation2 + $0x7] sm:$0x1] %v13495_v48  ;;  %v13507_v13 = vrot.slane %v13505_v62, 4  ;;  %v13491_v5 = vmax.f32 %v13477_v63, %v13486_v33 }
 0x766   :  { %v13528_v16 = vadd.f32 %v13527_v52, %v13492_v35  ;;  %v18519_v35 = vld [vmem:[%s22184_s9 + $0x30] sm:$0xff]  }
 0x767   :  { %13509 = vst [vmem:[#allocation2 + $0xf] sm:$0x1] %v13507_v13  ;;  %v13511_v23 = vadd.f32 %v13510_v54, %v13491_v5  ;;  %v13521_v21 = vadd.f32 %v21908_v10, %v13491_v5  ;;  %v18498_v10 = vld [vmem:[%s22180_s5 + $0x108] sm:$0xff]   ;;  %v18520_v54 = vld [vmem:[%s22184_s9 + $0x38] sm:$0xff]   ;;  %v16118_v13 = vld [vmem:[%s22183_s8] ss:$0 sm:$0xff] }
 0x768   :  { %v13529_v9 = vmax.f32 %v13528_v16, 0.0 }
 0x769   :  { %v13512_v3 = vmax.f32 %v13511_v23, 0.0  ;;  %v13522_v31 = vmax.f32 %v13521_v21, 0.0 }
 0x76a   :  { %13530 = vst [vmem:[#allocation2 + $0x27] sm:$0x1] %v13529_v9 }
 0x76b   :  { %13513 = vst [vmem:[#allocation2 + $0x17] sm:$0x1] %v13512_v3  ;;  %v13524_v17 = vrot.slane %v13522_v31, 4 }
 0x76c   :  { %v13531_v12 = vld [vmem:[#allocation2] sm:$0xff] }
 0x76d   :  { %13526 = vst [vmem:[#allocation2 + $0x1f] sm:$0x1] %v13524_v17  ;;  %v13536_v20 = vpack.c.bf16 %v13531_v12, %v13531_v12 }
 0x76e   :  { %v13532_v32 = vld [vmem:[#allocation2 + $0x8] sm:$0xff] }
 0x76f   :  { %v13537_v34 = vpack.c.bf16 %v13532_v32, %v13532_v32 }
 0x771   :  { %13900 = vmatprep.mubr.bf16.mxu0 %v13537_v34  ;;  %v13535_v43 = vld [vmem:[#allocation2 + $0x20] sm:$0xff] }
 0x772   :  { %13901 = vmatmul.mubr.bf16.vlgmr.msra.gmra.mrb[64].mxu0 %v13536_v20  ;;  %v13533_v25 = vld [vmem:[#allocation2 + $0x10] sm:$0xff]  ;;  %v13540_v1 = vpack.c.bf16 %v13535_v43, %v13535_v43 }
 0x773   :  { %16208 = vmatpush3.bf16.msra.mxu0 %v18495_v8  ;;  %16223 = vmatprep.mubr.msk.bf16.mxu0 %vm18634_vm5, %v18633_v19  ;;  %v13538_v50 = vpack.c.bf16 %v13533_v25, %v13533_v25 }
 0x774   :  { %16209 = vmatprep.subr.bf16.mxu0 %v18633_v19  ;;  %v13534_v61 = vld [vmem:[#allocation2 + $0x18] sm:$0xff] }
 0x775   :  { %v13539_v36 = vpack.c.bf16 %v13534_v61, %v13534_v61 }
 0x777   :  { %16210 = vmatpush3.bf16.msra.mxu0 %v18498_v10  ;;  %13940 = vmatprep.mubr.bf16.mxu1 %v13539_v36 }
 0x778   :  { %13941 = vmatmul.mubr.bf16.vlgmr.msra.gmra.mrb[64].mxu1 %v13538_v50  ;;  %16211 = vmatprep.subr.bf16.mxu0 %v18633_v19 }
 0x779   :  { %16243 = vmatprep.mubr.msk.bf16.mxu1 %vm18634_vm5, %v18633_v19  ;;  %16228 = vmatpush3.bf16.msra.mxu1 %v18505_v26 }
 0x77a   :  { %16229 = vmatprep.subr.bf16.mxu1 %v18633_v19 }
 0x77b   :  { %16212 = vmatpush3.bf16.msra.mxu0 %v18499_v29 }
 0x77c   :  { %16213 = vmatprep.subr.bf16.mxu0 %v18633_v19 }
 0x77d   :  { %16230 = vmatpush3.bf16.msra.mxu1 %v18506_v0 }
 0x77e   :  { %16231 = vmatprep.subr.bf16.mxu1 %v18633_v19 }
 0x77f   :  { %16214 = vmatpush3.bf16.msra.mxu0 %v18500_v49 }
 0x780   :  { %16215 = vmatprep.subr.bf16.mxu0 %v18633_v19 }
 0x781   :  { %16232 = vmatpush3.bf16.msra.mxu1 %v18507_v51 }
 0x782   :  { %16233 = vmatprep.subr.bf16.mxu1 %v18633_v19 }
 0x783   :  { %16216 = vmatpush3.bf16.msra.mxu0 %v18501_v58 }
 0x784   :  { %16217 = vmatprep.subr.bf16.mxu0 %v18633_v19 }
 0x785   :  { %16234 = vmatpush3.bf16.msra.mxu1 %v18508_v11 }
 0x786   :  { %16235 = vmatprep.subr.bf16.mxu1 %v18633_v19 }
 0x787   :  { %16218 = vmatpush3.bf16.msra.mxu0 %v18502_v42 }
 0x788   :  { %16219 = vmatprep.subr.bf16.mxu0 %v18633_v19 }
 0x789   :  { %16236 = vmatpush3.bf16.msra.mxu1 %v18509_v14 }
 0x78a   :  { %16237 = vmatprep.subr.bf16.mxu1 %v18633_v19 }
 0x78b   :  { %16220 = vmatpush3.bf16.msra.mxu0 %v18503_v6 }
 0x78c   :  { %16221 = vmatprep.subr.bf16.mxu0 %v18633_v19 }
 0x78d   :  { %16238 = vmatpush3.bf16.msra.mxu1 %v18510_v30 }
 0x78e   :  { %16239 = vmatprep.subr.bf16.mxu1 %v18633_v19 }
 0x78f   :  { %16222 = vmatpush3.bf16.msra.mxu0 %v18504_v39 }
 0x790   :  { %16247 = vmatprep.subr.bf16.mxu0 %v18633_v19 }
 0x791   :  { %16240 = vmatpush3.bf16.msra.mxu1 %v18511_v22 }
 0x792   :  { %16224 = vmatmul.mubr.bf16.vlgmr.msra.gmra.mrb[68].mxu0 %v13540_v1  ;;  %16241 = vmatprep.subr.bf16.mxu1 %v18633_v19 }
 0x793   :  { %16263 = vmatprep.mubr.msk.bf16.mxu0 %vm18634_vm5, %v18633_v19  ;;  %16248 = vmatpush3.bf16.msra.mxu0 %v18513_v57 }
 0x794   :  { %16249 = vmatprep.subr.bf16.mxu0 %v18633_v19 }
 0x795   :  { %16242 = vmatpush3.bf16.msra.mxu1 %v18512_v59 }
 0x797   :  { %16250 = vmatpush3.bf16.msra.mxu0 %v18514_v27 }
 0x798   :  { %16251 = vmatprep.subr.bf16.mxu0 %v18633_v19 }
 0x79b   :  { %16252 = vmatpush3.bf16.msra.mxu0 %v18515_v45 }
 0x79c   :  { %16253 = vmatprep.subr.bf16.mxu0 %v18633_v19 }
 0x79f   :  { %16254 = vmatpush3.bf16.msra.mxu0 %v18516_v18 }
 0x7a0   :  { %16255 = vmatprep.subr.bf16.mxu0 %v18633_v19 }
 0x7a3   :  { %16256 = vmatpush3.bf16.msra.mxu0 %v18517_v46 }
 0x7a4   :  { %16257 = vmatprep.subr.bf16.mxu0 %v18633_v19 }
 0x7a7   :  { %16258 = vmatpush3.bf16.msra.mxu0 %v18518_v53 }
 0x7a8   :  { %16259 = vmatprep.subr.bf16.mxu0 %v18633_v19 }
 0x7ab   :  { %16260 = vmatpush3.bf16.msra.mxu0 %v18519_v35 }
 0x7ac   :  { %16261 = vmatprep.subr.bf16.mxu0 %v18633_v19  ;;  %v16127_v19 = vld [vmem:[%s22185_s10] ss:$0 sm:$0xff] }
 0x7af   :  { %16262 = vmatpush3.bf16.msra.mxu0 %v18520_v54 }
 0x845   :  { %v16152_v4 = vpop.f32.mrb[64].mxu0 }
 0x846   :  { %v16153_v15 = vpop.f32.mrb[65].mxu0 }
 0x847   :  { %v16154_v63 = vadd.f32 %v16153_v15, %v16152_v4  ;;  %v16155_v60 = vpop.f32.mrb[66].mxu0 }
 0x848   :  { %v16156_v44 = vpop.f32.mrb[67].mxu0 }
 0x849   :  { %v13903_v24 = vadd.f32 %v16154_v63, %v16077_v38 }
 0x84b   :  { %v16174_v28 = vpop.f32.mrb[64].mxu1 }
 0x84c   :  { %v16175_v41 = vpop.f32.mrb[65].mxu1 }
 0x84d   :  { %v16176_v47 = vadd.f32 %v16175_v41, %v16174_v28  ;;  %v16177_v2 = vpop.f32.mrb[66].mxu1 }
 0x84e   :  { %v16178_v55 = vpop.f32.mrb[67].mxu1 }
 0x84f   :  { %v13943_v37 = vadd.f32 %v16176_v47, %v13903_v24 }
 0x865   :  { %v13982_v56 = vpop.f32.mrb[68].mxu0 }
 0x866   :  { %v13983_v7 = vadd.f32 %v13982_v56, %v13943_v37  ;;  %v16225_v40 = vpop.f32.mrb[69].mxu0 }
 0x867   :  { %v13985_v48 = vpop.f32.mrb[70].mxu0 }
 0x868   :  { %v13988_v62 = vmax.f32 %v13983_v7, 0.0  ;;  %v16226_v52 = vpop.f32.mrb[71].mxu0 }
 0x86a   :  { %v13989_v33 = vpack.c.bf16 %v13988_v62, %v13988_v62 }
 0x86c   :  { %16244 = vmatmul.mubr.bf16.vlgmr.msra.gmra.mrb[68].mxu1 %v13989_v33 }
 0x93f   :  { %v14095_v5 = vpop.f32.mrb[68].mxu1 }
 0x940   :  { %v14096_v16 = vadd.f32 %v16118_v13, %v14095_v5  ;;  %v16245_v23 = vpop.f32.mrb[69].mxu1 }
 0x941   :  { %v14098_v21 = vpop.f32.mrb[70].mxu1 }
 0x942   :  { %v14101_v9 = vmax.f32 %v14096_v16, 0.0  ;;  %v16246_v3 = vpop.f32.mrb[71].mxu1 }
 0x944   :  { %v14102_v31 = vpack.c.bf16 %v14101_v9, %v14101_v9 }
 0x946   :  { %16264 = vmatmul.mubr.bf16.vlgmr.msra.gmra.mrb[72].mxu0 %v14102_v31 }
 0xa19   :  { %v14208_v17 = vpop.f32.mrb[72].mxu0 }
 0xa1a   :  { %v14209_v12 = vadd.f32 %v16127_v19, %v14208_v17  ;;  %v16265_v32 = vpop.f32.mrb[73].mxu0 }
 0xa1b   :  { %v14211_v34 = vpop.f32.mrb[74].mxu0 }
 0xa1c   :  { %v16266_v8 = vpop.f32.mrb[75].mxu0  ;;  %v14215_v20 = vsel %vm14214_vm6, %v14209_v12, -inf }
 0xa1d   :  { %14216 = vmax.xlane.f32.xlu0 %v14215_v20 }
 0xaaa   :  { %v14217_v10 = vpop.xlane.xlu0 %14216 }
 0xaab   :  { %v14218_v25 = vsub.f32 %v14209_v12, %v14217_v10 }
 0xaad   :  { %v14219_v61 = vmul.f32 1.442695, %v14218_v25 }
 0xaaf   :  { %18521 = vpow2.f32 %v14219_v61 }
 0xab9   :  { %v18522_v36 = vpop.eup %18521 }
 0xaba   :  { %v14221_v50 = vsel %vm14214_vm6, %v18522_v36, 0.0 }
 0xabb   :  { %14222 = vadd.xlane.f32.xlu0 %v14221_v50 }
 0xb48   :  { %v14223_v29 = vpop.xlane.xlu0 %14222 }
 0xb49   :  { %18523 = vlog2.f32 %v14223_v29 }
 0xb53   :  { %v18524_v49 = vpop.eup %18523 }
 0xb54   :  { %v14225_v58 = vmul.f32 0.6931472, %v18524_v49 }
 0xb56   :  { %v14226_v42 = vsub.f32 %v14218_v25, %v14225_v58 }
 0xb58   :  { %14227 = vst.msk [vmem:[%s22186_s11] sm:$0xff] %vm14214_vm6, %v14226_v42 }
 0xb59   :  { %14232 = vsyncpa [#allocation4], 1 }

</bundles_post_ra>
